<compile_context>
chip_gen: v7x
topology: tpu7x:2x2x1
jax: 0.10.0
libtpu: 0.0.40
codegen_flags: <defaults>
</compile_context>

<pallas_src>
import functools

import jax
import jax.numpy as jnp
from jax import lax
from jax.experimental import pallas as pl
from jax.experimental.pallas import tpu as pltpu


# -----------------------------------------------------------------------------
# Fused kernel: conv1+pool, conv2+pool, conv3+pool, fc  (grid = (batch tiles, fc K tiles))
# -----------------------------------------------------------------------------
def _fused_encoder_kernel(xcol1_ref, w1_ref, w2_ref, w3_ref,
                          se1_ref, so1_ref, se2_ref, so2_ref, se3_ref, so3_ref,
                          wfc_ref, bfc_ref,
                          out_ref,
                          xpad2_ref, xpad3_ref, y2_ref, y3_ref, a3_ref, acc_ref):
    TB, L, KC1 = xcol1_ref.shape
    K2, C1, C2 = w2_ref.shape
    K3, _, C3 = w3_ref.shape
    P1 = xpad2_ref.shape[1] - K2          # pooled length after block 1
    P2 = xpad3_ref.shape[1] - K3          # pooled length after block 2
    P3 = a3_ref.shape[1]                  # pooled length after block 3
    TP = wfc_ref.shape[0]                 # fc positions handled per grid step
    bf16 = jnp.bfloat16
    f32 = jnp.float32

    k = pl.program_id(1)

    @pl.when(k == 0)
    def _encode():
        # ---- block 1: Conv1d(Cin->C1, K1, pad=K1//2, no bias) as one im2col matmul ----
        x1 = xcol1_ref[...].reshape(TB * L, KC1)                       # bf16
        y1 = jnp.dot(x1, w1_ref[...], preferred_element_type=f32)      # (TB*L, C1)
        # ReLU + MaxPool(2): max(relu(a), relu(b)) == relu(max(a, b)); the even/odd
        # decimation is done with 0/1 selection matmuls (block-diagonal over the batch
        # tile) to avoid strided sublane accesses / relayouts.
        y1b = y1.astype(bf16)
        a1 = jnp.maximum(
            jnp.maximum(jnp.dot(se1_ref[...], y1b, preferred_element_type=f32),
                        jnp.dot(so1_ref[...], y1b, preferred_element_type=f32)), 0.0)
        xpad2_ref[...] = jnp.zeros_like(xpad2_ref)
        xpad2_ref[:, K2 // 2:K2 // 2 + P1, :] = a1.reshape(TB, P1, C1)

        # ---- block 2: per-tap MXU dots, accumulated in VMEM scratch ----
        y2_ref[...] = jnp.zeros_like(y2_ref)
        for m in range(K2):
            xm = xpad2_ref[:, m:m + P1, :].reshape(TB * P1, C1).astype(bf16)
            y2_ref[...] += jnp.dot(xm, w2_ref[m], preferred_element_type=f32)
        y2b = y2_ref[...].astype(bf16)
        a2 = jnp.maximum(
            jnp.maximum(jnp.dot(se2_ref[...], y2b, preferred_element_type=f32),
                        jnp.dot(so2_ref[...], y2b, preferred_element_type=f32)), 0.0)
        xpad3_ref[...] = jnp.zeros_like(xpad3_ref)
        xpad3_ref[:, K3 // 2:K3 // 2 + P2, :] = a2.reshape(TB, P2, C2)

        # ---- block 3 ----
        y3_ref[...] = jnp.zeros_like(y3_ref)
        for m in range(K3):
            xm = xpad3_ref[:, m:m + P2, :].reshape(TB * P2, C2).astype(bf16)
            y3_ref[...] += jnp.dot(xm, w3_ref[m], preferred_element_type=f32)
        y3b = y3_ref[...].astype(bf16)
        a3 = jnp.maximum(
            jnp.maximum(jnp.dot(se3_ref[...], y3b, preferred_element_type=f32),
                        jnp.dot(so3_ref[...], y3b, preferred_element_type=f32)), 0.0)
        a3_ref[...] = a3.reshape(TB, P3, C3)

        acc_ref[...] = jnp.zeros_like(acc_ref)

    # ---- fc: flatten @ W + b, weight K-streamed over grid axis 1 ----
    blk = a3_ref[:, pl.ds(k * TP, TP), :]                               # (TB, TP, C3) f32
    for p in range(TP):
        acc_ref[...] += jnp.dot(blk[:, p, :].astype(bf16), wfc_ref[p],
                                preferred_element_type=f32)

    @pl.when(k == pl.num_programs(1) - 1)
    def _finish():
        out_ref[...] = (acc_ref[...] + bfc_ref[...]).astype(out_ref.dtype)


# -----------------------------------------------------------------------------
# One-time parameter preprocessing (hoisted out of the forward pass).
# -----------------------------------------------------------------------------
def _pool_select_mats(tb, pool_len, dtype=jnp.bfloat16):
    """Block-diagonal 0/1 matrices selecting even / odd rows of a (tb*2P, C) slab."""
    lc = 2 * pool_len
    rows = jnp.arange(tb * pool_len)
    cols = jnp.arange(tb * lc)
    even = (rows // pool_len) * lc + 2 * (rows % pool_len)
    se = (cols[None, :] == even[:, None]).astype(dtype)
    so = (cols[None, :] == (even + 1)[:, None]).astype(dtype)
    return se, so


def prepare_params(w1, w2, w3, w_fc, b_fc, *, window, tb):
    """w1/w2/w3 in PyTorch (Cout, Cin, K) layout; w_fc (80, 256*(window//8)); b_fc (80,)."""
    C1, Cin, K1 = w1.shape
    C2, _, K2 = w2.shape
    C3, _, K3 = w3.shape
    n_out = w_fc.shape[0]
    P1, P2, P3 = window // 2, window // 4, window // 8
    assert w_fc.shape[1] == C3 * P3

    w1c = jnp.transpose(w1, (2, 1, 0)).reshape(K1 * Cin, C1).astype(jnp.bfloat16)
    w2c = jnp.transpose(w2, (2, 1, 0)).astype(jnp.bfloat16)            # (K2, C1, C2)
    w3c = jnp.transpose(w3, (2, 1, 0)).astype(jnp.bfloat16)            # (K3, C2, C3)
    # PyTorch flattens (B, C3, P3) as c*P3 + p; our layout flattens as (p, c).
    wfc = jnp.transpose(w_fc.reshape(n_out, C3, P3), (2, 1, 0))        # (P3, C3, n_out)
    wfc = jnp.pad(wfc, ((0, 0), (0, 0), (0, 128 - n_out))).astype(jnp.bfloat16)
    bfc = jnp.pad(b_fc, (0, 128 - n_out)).reshape(1, 128).astype(jnp.float32)

    params = {"w1c": w1c, "w2c": w2c, "w3c": w3c, "wfc": wfc, "bfc": bfc}
    for name, pool_len in (("1", P1), ("2", P2), ("3", P3)):
        se, so = _pool_select_mats(tb, pool_len)
        params["se" + name] = se
        params["so" + name] = so
    return params


# -----------------------------------------------------------------------------
# Forward pass: wrapper-side input prep + a single pallas_call.
# -----------------------------------------------------------------------------
def ecg_encoder_forward(x, params, *, tb=8, n_out=80):
    """x: (B, Cin, window) in PyTorch NCL layout.  Returns h: (B, n_out)."""
    B, Cin, L = x.shape
    assert L % 64 == 0, "fused kernel assumes window % 64 == 0"
    w1c, w2c, w3c = params["w1c"], params["w2c"], params["w3c"]
    wfc, bfc = params["wfc"], params["bfc"]
    K1 = w1c.shape[0] // Cin
    C1 = w1c.shape[1]
    K2, _, C2 = w2c.shape
    K3, _, C3 = w3c.shape
    P1, P2, P3 = L // 2, L // 4, L // 8
    assert wfc.shape[0] == P3

    Bp = -(-B // tb) * tb
    if Bp != B:
        x = jnp.pad(x, ((0, Bp - B), (0, 0), (0, 0)))

    # conv1 im2col, channels-last, bf16 -> lane-dense (Bp, L, K1*Cin) slab.
    xb = jnp.transpose(x, (0, 2, 1))                                   # (Bp, L, Cin)
    xp = jnp.pad(xb, ((0, 0), (K1 // 2, K1 // 2), (0, 0)))
    cols = jnp.stack([xp[:, m:m + L, :] for m in range(K1)], axis=2)   # (Bp, L, K1, Cin)
    xcol1 = cols.reshape(Bp, L, K1 * Cin).astype(jnp.bfloat16)

    TP = next(t for t in (8, 4, 2, 1) if P3 % t == 0)                  # fc positions / k-step
    grid = (Bp // tb, P3 // TP)

    out = pl.pallas_call(
        _fused_encoder_kernel,
        out_shape=jax.ShapeDtypeStruct((Bp, 128), jnp.float32),
        grid=grid,
        in_specs=[
            pl.BlockSpec((tb, L, K1 * Cin), lambda i, k: (i, 0, 0)),   # conv1 im2col
            pl.BlockSpec((K1 * Cin, C1), lambda i, k: (0, 0)),         # w1 (resident)
            pl.BlockSpec((K2, C1, C2), lambda i, k: (0, 0, 0)),        # w2 (resident)
            pl.BlockSpec((K3, C2, C3), lambda i, k: (0, 0, 0)),        # w3 (resident)
            pl.BlockSpec((tb * P1, tb * L), lambda i, k: (0, 0)),      # pool-select 1 even
            pl.BlockSpec((tb * P1, tb * L), lambda i, k: (0, 0)),      # pool-select 1 odd
            pl.BlockSpec((tb * P2, tb * P1), lambda i, k: (0, 0)),     # pool-select 2 even
            pl.BlockSpec((tb * P2, tb * P1), lambda i, k: (0, 0)),     # pool-select 2 odd
            pl.BlockSpec((tb * P3, tb * P2), lambda i, k: (0, 0)),     # pool-select 3 even
            pl.BlockSpec((tb * P3, tb * P2), lambda i, k: (0, 0)),     # pool-select 3 odd
            pl.BlockSpec((TP, C3, 128), lambda i, k: (k, 0, 0)),       # fc weight, K-streamed
            pl.BlockSpec((1, 128), lambda i, k: (0, 0)),               # fc bias
        ],
        out_specs=pl.BlockSpec((tb, 128), lambda i, k: (i, 0)),
        scratch_shapes=[
            pltpu.VMEM((tb, P1 + K2, C1), jnp.float32),                # padded act -> conv2
            pltpu.VMEM((tb, P2 + K3, C2), jnp.float32),                # padded act -> conv3
            pltpu.VMEM((tb * P1, C2), jnp.float32),                    # conv2 accumulator
            pltpu.VMEM((tb * P2, C3), jnp.float32),                    # conv3 accumulator
            pltpu.VMEM((tb, P3, C3), jnp.float32),                     # flattened fc input
            pltpu.VMEM((tb, 128), jnp.float32),                        # fc accumulator
        ],
        compiler_params=pltpu.CompilerParams(
            dimension_semantics=("parallel", "arbitrary"),
            vmem_limit_bytes=32 * 1024 * 1024),
    )(xcol1, w1c, w2c, w3c,
      params["se1"], params["so1"], params["se2"], params["so2"],
      params["se3"], params["so3"], wfc, bfc)
    return out[:B, :n_out]


# -----------------------------------------------------------------------------
# Plain-JAX reference replicating the PyTorch forward exactly (f32).
# -----------------------------------------------------------------------------
def ref_forward(x_ncl, w1, w2, w3, w_fc, b_fc):
    def block(y, w, pad):
        y = lax.conv_general_dilated(
            y, w, window_strides=(1,), padding=[(pad, pad)],
            dimension_numbers=("NCH", "OIH", "NCH"),
            precision=lax.Precision.HIGHEST)
        y = jnp.maximum(y, 0.0)
        return lax.reduce_window(y, -jnp.inf, lax.max, (1, 1, 2), (1, 1, 2), "VALID")

    y = block(x_ncl, w1, w1.shape[2] // 2)
    y = block(y, w2, w2.shape[2] // 2)
    y = block(y, w3, w3.shape[2] // 2)
    yf = y.reshape(y.shape[0], -1)
    return jnp.dot(yf, w_fc.T, precision=lax.Precision.HIGHEST) + b_fc


if __name__ == "__main__":
    B, Cin, window, TB = 32, 1, 64, 8          # small shapes consistent with the module
    key = jax.random.PRNGKey(0)
    kx, k1, k2, k3, k4, k5 = jax.random.split(key, 6)
    x = jax.random.normal(kx, (B, Cin, window), jnp.float32)

    def u(k, shape, fan_in):                   # mimics nn.Conv1d / nn.Linear default init
        lim = 1.0 / (fan_in ** 0.5)
        return jax.random.uniform(k, shape, jnp.float32, -lim, lim)

    w1 = u(k1, (64, Cin, 32), Cin * 32)
    w2 = u(k2, (128, 64, 16), 64 * 16)
    w3 = u(k3, (256, 128, 8), 128 * 8)
    feat = 256 * (window // 8)
    w_fc = u(k4, (80, feat), feat)
    b_fc = u(k5, (80,), feat)

    params = prepare_params(w1, w2, w3, w_fc, b_fc, window=window, tb=TB)
    fwd = jax.jit(functools.partial(ecg_encoder_forward, tb=TB, n_out=80))

    h = fwd(x, params)
    jax.block_until_ready(h)

    h_ref = ref_forward(x, w1, w2, w3, w_fc, b_fc)
    assert h.shape == (B, 80)
    err = float(jnp.max(jnp.abs(h - h_ref)))
    assert err < 2e-2, f"max |err| = {err}"    # bf16 MXU operands vs f32 reference

    print("KERNEL_OK")
</pallas_src>

<mosaic_0001>
module attributes {stable_mosaic.version = 11 : i64} {
  func.func @_fused_encoder_kernel(%arg0: i32, %arg1: i32, %arg2: memref<8x64x32xbf16, #tpu.memory_space<vmem>>, %arg3: memref<32x64xbf16, #tpu.memory_space<vmem>>, %arg4: memref<16x64x128xbf16, #tpu.memory_space<vmem>>, %arg5: memref<8x128x256xbf16, #tpu.memory_space<vmem>>, %arg6: memref<256x512xbf16, #tpu.memory_space<vmem>>, %arg7: memref<256x512xbf16, #tpu.memory_space<vmem>>, %arg8: memref<128x256xbf16, #tpu.memory_space<vmem>>, %arg9: memref<128x256xbf16, #tpu.memory_space<vmem>>, %arg10: memref<64x128xbf16, #tpu.memory_space<vmem>>, %arg11: memref<64x128xbf16, #tpu.memory_space<vmem>>, %arg12: memref<8x256x128xbf16, #tpu.memory_space<vmem>>, %arg13: memref<1x128xf32, #tpu.memory_space<vmem>>, %arg14: memref<8x128xf32, #tpu.memory_space<vmem>>, %arg15: memref<8x48x64xf32, #tpu.memory_space<vmem>>, %arg16: memref<8x24x128xf32, #tpu.memory_space<vmem>>, %arg17: memref<256x128xf32, #tpu.memory_space<vmem>>, %arg18: memref<128x256xf32, #tpu.memory_space<vmem>>, %arg19: memref<8x8x256xf32, #tpu.memory_space<vmem>>, %arg20: memref<8x128xf32, #tpu.memory_space<vmem>>) attributes {dimension_semantics = [#tpu.dimension_semantics<parallel>, #tpu.dimension_semantics<arbitrary>], iteration_bounds = array<i64: 4, 1>, scalar_prefetch = 0 : i64, scratch_operands = 6 : i64, tpu.core_type = #tpu.core_type<tc>, window_params = [{transform_indices = @transform_0, window_bounds = array<i64: 8, 64, 32>}, {pipeline_mode = #tpu.pipeline_mode<synchronous>, transform_indices = @transform_1, window_bounds = array<i64: 32, 64>}, {pipeline_mode = #tpu.pipeline_mode<synchronous>, transform_indices = @transform_2, window_bounds = array<i64: 16, 64, 128>}, {pipeline_mode = #tpu.pipeline_mode<synchronous>, transform_indices = @transform_3, window_bounds = array<i64: 8, 128, 256>}, {pipeline_mode = #tpu.pipeline_mode<synchronous>, transform_indices = @transform_4, window_bounds = array<i64: 256, 512>}, {pipeline_mode = #tpu.pipeline_mode<synchronous>, transform_indices = @transform_5, window_bounds = array<i64: 256, 512>}, {pipeline_mode = #tpu.pipeline_mode<synchronous>, transform_indices = @transform_6, window_bounds = array<i64: 128, 256>}, {pipeline_mode = #tpu.pipeline_mode<synchronous>, transform_indices = @transform_7, window_bounds = array<i64: 128, 256>}, {pipeline_mode = #tpu.pipeline_mode<synchronous>, transform_indices = @transform_8, window_bounds = array<i64: 64, 128>}, {pipeline_mode = #tpu.pipeline_mode<synchronous>, transform_indices = @transform_9, window_bounds = array<i64: 64, 128>}, {transform_indices = @transform_10, window_bounds = array<i64: 8, 256, 128>}, {pipeline_mode = #tpu.pipeline_mode<synchronous>, transform_indices = @transform_11, window_bounds = array<i64: 1, 128>}, {transform_indices = @transform_12, window_bounds = array<i64: 8, 128>}]} {
    %c0_i32 = arith.constant 0 : i32
    %0 = arith.cmpi eq, %arg1, %c0_i32 : i32
    %1 = arith.extui %0 : i1 to i32
    %c0_i32_0 = arith.constant 0 : i32
    %2 = arith.cmpi ne, %1, %c0_i32_0 : i32
    scf.if %2 {
      %c0_60 = arith.constant 0 : index
      %c0_61 = arith.constant 0 : index
      %c0_62 = arith.constant 0 : index
      %81 = vector.load %arg2[%c0_60, %c0_61, %c0_62] : memref<8x64x32xbf16, #tpu.memory_space<vmem>>, vector<8x64x32xbf16>
      %82 = vector.shape_cast %81 : vector<8x64x32xbf16> to vector<512x32xbf16>
      %c0_63 = arith.constant 0 : index
      %c0_64 = arith.constant 0 : index
      %83 = vector.load %arg3[%c0_63, %c0_64] : memref<32x64xbf16, #tpu.memory_space<vmem>>, vector<32x64xbf16>
      %cst_65 = arith.constant dense<0.000000e+00> : vector<512x64xf32>
      %84 = tpu.matmul %82, %83, %cst_65 {dimension_numbers = #tpu.dot_dimension_numbers<[1], [0], [0], [1], [0, 0, 1, 1], [], []>} : vector<512x32xbf16>, vector<32x64xbf16>, vector<512x64xf32> -> vector<512x64xf32>
      %85 = arith.truncf %84 : vector<512x64xf32> to vector<512x64xbf16>
      %c0_66 = arith.constant 0 : index
      %c0_67 = arith.constant 0 : index
      %86 = vector.load %arg6[%c0_66, %c0_67] : memref<256x512xbf16, #tpu.memory_space<vmem>>, vector<256x512xbf16>
      %cst_68 = arith.constant dense<0.000000e+00> : vector<256x64xf32>
      %87 = tpu.matmul %86, %85, %cst_68 {dimension_numbers = #tpu.dot_dimension_numbers<[1], [0], [0], [1], [0, 0, 1, 1], [], []>} : vector<256x512xbf16>, vector<512x64xbf16>, vector<256x64xf32> -> vector<256x64xf32>
      %c0_69 = arith.constant 0 : index
      %c0_70 = arith.constant 0 : index
      %88 = vector.load %arg7[%c0_69, %c0_70] : memref<256x512xbf16, #tpu.memory_space<vmem>>, vector<256x512xbf16>
      %cst_71 = arith.constant dense<0.000000e+00> : vector<256x64xf32>
      %89 = tpu.matmul %88, %85, %cst_71 {dimension_numbers = #tpu.dot_dimension_numbers<[1], [0], [0], [1], [0, 0, 1, 1], [], []>} : vector<256x512xbf16>, vector<512x64xbf16>, vector<256x64xf32> -> vector<256x64xf32>
      %90 = arith.maximumf %87, %89 : vector<256x64xf32>
      %cst_72 = arith.constant 0.000000e+00 : f32
      %91 = vector.broadcast %cst_72 : f32 to vector<256x64xf32>
      %92 = arith.maximumf %90, %91 : vector<256x64xf32>
      %cst_73 = arith.constant 0.000000e+00 : f32
      %93 = vector.broadcast %cst_73 : f32 to vector<8x48x64xf32>
      %c0_74 = arith.constant 0 : index
      %c0_75 = arith.constant 0 : index
      %c0_76 = arith.constant 0 : index
      %94 = vector.load %arg15[%c0_74, %c0_75, %c0_76] : memref<8x48x64xf32, #tpu.memory_space<vmem>>, vector<8x48x64xf32>
      tpu.vector_store %arg15[%c0_74, %c0_75, %c0_76], %93 {strides = array<i32>} : memref<8x48x64xf32, #tpu.memory_space<vmem>>, vector<8x48x64xf32>,
      %95 = vector.shape_cast %92 : vector<256x64xf32> to vector<8x32x64xf32>
      %c0_77 = arith.constant 0 : index
      %c8 = arith.constant 8 : index
      %c0_78 = arith.constant 0 : index
      %96 = vector.load %arg15[%c0_77, %c8, %c0_78] : memref<8x48x64xf32, #tpu.memory_space<vmem>>, vector<8x32x64xf32>
      tpu.vector_store %arg15[%c0_77, %c8, %c0_78], %95 {strides = array<i32>} : memref<8x48x64xf32, #tpu.memory_space<vmem>>, vector<8x32x64xf32>,
      %cst_79 = arith.constant 0.000000e+00 : f32
      %97 = vector.broadcast %cst_79 : f32 to vector<256x128xf32>
      %c0_80 = arith.constant 0 : index
      %c0_81 = arith.constant 0 : index
      %98 = vector.load %arg17[%c0_80, %c0_81] : memref<256x128xf32, #tpu.memory_space<vmem>>, vector<256x128xf32>
      tpu.vector_store %arg17[%c0_80, %c0_81], %97 {strides = array<i32>} : memref<256x128xf32, #tpu.memory_space<vmem>>, vector<256x128xf32>,
      %c0_82 = arith.constant 0 : index
      %c0_83 = arith.constant 0 : index
      %c0_84 = arith.constant 0 : index
      %99 = vector.load %arg15[%c0_82, %c0_83, %c0_84] : memref<8x48x64xf32, #tpu.memory_space<vmem>>, vector<8x32x64xf32>
      %100 = vector.shape_cast %99 : vector<8x32x64xf32> to vector<256x64xf32>
      %101 = arith.truncf %100 : vector<256x64xf32> to vector<256x64xbf16>
      %c0_85 = arith.constant 0 : index
      %c0_86 = arith.constant 0 : index
      %102 = vector.load %arg17[%c0_85, %c0_86] : memref<256x128xf32, #tpu.memory_space<vmem>>, vector<256x128xf32>
      %c0_87 = arith.constant 0 : index
      %c0_88 = arith.constant 0 : index
      %c0_89 = arith.constant 0 : index
      %103 = vector.load %arg4[%c0_87, %c0_88, %c0_89] : memref<16x64x128xbf16, #tpu.memory_space<vmem>>, vector<1x64x128xbf16>
      %104 = vector.shape_cast %103 : vector<1x64x128xbf16> to vector<64x128xbf16>
      %cst_90 = arith.constant dense<0.000000e+00> : vector<256x128xf32>
      %105 = tpu.matmul %101, %104, %cst_90 {dimension_numbers = #tpu.dot_dimension_numbers<[1], [0], [0], [1], [0, 0, 1, 1], [], []>} : vector<256x64xbf16>, vector<64x128xbf16>, vector<256x128xf32> -> vector<256x128xf32>
      %106 = arith.addf %102, %105 : vector<256x128xf32>
      %c0_91 = arith.constant 0 : index
      %c0_92 = arith.constant 0 : index
      %107 = vector.load %arg17[%c0_91, %c0_92] : memref<256x128xf32, #tpu.memory_space<vmem>>, vector<256x128xf32>
      tpu.vector_store %arg17[%c0_91, %c0_92], %106 {strides = array<i32>} : memref<256x128xf32, #tpu.memory_space<vmem>>, vector<256x128xf32>,
      %c0_93 = arith.constant 0 : index
      %c1_94 = arith.constant 1 : index
      %c0_95 = arith.constant 0 : index
      %108 = vector.load %arg15[%c0_93, %c1_94, %c0_95] : memref<8x48x64xf32, #tpu.memory_space<vmem>>, vector<8x32x64xf32>
      %109 = vector.shape_cast %108 : vector<8x32x64xf32> to vector<256x64xf32>
      %110 = arith.truncf %109 : vector<256x64xf32> to vector<256x64xbf16>
      %c0_96 = arith.constant 0 : index
      %c0_97 = arith.constant 0 : index
      %111 = vector.load %arg17[%c0_96, %c0_97] : memref<256x128xf32, #tpu.memory_space<vmem>>, vector<256x128xf32>
      %c1_98 = arith.constant 1 : index
      %c0_99 = arith.constant 0 : index
      %c0_100 = arith.constant 0 : index
      %112 = vector.load %arg4[%c1_98, %c0_99, %c0_100] : memref<16x64x128xbf16, #tpu.memory_space<vmem>>, vector<1x64x128xbf16>
      %113 = vector.shape_cast %112 : vector<1x64x128xbf16> to vector<64x128xbf16>
      %cst_101 = arith.constant dense<0.000000e+00> : vector<256x128xf32>
      %114 = tpu.matmul %110, %113, %cst_101 {dimension_numbers = #tpu.dot_dimension_numbers<[1], [0], [0], [1], [0, 0, 1, 1], [], []>} : vector<256x64xbf16>, vector<64x128xbf16>, vector<256x128xf32> -> vector<256x128xf32>
      %115 = arith.addf %111, %114 : vector<256x128xf32>
      %c0_102 = arith.constant 0 : index
      %c0_103 = arith.constant 0 : index
      %116 = vector.load %arg17[%c0_102, %c0_103] : memref<256x128xf32, #tpu.memory_space<vmem>>, vector<256x128xf32>
      tpu.vector_store %arg17[%c0_102, %c0_103], %115 {strides = array<i32>} : memref<256x128xf32, #tpu.memory_space<vmem>>, vector<256x128xf32>,
      %c0_104 = arith.constant 0 : index
      %c2_105 = arith.constant 2 : index
      %c0_106 = arith.constant 0 : index
      %117 = vector.load %arg15[%c0_104, %c2_105, %c0_106] : memref<8x48x64xf32, #tpu.memory_space<vmem>>, vector<8x32x64xf32>
      %118 = vector.shape_cast %117 : vector<8x32x64xf32> to vector<256x64xf32>
      %119 = arith.truncf %118 : vector<256x64xf32> to vector<256x64xbf16>
      %c0_107 = arith.constant 0 : index
      %c0_108 = arith.constant 0 : index
      %120 = vector.load %arg17[%c0_107, %c0_108] : memref<256x128xf32, #tpu.memory_space<vmem>>, vector<256x128xf32>
      %c2_109 = arith.constant 2 : index
      %c0_110 = arith.constant 0 : index
      %c0_111 = arith.constant 0 : index
      %121 = vector.load %arg4[%c2_109, %c0_110, %c0_111] : memref<16x64x128xbf16, #tpu.memory_space<vmem>>, vector<1x64x128xbf16>
      %122 = vector.shape_cast %121 : vector<1x64x128xbf16> to vector<64x128xbf16>
      %cst_112 = arith.constant dense<0.000000e+00> : vector<256x128xf32>
      %123 = tpu.matmul %119, %122, %cst_112 {dimension_numbers = #tpu.dot_dimension_numbers<[1], [0], [0], [1], [0, 0, 1, 1], [], []>} : vector<256x64xbf16>, vector<64x128xbf16>, vector<256x128xf32> -> vector<256x128xf32>
      %124 = arith.addf %120, %123 : vector<256x128xf32>
      %c0_113 = arith.constant 0 : index
      %c0_114 = arith.constant 0 : index
      %125 = vector.load %arg17[%c0_113, %c0_114] : memref<256x128xf32, #tpu.memory_space<vmem>>, vector<256x128xf32>
      tpu.vector_store %arg17[%c0_113, %c0_114], %124 {strides = array<i32>} : memref<256x128xf32, #tpu.memory_space<vmem>>, vector<256x128xf32>,
      %c0_115 = arith.constant 0 : index
      %c3_116 = arith.constant 3 : index
      %c0_117 = arith.constant 0 : index
      %126 = vector.load %arg15[%c0_115, %c3_116, %c0_117] : memref<8x48x64xf32, #tpu.memory_space<vmem>>, vector<8x32x64xf32>
      %127 = vector.shape_cast %126 : vector<8x32x64xf32> to vector<256x64xf32>
      %128 = arith.truncf %127 : vector<256x64xf32> to vector<256x64xbf16>
      %c0_118 = arith.constant 0 : index
      %c0_119 = arith.constant 0 : index
      %129 = vector.load %arg17[%c0_118, %c0_119] : memref<256x128xf32, #tpu.memory_space<vmem>>, vector<256x128xf32>
      %c3_120 = arith.constant 3 : index
      %c0_121 = arith.constant 0 : index
      %c0_122 = arith.constant 0 : index
      %130 = vector.load %arg4[%c3_120, %c0_121, %c0_122] : memref<16x64x128xbf16, #tpu.memory_space<vmem>>, vector<1x64x128xbf16>
      %131 = vector.shape_cast %130 : vector<1x64x128xbf16> to vector<64x128xbf16>
      %cst_123 = arith.constant dense<0.000000e+00> : vector<256x128xf32>
      %132 = tpu.matmul %128, %131, %cst_123 {dimension_numbers = #tpu.dot_dimension_numbers<[1], [0], [0], [1], [0, 0, 1, 1], [], []>} : vector<256x64xbf16>, vector<64x128xbf16>, vector<256x128xf32> -> vector<256x128xf32>
      %133 = arith.addf %129, %132 : vector<256x128xf32>
      %c0_124 = arith.constant 0 : index
      %c0_125 = arith.constant 0 : index
      %134 = vector.load %arg17[%c0_124, %c0_125] : memref<256x128xf32, #tpu.memory_space<vmem>>, vector<256x128xf32>
      tpu.vector_store %arg17[%c0_124, %c0_125], %133 {strides = array<i32>} : memref<256x128xf32, #tpu.memory_space<vmem>>, vector<256x128xf32>,
      %c0_126 = arith.constant 0 : index
      %c4_127 = arith.constant 4 : index
      %c0_128 = arith.constant 0 : index
      %135 = vector.load %arg15[%c0_126, %c4_127, %c0_128] : memref<8x48x64xf32, #tpu.memory_space<vmem>>, vector<8x32x64xf32>
      %136 = vector.shape_cast %135 : vector<8x32x64xf32> to vector<256x64xf32>
      %137 = arith.truncf %136 : vector<256x64xf32> to vector<256x64xbf16>
      %c0_129 = arith.constant 0 : index
      %c0_130 = arith.constant 0 : index
      %138 = vector.load %arg17[%c0_129, %c0_130] : memref<256x128xf32, #tpu.memory_space<vmem>>, vector<256x128xf32>
      %c4_131 = arith.constant 4 : index
      %c0_132 = arith.constant 0 : index
      %c0_133 = arith.constant 0 : index
      %139 = vector.load %arg4[%c4_131, %c0_132, %c0_133] : memref<16x64x128xbf16, #tpu.memory_space<vmem>>, vector<1x64x128xbf16>
      %140 = vector.shape_cast %139 : vector<1x64x128xbf16> to vector<64x128xbf16>
      %cst_134 = arith.constant dense<0.000000e+00> : vector<256x128xf32>
      %141 = tpu.matmul %137, %140, %cst_134 {dimension_numbers = #tpu.dot_dimension_numbers<[1], [0], [0], [1], [0, 0, 1, 1], [], []>} : vector<256x64xbf16>, vector<64x128xbf16>, vector<256x128xf32> -> vector<256x128xf32>
      %142 = arith.addf %138, %141 : vector<256x128xf32>
      %c0_135 = arith.constant 0 : index
      %c0_136 = arith.constant 0 : index
      %143 = vector.load %arg17[%c0_135, %c0_136] : memref<256x128xf32, #tpu.memory_space<vmem>>, vector<256x128xf32>
      tpu.vector_store %arg17[%c0_135, %c0_136], %142 {strides = array<i32>} : memref<256x128xf32, #tpu.memory_space<vmem>>, vector<256x128xf32>,
      %c0_137 = arith.constant 0 : index
      %c5_138 = arith.constant 5 : index
      %c0_139 = arith.constant 0 : index
      %144 = vector.load %arg15[%c0_137, %c5_138, %c0_139] : memref<8x48x64xf32, #tpu.memory_space<vmem>>, vector<8x32x64xf32>
      %145 = vector.shape_cast %144 : vector<8x32x64xf32> to vector<256x64xf32>
      %146 = arith.truncf %145 : vector<256x64xf32> to vector<256x64xbf16>
      %c0_140 = arith.constant 0 : index
      %c0_141 = arith.constant 0 : index
      %147 = vector.load %arg17[%c0_140, %c0_141] : memref<256x128xf32, #tpu.memory_space<vmem>>, vector<256x128xf32>
      %c5_142 = arith.constant 5 : index
      %c0_143 = arith.constant 0 : index
      %c0_144 = arith.constant 0 : index
      %148 = vector.load %arg4[%c5_142, %c0_143, %c0_144] : memref<16x64x128xbf16, #tpu.memory_space<vmem>>, vector<1x64x128xbf16>
      %149 = vector.shape_cast %148 : vector<1x64x128xbf16> to vector<64x128xbf16>
      %cst_145 = arith.constant dense<0.000000e+00> : vector<256x128xf32>
      %150 = tpu.matmul %146, %149, %cst_145 {dimension_numbers = #tpu.dot_dimension_numbers<[1], [0], [0], [1], [0, 0, 1, 1], [], []>} : vector<256x64xbf16>, vector<64x128xbf16>, vector<256x128xf32> -> vector<256x128xf32>
      %151 = arith.addf %147, %150 : vector<256x128xf32>
      %c0_146 = arith.constant 0 : index
      %c0_147 = arith.constant 0 : index
      %152 = vector.load %arg17[%c0_146, %c0_147] : memref<256x128xf32, #tpu.memory_space<vmem>>, vector<256x128xf32>
      tpu.vector_store %arg17[%c0_146, %c0_147], %151 {strides = array<i32>} : memref<256x128xf32, #tpu.memory_space<vmem>>, vector<256x128xf32>,
      %c0_148 = arith.constant 0 : index
      %c6_149 = arith.constant 6 : index
      %c0_150 = arith.constant 0 : index
      %153 = vector.load %arg15[%c0_148, %c6_149, %c0_150] : memref<8x48x64xf32, #tpu.memory_space<vmem>>, vector<8x32x64xf32>
      %154 = vector.shape_cast %153 : vector<8x32x64xf32> to vector<256x64xf32>
      %155 = arith.truncf %154 : vector<256x64xf32> to vector<256x64xbf16>
      %c0_151 = arith.constant 0 : index
      %c0_152 = arith.constant 0 : index
      %156 = vector.load %arg17[%c0_151, %c0_152] : memref<256x128xf32, #tpu.memory_space<vmem>>, vector<256x128xf32>
      %c6_153 = arith.constant 6 : index
      %c0_154 = arith.constant 0 : index
      %c0_155 = arith.constant 0 : index
      %157 = vector.load %arg4[%c6_153, %c0_154, %c0_155] : memref<16x64x128xbf16, #tpu.memory_space<vmem>>, vector<1x64x128xbf16>
      %158 = vector.shape_cast %157 : vector<1x64x128xbf16> to vector<64x128xbf16>
      %cst_156 = arith.constant dense<0.000000e+00> : vector<256x128xf32>
      %159 = tpu.matmul %155, %158, %cst_156 {dimension_numbers = #tpu.dot_dimension_numbers<[1], [0], [0], [1], [0, 0, 1, 1], [], []>} : vector<256x64xbf16>, vector<64x128xbf16>, vector<256x128xf32> -> vector<256x128xf32>
      %160 = arith.addf %156, %159 : vector<256x128xf32>
      %c0_157 = arith.constant 0 : index
      %c0_158 = arith.constant 0 : index
      %161 = vector.load %arg17[%c0_157, %c0_158] : memref<256x128xf32, #tpu.memory_space<vmem>>, vector<256x128xf32>
      tpu.vector_store %arg17[%c0_157, %c0_158], %160 {strides = array<i32>} : memref<256x128xf32, #tpu.memory_space<vmem>>, vector<256x128xf32>,
      %c0_159 = arith.constant 0 : index
      %c7_160 = arith.constant 7 : index
      %c0_161 = arith.constant 0 : index
      %162 = vector.load %arg15[%c0_159, %c7_160, %c0_161] : memref<8x48x64xf32, #tpu.memory_space<vmem>>, vector<8x32x64xf32>
      %163 = vector.shape_cast %162 : vector<8x32x64xf32> to vector<256x64xf32>
      %164 = arith.truncf %163 : vector<256x64xf32> to vector<256x64xbf16>
      %c0_162 = arith.constant 0 : index
      %c0_163 = arith.constant 0 : index
      %165 = vector.load %arg17[%c0_162, %c0_163] : memref<256x128xf32, #tpu.memory_space<vmem>>, vector<256x128xf32>
      %c7_164 = arith.constant 7 : index
      %c0_165 = arith.constant 0 : index
      %c0_166 = arith.constant 0 : index
      %166 = vector.load %arg4[%c7_164, %c0_165, %c0_166] : memref<16x64x128xbf16, #tpu.memory_space<vmem>>, vector<1x64x128xbf16>
      %167 = vector.shape_cast %166 : vector<1x64x128xbf16> to vector<64x128xbf16>
      %cst_167 = arith.constant dense<0.000000e+00> : vector<256x128xf32>
      %168 = tpu.matmul %164, %167, %cst_167 {dimension_numbers = #tpu.dot_dimension_numbers<[1], [0], [0], [1], [0, 0, 1, 1], [], []>} : vector<256x64xbf16>, vector<64x128xbf16>, vector<256x128xf32> -> vector<256x128xf32>
      %169 = arith.addf %165, %168 : vector<256x128xf32>
      %c0_168 = arith.constant 0 : index
      %c0_169 = arith.constant 0 : index
      %170 = vector.load %arg17[%c0_168, %c0_169] : memref<256x128xf32, #tpu.memory_space<vmem>>, vector<256x128xf32>
      tpu.vector_store %arg17[%c0_168, %c0_169], %169 {strides = array<i32>} : memref<256x128xf32, #tpu.memory_space<vmem>>, vector<256x128xf32>,
      %c0_170 = arith.constant 0 : index
      %c8_171 = arith.constant 8 : index
      %c0_172 = arith.constant 0 : index
      %171 = vector.load %arg15[%c0_170, %c8_171, %c0_172] : memref<8x48x64xf32, #tpu.memory_space<vmem>>, vector<8x32x64xf32>
      %172 = vector.shape_cast %171 : vector<8x32x64xf32> to vector<256x64xf32>
      %173 = arith.truncf %172 : vector<256x64xf32> to vector<256x64xbf16>
      %c0_173 = arith.constant 0 : index
      %c0_174 = arith.constant 0 : index
      %174 = vector.load %arg17[%c0_173, %c0_174] : memref<256x128xf32, #tpu.memory_space<vmem>>, vector<256x128xf32>
      %c8_175 = arith.constant 8 : index
      %c0_176 = arith.constant 0 : index
      %c0_177 = arith.constant 0 : index
      %175 = vector.load %arg4[%c8_175, %c0_176, %c0_177] : memref<16x64x128xbf16, #tpu.memory_space<vmem>>, vector<1x64x128xbf16>
      %176 = vector.shape_cast %175 : vector<1x64x128xbf16> to vector<64x128xbf16>
      %cst_178 = arith.constant dense<0.000000e+00> : vector<256x128xf32>
      %177 = tpu.matmul %173, %176, %cst_178 {dimension_numbers = #tpu.dot_dimension_numbers<[1], [0], [0], [1], [0, 0, 1, 1], [], []>} : vector<256x64xbf16>, vector<64x128xbf16>, vector<256x128xf32> -> vector<256x128xf32>
      %178 = arith.addf %174, %177 : vector<256x128xf32>
      %c0_179 = arith.constant 0 : index
      %c0_180 = arith.constant 0 : index
      %179 = vector.load %arg17[%c0_179, %c0_180] : memref<256x128xf32, #tpu.memory_space<vmem>>, vector<256x128xf32>
      tpu.vector_store %arg17[%c0_179, %c0_180], %178 {strides = array<i32>} : memref<256x128xf32, #tpu.memory_space<vmem>>, vector<256x128xf32>,
      %c0_181 = arith.constant 0 : index
      %c9 = arith.constant 9 : index
      %c0_182 = arith.constant 0 : index
      %180 = vector.load %arg15[%c0_181, %c9, %c0_182] : memref<8x48x64xf32, #tpu.memory_space<vmem>>, vector<8x32x64xf32>
      %181 = vector.shape_cast %180 : vector<8x32x64xf32> to vector<256x64xf32>
      %182 = arith.truncf %181 : vector<256x64xf32> to vector<256x64xbf16>
      %c0_183 = arith.constant 0 : index
      %c0_184 = arith.constant 0 : index
      %183 = vector.load %arg17[%c0_183, %c0_184] : memref<256x128xf32, #tpu.memory_space<vmem>>, vector<256x128xf32>
      %c9_185 = arith.constant 9 : index
      %c0_186 = arith.constant 0 : index
      %c0_187 = arith.constant 0 : index
      %184 = vector.load %arg4[%c9_185, %c0_186, %c0_187] : memref<16x64x128xbf16, #tpu.memory_space<vmem>>, vector<1x64x128xbf16>
      %185 = vector.shape_cast %184 : vector<1x64x128xbf16> to vector<64x128xbf16>
      %cst_188 = arith.constant dense<0.000000e+00> : vector<256x128xf32>
      %186 = tpu.matmul %182, %185, %cst_188 {dimension_numbers = #tpu.dot_dimension_numbers<[1], [0], [0], [1], [0, 0, 1, 1], [], []>} : vector<256x64xbf16>, vector<64x128xbf16>, vector<256x128xf32> -> vector<256x128xf32>
      %187 = arith.addf %183, %186 : vector<256x128xf32>
      %c0_189 = arith.constant 0 : index
      %c0_190 = arith.constant 0 : index
      %188 = vector.load %arg17[%c0_189, %c0_190] : memref<256x128xf32, #tpu.memory_space<vmem>>, vector<256x128xf32>
      tpu.vector_store %arg17[%c0_189, %c0_190], %187 {strides = array<i32>} : memref<256x128xf32, #tpu.memory_space<vmem>>, vector<256x128xf32>,
      %c0_191 = arith.constant 0 : index
      %c10 = arith.constant 10 : index
      %c0_192 = arith.constant 0 : index
      %189 = vector.load %arg15[%c0_191, %c10, %c0_192] : memref<8x48x64xf32, #tpu.memory_space<vmem>>, vector<8x32x64xf32>
      %190 = vector.shape_cast %189 : vector<8x32x64xf32> to vector<256x64xf32>
      %191 = arith.truncf %190 : vector<256x64xf32> to vector<256x64xbf16>
      %c0_193 = arith.constant 0 : index
      %c0_194 = arith.constant 0 : index
      %192 = vector.load %arg17[%c0_193, %c0_194] : memref<256x128xf32, #tpu.memory_space<vmem>>, vector<256x128xf32>
      %c10_195 = arith.constant 10 : index
      %c0_196 = arith.constant 0 : index
      %c0_197 = arith.constant 0 : index
      %193 = vector.load %arg4[%c10_195, %c0_196, %c0_197] : memref<16x64x128xbf16, #tpu.memory_space<vmem>>, vector<1x64x128xbf16>
      %194 = vector.shape_cast %193 : vector<1x64x128xbf16> to vector<64x128xbf16>
      %cst_198 = arith.constant dense<0.000000e+00> : vector<256x128xf32>
      %195 = tpu.matmul %191, %194, %cst_198 {dimension_numbers = #tpu.dot_dimension_numbers<[1], [0], [0], [1], [0, 0, 1, 1], [], []>} : vector<256x64xbf16>, vector<64x128xbf16>, vector<256x128xf32> -> vector<256x128xf32>
      %196 = arith.addf %192, %195 : vector<256x128xf32>
      %c0_199 = arith.constant 0 : index
      %c0_200 = arith.constant 0 : index
      %197 = vector.load %arg17[%c0_199, %c0_200] : memref<256x128xf32, #tpu.memory_space<vmem>>, vector<256x128xf32>
      tpu.vector_store %arg17[%c0_199, %c0_200], %196 {strides = array<i32>} : memref<256x128xf32, #tpu.memory_space<vmem>>, vector<256x128xf32>,
      %c0_201 = arith.constant 0 : index
      %c11 = arith.constant 11 : index
      %c0_202 = arith.constant 0 : index
      %198 = vector.load %arg15[%c0_201, %c11, %c0_202] : memref<8x48x64xf32, #tpu.memory_space<vmem>>, vector<8x32x64xf32>
      %199 = vector.shape_cast %198 : vector<8x32x64xf32> to vector<256x64xf32>
      %200 = arith.truncf %199 : vector<256x64xf32> to vector<256x64xbf16>
      %c0_203 = arith.constant 0 : index
      %c0_204 = arith.constant 0 : index
      %201 = vector.load %arg17[%c0_203, %c0_204] : memref<256x128xf32, #tpu.memory_space<vmem>>, vector<256x128xf32>
      %c11_205 = arith.constant 11 : index
      %c0_206 = arith.constant 0 : index
      %c0_207 = arith.constant 0 : index
      %202 = vector.load %arg4[%c11_205, %c0_206, %c0_207] : memref<16x64x128xbf16, #tpu.memory_space<vmem>>, vector<1x64x128xbf16>
      %203 = vector.shape_cast %202 : vector<1x64x128xbf16> to vector<64x128xbf16>
      %cst_208 = arith.constant dense<0.000000e+00> : vector<256x128xf32>
      %204 = tpu.matmul %200, %203, %cst_208 {dimension_numbers = #tpu.dot_dimension_numbers<[1], [0], [0], [1], [0, 0, 1, 1], [], []>} : vector<256x64xbf16>, vector<64x128xbf16>, vector<256x128xf32> -> vector<256x128xf32>
      %205 = arith.addf %201, %204 : vector<256x128xf32>
      %c0_209 = arith.constant 0 : index
      %c0_210 = arith.constant 0 : index
      %206 = vector.load %arg17[%c0_209, %c0_210] : memref<256x128xf32, #tpu.memory_space<vmem>>, vector<256x128xf32>
      tpu.vector_store %arg17[%c0_209, %c0_210], %205 {strides = array<i32>} : memref<256x128xf32, #tpu.memory_space<vmem>>, vector<256x128xf32>,
      %c0_211 = arith.constant 0 : index
      %c12 = arith.constant 12 : index
      %c0_212 = arith.constant 0 : index
      %207 = vector.load %arg15[%c0_211, %c12, %c0_212] : memref<8x48x64xf32, #tpu.memory_space<vmem>>, vector<8x32x64xf32>
      %208 = vector.shape_cast %207 : vector<8x32x64xf32> to vector<256x64xf32>
      %209 = arith.truncf %208 : vector<256x64xf32> to vector<256x64xbf16>
      %c0_213 = arith.constant 0 : index
      %c0_214 = arith.constant 0 : index
      %210 = vector.load %arg17[%c0_213, %c0_214] : memref<256x128xf32, #tpu.memory_space<vmem>>, vector<256x128xf32>
      %c12_215 = arith.constant 12 : index
      %c0_216 = arith.constant 0 : index
      %c0_217 = arith.constant 0 : index
      %211 = vector.load %arg4[%c12_215, %c0_216, %c0_217] : memref<16x64x128xbf16, #tpu.memory_space<vmem>>, vector<1x64x128xbf16>
      %212 = vector.shape_cast %211 : vector<1x64x128xbf16> to vector<64x128xbf16>
      %cst_218 = arith.constant dense<0.000000e+00> : vector<256x128xf32>
      %213 = tpu.matmul %209, %212, %cst_218 {dimension_numbers = #tpu.dot_dimension_numbers<[1], [0], [0], [1], [0, 0, 1, 1], [], []>} : vector<256x64xbf16>, vector<64x128xbf16>, vector<256x128xf32> -> vector<256x128xf32>
      %214 = arith.addf %210, %213 : vector<256x128xf32>
      %c0_219 = arith.constant 0 : index
      %c0_220 = arith.constant 0 : index
      %215 = vector.load %arg17[%c0_219, %c0_220] : memref<256x128xf32, #tpu.memory_space<vmem>>, vector<256x128xf32>
      tpu.vector_store %arg17[%c0_219, %c0_220], %214 {strides = array<i32>} : memref<256x128xf32, #tpu.memory_space<vmem>>, vector<256x128xf32>,
      %c0_221 = arith.constant 0 : index
      %c13 = arith.constant 13 : index
      %c0_222 = arith.constant 0 : index
      %216 = vector.load %arg15[%c0_221, %c13, %c0_222] : memref<8x48x64xf32, #tpu.memory_space<vmem>>, vector<8x32x64xf32>
      %217 = vector.shape_cast %216 : vector<8x32x64xf32> to vector<256x64xf32>
      %218 = arith.truncf %217 : vector<256x64xf32> to vector<256x64xbf16>
      %c0_223 = arith.constant 0 : index
      %c0_224 = arith.constant 0 : index
      %219 = vector.load %arg17[%c0_223, %c0_224] : memref<256x128xf32, #tpu.memory_space<vmem>>, vector<256x128xf32>
      %c13_225 = arith.constant 13 : index
      %c0_226 = arith.constant 0 : index
      %c0_227 = arith.constant 0 : index
      %220 = vector.load %arg4[%c13_225, %c0_226, %c0_227] : memref<16x64x128xbf16, #tpu.memory_space<vmem>>, vector<1x64x128xbf16>
      %221 = vector.shape_cast %220 : vector<1x64x128xbf16> to vector<64x128xbf16>
      %cst_228 = arith.constant dense<0.000000e+00> : vector<256x128xf32>
      %222 = tpu.matmul %218, %221, %cst_228 {dimension_numbers = #tpu.dot_dimension_numbers<[1], [0], [0], [1], [0, 0, 1, 1], [], []>} : vector<256x64xbf16>, vector<64x128xbf16>, vector<256x128xf32> -> vector<256x128xf32>
      %223 = arith.addf %219, %222 : vector<256x128xf32>
      %c0_229 = arith.constant 0 : index
      %c0_230 = arith.constant 0 : index
      %224 = vector.load %arg17[%c0_229, %c0_230] : memref<256x128xf32, #tpu.memory_space<vmem>>, vector<256x128xf32>
      tpu.vector_store %arg17[%c0_229, %c0_230], %223 {strides = array<i32>} : memref<256x128xf32, #tpu.memory_space<vmem>>, vector<256x128xf32>,
      %c0_231 = arith.constant 0 : index
      %c14 = arith.constant 14 : index
      %c0_232 = arith.constant 0 : index
      %225 = vector.load %arg15[%c0_231, %c14, %c0_232] : memref<8x48x64xf32, #tpu.memory_space<vmem>>, vector<8x32x64xf32>
      %226 = vector.shape_cast %225 : vector<8x32x64xf32> to vector<256x64xf32>
      %227 = arith.truncf %226 : vector<256x64xf32> to vector<256x64xbf16>
      %c0_233 = arith.constant 0 : index
      %c0_234 = arith.constant 0 : index
      %228 = vector.load %arg17[%c0_233, %c0_234] : memref<256x128xf32, #tpu.memory_space<vmem>>, vector<256x128xf32>
      %c14_235 = arith.constant 14 : index
      %c0_236 = arith.constant 0 : index
      %c0_237 = arith.constant 0 : index
      %229 = vector.load %arg4[%c14_235, %c0_236, %c0_237] : memref<16x64x128xbf16, #tpu.memory_space<vmem>>, vector<1x64x128xbf16>
      %230 = vector.shape_cast %229 : vector<1x64x128xbf16> to vector<64x128xbf16>
      %cst_238 = arith.constant dense<0.000000e+00> : vector<256x128xf32>
      %231 = tpu.matmul %227, %230, %cst_238 {dimension_numbers = #tpu.dot_dimension_numbers<[1], [0], [0], [1], [0, 0, 1, 1], [], []>} : vector<256x64xbf16>, vector<64x128xbf16>, vector<256x128xf32> -> vector<256x128xf32>
      %232 = arith.addf %228, %231 : vector<256x128xf32>
      %c0_239 = arith.constant 0 : index
      %c0_240 = arith.constant 0 : index
      %233 = vector.load %arg17[%c0_239, %c0_240] : memref<256x128xf32, #tpu.memory_space<vmem>>, vector<256x128xf32>
      tpu.vector_store %arg17[%c0_239, %c0_240], %232 {strides = array<i32>} : memref<256x128xf32, #tpu.memory_space<vmem>>, vector<256x128xf32>,
      %c0_241 = arith.constant 0 : index
      %c15 = arith.constant 15 : index
      %c0_242 = arith.constant 0 : index
      %234 = vector.load %arg15[%c0_241, %c15, %c0_242] : memref<8x48x64xf32, #tpu.memory_space<vmem>>, vector<8x32x64xf32>
      %235 = vector.shape_cast %234 : vector<8x32x64xf32> to vector<256x64xf32>
      %236 = arith.truncf %235 : vector<256x64xf32> to vector<256x64xbf16>
      %c0_243 = arith.constant 0 : index
      %c0_244 = arith.constant 0 : index
      %237 = vector.load %arg17[%c0_243, %c0_244] : memref<256x128xf32, #tpu.memory_space<vmem>>, vector<256x128xf32>
      %c15_245 = arith.constant 15 : index
      %c0_246 = arith.constant 0 : index
      %c0_247 = arith.constant 0 : index
      %238 = vector.load %arg4[%c15_245, %c0_246, %c0_247] : memref<16x64x128xbf16, #tpu.memory_space<vmem>>, vector<1x64x128xbf16>
      %239 = vector.shape_cast %238 : vector<1x64x128xbf16> to vector<64x128xbf16>
      %cst_248 = arith.constant dense<0.000000e+00> : vector<256x128xf32>
      %240 = tpu.matmul %236, %239, %cst_248 {dimension_numbers = #tpu.dot_dimension_numbers<[1], [0], [0], [1], [0, 0, 1, 1], [], []>} : vector<256x64xbf16>, vector<64x128xbf16>, vector<256x128xf32> -> vector<256x128xf32>
      %241 = arith.addf %237, %240 : vector<256x128xf32>
      %c0_249 = arith.constant 0 : index
      %c0_250 = arith.constant 0 : index
      %242 = vector.load %arg17[%c0_249, %c0_250] : memref<256x128xf32, #tpu.memory_space<vmem>>, vector<256x128xf32>
      tpu.vector_store %arg17[%c0_249, %c0_250], %241 {strides = array<i32>} : memref<256x128xf32, #tpu.memory_space<vmem>>, vector<256x128xf32>,
      %c0_251 = arith.constant 0 : index
      %c0_252 = arith.constant 0 : index
      %243 = vector.load %arg17[%c0_251, %c0_252] : memref<256x128xf32, #tpu.memory_space<vmem>>, vector<256x128xf32>
      %244 = arith.truncf %243 : vector<256x128xf32> to vector<256x128xbf16>
      %c0_253 = arith.constant 0 : index
      %c0_254 = arith.constant 0 : index
      %245 = vector.load %arg8[%c0_253, %c0_254] : memref<128x256xbf16, #tpu.memory_space<vmem>>, vector<128x256xbf16>
      %cst_255 = arith.constant dense<0.000000e+00> : vector<128x128xf32>
      %246 = tpu.matmul %245, %244, %cst_255 {dimension_numbers = #tpu.dot_dimension_numbers<[1], [0], [0], [1], [0, 0, 1, 1], [], []>} : vector<128x256xbf16>, vector<256x128xbf16>, vector<128x128xf32> -> vector<128x128xf32>
      %c0_256 = arith.constant 0 : index
      %c0_257 = arith.constant 0 : index
      %247 = vector.load %arg9[%c0_256, %c0_257] : memref<128x256xbf16, #tpu.memory_space<vmem>>, vector<128x256xbf16>
      %cst_258 = arith.constant dense<0.000000e+00> : vector<128x128xf32>
      %248 = tpu.matmul %247, %244, %cst_258 {dimension_numbers = #tpu.dot_dimension_numbers<[1], [0], [0], [1], [0, 0, 1, 1], [], []>} : vector<128x256xbf16>, vector<256x128xbf16>, vector<128x128xf32> -> vector<128x128xf32>
      %249 = arith.maximumf %246, %248 : vector<128x128xf32>
      %cst_259 = arith.constant 0.000000e+00 : f32
      %250 = vector.broadcast %cst_259 : f32 to vector<128x128xf32>
      %251 = arith.maximumf %249, %250 : vector<128x128xf32>
      %cst_260 = arith.constant 0.000000e+00 : f32
      %252 = vector.broadcast %cst_260 : f32 to vector<8x24x128xf32>
      %c0_261 = arith.constant 0 : index
      %c0_262 = arith.constant 0 : index
      %c0_263 = arith.constant 0 : index
      %253 = vector.load %arg16[%c0_261, %c0_262, %c0_263] : memref<8x24x128xf32, #tpu.memory_space<vmem>>, vector<8x24x128xf32>
      tpu.vector_store %arg16[%c0_261, %c0_262, %c0_263], %252 {strides = array<i32>} : memref<8x24x128xf32, #tpu.memory_space<vmem>>, vector<8x24x128xf32>,
      %254 = vector.shape_cast %251 : vector<128x128xf32> to vector<8x16x128xf32>
      %c0_264 = arith.constant 0 : index
      %c4_265 = arith.constant 4 : index
      %c0_266 = arith.constant 0 : index
      %255 = vector.load %arg16[%c0_264, %c4_265, %c0_266] : memref<8x24x128xf32, #tpu.memory_space<vmem>>, vector<8x16x128xf32>
      tpu.vector_store %arg16[%c0_264, %c4_265, %c0_266], %254 {strides = array<i32>} : memref<8x24x128xf32, #tpu.memory_space<vmem>>, vector<8x16x128xf32>,
      %cst_267 = arith.constant 0.000000e+00 : f32
      %256 = vector.broadcast %cst_267 : f32 to vector<128x256xf32>
      %c0_268 = arith.constant 0 : index
      %c0_269 = arith.constant 0 : index
      %257 = vector.load %arg18[%c0_268, %c0_269] : memref<128x256xf32, #tpu.memory_space<vmem>>, vector<128x256xf32>
      tpu.vector_store %arg18[%c0_268, %c0_269], %256 {strides = array<i32>} : memref<128x256xf32, #tpu.memory_space<vmem>>, vector<128x256xf32>,
      %c0_270 = arith.constant 0 : index
      %c0_271 = arith.constant 0 : index
      %c0_272 = arith.constant 0 : index
      %258 = vector.load %arg16[%c0_270, %c0_271, %c0_272] : memref<8x24x128xf32, #tpu.memory_space<vmem>>, vector<8x16x128xf32>
      %259 = vector.shape_cast %258 : vector<8x16x128xf32> to vector<128x128xf32>
      %260 = arith.truncf %259 : vector<128x128xf32> to vector<128x128xbf16>
      %c0_273 = arith.constant 0 : index
      %c0_274 = arith.constant 0 : index
      %261 = vector.load %arg18[%c0_273, %c0_274] : memref<128x256xf32, #tpu.memory_space<vmem>>, vector<128x256xf32>
      %c0_275 = arith.constant 0 : index
      %c0_276 = arith.constant 0 : index
      %c0_277 = arith.constant 0 : index
      %262 = vector.load %arg5[%c0_275, %c0_276, %c0_277] : memref<8x128x256xbf16, #tpu.memory_space<vmem>>, vector<1x128x256xbf16>
      %263 = vector.shape_cast %262 : vector<1x128x256xbf16> to vector<128x256xbf16>
      %cst_278 = arith.constant dense<0.000000e+00> : vector<128x256xf32>
      %264 = tpu.matmul %260, %263, %cst_278 {dimension_numbers = #tpu.dot_dimension_numbers<[1], [0], [0], [1], [0, 0, 1, 1], [], []>} : vector<128x128xbf16>, vector<128x256xbf16>, vector<128x256xf32> -> vector<128x256xf32>
      %265 = arith.addf %261, %264 : vector<128x256xf32>
      %c0_279 = arith.constant 0 : index
      %c0_280 = arith.constant 0 : index
      %266 = vector.load %arg18[%c0_279, %c0_280] : memref<128x256xf32, #tpu.memory_space<vmem>>, vector<128x256xf32>
      tpu.vector_store %arg18[%c0_279, %c0_280], %265 {strides = array<i32>} : memref<128x256xf32, #tpu.memory_space<vmem>>, vector<128x256xf32>,
      %c0_281 = arith.constant 0 : index
      %c1_282 = arith.constant 1 : index
      %c0_283 = arith.constant 0 : index
      %267 = vector.load %arg16[%c0_281, %c1_282, %c0_283] : memref<8x24x128xf32, #tpu.memory_space<vmem>>, vector<8x16x128xf32>
      %268 = vector.shape_cast %267 : vector<8x16x128xf32> to vector<128x128xf32>
      %269 = arith.truncf %268 : vector<128x128xf32> to vector<128x128xbf16>
      %c0_284 = arith.constant 0 : index
      %c0_285 = arith.constant 0 : index
      %270 = vector.load %arg18[%c0_284, %c0_285] : memref<128x256xf32, #tpu.memory_space<vmem>>, vector<128x256xf32>
      %c1_286 = arith.constant 1 : index
      %c0_287 = arith.constant 0 : index
      %c0_288 = arith.constant 0 : index
      %271 = vector.load %arg5[%c1_286, %c0_287, %c0_288] : memref<8x128x256xbf16, #tpu.memory_space<vmem>>, vector<1x128x256xbf16>
      %272 = vector.shape_cast %271 : vector<1x128x256xbf16> to vector<128x256xbf16>
      %cst_289 = arith.constant dense<0.000000e+00> : vector<128x256xf32>
      %273 = tpu.matmul %269, %272, %cst_289 {dimension_numbers = #tpu.dot_dimension_numbers<[1], [0], [0], [1], [0, 0, 1, 1], [], []>} : vector<128x128xbf16>, vector<128x256xbf16>, vector<128x256xf32> -> vector<128x256xf32>
      %274 = arith.addf %270, %273 : vector<128x256xf32>
      %c0_290 = arith.constant 0 : index
      %c0_291 = arith.constant 0 : index
      %275 = vector.load %arg18[%c0_290, %c0_291] : memref<128x256xf32, #tpu.memory_space<vmem>>, vector<128x256xf32>
      tpu.vector_store %arg18[%c0_290, %c0_291], %274 {strides = array<i32>} : memref<128x256xf32, #tpu.memory_space<vmem>>, vector<128x256xf32>,
      %c0_292 = arith.constant 0 : index
      %c2_293 = arith.constant 2 : index
      %c0_294 = arith.constant 0 : index
      %276 = vector.load %arg16[%c0_292, %c2_293, %c0_294] : memref<8x24x128xf32, #tpu.memory_space<vmem>>, vector<8x16x128xf32>
      %277 = vector.shape_cast %276 : vector<8x16x128xf32> to vector<128x128xf32>
      %278 = arith.truncf %277 : vector<128x128xf32> to vector<128x128xbf16>
      %c0_295 = arith.constant 0 : index
      %c0_296 = arith.constant 0 : index
      %279 = vector.load %arg18[%c0_295, %c0_296] : memref<128x256xf32, #tpu.memory_space<vmem>>, vector<128x256xf32>
      %c2_297 = arith.constant 2 : index
      %c0_298 = arith.constant 0 : index
      %c0_299 = arith.constant 0 : index
      %280 = vector.load %arg5[%c2_297, %c0_298, %c0_299] : memref<8x128x256xbf16, #tpu.memory_space<vmem>>, vector<1x128x256xbf16>
      %281 = vector.shape_cast %280 : vector<1x128x256xbf16> to vector<128x256xbf16>
      %cst_300 = arith.constant dense<0.000000e+00> : vector<128x256xf32>
      %282 = tpu.matmul %278, %281, %cst_300 {dimension_numbers = #tpu.dot_dimension_numbers<[1], [0], [0], [1], [0, 0, 1, 1], [], []>} : vector<128x128xbf16>, vector<128x256xbf16>, vector<128x256xf32> -> vector<128x256xf32>
      %283 = arith.addf %279, %282 : vector<128x256xf32>
      %c0_301 = arith.constant 0 : index
      %c0_302 = arith.constant 0 : index
      %284 = vector.load %arg18[%c0_301, %c0_302] : memref<128x256xf32, #tpu.memory_space<vmem>>, vector<128x256xf32>
      tpu.vector_store %arg18[%c0_301, %c0_302], %283 {strides = array<i32>} : memref<128x256xf32, #tpu.memory_space<vmem>>, vector<128x256xf32>,
      %c0_303 = arith.constant 0 : index
      %c3_304 = arith.constant 3 : index
      %c0_305 = arith.constant 0 : index
      %285 = vector.load %arg16[%c0_303, %c3_304, %c0_305] : memref<8x24x128xf32, #tpu.memory_space<vmem>>, vector<8x16x128xf32>
      %286 = vector.shape_cast %285 : vector<8x16x128xf32> to vector<128x128xf32>
      %287 = arith.truncf %286 : vector<128x128xf32> to vector<128x128xbf16>
      %c0_306 = arith.constant 0 : index
      %c0_307 = arith.constant 0 : index
      %288 = vector.load %arg18[%c0_306, %c0_307] : memref<128x256xf32, #tpu.memory_space<vmem>>, vector<128x256xf32>
      %c3_308 = arith.constant 3 : index
      %c0_309 = arith.constant 0 : index
      %c0_310 = arith.constant 0 : index
      %289 = vector.load %arg5[%c3_308, %c0_309, %c0_310] : memref<8x128x256xbf16, #tpu.memory_space<vmem>>, vector<1x128x256xbf16>
      %290 = vector.shape_cast %289 : vector<1x128x256xbf16> to vector<128x256xbf16>
      %cst_311 = arith.constant dense<0.000000e+00> : vector<128x256xf32>
      %291 = tpu.matmul %287, %290, %cst_311 {dimension_numbers = #tpu.dot_dimension_numbers<[1], [0], [0], [1], [0, 0, 1, 1], [], []>} : vector<128x128xbf16>, vector<128x256xbf16>, vector<128x256xf32> -> vector<128x256xf32>
      %292 = arith.addf %288, %291 : vector<128x256xf32>
      %c0_312 = arith.constant 0 : index
      %c0_313 = arith.constant 0 : index
      %293 = vector.load %arg18[%c0_312, %c0_313] : memref<128x256xf32, #tpu.memory_space<vmem>>, vector<128x256xf32>
      tpu.vector_store %arg18[%c0_312, %c0_313], %292 {strides = array<i32>} : memref<128x256xf32, #tpu.memory_space<vmem>>, vector<128x256xf32>,
      %c0_314 = arith.constant 0 : index
      %c4_315 = arith.constant 4 : index
      %c0_316 = arith.constant 0 : index
      %294 = vector.load %arg16[%c0_314, %c4_315, %c0_316] : memref<8x24x128xf32, #tpu.memory_space<vmem>>, vector<8x16x128xf32>
      %295 = vector.shape_cast %294 : vector<8x16x128xf32> to vector<128x128xf32>
      %296 = arith.truncf %295 : vector<128x128xf32> to vector<128x128xbf16>
      %c0_317 = arith.constant 0 : index
      %c0_318 = arith.constant 0 : index
      %297 = vector.load %arg18[%c0_317, %c0_318] : memref<128x256xf32, #tpu.memory_space<vmem>>, vector<128x256xf32>
      %c4_319 = arith.constant 4 : index
      %c0_320 = arith.constant 0 : index
      %c0_321 = arith.constant 0 : index
      %298 = vector.load %arg5[%c4_319, %c0_320, %c0_321] : memref<8x128x256xbf16, #tpu.memory_space<vmem>>, vector<1x128x256xbf16>
      %299 = vector.shape_cast %298 : vector<1x128x256xbf16> to vector<128x256xbf16>
      %cst_322 = arith.constant dense<0.000000e+00> : vector<128x256xf32>
      %300 = tpu.matmul %296, %299, %cst_322 {dimension_numbers = #tpu.dot_dimension_numbers<[1], [0], [0], [1], [0, 0, 1, 1], [], []>} : vector<128x128xbf16>, vector<128x256xbf16>, vector<128x256xf32> -> vector<128x256xf32>
      %301 = arith.addf %297, %300 : vector<128x256xf32>
      %c0_323 = arith.constant 0 : index
      %c0_324 = arith.constant 0 : index
      %302 = vector.load %arg18[%c0_323, %c0_324] : memref<128x256xf32, #tpu.memory_space<vmem>>, vector<128x256xf32>
      tpu.vector_store %arg18[%c0_323, %c0_324], %301 {strides = array<i32>} : memref<128x256xf32, #tpu.memory_space<vmem>>, vector<128x256xf32>,
      %c0_325 = arith.constant 0 : index
      %c5_326 = arith.constant 5 : index
      %c0_327 = arith.constant 0 : index
      %303 = vector.load %arg16[%c0_325, %c5_326, %c0_327] : memref<8x24x128xf32, #tpu.memory_space<vmem>>, vector<8x16x128xf32>
      %304 = vector.shape_cast %303 : vector<8x16x128xf32> to vector<128x128xf32>
      %305 = arith.truncf %304 : vector<128x128xf32> to vector<128x128xbf16>
      %c0_328 = arith.constant 0 : index
      %c0_329 = arith.constant 0 : index
      %306 = vector.load %arg18[%c0_328, %c0_329] : memref<128x256xf32, #tpu.memory_space<vmem>>, vector<128x256xf32>
      %c5_330 = arith.constant 5 : index
      %c0_331 = arith.constant 0 : index
      %c0_332 = arith.constant 0 : index
      %307 = vector.load %arg5[%c5_330, %c0_331, %c0_332] : memref<8x128x256xbf16, #tpu.memory_space<vmem>>, vector<1x128x256xbf16>
      %308 = vector.shape_cast %307 : vector<1x128x256xbf16> to vector<128x256xbf16>
      %cst_333 = arith.constant dense<0.000000e+00> : vector<128x256xf32>
      %309 = tpu.matmul %305, %308, %cst_333 {dimension_numbers = #tpu.dot_dimension_numbers<[1], [0], [0], [1], [0, 0, 1, 1], [], []>} : vector<128x128xbf16>, vector<128x256xbf16>, vector<128x256xf32> -> vector<128x256xf32>
      %310 = arith.addf %306, %309 : vector<128x256xf32>
      %c0_334 = arith.constant 0 : index
      %c0_335 = arith.constant 0 : index
      %311 = vector.load %arg18[%c0_334, %c0_335] : memref<128x256xf32, #tpu.memory_space<vmem>>, vector<128x256xf32>
      tpu.vector_store %arg18[%c0_334, %c0_335], %310 {strides = array<i32>} : memref<128x256xf32, #tpu.memory_space<vmem>>, vector<128x256xf32>,
      %c0_336 = arith.constant 0 : index
      %c6_337 = arith.constant 6 : index
      %c0_338 = arith.constant 0 : index
      %312 = vector.load %arg16[%c0_336, %c6_337, %c0_338] : memref<8x24x128xf32, #tpu.memory_space<vmem>>, vector<8x16x128xf32>
      %313 = vector.shape_cast %312 : vector<8x16x128xf32> to vector<128x128xf32>
      %314 = arith.truncf %313 : vector<128x128xf32> to vector<128x128xbf16>
      %c0_339 = arith.constant 0 : index
      %c0_340 = arith.constant 0 : index
      %315 = vector.load %arg18[%c0_339, %c0_340] : memref<128x256xf32, #tpu.memory_space<vmem>>, vector<128x256xf32>
      %c6_341 = arith.constant 6 : index
      %c0_342 = arith.constant 0 : index
      %c0_343 = arith.constant 0 : index
      %316 = vector.load %arg5[%c6_341, %c0_342, %c0_343] : memref<8x128x256xbf16, #tpu.memory_space<vmem>>, vector<1x128x256xbf16>
      %317 = vector.shape_cast %316 : vector<1x128x256xbf16> to vector<128x256xbf16>
      %cst_344 = arith.constant dense<0.000000e+00> : vector<128x256xf32>
      %318 = tpu.matmul %314, %317, %cst_344 {dimension_numbers = #tpu.dot_dimension_numbers<[1], [0], [0], [1], [0, 0, 1, 1], [], []>} : vector<128x128xbf16>, vector<128x256xbf16>, vector<128x256xf32> -> vector<128x256xf32>
      %319 = arith.addf %315, %318 : vector<128x256xf32>
      %c0_345 = arith.constant 0 : index
      %c0_346 = arith.constant 0 : index
      %320 = vector.load %arg18[%c0_345, %c0_346] : memref<128x256xf32, #tpu.memory_space<vmem>>, vector<128x256xf32>
      tpu.vector_store %arg18[%c0_345, %c0_346], %319 {strides = array<i32>} : memref<128x256xf32, #tpu.memory_space<vmem>>, vector<128x256xf32>,
      %c0_347 = arith.constant 0 : index
      %c7_348 = arith.constant 7 : index
      %c0_349 = arith.constant 0 : index
      %321 = vector.load %arg16[%c0_347, %c7_348, %c0_349] : memref<8x24x128xf32, #tpu.memory_space<vmem>>, vector<8x16x128xf32>
      %322 = vector.shape_cast %321 : vector<8x16x128xf32> to vector<128x128xf32>
      %323 = arith.truncf %322 : vector<128x128xf32> to vector<128x128xbf16>
      %c0_350 = arith.constant 0 : index
      %c0_351 = arith.constant 0 : index
      %324 = vector.load %arg18[%c0_350, %c0_351] : memref<128x256xf32, #tpu.memory_space<vmem>>, vector<128x256xf32>
      %c7_352 = arith.constant 7 : index
      %c0_353 = arith.constant 0 : index
      %c0_354 = arith.constant 0 : index
      %325 = vector.load %arg5[%c7_352, %c0_353, %c0_354] : memref<8x128x256xbf16, #tpu.memory_space<vmem>>, vector<1x128x256xbf16>
      %326 = vector.shape_cast %325 : vector<1x128x256xbf16> to vector<128x256xbf16>
      %cst_355 = arith.constant dense<0.000000e+00> : vector<128x256xf32>
      %327 = tpu.matmul %323, %326, %cst_355 {dimension_numbers = #tpu.dot_dimension_numbers<[1], [0], [0], [1], [0, 0, 1, 1], [], []>} : vector<128x128xbf16>, vector<128x256xbf16>, vector<128x256xf32> -> vector<128x256xf32>
      %328 = arith.addf %324, %327 : vector<128x256xf32>
      %c0_356 = arith.constant 0 : index
      %c0_357 = arith.constant 0 : index
      %329 = vector.load %arg18[%c0_356, %c0_357] : memref<128x256xf32, #tpu.memory_space<vmem>>, vector<128x256xf32>
      tpu.vector_store %arg18[%c0_356, %c0_357], %328 {strides = array<i32>} : memref<128x256xf32, #tpu.memory_space<vmem>>, vector<128x256xf32>,
      %c0_358 = arith.constant 0 : index
      %c0_359 = arith.constant 0 : index
      %330 = vector.load %arg18[%c0_358, %c0_359] : memref<128x256xf32, #tpu.memory_space<vmem>>, vector<128x256xf32>
      %331 = arith.truncf %330 : vector<128x256xf32> to vector<128x256xbf16>
      %c0_360 = arith.constant 0 : index
      %c0_361 = arith.constant 0 : index
      %332 = vector.load %arg10[%c0_360, %c0_361] : memref<64x128xbf16, #tpu.memory_space<vmem>>, vector<64x128xbf16>
      %cst_362 = arith.constant dense<0.000000e+00> : vector<64x256xf32>
      %333 = tpu.matmul %332, %331, %cst_362 {dimension_numbers = #tpu.dot_dimension_numbers<[1], [0], [0], [1], [0, 0, 1, 1], [], []>} : vector<64x128xbf16>, vector<128x256xbf16>, vector<64x256xf32> -> vector<64x256xf32>
      %c0_363 = arith.constant 0 : index
      %c0_364 = arith.constant 0 : index
      %334 = vector.load %arg11[%c0_363, %c0_364] : memref<64x128xbf16, #tpu.memory_space<vmem>>, vector<64x128xbf16>
      %cst_365 = arith.constant dense<0.000000e+00> : vector<64x256xf32>
      %335 = tpu.matmul %334, %331, %cst_365 {dimension_numbers = #tpu.dot_dimension_numbers<[1], [0], [0], [1], [0, 0, 1, 1], [], []>} : vector<64x128xbf16>, vector<128x256xbf16>, vector<64x256xf32> -> vector<64x256xf32>
      %336 = arith.maximumf %333, %335 : vector<64x256xf32>
      %cst_366 = arith.constant 0.000000e+00 : f32
      %337 = vector.broadcast %cst_366 : f32 to vector<64x256xf32>
      %338 = arith.maximumf %336, %337 : vector<64x256xf32>
      %339 = vector.shape_cast %338 : vector<64x256xf32> to vector<8x8x256xf32>
      %c0_367 = arith.constant 0 : index
      %c0_368 = arith.constant 0 : index
      %c0_369 = arith.constant 0 : index
      %340 = vector.load %arg19[%c0_367, %c0_368, %c0_369] : memref<8x8x256xf32, #tpu.memory_space<vmem>>, vector<8x8x256xf32>
      tpu.vector_store %arg19[%c0_367, %c0_368, %c0_369], %339 {strides = array<i32>} : memref<8x8x256xf32, #tpu.memory_space<vmem>>, vector<8x8x256xf32>,
      %cst_370 = arith.constant 0.000000e+00 : f32
      %341 = vector.broadcast %cst_370 : f32 to vector<8x128xf32>
      %c0_371 = arith.constant 0 : index
      %c0_372 = arith.constant 0 : index
      %342 = vector.load %arg20[%c0_371, %c0_372] : memref<8x128xf32, #tpu.memory_space<vmem>>, vector<8x128xf32>
      tpu.vector_store %arg20[%c0_371, %c0_372], %341 {strides = array<i32>} : memref<8x128xf32, #tpu.memory_space<vmem>>, vector<8x128xf32>,
    } else {
    }
    %c8_i32 = arith.constant 8 : i32
    %3 = arith.muli %arg1, %c8_i32 : i32
    %c0 = arith.constant 0 : index
    %4 = arith.index_cast %3 : i32 to index
    %c0_1 = arith.constant 0 : index
    %5 = vector.load %arg19[%c0, %4, %c0_1] : memref<8x8x256xf32, #tpu.memory_space<vmem>>, vector<8x8x256xf32>
    %c0_2 = arith.constant 0 : index
    %c0_3 = arith.constant 0 : index
    %6 = vector.load %arg20[%c0_2, %c0_3] : memref<8x128xf32, #tpu.memory_space<vmem>>, vector<8x128xf32>
    %7 = vector.extract_strided_slice %5 {offsets = [0, 0, 0], sizes = [8, 1, 256], strides = [1, 1, 1]} : vector<8x8x256xf32> to vector<8x1x256xf32>
    %8 = vector.shape_cast %7 : vector<8x1x256xf32> to vector<8x256xf32>
    %9 = arith.truncf %8 : vector<8x256xf32> to vector<8x256xbf16>
    %c0_4 = arith.constant 0 : index
    %c0_5 = arith.constant 0 : index
    %c0_6 = arith.constant 0 : index
    %10 = vector.load %arg12[%c0_4, %c0_5, %c0_6] : memref<8x256x128xbf16, #tpu.memory_space<vmem>>, vector<1x256x128xbf16>
    %11 = vector.shape_cast %10 : vector<1x256x128xbf16> to vector<256x128xbf16>
    %cst = arith.constant dense<0.000000e+00> : vector<8x128xf32>
    %12 = tpu.matmul %9, %11, %cst {dimension_numbers = #tpu.dot_dimension_numbers<[1], [0], [0], [1], [0, 0, 1, 1], [], []>} : vector<8x256xbf16>, vector<256x128xbf16>, vector<8x128xf32> -> vector<8x128xf32>
    %13 = arith.addf %6, %12 : vector<8x128xf32>
    %c0_7 = arith.constant 0 : index
    %c0_8 = arith.constant 0 : index
    %14 = vector.load %arg20[%c0_7, %c0_8] : memref<8x128xf32, #tpu.memory_space<vmem>>, vector<8x128xf32>
    tpu.vector_store %arg20[%c0_7, %c0_8], %13 {strides = array<i32>} : memref<8x128xf32, #tpu.memory_space<vmem>>, vector<8x128xf32>,
    %c0_9 = arith.constant 0 : index
    %c0_10 = arith.constant 0 : index
    %15 = vector.load %arg20[%c0_9, %c0_10] : memref<8x128xf32, #tpu.memory_space<vmem>>, vector<8x128xf32>
    %16 = vector.extract_strided_slice %5 {offsets = [0, 1, 0], sizes = [8, 1, 256], strides = [1, 1, 1]} : vector<8x8x256xf32> to vector<8x1x256xf32>
    %17 = vector.shape_cast %16 : vector<8x1x256xf32> to vector<8x256xf32>
    %18 = arith.truncf %17 : vector<8x256xf32> to vector<8x256xbf16>
    %c1 = arith.constant 1 : index
    %c0_11 = arith.constant 0 : index
    %c0_12 = arith.constant 0 : index
    %19 = vector.load %arg12[%c1, %c0_11, %c0_12] : memref<8x256x128xbf16, #tpu.memory_space<vmem>>, vector<1x256x128xbf16>
    %20 = vector.shape_cast %19 : vector<1x256x128xbf16> to vector<256x128xbf16>
    %cst_13 = arith.constant dense<0.000000e+00> : vector<8x128xf32>
    %21 = tpu.matmul %18, %20, %cst_13 {dimension_numbers = #tpu.dot_dimension_numbers<[1], [0], [0], [1], [0, 0, 1, 1], [], []>} : vector<8x256xbf16>, vector<256x128xbf16>, vector<8x128xf32> -> vector<8x128xf32>
    %22 = arith.addf %15, %21 : vector<8x128xf32>
    %c0_14 = arith.constant 0 : index
    %c0_15 = arith.constant 0 : index
    %23 = vector.load %arg20[%c0_14, %c0_15] : memref<8x128xf32, #tpu.memory_space<vmem>>, vector<8x128xf32>
    tpu.vector_store %arg20[%c0_14, %c0_15], %22 {strides = array<i32>} : memref<8x128xf32, #tpu.memory_space<vmem>>, vector<8x128xf32>,
    %c0_16 = arith.constant 0 : index
    %c0_17 = arith.constant 0 : index
    %24 = vector.load %arg20[%c0_16, %c0_17] : memref<8x128xf32, #tpu.memory_space<vmem>>, vector<8x128xf32>
    %25 = vector.extract_strided_slice %5 {offsets = [0, 2, 0], sizes = [8, 1, 256], strides = [1, 1, 1]} : vector<8x8x256xf32> to vector<8x1x256xf32>
    %26 = vector.shape_cast %25 : vector<8x1x256xf32> to vector<8x256xf32>
    %27 = arith.truncf %26 : vector<8x256xf32> to vector<8x256xbf16>
    %c2 = arith.constant 2 : index
    %c0_18 = arith.constant 0 : index
    %c0_19 = arith.constant 0 : index
    %28 = vector.load %arg12[%c2, %c0_18, %c0_19] : memref<8x256x128xbf16, #tpu.memory_space<vmem>>, vector<1x256x128xbf16>
    %29 = vector.shape_cast %28 : vector<1x256x128xbf16> to vector<256x128xbf16>
    %cst_20 = arith.constant dense<0.000000e+00> : vector<8x128xf32>
    %30 = tpu.matmul %27, %29, %cst_20 {dimension_numbers = #tpu.dot_dimension_numbers<[1], [0], [0], [1], [0, 0, 1, 1], [], []>} : vector<8x256xbf16>, vector<256x128xbf16>, vector<8x128xf32> -> vector<8x128xf32>
    %31 = arith.addf %24, %30 : vector<8x128xf32>
    %c0_21 = arith.constant 0 : index
    %c0_22 = arith.constant 0 : index
    %32 = vector.load %arg20[%c0_21, %c0_22] : memref<8x128xf32, #tpu.memory_space<vmem>>, vector<8x128xf32>
    tpu.vector_store %arg20[%c0_21, %c0_22], %31 {strides = array<i32>} : memref<8x128xf32, #tpu.memory_space<vmem>>, vector<8x128xf32>,
    %c0_23 = arith.constant 0 : index
    %c0_24 = arith.constant 0 : index
    %33 = vector.load %arg20[%c0_23, %c0_24] : memref<8x128xf32, #tpu.memory_space<vmem>>, vector<8x128xf32>
    %34 = vector.extract_strided_slice %5 {offsets = [0, 3, 0], sizes = [8, 1, 256], strides = [1, 1, 1]} : vector<8x8x256xf32> to vector<8x1x256xf32>
    %35 = vector.shape_cast %34 : vector<8x1x256xf32> to vector<8x256xf32>
    %36 = arith.truncf %35 : vector<8x256xf32> to vector<8x256xbf16>
    %c3 = arith.constant 3 : index
    %c0_25 = arith.constant 0 : index
    %c0_26 = arith.constant 0 : index
    %37 = vector.load %arg12[%c3, %c0_25, %c0_26] : memref<8x256x128xbf16, #tpu.memory_space<vmem>>, vector<1x256x128xbf16>
    %38 = vector.shape_cast %37 : vector<1x256x128xbf16> to vector<256x128xbf16>
    %cst_27 = arith.constant dense<0.000000e+00> : vector<8x128xf32>
    %39 = tpu.matmul %36, %38, %cst_27 {dimension_numbers = #tpu.dot_dimension_numbers<[1], [0], [0], [1], [0, 0, 1, 1], [], []>} : vector<8x256xbf16>, vector<256x128xbf16>, vector<8x128xf32> -> vector<8x128xf32>
    %40 = arith.addf %33, %39 : vector<8x128xf32>
    %c0_28 = arith.constant 0 : index
    %c0_29 = arith.constant 0 : index
    %41 = vector.load %arg20[%c0_28, %c0_29] : memref<8x128xf32, #tpu.memory_space<vmem>>, vector<8x128xf32>
    tpu.vector_store %arg20[%c0_28, %c0_29], %40 {strides = array<i32>} : memref<8x128xf32, #tpu.memory_space<vmem>>, vector<8x128xf32>,
    %c0_30 = arith.constant 0 : index
    %c0_31 = arith.constant 0 : index
    %42 = vector.load %arg20[%c0_30, %c0_31] : memref<8x128xf32, #tpu.memory_space<vmem>>, vector<8x128xf32>
    %43 = vector.extract_strided_slice %5 {offsets = [0, 4, 0], sizes = [8, 1, 256], strides = [1, 1, 1]} : vector<8x8x256xf32> to vector<8x1x256xf32>
    %44 = vector.shape_cast %43 : vector<8x1x256xf32> to vector<8x256xf32>
    %45 = arith.truncf %44 : vector<8x256xf32> to vector<8x256xbf16>
    %c4 = arith.constant 4 : index
    %c0_32 = arith.constant 0 : index
    %c0_33 = arith.constant 0 : index
    %46 = vector.load %arg12[%c4, %c0_32, %c0_33] : memref<8x256x128xbf16, #tpu.memory_space<vmem>>, vector<1x256x128xbf16>
    %47 = vector.shape_cast %46 : vector<1x256x128xbf16> to vector<256x128xbf16>
    %cst_34 = arith.constant dense<0.000000e+00> : vector<8x128xf32>
    %48 = tpu.matmul %45, %47, %cst_34 {dimension_numbers = #tpu.dot_dimension_numbers<[1], [0], [0], [1], [0, 0, 1, 1], [], []>} : vector<8x256xbf16>, vector<256x128xbf16>, vector<8x128xf32> -> vector<8x128xf32>
    %49 = arith.addf %42, %48 : vector<8x128xf32>
    %c0_35 = arith.constant 0 : index
    %c0_36 = arith.constant 0 : index
    %50 = vector.load %arg20[%c0_35, %c0_36] : memref<8x128xf32, #tpu.memory_space<vmem>>, vector<8x128xf32>
    tpu.vector_store %arg20[%c0_35, %c0_36], %49 {strides = array<i32>} : memref<8x128xf32, #tpu.memory_space<vmem>>, vector<8x128xf32>,
    %c0_37 = arith.constant 0 : index
    %c0_38 = arith.constant 0 : index
    %51 = vector.load %arg20[%c0_37, %c0_38] : memref<8x128xf32, #tpu.memory_space<vmem>>, vector<8x128xf32>
    %52 = vector.extract_strided_slice %5 {offsets = [0, 5, 0], sizes = [8, 1, 256], strides = [1, 1, 1]} : vector<8x8x256xf32> to vector<8x1x256xf32>
    %53 = vector.shape_cast %52 : vector<8x1x256xf32> to vector<8x256xf32>
    %54 = arith.truncf %53 : vector<8x256xf32> to vector<8x256xbf16>
    %c5 = arith.constant 5 : index
    %c0_39 = arith.constant 0 : index
    %c0_40 = arith.constant 0 : index
    %55 = vector.load %arg12[%c5, %c0_39, %c0_40] : memref<8x256x128xbf16, #tpu.memory_space<vmem>>, vector<1x256x128xbf16>
    %56 = vector.shape_cast %55 : vector<1x256x128xbf16> to vector<256x128xbf16>
    %cst_41 = arith.constant dense<0.000000e+00> : vector<8x128xf32>
    %57 = tpu.matmul %54, %56, %cst_41 {dimension_numbers = #tpu.dot_dimension_numbers<[1], [0], [0], [1], [0, 0, 1, 1], [], []>} : vector<8x256xbf16>, vector<256x128xbf16>, vector<8x128xf32> -> vector<8x128xf32>
    %58 = arith.addf %51, %57 : vector<8x128xf32>
    %c0_42 = arith.constant 0 : index
    %c0_43 = arith.constant 0 : index
    %59 = vector.load %arg20[%c0_42, %c0_43] : memref<8x128xf32, #tpu.memory_space<vmem>>, vector<8x128xf32>
    tpu.vector_store %arg20[%c0_42, %c0_43], %58 {strides = array<i32>} : memref<8x128xf32, #tpu.memory_space<vmem>>, vector<8x128xf32>,
    %c0_44 = arith.constant 0 : index
    %c0_45 = arith.constant 0 : index
    %60 = vector.load %arg20[%c0_44, %c0_45] : memref<8x128xf32, #tpu.memory_space<vmem>>, vector<8x128xf32>
    %61 = vector.extract_strided_slice %5 {offsets = [0, 6, 0], sizes = [8, 1, 256], strides = [1, 1, 1]} : vector<8x8x256xf32> to vector<8x1x256xf32>
    %62 = vector.shape_cast %61 : vector<8x1x256xf32> to vector<8x256xf32>
    %63 = arith.truncf %62 : vector<8x256xf32> to vector<8x256xbf16>
    %c6 = arith.constant 6 : index
    %c0_46 = arith.constant 0 : index
    %c0_47 = arith.constant 0 : index
    %64 = vector.load %arg12[%c6, %c0_46, %c0_47] : memref<8x256x128xbf16, #tpu.memory_space<vmem>>, vector<1x256x128xbf16>
    %65 = vector.shape_cast %64 : vector<1x256x128xbf16> to vector<256x128xbf16>
    %cst_48 = arith.constant dense<0.000000e+00> : vector<8x128xf32>
    %66 = tpu.matmul %63, %65, %cst_48 {dimension_numbers = #tpu.dot_dimension_numbers<[1], [0], [0], [1], [0, 0, 1, 1], [], []>} : vector<8x256xbf16>, vector<256x128xbf16>, vector<8x128xf32> -> vector<8x128xf32>
    %67 = arith.addf %60, %66 : vector<8x128xf32>
    %c0_49 = arith.constant 0 : index
    %c0_50 = arith.constant 0 : index
    %68 = vector.load %arg20[%c0_49, %c0_50] : memref<8x128xf32, #tpu.memory_space<vmem>>, vector<8x128xf32>
    tpu.vector_store %arg20[%c0_49, %c0_50], %67 {strides = array<i32>} : memref<8x128xf32, #tpu.memory_space<vmem>>, vector<8x128xf32>,
    %c0_51 = arith.constant 0 : index
    %c0_52 = arith.constant 0 : index
    %69 = vector.load %arg20[%c0_51, %c0_52] : memref<8x128xf32, #tpu.memory_space<vmem>>, vector<8x128xf32>
    %70 = vector.extract_strided_slice %5 {offsets = [0, 7, 0], sizes = [8, 1, 256], strides = [1, 1, 1]} : vector<8x8x256xf32> to vector<8x1x256xf32>
    %71 = vector.shape_cast %70 : vector<8x1x256xf32> to vector<8x256xf32>
    %72 = arith.truncf %71 : vector<8x256xf32> to vector<8x256xbf16>
    %c7 = arith.constant 7 : index
    %c0_53 = arith.constant 0 : index
    %c0_54 = arith.constant 0 : index
    %73 = vector.load %arg12[%c7, %c0_53, %c0_54] : memref<8x256x128xbf16, #tpu.memory_space<vmem>>, vector<1x256x128xbf16>
    %74 = vector.shape_cast %73 : vector<1x256x128xbf16> to vector<256x128xbf16>
    %cst_55 = arith.constant dense<0.000000e+00> : vector<8x128xf32>
    %75 = tpu.matmul %72, %74, %cst_55 {dimension_numbers = #tpu.dot_dimension_numbers<[1], [0], [0], [1], [0, 0, 1, 1], [], []>} : vector<8x256xbf16>, vector<256x128xbf16>, vector<8x128xf32> -> vector<8x128xf32>
    %76 = arith.addf %69, %75 : vector<8x128xf32>
    %c0_56 = arith.constant 0 : index
    %c0_57 = arith.constant 0 : index
    %77 = vector.load %arg20[%c0_56, %c0_57] : memref<8x128xf32, #tpu.memory_space<vmem>>, vector<8x128xf32>
    tpu.vector_store %arg20[%c0_56, %c0_57], %76 {strides = array<i32>} : memref<8x128xf32, #tpu.memory_space<vmem>>, vector<8x128xf32>,
    %c0_i32_58 = arith.constant 0 : i32
    %78 = arith.cmpi eq, %arg1, %c0_i32_58 : i32
    %79 = arith.extui %78 : i1 to i32
    %c0_i32_59 = arith.constant 0 : i32
    %80 = arith.cmpi ne, %79, %c0_i32_59 : i32
    scf.if %80 {
      %c0_60 = arith.constant 0 : index
      %c0_61 = arith.constant 0 : index
      %81 = vector.load %arg20[%c0_60, %c0_61] : memref<8x128xf32, #tpu.memory_space<vmem>>, vector<8x128xf32>
      %c0_62 = arith.constant 0 : index
      %c0_63 = arith.constant 0 : index
      %82 = vector.load %arg13[%c0_62, %c0_63] : memref<1x128xf32, #tpu.memory_space<vmem>>, vector<1x128xf32>
      %83 = vector.broadcast %82 : vector<1x128xf32> to vector<8x128xf32>
      %84 = arith.addf %81, %83 : vector<8x128xf32>
      %c0_64 = arith.constant 0 : index
      %c0_65 = arith.constant 0 : index
      %85 = vector.load %arg14[%c0_64, %c0_65] : memref<8x128xf32, #tpu.memory_space<vmem>>, vector<8x128xf32>
      tpu.vector_store %arg14[%c0_64, %c0_65], %84 {strides = array<i32>} : memref<8x128xf32, #tpu.memory_space<vmem>>, vector<8x128xf32>,
    } else {
    }
    return
  }
  func.func @transform_0(%arg0: i32, %arg1: i32) -> (i32, i32, i32) {
    %c0_i32 = arith.constant 0 : i32
    %c0_i32_0 = arith.constant 0 : i32
    %c0_i32_1 = arith.constant 0 : i32
    return %arg0, %c0_i32, %c0_i32_0 : i32, i32, i32
  }
  func.func @transform_1(%arg0: i32, %arg1: i32) -> (i32, i32) {
    %c0_i32 = arith.constant 0 : i32
    %c0_i32_0 = arith.constant 0 : i32
    %c0_i32_1 = arith.constant 0 : i32
    return %c0_i32, %c0_i32_0 : i32, i32
  }
  func.func @transform_2(%arg0: i32, %arg1: i32) -> (i32, i32, i32) {
    %c0_i32 = arith.constant 0 : i32
    %c0_i32_0 = arith.constant 0 : i32
    %c0_i32_1 = arith.constant 0 : i32
    %c0_i32_2 = arith.constant 0 : i32
    return %c0_i32, %c0_i32_0, %c0_i32_1 : i32, i32, i32
  }
  func.func @transform_3(%arg0: i32, %arg1: i32) -> (i32, i32, i32) {
    %c0_i32 = arith.constant 0 : i32
    %c0_i32_0 = arith.constant 0 : i32
    %c0_i32_1 = arith.constant 0 : i32
    %c0_i32_2 = arith.constant 0 : i32
    return %c0_i32, %c0_i32_0, %c0_i32_1 : i32, i32, i32
  }
  func.func @transform_4(%arg0: i32, %arg1: i32) -> (i32, i32) {
    %c0_i32 = arith.constant 0 : i32
    %c0_i32_0 = arith.constant 0 : i32
    %c0_i32_1 = arith.constant 0 : i32
    return %c0_i32, %c0_i32_0 : i32, i32
  }
  func.func @transform_5(%arg0: i32, %arg1: i32) -> (i32, i32) {
    %c0_i32 = arith.constant 0 : i32
    %c0_i32_0 = arith.constant 0 : i32
    %c0_i32_1 = arith.constant 0 : i32
    return %c0_i32, %c0_i32_0 : i32, i32
  }
  func.func @transform_6(%arg0: i32, %arg1: i32) -> (i32, i32) {
    %c0_i32 = arith.constant 0 : i32
    %c0_i32_0 = arith.constant 0 : i32
    %c0_i32_1 = arith.constant 0 : i32
    return %c0_i32, %c0_i32_0 : i32, i32
  }
  func.func @transform_7(%arg0: i32, %arg1: i32) -> (i32, i32) {
    %c0_i32 = arith.constant 0 : i32
    %c0_i32_0 = arith.constant 0 : i32
    %c0_i32_1 = arith.constant 0 : i32
    return %c0_i32, %c0_i32_0 : i32, i32
  }
  func.func @transform_8(%arg0: i32, %arg1: i32) -> (i32, i32) {
    %c0_i32 = arith.constant 0 : i32
    %c0_i32_0 = arith.constant 0 : i32
    %c0_i32_1 = arith.constant 0 : i32
    return %c0_i32, %c0_i32_0 : i32, i32
  }
  func.func @transform_9(%arg0: i32, %arg1: i32) -> (i32, i32) {
    %c0_i32 = arith.constant 0 : i32
    %c0_i32_0 = arith.constant 0 : i32
    %c0_i32_1 = arith.constant 0 : i32
    return %c0_i32, %c0_i32_0 : i32, i32
  }
  func.func @transform_10(%arg0: i32, %arg1: i32) -> (i32, i32, i32) {
    %c0_i32 = arith.constant 0 : i32
    %c0_i32_0 = arith.constant 0 : i32
    %c0_i32_1 = arith.constant 0 : i32
    return %arg1, %c0_i32, %c0_i32_0 : i32, i32, i32
  }
  func.func @transform_11(%arg0: i32, %arg1: i32) -> (i32, i32) {
    %c0_i32 = arith.constant 0 : i32
    %c0_i32_0 = arith.constant 0 : i32
    %c0_i32_1 = arith.constant 0 : i32
    return %c0_i32, %c0_i32_0 : i32, i32
  }
  func.func @transform_12(%arg0: i32, %arg1: i32) -> (i32, i32) {
    %c0_i32 = arith.constant 0 : i32
    %c0_i32_0 = arith.constant 0 : i32
    return %arg0, %c0_i32 : i32, i32
  }
}

</mosaic_0001>

<bundles_post_ra>
// kernel: ecg_encoder_forward.1
= control target key start
LH: loop header
LB: loop body
LE: loop exit
PB: predicated region body
PF: predicated region fallthrough
CT: control target
= control target key end

     0   :  { %s21818_s0 = inlined_call_operand.vmem [shape: bf16[32,64,32], index: 0, kind: input, shape index: {}]   ;;  %s21819_s1 = inlined_call_operand.vmem [shape: bf16[32,64], index: 1, kind: input, shape index: {}]   ;;  %s21820_s2 = inlined_call_operand.vmem [shape: bf16[16,64,128], index: 2, kind: input, shape index: {}]   ;;  %s21821_s3 = inlined_call_operand.vmem [shape: bf16[8,128,256], index: 3, kind: input, shape index: {}]   ;;  %s21822_s4 = inlined_call_operand.hbm [shape: bf16[256,512], index: 4, kind: input, shape index: {}]   ;;  %s21823_s5 = inlined_call_operand.hbm [shape: bf16[256,512], index: 5, kind: input, shape index: {}]   ;;  %s21824_s6 = inlined_call_operand.hbm [shape: bf16[128,256], index: 6, kind: input, shape index: {}]   ;;  %s21825_s7 = inlined_call_operand.hbm [shape: bf16[128,256], index: 7, kind: input, shape index: {}]   ;;  %s21826_s8 = inlined_call_operand.vmem [shape: bf16[64,128], index: 8, kind: input, shape index: {}]   ;;  %s21827_s9 = inlined_call_operand.vmem [shape: bf16[64,128], index: 9, kind: input, shape index: {}]   ;;  %s21828_s10 = inlined_call_operand.vmem [shape: bf16[8,256,128], index: 10, kind: input, shape index: {}]   ;;  %s21829_s11 = inlined_call_operand.vmem [shape: f32[1,128], index: 11, kind: input, shape index: {}]   ;;  %s21830_s12 = inlined_call_operand.hbm [shape: f32[32,128], index: 12, kind: output, shape index: {}]  }
   0x1   :  { %21843 = sst [smem:[#allocation31_spill]] %s21823_s5 }
   0x2   :  { %21844 = sst [smem:[#allocation32_spill]] %s21829_s11 }
   0x3   :  { %21845 = sst [smem:[#allocation33_spill]] %s21830_s12 }
   0x4   :  { %17 = vsyncpa [#allocation9], 0 }
   0x5   :  { %18 = vsyncpa [#allocation12], 0 }
   0x6   :  { %19 = vsyncpa [#allocation15], 0 }
   0x7   :  { %20 = vsyncpa [#allocation10], 0 }
   0x8   :  { %22 = vsyncpa [#allocation10 + $0x1], 0  ;;  %s19140_s21 = smov 0   ;;  %s19142_s22 = smov 0  }
   0x9   :  { %s19144_s23 = smov 0   ;;  %s19146_s24 = smov 0  }
   0xa   :  { %s19148_s25 = smov 0   ;;  %s19150_s26 = smov 0  }
   0xb LB: > { %21846 = sst [smem:[#allocation21_spill]] %s19042_s21  ;;  %s14284_s27 = sadd.s32 4294967295, %s19062_s26   ;;  %s19062_s26 = sphi %s19150_s26, %s28_s26   ;;  %s19058_s25 = sphi %s19148_s25, %s21881_s25   ;;  %s19054_s24 = sphi %s19146_s24, %s21877_s24   ;;  %s19050_s23 = sphi %s19144_s23, %s21876_s23   ;;  %s19046_s22 = sphi %s19142_s22, %s21880_s22   ;;  %s19042_s21 = sphi %s19140_s21, %s21879_s21  }
   0xc   : > { %21847 = sst [smem:[#allocation22_spill]] %s19050_s23  ;;  %s14285_s28 = sadd.s32 4294967294, %s19062_s26  }
   0xd   : > { %21848 = sst [smem:[#allocation23_spill]] %s19058_s25  ;;  %s40_s29 = sadd.s32 1, %s19058_s25 }
   0xe   : > { %21849 = sst [smem:[#allocation24_spill]] %s19062_s26  ;;  %s309_s30 = sadd.s32 1, %s19050_s23 }
   0xf   : > { %p42_p0 = scmp.ge.s32.totalorder %s40_s29, 4  ;;  %p319_p1 = scmp.ne.s32.totalorder %s19050_s23, %s19046_s22 }
  0x10   : > { %p320_p2 = scmp.eq.s32.totalorder %s14284_s27, 3  ;;  %p325_p3 = scmp.ne.s32.totalorder %s19046_s22, %s19042_s21 }
  0x11   : > { %s21883_s29 = smov (%p42_p0, %s40_s29), 0  ;;  %p326_p5 = scmp.eq.s32.totalorder %s14285_s28, 3 }
  0x12   : > { %21850 = sst [smem:[#allocation25_spill]] %s21883_s29  ;;  %p19180_p4 = por %p320_p2, %p319_p1 }
  0x13   : > { %s306_s14 = ssub.s32 %s19058_s25, %s21883_s29  ;;  %p14286_p6 = scmp.ge.s32.totalorder %s19062_s26, 1 }
  0x14   : > { %s21851_s13 = scalar_select %p19180_p4, 1, 0 }
  0x15   : > { %p307_p7 = scmp.eq.s32.totalorder %s306_s14, 0  ;;  %p19187_p8 = por %p326_p5, %p325_p3 }
  0x16   : > { %p333_p9 = scmp.lt.s32.totalorder %s19062_s26, 5  ;;  %p19199_p11 = scmp.eq.s32.totalorder %s14284_s27, 0 }
  0x17   : > { %s21852_s15 = scalar_select %p19187_p8, 1, 0 }
  0x18   : > { %s19193_s16 = scalar_select %p307_p7, %s19050_s23, %s309_s30  }
  0x19   : > { %21853 = sst [smem:[#allocation26_spill]] %s21852_s15  ;;  %p19195_p10 = pnand %p14286_p6, %p333_p9 }
  0x1a   : > { %21854 = sst [smem:[#allocation27_spill]] %s19193_s16  ;;  %s19064_s19 = smov [#allocation11]  }
  0x1b   : > { %s21855_s17 = scalar_select %p19195_p10, 1, 0 }
  0x1c   : > { %s21856_s18 = scalar_select %p19199_p11, 1, 0 }
  0x1d   : > { %p18110_p12 = pneg %p19195_p10  ;;  %s367_s20 = sshll.u32 %s19064_s19, 4  ;;  %s368_s20 = int_to_ptr.vmem [resolvable:$true] %s367_s20 }
  0x1e   : > { %s19065_s30 = smov [#allocation8]   ;;  %s21858_s5 = sld [smem:[#allocation31_spill]] }
  0x1f   : > { %p19207_p13 = pnand %p19199_p11, %p18110_p12  ;;  %s354_s14 = sshll.u32 %s19065_s30, 4  ;;  %s355_s14 = int_to_ptr.vmem [resolvable:$true] %s354_s14 }
  0x21   : > { %p19219_p1 = pneg %p19207_p13 }
  0x24   : > { %s18860_s27 = scalar_lea.hbm %s21858_s5, 8192 }
  0x25   : > { %p18861_p0 = scmp.ne.s32.totalorder %s21858_s5, %s18860_s27  ;;  %p18867_p5 = scmp.lt.u32.totalorder %s18860_s27, %s21858_s5 }
  0x27   : > { %p18863_p2 = pnand %p19219_p1, %p18861_p0 }
  0x29   : > { %p18864_p3 = pneg %p18863_p2 }
  0x2b   : > { %p18869_p6 = pnand %p18867_p5, %p18864_p3 }
  0x2d   : > { %18872 = shalt.err (!%p18869_p6)
}
  0x2e   : > { %s18873_s25 = scalar_lea.vmem %s368_s20, 8192  ;;  %p18881_p8 = scmp.lt.s32.totalorder %s368_s20, %s368_s20 }
  0x2f   : > { %p18874_p7 = scmp.ne.s32.totalorder %s368_s20, %s18873_s25  ;;  %p18882_p4 = scmp.lt.s32.totalorder %s18873_s25, %s18873_s25 }
  0x31   : > { %p18876_p9 = pnand %p18874_p7, %p19219_p1  ;;  %p18883_p11 = por %p18882_p4, %p18881_p8 }
  0x33   : > { %p18877_p12 = pneg %p18876_p9 }
  0x35   : > { %p18884_p10 = pnand %p18883_p11, %p18877_p12 }
  0x37   : > { %18887 = shalt.err (!%p18884_p10)
}
  0x38   : > { %s19066_s23 = smov 256   ;;  %s19067_s29 = smov 16  }
  0x39   : > { %18116 = dma.hbm_to_vmem [thread:$0]  (!%p19207_p13), %s21858_s5, 8192, %s368_s20, [#allocation12], %s19066_s23, %s19066_s23, %s19067_s29  }
  0x3a   : > { %s18888_s27 = scalar_lea.hbm %s21822_s4, 8192 }
  0x3b   : > { %p18889_p4 = scmp.ne.s32.totalorder %s21822_s4, %s18888_s27  ;;  %p18895_p11 = scmp.lt.u32.totalorder %s18888_s27, %s21822_s4 }
  0x3d   : > { %p18891_p8 = pnand %p18889_p4, %p19219_p1 }
  0x3f   : > { %p18892_p10 = pneg %p18891_p8 }
  0x41   : > { %p18897_p0 = pnand %p18895_p11, %p18892_p10 }
  0x43   : > { %18900 = shalt.err (!%p18897_p0)
}
  0x44   : > { %s18901_s21 = scalar_lea.vmem %s355_s14, 8192  ;;  %p18909_p6 = scmp.lt.s32.totalorder %s355_s14, %s355_s14 }
  0x45   : > { %p18902_p2 = scmp.ne.s32.totalorder %s355_s14, %s18901_s21  ;;  %p18910_p7 = scmp.lt.s32.totalorder %s18901_s21, %s18901_s21 }
  0x47   : > { %p18904_p3 = pnand %p18902_p2, %p19219_p1  ;;  %p18911_p9 = por %p18910_p7, %p18909_p6 }
  0x49   : > { %p18905_p5 = pneg %p18904_p3 }
  0x4b   : > { %p18912_p12 = pnand %p18911_p9, %p18905_p5 }
  0x4d   : > { %18915 = shalt.err (!%p18912_p12)
}
  0x4e   : > { %18113 = dma.hbm_to_vmem [thread:$0]  (!%p19207_p13), %s21822_s4, 8192, %s355_s14, [#allocation9], %s19066_s23, %s19066_s23, %s19067_s29  }
  0x4f   : > { %s19068_s11 = smov [#allocation13]   ;;  %s18916_s30 = scalar_lea.hbm %s21824_s6, 2048 }
  0x50   : > { %s380_s20 = sshll.u32 %s19068_s11, 4  ;;  %p18917_p4 = scmp.ne.s32.totalorder %s21824_s6, %s18916_s30  ;;  %s381_s20 = int_to_ptr.vmem [resolvable:$true] %s380_s20 }
  0x51   : > { %p18923_p11 = scmp.lt.u32.totalorder %s18916_s30, %s21824_s6 }
  0x52   : > { %p18919_p8 = pnand %p18917_p4, %p19219_p1 }
  0x54   : > { %p18920_p10 = pneg %p18919_p8 }
  0x56   : > { %p18925_p0 = pnand %p18923_p11, %p18920_p10 }
  0x58   : > { %18928 = shalt.err (!%p18925_p0)
}
  0x59   : > { %s18929_s14 = scalar_lea.vmem %s381_s20, 2048  ;;  %p18937_p6 = scmp.lt.s32.totalorder %s381_s20, %s381_s20 }
  0x5a   : > { %p18930_p2 = scmp.ne.s32.totalorder %s381_s20, %s18929_s14  ;;  %p18938_p7 = scmp.lt.s32.totalorder %s18929_s14, %s18929_s14 }
  0x5c   : > { %p18932_p3 = pnand %p18930_p2, %p19219_p1  ;;  %p18939_p9 = por %p18938_p7, %p18937_p6 }
  0x5e   : > { %p18933_p5 = pneg %p18932_p3 }
  0x60   : > { %p18940_p12 = pnand %p18939_p9, %p18933_p5 }
  0x62   : > { %18943 = shalt.err (!%p18940_p12)
}
  0x63   : > { %s19069_s23 = smov 128   ;;  %s19070_s29 = smov 8  }
  0x64   : > { %18119 = dma.hbm_to_vmem [thread:$0]  (!%p19207_p13), %s21824_s6, 2048, %s381_s20, [#allocation12], %s19069_s23, %s19069_s23, %s19070_s29  }
  0x65   : > { %s19071_s26 = smov [#allocation14]   ;;  %s18944_s30 = scalar_lea.hbm %s21825_s7, 2048 }
  0x66   : > { %s393_s11 = sshll.u32 %s19071_s26, 4  ;;  %p18945_p4 = scmp.ne.s32.totalorder %s21825_s7, %s18944_s30  ;;  %s394_s11 = int_to_ptr.vmem [resolvable:$true] %s393_s11 }
  0x67   : > { %p18951_p11 = scmp.lt.u32.totalorder %s18944_s30, %s21825_s7 }
  0x68   : > { %p18947_p8 = pnand %p18945_p4, %p19219_p1 }
  0x6a   : > { %p18948_p10 = pneg %p18947_p8 }
  0x6c   : > { %p18953_p0 = pnand %p18951_p11, %p18948_p10 }
  0x6e   : > { %18956 = shalt.err (!%p18953_p0)
}
  0x6f   : > { %s18957_s20 = scalar_lea.vmem %s394_s11, 2048  ;;  %p18965_p6 = scmp.lt.s32.totalorder %s394_s11, %s394_s11 }
  0x70   : > { %p18958_p2 = scmp.ne.s32.totalorder %s394_s11, %s18957_s20  ;;  %p18966_p7 = scmp.lt.s32.totalorder %s18957_s20, %s18957_s20 }
  0x72   : > { %p18960_p3 = pnand %p18958_p2, %p19219_p1  ;;  %p18967_p9 = por %p18966_p7, %p18965_p6 }
  0x74   : > { %p18961_p5 = pneg %p18960_p3 }
  0x76   : > { %p18968_p12 = pnand %p18967_p9, %p18961_p5 }
  0x78   : > { %18971 = shalt.err (!%p18968_p12)
}
  0x79   : > { %18122 = dma.hbm_to_vmem [thread:$0]  (!%p19207_p13), %s21825_s7, 2048, %s394_s11, [#allocation15], %s19069_s23, %s19069_s23, %s19070_s29  }
  0x7a   : > { %p21860_p4 = scmp.ne.s32.totalorder %s21855_s17, 0 }
  0x7c   : > { %438 = sbr.rel (%p21860_p4) target bundleno = 3895 (0xf37), region = 68 }
  0x83   : > { %p21861_p8 = scmp.ne.s32.totalorder %s21856_s18, 0 }
  0x85   : > { %19025 = dma.done.wait (%p21861_p8), [#allocation9], 8192  }
  0x86   : > { %19027 = vsyncadd (%p21861_p8), [#allocation9], 4294959104 }
  0x87   : > { %19029 = dma.done.wait (%p21861_p8), [#allocation12], 10240  }
  0x88   : > { %19031 = vsyncadd (%p21861_p8), [#allocation12], 4294957056 }
  0x89   : > { %19033 = dma.done.wait (%p21861_p8), [#allocation15], 2048  }
  0x8a   : > { %19035 = vsyncadd (%p21861_p8), [#allocation15], 4294965248  ;;  %s14299_s17 = sshll.u32 %s19054_s24, 3  ;;  %v18194_v0 = vld [vmem:[%s21819_s1] sm:$0xff]   ;;  %v18195_v1 = vld [vmem:[%s21819_s1 + $0x8] sm:$0xff]   ;;  %vm758_vm0 = vcmask 261120  }
  0x8b   : > { %p500_p13 = scmp.lt.s32.totalorder %s14299_s17, 31  ;;  %16680 = vmatprep.subr.bf16.mxu0 %v18194_v0  ;;  %v18230_v34 = vld [vmem:[#allocation8 + $0x4] ss:$16 sps:$4 sm:$0xff]   ;;  %v18233_v40 = vld [vmem:[#allocation8 + $0xc] ss:$16 sps:$4 sm:$0xff]   ;;  %vm2652_vm1 = vcmask 523264  }
  0x8c   : > { %16681 = vmatpush3.bf16.msra.mxu0 %v18194_v0  ;;  %1592 = vmatprep.mubr.bf16.mxu1 %v18230_v34  ;;  %v18240_v34 = vld [vmem:[#allocation8 + $0x44] ss:$16 sps:$4 sm:$0xff]   ;;  %vm12528_vm2 = vcmask 1041409   ;;  %vm12531_vm3 = vcmask 1042434   ;;  %vm12534_vm4 = vcmask 1043459   ;;  %vm12537_vm5 = vcmask 1044484  }
  0x8d   : > { %s21885_s17 = smov (!%p500_p13, %s14299_s17), 31  ;;  %16682 = vmatprep.subr.bf16.mxu0 %v18195_v1  ;;  %vm12540_vm6 = vcmask 1045509   ;;  %vm12543_vm7 = vcmask 1046534   ;;  %vm12546_vm8 = vcmask 1047559   ;;  %s496_s12 = sand.u32 1, %s19046_s22  }
  0x8e   : > { %s15573_s28 = sshll.u32 %s21885_s17, 5  ;;  %s14298_s17 = sshll.u32 %s496_s12, 3 }
  0x8f   : > { %s19307_s29 = scalar_lea.vmem %s21818_s0, %s15573_s28  ;;  %s21868_s23 = sld [smem:[#allocation32_spill]] }
  0x90   : > { %v18196_v2 = vld [vmem:[%s19307_s29] sm:$0xff]   ;;  %v18197_v3 = vld [vmem:[%s19307_s29 + $0x8] sm:$0xff]   ;;  %16683 = vmatpush3.bf16.msra.mxu0 %v18195_v1  ;;  %v18198_v4 = vld [vmem:[%s19307_s29 + $0x10] sm:$0xff]   ;;  %s498_s26 = scalar_lea.vmem [#allocation16], %s14298_s17  ;;  %s21869_s16 = sld [smem:[#allocation33_spill]] }
  0x91   : > { %16684 = vmatprep.mubr.msk.bf16.mxu0 %vm758_vm0, %v18196_v2  ;;  %v18199_v5 = vld [vmem:[%s19307_s29 + $0x18] sm:$0xff]   ;;  %v18200_v6 = vld [vmem:[%s19307_s29 + $0x20] sm:$0xff]   ;;  %v18201_v7 = vld [vmem:[%s19307_s29 + $0x28] sm:$0xff]   ;;  %s14159_s11 = sshll.u32 %s498_s26, 4  ;;  %s14146_s27 = scalar_lea.sflag [#allocation10], %s496_s12  ;;  %s21773_s11 = int_to_ptr.vmem [resolvable:$true] %s14159_s11 }
  0x92   : > { %v18202_v8 = vld [vmem:[%s19307_s29 + $0x30] sm:$0xff]   ;;  %v18203_v9 = vld [vmem:[%s19307_s29 + $0x38] sm:$0xff]   ;;  %v18204_v10 = vld [vmem:[%s19307_s29 + $0x40] sm:$0xff]   ;;  %s18972_s25 = scalar_lea.vmem %s21773_s11, 128  ;;  %p21870_p10 = scmp.ne.s32.totalorder %s21851_s13, 0 }
  0x93   : > { %16685 = vmatmul.mubr.msk.bf16.vlgmr.msra.gmra.mrb[0].mxu0 %vm758_vm0, %v18197_v3  ;;  %v18205_v11 = vld [vmem:[%s19307_s29 + $0x48] sm:$0xff]   ;;  %v18206_v12 = vld [vmem:[%s19307_s29 + $0x50] sm:$0xff]   ;;  %v18207_v13 = vld [vmem:[%s19307_s29 + $0x58] sm:$0xff]   ;;  %p18973_p1 = scmp.ne.s32.totalorder %s21773_s11, %s18972_s25 }
  0x94   : > { %16688 = vmatprep.mubr.msk.bf16.mxu0 %vm758_vm0, %v18198_v4  ;;  %v18208_v14 = vld [vmem:[%s19307_s29 + $0x60] sm:$0xff]   ;;  %v18209_v15 = vld [vmem:[%s19307_s29 + $0x68] sm:$0xff]   ;;  %v18210_v16 = vld [vmem:[%s19307_s29 + $0x70] sm:$0xff]  }
  0x95   : > { %v18211_v17 = vld [vmem:[%s19307_s29 + $0x78] sm:$0xff]   ;;  %v18212_v18 = vld [vmem:[%s19307_s29 + $0x80] sm:$0xff]   ;;  %v18213_v19 = vld [vmem:[%s19307_s29 + $0x88] sm:$0xff]   ;;  %p18974_p11 = pnand %p18973_p1, %p21870_p10 }
  0x96   : > { %v18214_v20 = vld [vmem:[%s19307_s29 + $0x90] sm:$0xff]   ;;  %v18215_v21 = vld [vmem:[%s19307_s29 + $0x98] sm:$0xff]   ;;  %v18216_v22 = vld [vmem:[%s19307_s29 + $0xa0] sm:$0xff]  }
  0x97   : > { %v18217_v23 = vld [vmem:[%s19307_s29 + $0xa8] sm:$0xff]   ;;  %v18218_v24 = vld [vmem:[%s19307_s29 + $0xb0] sm:$0xff]   ;;  %v18219_v25 = vld [vmem:[%s19307_s29 + $0xb8] sm:$0xff]   ;;  %p18975_p0 = pneg %p18974_p11 }
  0x98   : > { %v18220_v26 = vld [vmem:[%s19307_s29 + $0xc0] sm:$0xff]   ;;  %v18221_v27 = vld [vmem:[%s19307_s29 + $0xc8] sm:$0xff]   ;;  %v18222_v28 = vld [vmem:[%s19307_s29 + $0xd0] sm:$0xff]  }
  0x99   : > { %v18223_v29 = vld [vmem:[%s19307_s29 + $0xd8] sm:$0xff]   ;;  %v18224_v30 = vld [vmem:[%s19307_s29 + $0xe0] sm:$0xff]   ;;  %v18225_v31 = vld [vmem:[%s19307_s29 + $0xe8] sm:$0xff]  }
  0x9a   : > { %v18226_v32 = vld [vmem:[%s19307_s29 + $0xf0] sm:$0xff]   ;;  %v18227_v33 = vld [vmem:[%s19307_s29 + $0xf8] sm:$0xff]   ;;  %s15570_s29 = sshll.u32 %s19054_s24, 7  ;;  %s19074_s24 = smov [#allocation16]  }
  0x9b   : > { %16689 = vmatmul.mubr.msk.bf16.gmra.mrb[4].mxu0 %vm758_vm0, %v18199_v5  ;;  %s21771_s30 = scalar_lea.hbm %s21869_s16, %s15570_s29  ;;  %s18976_s21 = sshll.u32 %s19074_s24, 4  ;;  %s18977_s21 = int_to_ptr.vmem [resolvable:$false] %s18976_s21 }
  0x9c   : > { %16692 = vmatprep.mubr.msk.bf16.mxu0 %vm758_vm0, %v18200_v6  ;;  %s18978_s14 = scalar_lea.vmem %s18977_s21, 256  ;;  %p18979_p2 = scmp.lt.s32.totalorder %s21773_s11, %s18977_s21 }
  0x9d   : > { %p18980_p3 = scmp.lt.s32.totalorder %s18978_s14, %s18972_s25 }
  0x9f   : > { %p18981_p5 = por %p18980_p3, %p18979_p2 }
  0xa1   : > { %p18982_p6 = pnand %p18981_p5, %p18975_p0 }
  0xa3   : > { %16693 = vmatmul.mubr.msk.bf16.gmra.mrb[8].mxu0 %vm758_vm0, %v18201_v7 }
  0xa4   : > { %16696 = vmatprep.mubr.msk.bf16.mxu0 %vm758_vm0, %v18202_v8 }
  0xab   : > { %16697 = vmatmul.mubr.msk.bf16.gmra.mrb[12].mxu0 %vm758_vm0, %v18203_v9 }
  0xac   : > { %16700 = vmatprep.mubr.msk.bf16.mxu0 %vm758_vm0, %v18204_v10 }
  0xb3   : > { %16701 = vmatmul.mubr.msk.bf16.gmra.mrb[16].mxu0 %vm758_vm0, %v18205_v11 }
  0xb4   : > { %16704 = vmatprep.mubr.msk.bf16.mxu0 %vm758_vm0, %v18206_v12 }
  0xbb   : > { %16705 = vmatmul.mubr.msk.bf16.gmra.mrb[20].mxu0 %vm758_vm0, %v18207_v13 }
  0xbc   : > { %16708 = vmatprep.mubr.msk.bf16.mxu0 %vm758_vm0, %v18208_v14 }
  0xc3   : > { %16709 = vmatmul.mubr.msk.bf16.gmra.mrb[24].mxu0 %vm758_vm0, %v18209_v15 }
  0xc4   : > { %16712 = vmatprep.mubr.msk.bf16.mxu0 %vm758_vm0, %v18210_v16 }
  0xcb   : > { %16713 = vmatmul.mubr.msk.bf16.gmra.mrb[28].mxu0 %vm758_vm0, %v18211_v17 }
  0xcc   : > { %16716 = vmatprep.mubr.msk.bf16.mxu0 %vm758_vm0, %v18212_v18 }
  0xd3   : > { %16717 = vmatmul.mubr.msk.bf16.gmra.mrb[32].mxu0 %vm758_vm0, %v18213_v19 }
  0xd4   : > { %16720 = vmatprep.mubr.msk.bf16.mxu0 %vm758_vm0, %v18214_v20 }
  0xdb   : > { %16721 = vmatmul.mubr.msk.bf16.gmra.mrb[36].mxu0 %vm758_vm0, %v18215_v21 }
  0xdc   : > { %16724 = vmatprep.mubr.msk.bf16.mxu0 %vm758_vm0, %v18216_v22 }
  0xe3   : > { %16725 = vmatmul.mubr.msk.bf16.gmra.mrb[40].mxu0 %vm758_vm0, %v18217_v23  ;;  %v18228_v23 = vld [vmem:[#allocation8] ss:$16 sps:$4 sm:$0xff]  }
  0xe4   : > { %16728 = vmatprep.mubr.msk.bf16.mxu0 %vm758_vm0, %v18218_v24 }
  0xeb   : > { %16729 = vmatmul.mubr.msk.bf16.gmra.mrb[44].mxu0 %vm758_vm0, %v18219_v25 }
  0xec   : > { %16732 = vmatprep.mubr.msk.bf16.mxu0 %vm758_vm0, %v18220_v26  ;;  %v18234_v26 = vld [vmem:[#allocation8 + $0x24] ss:$16 sps:$4 sm:$0xff]  }
  0xf3   : > { %16733 = vmatmul.mubr.msk.bf16.gmra.mrb[48].mxu0 %vm758_vm0, %v18221_v27 }
  0xf4   : > { %16736 = vmatprep.mubr.msk.bf16.mxu0 %vm758_vm0, %v18222_v28 }
  0xfb   : > { %16737 = vmatmul.mubr.msk.bf16.gmra.mrb[52].mxu0 %vm758_vm0, %v18223_v29 }
  0xfc   : > { %16740 = vmatprep.mubr.msk.bf16.mxu0 %vm758_vm0, %v18224_v30 }
 0x103   : > { %16741 = vmatmul.mubr.msk.bf16.gmra.mrb[56].mxu0 %vm758_vm0, %v18225_v31  ;;  %v18236_v31 = vld [vmem:[#allocation8 + $0x20] ss:$16 sps:$4 sm:$0xff]  }
 0x104   : > { %16744 = vmatprep.mubr.msk.bf16.mxu0 %vm758_vm0, %v18226_v32 }
 0x10b   : > { %16745 = vmatmul.mubr.msk.bf16.gmra.mrb[60].mxu0 %vm758_vm0, %v18227_v33 }
 0x10c   : > { %1753 = vmatprep.mubr.bf16.mxu0 %v18233_v40  ;;  %v18242_v40 = vld [vmem:[#allocation8 + $0x40] ss:$16 sps:$4 sm:$0xff]  }
 0x166   : > { %v16686_v35 = vpop.f32.mrb[0].mxu0 }
 0x167   : > { %v889_v36 = vpop.f32.mrb[1].mxu0 }
 0x168   : > { %v16687_v37 = vpop.f32.mrb[2].mxu0 }
 0x169   : > { %v892_v38 = vpop.f32.mrb[3].mxu0  ;;  %v19379_v39 = vpack.c.bf16 %v16687_v37, %v16686_v35 }
 0x16a   : > { %v19381_v41 = vpack.c.bf16 %v892_v38, %v889_v36 }
 0x16e   : > { %v16690_v42 = vpop.f32.mrb[4].mxu0 }
 0x16f   : > { %v905_v43 = vpop.f32.mrb[5].mxu0 }
 0x170   : > { %v16691_v44 = vpop.f32.mrb[6].mxu0 }
 0x171   : > { %v908_v45 = vpop.f32.mrb[7].mxu0  ;;  %v19383_v46 = vpack.c.bf16 %v16691_v44, %v16690_v42 }
 0x172   : > { %v19385_v47 = vpack.c.bf16 %v908_v45, %v905_v43  ;;  %v18246_v43 = vld [vmem:[#allocation8 + $0x64] ss:$16 sps:$4 sm:$0xff]  }
 0x176   : > { %v16694_v48 = vpop.f32.mrb[8].mxu0 }
 0x177   : > { %v921_v49 = vpop.f32.mrb[9].mxu0 }
 0x178   : > { %v16695_v50 = vpop.f32.mrb[10].mxu0 }
 0x179   : > { %v924_v51 = vpop.f32.mrb[11].mxu0  ;;  %v19387_v52 = vpack.c.bf16 %v16695_v50, %v16694_v48  ;;  %v18248_v48 = vld [vmem:[#allocation8 + $0x60] ss:$16 sps:$4 sm:$0xff]  }
 0x17a   : > { %v19389_v53 = vpack.c.bf16 %v924_v51, %v921_v49  ;;  %v18252_v51 = vld [vmem:[#allocation8 + $0x84] ss:$16 sps:$4 sm:$0xff]  }
 0x17e   : > { %v16698_v54 = vpop.f32.mrb[12].mxu0 }
 0x17f   : > { %v937_v55 = vpop.f32.mrb[13].mxu0 }
 0x180   : > { %v16699_v56 = vpop.f32.mrb[14].mxu0 }
 0x181   : > { %v940_v57 = vpop.f32.mrb[15].mxu0  ;;  %v19391_v58 = vpack.c.bf16 %v16699_v56, %v16698_v54  ;;  %v18254_v56 = vld [vmem:[#allocation8 + $0x80] ss:$16 sps:$4 sm:$0xff]  }
 0x182   : > { %v19393_v59 = vpack.c.bf16 %v940_v57, %v937_v55 }
 0x186   : > { %v16702_v60 = vpop.f32.mrb[16].mxu0 }
 0x187   : > { %v953_v61 = vpop.f32.mrb[17].mxu0 }
 0x188   : > { %v16703_v62 = vpop.f32.mrb[18].mxu0 }
 0x189   : > { %v956_v63 = vpop.f32.mrb[19].mxu0  ;;  %v1153_v0 = vpack.c.bf16 %v16703_v62, %v16702_v60 }
 0x18a   : > { %v1152_v1 = vpack.c.bf16 %v956_v63, %v953_v61  ;;  %v18258_v61 = vld [vmem:[#allocation8 + $0xa4] ss:$16 sps:$4 sm:$0xff]  }
 0x18c   : > { %15608 = vmatprep.subr.bf16.mxu1 %v1152_v1 }
 0x18d   : > { %15609 = vmatpush3.bf16.msra.mxu1 %v19381_v41 }
 0x18e   : > { %v16706_v2 = vpop.f32.mrb[20].mxu0  ;;  %15610 = vmatprep.subr.bf16.mxu1 %v1153_v0 }
 0x18f   : > { %v969_v3 = vpop.f32.mrb[21].mxu0 }
 0x190   : > { %v16707_v4 = vpop.f32.mrb[22].mxu0 }
 0x191   : > { %v972_v5 = vpop.f32.mrb[23].mxu0  ;;  %15611 = vmatpush3.bf16.msra.mxu1 %v19379_v39  ;;  %v1155_v6 = vpack.c.bf16 %v16707_v4, %v16706_v2 }
 0x192   : > { %v1154_v7 = vpack.c.bf16 %v972_v5, %v969_v3  ;;  %v18264_v3 = vld [vmem:[#allocation8 + $0xc4] ss:$16 sps:$4 sm:$0xff]  }
 0x194   : > { %15612 = vmatprep.subr.bf16.mxu1 %v1154_v7 }
 0x195   : > { %15613 = vmatpush3.bf16.msra.mxu1 %v19385_v47 }
 0x196   : > { %v16710_v8 = vpop.f32.mrb[24].mxu0  ;;  %15614 = vmatprep.subr.bf16.mxu1 %v1155_v6 }
 0x197   : > { %v985_v9 = vpop.f32.mrb[25].mxu0 }
 0x198   : > { %v16711_v10 = vpop.f32.mrb[26].mxu0 }
 0x199   : > { %v988_v11 = vpop.f32.mrb[27].mxu0  ;;  %15615 = vmatpush3.bf16.msra.mxu1 %v19383_v46  ;;  %v1157_v12 = vpack.c.bf16 %v16711_v10, %v16710_v8  ;;  %v18270_v10 = vld [vmem:[#allocation8 + $0xe4] ss:$16 sps:$4 sm:$0xff]  }
 0x19a   : > { %v1156_v13 = vpack.c.bf16 %v988_v11, %v985_v9 }
 0x19c   : > { %15616 = vmatprep.subr.bf16.mxu1 %v1156_v13 }
 0x19d   : > { %15617 = vmatpush3.bf16.msra.mxu1 %v19389_v53 }
 0x19e   : > { %v16714_v14 = vpop.f32.mrb[28].mxu0  ;;  %15618 = vmatprep.subr.bf16.mxu1 %v1157_v12 }
 0x19f   : > { %v1001_v15 = vpop.f32.mrb[29].mxu0 }
 0x1a0   : > { %v16715_v16 = vpop.f32.mrb[30].mxu0 }
 0x1a1   : > { %v1004_v17 = vpop.f32.mrb[31].mxu0  ;;  %15619 = vmatpush3.bf16.msra.mxu1 %v19387_v52  ;;  %v1159_v18 = vpack.c.bf16 %v16715_v16, %v16714_v14 }
 0x1a2   : > { %v1158_v19 = vpack.c.bf16 %v1004_v17, %v1001_v15  ;;  %v18272_v15 = vld [vmem:[#allocation8 + $0xe0] ss:$16 sps:$4 sm:$0xff]  }
 0x1a4   : > { %15620 = vmatprep.subr.bf16.mxu1 %v1158_v19 }
 0x1a5   : > { %15621 = vmatpush3.bf16.msra.mxu1 %v19393_v59 }
 0x1a6   : > { %v16718_v20 = vpop.f32.mrb[32].mxu0  ;;  %15622 = vmatprep.subr.bf16.mxu1 %v1159_v18 }
 0x1a7   : > { %v1017_v21 = vpop.f32.mrb[33].mxu0 }
 0x1a8   : > { %v16719_v22 = vpop.f32.mrb[34].mxu0 }
 0x1a9   : > { %v19402_v24 = vpack.c.bf16 %v16719_v22, %v16718_v20  ;;  %v1020_v25 = vpop.f32.mrb[35].mxu0  ;;  %15623 = vmatpush3.bf16.msra.mxu1 %v19391_v58  ;;  %v18231_v20 = vld [vmem:[#allocation8 + $0x8] ss:$16 sps:$4 sm:$0xff]   ;;  %v18237_v22 = vld [vmem:[#allocation8 + $0x2c] ss:$16 sps:$4 sm:$0xff]  }
 0x1aa   : > { %v19405_v27 = vpack.c.bf16 %v1020_v25, %v1017_v21  ;;  %15832 = vmatprep.subr.bf16.mxu1 %v1152_v1  ;;  %v18278_v21 = vld [vmem:[#allocation8 + $0x100] ss:$16 sps:$4 sm:$0xff]   ;;  %v18239_v25 = vld [vmem:[#allocation8 + $0x28] ss:$16 sps:$4 sm:$0xff]  }
 0x1ac   : > { %1593 = vmatmul.mubr.bf16.vlgmr.msra.gmra.mrb[0].mxu1 %v18228_v23  ;;  %v18282_v23 = vld [vmem:[#allocation8 + $0x124] ss:$16 sps:$4 sm:$0xff]  }
 0x1ad   : > { %15833 = vmatpush3.bf16.msra.mxu1 %v19381_v41  ;;  %1600 = vmatprep.mubr.bf16.mxu1 %v18234_v26  ;;  %v18284_v26 = vld [vmem:[#allocation8 + $0x120] ss:$16 sps:$4 sm:$0xff]  }
 0x1ae   : > { %v16722_v28 = vpop.f32.mrb[36].mxu0  ;;  %15834 = vmatprep.subr.bf16.mxu1 %v1153_v0  ;;  %v18260_v0 = vld [vmem:[#allocation8 + $0xa0] ss:$16 sps:$4 sm:$0xff]  }
 0x1af   : > { %v1033_v29 = vpop.f32.mrb[37].mxu0 }
 0x1b0   : > { %v16723_v30 = vpop.f32.mrb[38].mxu0 }
 0x1b1   : > { %v19408_v32 = vpack.c.bf16 %v16723_v30, %v16722_v28  ;;  %v1036_v33 = vpop.f32.mrb[39].mxu0  ;;  %15835 = vmatpush3.bf16.msra.mxu1 %v19379_v39  ;;  %v18243_v28 = vld [vmem:[#allocation8 + $0x4c] ss:$16 sps:$4 sm:$0xff]   ;;  %v18245_v30 = vld [vmem:[#allocation8 + $0x48] ss:$16 sps:$4 sm:$0xff]  }
 0x1b2   : > { %v19411_v35 = vpack.c.bf16 %v1036_v33, %v1033_v29  ;;  %15836 = vmatprep.subr.bf16.mxu1 %v1154_v7  ;;  %v18266_v7 = vld [vmem:[#allocation8 + $0xc0] ss:$16 sps:$4 sm:$0xff]   ;;  %v18288_v29 = vld [vmem:[#allocation8 + $0x144] ss:$16 sps:$4 sm:$0xff]  }
 0x1b3   : > { %v18294_v33 = vld [vmem:[#allocation8 + $0x164] ss:$16 sps:$4 sm:$0xff]  }
 0x1b4   : > { %1601 = vmatmul.mubr.bf16.gmra.mrb[4].mxu1 %v18236_v31  ;;  %v18290_v31 = vld [vmem:[#allocation8 + $0x140] ss:$16 sps:$4 sm:$0xff]  }
 0x1b5   : > { %15837 = vmatpush3.bf16.msra.mxu1 %v19385_v47  ;;  %1608 = vmatprep.mubr.bf16.mxu1 %v18240_v34  ;;  %v18296_v34 = vld [vmem:[#allocation8 + $0x160] ss:$16 sps:$4 sm:$0xff]  }
 0x1b6   : > { %v16726_v36 = vpop.f32.mrb[40].mxu0  ;;  %15838 = vmatprep.subr.bf16.mxu1 %v1155_v6 }
 0x1b7   : > { %v1049_v37 = vpop.f32.mrb[41].mxu0 }
 0x1b8   : > { %v16727_v38 = vpop.f32.mrb[42].mxu0 }
 0x1b9   : > { %v19414_v41 = vpack.c.bf16 %v16727_v38, %v16726_v36  ;;  %v1052_v42 = vpop.f32.mrb[43].mxu0  ;;  %15839 = vmatpush3.bf16.msra.mxu1 %v19383_v46  ;;  %v18300_v36 = vld [vmem:[#allocation8 + $0x184] ss:$16 sps:$4 sm:$0xff]   ;;  %v18261_v38 = vld [vmem:[#allocation8 + $0xac] ss:$16 sps:$4 sm:$0xff]  }
 0x1ba   : > { %v19417_v39 = vpack.c.bf16 %v1052_v42, %v1049_v37  ;;  %15840 = vmatprep.subr.bf16.mxu1 %v1156_v13  ;;  %v18302_v37 = vld [vmem:[#allocation8 + $0x180] ss:$16 sps:$4 sm:$0xff]  }
 0x1bb   : > { %v18308_v42 = vld [vmem:[#allocation8 + $0x1a0] ss:$16 sps:$4 sm:$0xff]  }
 0x1bc   : > { %1609 = vmatmul.mubr.bf16.gmra.mrb[8].mxu1 %v18242_v40  ;;  %v18306_v40 = vld [vmem:[#allocation8 + $0x1a4] ss:$16 sps:$4 sm:$0xff]  }
 0x1bd   : > { %15841 = vmatpush3.bf16.msra.mxu1 %v19389_v53  ;;  %1616 = vmatprep.mubr.bf16.mxu1 %v18246_v43  ;;  %v18267_v43 = vld [vmem:[#allocation8 + $0xcc] ss:$16 sps:$4 sm:$0xff]  }
 0x1be   : > { %v16730_v44 = vpop.f32.mrb[44].mxu0  ;;  %15842 = vmatprep.subr.bf16.mxu1 %v1157_v12 }
 0x1bf   : > { %v1065_v45 = vpop.f32.mrb[45].mxu0 }
 0x1c0   : > { %v16731_v47 = vpop.f32.mrb[46].mxu0 }
 0x1c1   : > { %v19420_v49 = vpack.c.bf16 %v16731_v47, %v16730_v44  ;;  %v1068_v50 = vpop.f32.mrb[47].mxu0  ;;  %15843 = vmatpush3.bf16.msra.mxu1 %v19387_v52  ;;  %v18269_v44 = vld [vmem:[#allocation8 + $0xc8] ss:$16 sps:$4 sm:$0xff]   ;;  %v18273_v47 = vld [vmem:[#allocation8 + $0xec] ss:$16 sps:$4 sm:$0xff]  }
 0x1c2   : > { %v19423_v46 = vpack.c.bf16 %v1068_v50, %v1065_v45  ;;  %15844 = vmatprep.subr.bf16.mxu1 %v1158_v19  ;;  %v18314_v45 = vld [vmem:[#allocation8 + $0x1c0] ss:$16 sps:$4 sm:$0xff]  }
 0x1c3   : > { %v18320_v50 = vld [vmem:[#allocation8 + $0x1e0] ss:$16 sps:$4 sm:$0xff]  }
 0x1c4   : > { %1617 = vmatmul.mubr.bf16.gmra.mrb[12].mxu1 %v18248_v48  ;;  %v18318_v48 = vld [vmem:[#allocation8 + $0x1e4] ss:$16 sps:$4 sm:$0xff]  }
 0x1c5   : > { %15845 = vmatpush3.bf16.msra.mxu1 %v19393_v59  ;;  %1624 = vmatprep.mubr.bf16.mxu1 %v18252_v51  ;;  %v18279_v51 = vld [vmem:[#allocation8 + $0x10c] ss:$16 sps:$4 sm:$0xff]  }
 0x1c6   : > { %v16734_v53 = vpop.f32.mrb[48].mxu0  ;;  %15846 = vmatprep.subr.bf16.mxu1 %v1159_v18  ;;  %v18276_v18 = vld [vmem:[#allocation8 + $0x104] ss:$16 sps:$4 sm:$0xff]  }
 0x1c7   : > { %v1081_v54 = vpop.f32.mrb[49].mxu0 }
 0x1c8   : > { %v16735_v55 = vpop.f32.mrb[50].mxu0 }
 0x1c9   : > { %v1169_v57 = vpack.c.bf16 %v16735_v55, %v16734_v53  ;;  %v1084_v60 = vpop.f32.mrb[51].mxu0  ;;  %15847 = vmatpush3.bf16.msra.mxu1 %v19391_v58  ;;  %v18281_v53 = vld [vmem:[#allocation8 + $0x108] ss:$16 sps:$4 sm:$0xff]   ;;  %v18285_v55 = vld [vmem:[#allocation8 + $0x12c] ss:$16 sps:$4 sm:$0xff]  }
 0x1ca   : > { %v1168_v62 = vpack.c.bf16 %v1084_v60, %v1081_v54  ;;  %v18324_v54 = vld [vmem:[#allocation11] ss:$16 sps:$4 sm:$0xff]  }
 0x1cb   : > { %v18332_v60 = vld [vmem:[#allocation11 + $0x20] ss:$16 sps:$4 sm:$0xff]  }
 0x1cc   : > { %15720 = vmatprep.subr.bf16.mxu0 %v1168_v62  ;;  %1625 = vmatmul.mubr.bf16.gmra.mrb[16].mxu1 %v18254_v56  ;;  %v18330_v56 = vld [vmem:[#allocation11 + $0x24] ss:$16 sps:$4 sm:$0xff]  }
 0x1cd   : > { %15721 = vmatpush3.bf16.msra.mxu0 %v19405_v27  ;;  %1632 = vmatprep.mubr.bf16.mxu1 %v18258_v61  ;;  %v18291_v61 = vld [vmem:[#allocation8 + $0x14c] ss:$16 sps:$4 sm:$0xff]  }
 0x1ce   : > { %v16738_v52 = vpop.f32.mrb[52].mxu0  ;;  %15722 = vmatprep.subr.bf16.mxu0 %v1169_v57 }
 0x1cf   : > { %v1097_v59 = vpop.f32.mrb[53].mxu0 }
 0x1d0   : > { %v16739_v63 = vpop.f32.mrb[54].mxu0 }
 0x1d1   : > { %v1171_v1 = vpack.c.bf16 %v16739_v63, %v16738_v52  ;;  %v1100_v2 = vpop.f32.mrb[55].mxu0  ;;  %15723 = vmatpush3.bf16.msra.mxu0 %v19402_v24  ;;  %v18293_v52 = vld [vmem:[#allocation8 + $0x148] ss:$16 sps:$4 sm:$0xff]   ;;  %v18297_v63 = vld [vmem:[#allocation8 + $0x16c] ss:$16 sps:$4 sm:$0xff]  }
 0x1d2   : > { %v1170_v4 = vpack.c.bf16 %v1100_v2, %v1097_v59  ;;  %v18338_v59 = vld [vmem:[#allocation11 + $0x40] ss:$16 sps:$4 sm:$0xff]  }
 0x1d3   : > { %v18344_v2 = vld [vmem:[#allocation11 + $0x60] ss:$16 sps:$4 sm:$0xff]  }
 0x1d4   : > { %15724 = vmatprep.subr.bf16.mxu0 %v1170_v4  ;;  %1633 = vmatmul.mubr.bf16.gmra.mrb[20].mxu1 %v18260_v0  ;;  %v18342_v0 = vld [vmem:[#allocation11 + $0x64] ss:$16 sps:$4 sm:$0xff]  }
 0x1d5   : > { %15725 = vmatpush3.bf16.msra.mxu0 %v19411_v35  ;;  %1640 = vmatprep.mubr.bf16.mxu1 %v18264_v3  ;;  %v18303_v3 = vld [vmem:[#allocation8 + $0x18c] ss:$16 sps:$4 sm:$0xff]  }
 0x1d6   : > { %v16742_v58 = vpop.f32.mrb[56].mxu0  ;;  %15726 = vmatprep.subr.bf16.mxu0 %v1171_v1 }
 0x1d7   : > { %v1113_v5 = vpop.f32.mrb[57].mxu0 }
 0x1d8   : > { %v16743_v6 = vpop.f32.mrb[58].mxu0 }
 0x1d9   : > { %v1173_v8 = vpack.c.bf16 %v16743_v6, %v16742_v58  ;;  %v1116_v9 = vpop.f32.mrb[59].mxu0  ;;  %15727 = vmatpush3.bf16.msra.mxu0 %v19408_v32  ;;  %v18305_v58 = vld [vmem:[#allocation8 + $0x188] ss:$16 sps:$4 sm:$0xff]   ;;  %v18309_v6 = vld [vmem:[#allocation8 + $0x1ac] ss:$16 sps:$4 sm:$0xff]  }
 0x1da   : > { %v1172_v11 = vpack.c.bf16 %v1116_v9, %v1113_v5  ;;  %v18350_v5 = vld [vmem:[#allocation11 + $0x80] ss:$16 sps:$4 sm:$0xff]  }
 0x1db   : > { %v18356_v9 = vld [vmem:[#allocation11 + $0xa0] ss:$16 sps:$4 sm:$0xff]  }
 0x1dc   : > { %15728 = vmatprep.subr.bf16.mxu0 %v1172_v11  ;;  %1641 = vmatmul.mubr.bf16.gmra.mrb[24].mxu1 %v18266_v7  ;;  %v18354_v7 = vld [vmem:[#allocation11 + $0xa4] ss:$16 sps:$4 sm:$0xff]  }
 0x1dd   : > { %15729 = vmatpush3.bf16.msra.mxu0 %v19417_v39  ;;  %1648 = vmatprep.mubr.bf16.mxu1 %v18270_v10  ;;  %v18315_v10 = vld [vmem:[#allocation8 + $0x1cc] ss:$16 sps:$4 sm:$0xff]  }
 0x1de   : > { %v16746_v12 = vpop.f32.mrb[60].mxu0  ;;  %15730 = vmatprep.subr.bf16.mxu0 %v1173_v8 }
 0x1df   : > { %v1129_v13 = vpop.f32.mrb[61].mxu0 }
 0x1e0   : > { %v16747_v14 = vpop.f32.mrb[62].mxu0 }
 0x1e1   : > { %v1175_v16 = vpack.c.bf16 %v16747_v14, %v16746_v12  ;;  %v1132_v17 = vpop.f32.mrb[63].mxu0  ;;  %15731 = vmatpush3.bf16.msra.mxu0 %v19414_v41  ;;  %v18317_v12 = vld [vmem:[#allocation8 + $0x1c8] ss:$16 sps:$4 sm:$0xff]   ;;  %v18321_v14 = vld [vmem:[#allocation8 + $0x1ec] ss:$16 sps:$4 sm:$0xff]  }
 0x1e2   : > { %v1174_v19 = vpack.c.bf16 %v1132_v17, %v1129_v13  ;;  %v18362_v13 = vld [vmem:[#allocation11 + $0xc0] ss:$16 sps:$4 sm:$0xff]  }
 0x1e3   : > { %v18368_v17 = vld [vmem:[#allocation11 + $0xe0] ss:$16 sps:$4 sm:$0xff]  }
 0x1e4   : > { %15732 = vmatprep.subr.bf16.mxu0 %v1174_v19  ;;  %1649 = vmatmul.mubr.bf16.gmra.mrb[28].mxu1 %v18272_v15  ;;  %v18366_v15 = vld [vmem:[#allocation11 + $0xe4] ss:$16 sps:$4 sm:$0xff]  }
 0x1e5   : > { %15733 = vmatpush3.bf16.msra.mxu0 %v19423_v46  ;;  %1656 = vmatprep.mubr.bf16.mxu1 %v18276_v18  ;;  %v18329_v18 = vld [vmem:[#allocation11 + $0xc] ss:$16 sps:$4 sm:$0xff]  }
 0x1e6   : > { %15734 = vmatprep.subr.bf16.mxu0 %v1175_v16 }
 0x1e9   : > { %15735 = vmatpush3.bf16.msra.mxu0 %v19420_v49 }
 0x1ea   : > { %15944 = vmatprep.subr.bf16.mxu0 %v1168_v62  ;;  %v18336_v62 = vld [vmem:[#allocation11 + $0x44] ss:$16 sps:$4 sm:$0xff]  }
 0x1ec   : > { %1754 = vmatmul.mubr.bf16.vlgmr.msra.gmra.mrb[64].mxu0 %v18231_v20  ;;  %1657 = vmatmul.mubr.bf16.gmra.mrb[32].mxu1 %v18278_v21  ;;  %v18327_v20 = vld [vmem:[#allocation11 + $0x8] ss:$16 sps:$4 sm:$0xff]   ;;  %v18374_v21 = vld [vmem:[#allocation11 + $0x100] ss:$16 sps:$4 sm:$0xff]  }
 0x1ed   : > { %15945 = vmatpush3.bf16.msra.mxu0 %v19405_v27  ;;  %1761 = vmatprep.mubr.bf16.mxu0 %v18237_v22  ;;  %v18249_v27 = vld [vmem:[#allocation8 + $0x6c] ss:$16 sps:$4 sm:$0xff]  }
 0x1ee   : > { %15946 = vmatprep.subr.bf16.mxu0 %v1169_v57  ;;  %1664 = vmatprep.mubr.bf16.mxu1 %v18282_v23  ;;  %v18287_v57 = vld [vmem:[#allocation8 + $0x128] ss:$16 sps:$4 sm:$0xff]   ;;  %v18333_v22 = vld [vmem:[#allocation11 + $0x2c] ss:$16 sps:$4 sm:$0xff]   ;;  %v18378_v23 = vld [vmem:[#allocation11 + $0x124] ss:$16 sps:$4 sm:$0xff]  }
 0x1f1   : > { %15947 = vmatpush3.bf16.msra.mxu0 %v19402_v24  ;;  %v18251_v24 = vld [vmem:[#allocation8 + $0x68] ss:$16 sps:$4 sm:$0xff]  }
 0x1f2   : > { %15948 = vmatprep.subr.bf16.mxu0 %v1170_v4  ;;  %v18348_v4 = vld [vmem:[#allocation11 + $0x84] ss:$16 sps:$4 sm:$0xff]  }
 0x1f4   : > { %1762 = vmatmul.mubr.bf16.gmra.mrb[68].mxu0 %v18239_v25  ;;  %1665 = vmatmul.mubr.bf16.gmra.mrb[36].mxu1 %v18284_v26  ;;  %v18335_v25 = vld [vmem:[#allocation11 + $0x28] ss:$16 sps:$4 sm:$0xff]   ;;  %v18380_v26 = vld [vmem:[#allocation11 + $0x120] ss:$16 sps:$4 sm:$0xff]  }
 0x1f5   : > { %15949 = vmatpush3.bf16.msra.mxu0 %v19411_v35  ;;  %1769 = vmatprep.mubr.bf16.mxu0 %v18243_v28  ;;  %v18255_v35 = vld [vmem:[#allocation8 + $0x8c] ss:$16 sps:$4 sm:$0xff]  }
 0x1f6   : > { %15950 = vmatprep.subr.bf16.mxu0 %v1171_v1  ;;  %1672 = vmatprep.mubr.bf16.mxu1 %v18288_v29  ;;  %v18299_v1 = vld [vmem:[#allocation8 + $0x168] ss:$16 sps:$4 sm:$0xff]   ;;  %v18339_v28 = vld [vmem:[#allocation11 + $0x4c] ss:$16 sps:$4 sm:$0xff]   ;;  %v18384_v29 = vld [vmem:[#allocation11 + $0x144] ss:$16 sps:$4 sm:$0xff]  }
 0x1f9   : > { %15951 = vmatpush3.bf16.msra.mxu0 %v19408_v32  ;;  %v18257_v32 = vld [vmem:[#allocation8 + $0x88] ss:$16 sps:$4 sm:$0xff]  }
 0x1fa   : > { %15952 = vmatprep.subr.bf16.mxu0 %v1172_v11  ;;  %v18360_v11 = vld [vmem:[#allocation11 + $0xc4] ss:$16 sps:$4 sm:$0xff]  }
 0x1fc   : > { %1770 = vmatmul.mubr.bf16.gmra.mrb[72].mxu0 %v18245_v30  ;;  %1673 = vmatmul.mubr.bf16.gmra.mrb[40].mxu1 %v18290_v31  ;;  %v18341_v30 = vld [vmem:[#allocation11 + $0x48] ss:$16 sps:$4 sm:$0xff]   ;;  %v18386_v31 = vld [vmem:[#allocation11 + $0x140] ss:$16 sps:$4 sm:$0xff]  }
 0x1fd   : > { %15953 = vmatpush3.bf16.msra.mxu0 %v19417_v39  ;;  %1777 = vmatprep.mubr.bf16.mxu0 %v18249_v27  ;;  %v18312_v39 = vld [vmem:[#allocation8 + $0x1c4] ss:$16 sps:$4 sm:$0xff]   ;;  %v18345_v27 = vld [vmem:[#allocation11 + $0x6c] ss:$16 sps:$4 sm:$0xff]  }
 0x1fe   : > { %15954 = vmatprep.subr.bf16.mxu0 %v1173_v8  ;;  %1680 = vmatprep.mubr.bf16.mxu1 %v18294_v33  ;;  %v18311_v8 = vld [vmem:[#allocation8 + $0x1a8] ss:$16 sps:$4 sm:$0xff]   ;;  %v18390_v33 = vld [vmem:[#allocation11 + $0x164] ss:$16 sps:$4 sm:$0xff]  }
 0x201   : > { %15955 = vmatpush3.bf16.msra.mxu0 %v19414_v41  ;;  %v18263_v41 = vld [vmem:[#allocation8 + $0xa8] ss:$16 sps:$4 sm:$0xff]  }
 0x202   : > { %15956 = vmatprep.subr.bf16.mxu0 %v1174_v19  ;;  %v18372_v19 = vld [vmem:[#allocation11 + $0x104] ss:$16 sps:$4 sm:$0xff]  }
 0x204   : > { %1778 = vmatmul.mubr.bf16.gmra.mrb[76].mxu0 %v18251_v24  ;;  %1681 = vmatmul.mubr.bf16.gmra.mrb[44].mxu1 %v18296_v34  ;;  %v18347_v34 = vld [vmem:[#allocation11 + $0x68] ss:$16 sps:$4 sm:$0xff]  }
 0x205   : > { %15957 = vmatpush3.bf16.msra.mxu0 %v19423_v46  ;;  %1785 = vmatprep.mubr.bf16.mxu0 %v18255_v35  ;;  %v18326_v46 = vld [vmem:[#allocation11 + $0x4] ss:$16 sps:$4 sm:$0xff]  }
 0x206   : > { %15958 = vmatprep.subr.bf16.mxu0 %v1175_v16  ;;  %1688 = vmatprep.mubr.bf16.mxu1 %v18300_v36  ;;  %v18323_v16 = vld [vmem:[#allocation8 + $0x1e8] ss:$16 sps:$4 sm:$0xff]   ;;  %v18392_v36 = vld [vmem:[#allocation11 + $0x160] ss:$16 sps:$4 sm:$0xff]  }
 0x209   : > { %15959 = vmatpush3.bf16.msra.mxu0 %v19420_v49  ;;  %v18275_v49 = vld [vmem:[#allocation8 + $0xe8] ss:$16 sps:$4 sm:$0xff]  }
 0x20c   : > { %1786 = vmatmul.mubr.bf16.gmra.mrb[80].mxu0 %v18257_v32  ;;  %1689 = vmatmul.mubr.bf16.gmra.mrb[48].mxu1 %v18302_v37  ;;  %v18351_v32 = vld [vmem:[#allocation11 + $0x8c] ss:$16 sps:$4 sm:$0xff]  }
 0x20d   : > { %1793 = vmatprep.mubr.bf16.mxu0 %v18261_v38  ;;  %1696 = vmatprep.mubr.bf16.mxu1 %v18306_v40  ;;  %v18396_v40 = vld [vmem:[#allocation11 + $0x184] ss:$16 sps:$4 sm:$0xff]  }
 0x214   : > { %1794 = vmatmul.mubr.bf16.gmra.mrb[84].mxu0 %v18263_v41  ;;  %1697 = vmatmul.mubr.bf16.gmra.mrb[52].mxu1 %v18308_v42 }
 0x215   : > { %1801 = vmatprep.mubr.bf16.mxu0 %v18267_v43  ;;  %1704 = vmatprep.mubr.bf16.mxu1 %v18312_v39  ;;  %v18353_v39 = vld [vmem:[#allocation11 + $0x88] ss:$16 sps:$4 sm:$0xff]  }
 0x21c   : > { %1802 = vmatmul.mubr.bf16.gmra.mrb[88].mxu0 %v18269_v44  ;;  %1705 = vmatmul.mubr.bf16.gmra.mrb[56].mxu1 %v18314_v45  ;;  %v18398_v45 = vld [vmem:[#allocation11 + $0x180] ss:$16 sps:$4 sm:$0xff]  }
 0x21d   : > { %1809 = vmatprep.mubr.bf16.mxu0 %v18273_v47  ;;  %1712 = vmatprep.mubr.bf16.mxu1 %v18318_v48  ;;  %v18357_v47 = vld [vmem:[#allocation11 + $0xac] ss:$16 sps:$4 sm:$0xff]  }
 0x224   : > { %1810 = vmatmul.mubr.bf16.gmra.mrb[92].mxu0 %v18275_v49  ;;  %1713 = vmatmul.mubr.bf16.gmra.mrb[60].mxu1 %v18320_v50  ;;  %v18402_v50 = vld [vmem:[#allocation11 + $0x1a4] ss:$16 sps:$4 sm:$0xff]  }
 0x225   : > { %1817 = vmatprep.mubr.bf16.mxu0 %v18279_v51  ;;  %2298 = vmatprep.mubr.bf16.mxu1 %v18326_v46 }
 0x22c   : > { %1818 = vmatmul.mubr.bf16.gmra.mrb[96].mxu0 %v18281_v53  ;;  %2299 = vmatmul.mubr.bf16.vlgmr.msra.gmra.mrb[64].mxu1 %v18324_v54  ;;  %v18359_v54 = vld [vmem:[#allocation11 + $0xa8] ss:$16 sps:$4 sm:$0xff]  }
 0x22d   : > { %1825 = vmatprep.mubr.bf16.mxu0 %v18285_v55  ;;  %2306 = vmatprep.mubr.bf16.mxu1 %v18330_v56  ;;  %v18404_v56 = vld [vmem:[#allocation11 + $0x1a0] ss:$16 sps:$4 sm:$0xff]  }
 0x234   : > { %1826 = vmatmul.mubr.bf16.gmra.mrb[100].mxu0 %v18287_v57  ;;  %2307 = vmatmul.mubr.bf16.gmra.mrb[68].mxu1 %v18332_v60  ;;  %v18363_v57 = vld [vmem:[#allocation11 + $0xcc] ss:$16 sps:$4 sm:$0xff]  }
 0x235   : > { %1833 = vmatprep.mubr.bf16.mxu0 %v18291_v61  ;;  %2314 = vmatprep.mubr.bf16.mxu1 %v18336_v62  ;;  %v18408_v62 = vld [vmem:[#allocation11 + $0x1c4] ss:$16 sps:$4 sm:$0xff]  }
 0x23c   : > { %1834 = vmatmul.mubr.bf16.gmra.mrb[104].mxu0 %v18293_v52  ;;  %2315 = vmatmul.mubr.bf16.gmra.mrb[72].mxu1 %v18338_v59 }
 0x23d   : > { %1841 = vmatprep.mubr.bf16.mxu0 %v18297_v63  ;;  %2322 = vmatprep.mubr.bf16.mxu1 %v18342_v0  ;;  %v18365_v0 = vld [vmem:[#allocation11 + $0xc8] ss:$16 sps:$4 sm:$0xff]  }
 0x244   : > { %1842 = vmatmul.mubr.bf16.gmra.mrb[108].mxu0 %v18299_v1  ;;  %2323 = vmatmul.mubr.bf16.gmra.mrb[76].mxu1 %v18344_v2  ;;  %v18410_v2 = vld [vmem:[#allocation11 + $0x1c0] ss:$16 sps:$4 sm:$0xff]  }
 0x245   : > { %1849 = vmatprep.mubr.bf16.mxu0 %v18303_v3  ;;  %2330 = vmatprep.mubr.bf16.mxu1 %v18348_v4  ;;  %v18369_v3 = vld [vmem:[#allocation11 + $0xec] ss:$16 sps:$4 sm:$0xff]  }
 0x24c   : > { %1850 = vmatmul.mubr.bf16.gmra.mrb[112].mxu0 %v18305_v58  ;;  %2331 = vmatmul.mubr.bf16.gmra.mrb[80].mxu1 %v18350_v5  ;;  %v18414_v5 = vld [vmem:[#allocation11 + $0x1e4] ss:$16 sps:$4 sm:$0xff]  }
 0x24d   : > { %1857 = vmatprep.mubr.bf16.mxu0 %v18309_v6  ;;  %2338 = vmatprep.mubr.bf16.mxu1 %v18354_v7 }
 0x254   : > { %1858 = vmatmul.mubr.bf16.gmra.mrb[116].mxu0 %v18311_v8  ;;  %2339 = vmatmul.mubr.bf16.gmra.mrb[84].mxu1 %v18356_v9  ;;  %v18371_v9 = vld [vmem:[#allocation11 + $0xe8] ss:$16 sps:$4 sm:$0xff]  }
 0x255   : > { %1865 = vmatprep.mubr.bf16.mxu0 %v18315_v10  ;;  %2346 = vmatprep.mubr.bf16.mxu1 %v18360_v11  ;;  %v18416_v11 = vld [vmem:[#allocation11 + $0x1e0] ss:$16 sps:$4 sm:$0xff]  }
 0x25c   : > { %1866 = vmatmul.mubr.bf16.gmra.mrb[120].mxu0 %v18317_v12  ;;  %2347 = vmatmul.mubr.bf16.gmra.mrb[88].mxu1 %v18362_v13  ;;  %v18375_v12 = vld [vmem:[#allocation11 + $0x10c] ss:$16 sps:$4 sm:$0xff]  }
 0x25d   : > { %1873 = vmatprep.mubr.bf16.mxu0 %v18321_v14  ;;  %2354 = vmatprep.mubr.bf16.mxu1 %v18366_v15 }
 0x264   : > { %1874 = vmatmul.mubr.bf16.gmra.mrb[124].mxu0 %v18323_v16  ;;  %2355 = vmatmul.mubr.bf16.gmra.mrb[92].mxu1 %v18368_v17 }
 0x265   : > { %2459 = vmatprep.mubr.bf16.mxu0 %v18329_v18  ;;  %2362 = vmatprep.mubr.bf16.mxu1 %v18372_v19  ;;  %v18377_v18 = vld [vmem:[#allocation11 + $0x108] ss:$16 sps:$4 sm:$0xff]  }
 0x26c   : > { %2460 = vmatmul.mubr.bf16.vlgmr.msra.gmra.mrb[128].mxu0 %v18327_v20  ;;  %2363 = vmatmul.mubr.bf16.gmra.mrb[96].mxu1 %v18374_v21  ;;  %v18381_v20 = vld [vmem:[#allocation11 + $0x12c] ss:$16 sps:$4 sm:$0xff]  }
 0x26d   : > { %2467 = vmatprep.mubr.bf16.mxu0 %v18333_v22  ;;  %2370 = vmatprep.mubr.bf16.mxu1 %v18378_v23 }
 0x274   : > { %2468 = vmatmul.mubr.bf16.gmra.mrb[132].mxu0 %v18335_v25  ;;  %2371 = vmatmul.mubr.bf16.gmra.mrb[100].mxu1 %v18380_v26 }
 0x275   : > { %2475 = vmatprep.mubr.bf16.mxu0 %v18339_v28  ;;  %2378 = vmatprep.mubr.bf16.mxu1 %v18384_v29  ;;  %v18383_v28 = vld [vmem:[#allocation11 + $0x128] ss:$16 sps:$4 sm:$0xff]  }
 0x27c   : > { %2476 = vmatmul.mubr.bf16.gmra.mrb[136].mxu0 %v18341_v30  ;;  %2379 = vmatmul.mubr.bf16.gmra.mrb[104].mxu1 %v18386_v31  ;;  %v18387_v30 = vld [vmem:[#allocation11 + $0x14c] ss:$16 sps:$4 sm:$0xff]  }
 0x27d   : > { %2483 = vmatprep.mubr.bf16.mxu0 %v18345_v27  ;;  %2386 = vmatprep.mubr.bf16.mxu1 %v18390_v33 }
 0x27f   : > { %v15624_v24 = vpop.f32.mrb[0].mxu1 }
 0x280   : > { %v15625_v35 = vpop.f32.mrb[1].mxu1 }
 0x281   : > { %v19443_v37 = vadd.f32 %v15625_v35, %v15624_v24  ;;  %v15627_v38 = vpop.f32.mrb[2].mxu1  ;;  %v18389_v35 = vld [vmem:[#allocation11 + $0x148] ss:$16 sps:$4 sm:$0xff]  }
 0x282   : > { %v15628_v41 = vpop.f32.mrb[3].mxu1 }
 0x283   : > { %v19445_v42 = vadd.f32 %v15628_v41, %v15627_v38 }
 0x284   : > { %2484 = vmatmul.mubr.bf16.gmra.mrb[140].mxu0 %v18347_v34  ;;  %2387 = vmatmul.mubr.bf16.gmra.mrb[108].mxu1 %v18392_v36 }
 0x285   : > { %2491 = vmatprep.mubr.bf16.mxu0 %v18351_v32  ;;  %2394 = vmatprep.mubr.bf16.mxu1 %v18396_v40  ;;  %v18393_v32 = vld [vmem:[#allocation11 + $0x16c] ss:$16 sps:$4 sm:$0xff]  }
 0x287   : > { %v15630_v43 = vpop.f32.mrb[4].mxu1 }
 0x288   : > { %v15631_v44 = vpop.f32.mrb[5].mxu1 }
 0x289   : > { %v19447_v48 = vadd.f32 %v15631_v44, %v15630_v43  ;;  %v15633_v49 = vpop.f32.mrb[6].mxu1 }
 0x28a   : > { %v15634_v51 = vpop.f32.mrb[7].mxu1 }
 0x28b   : > { %v19449_v46 = vadd.f32 %v15634_v51, %v15633_v49 }
 0x28c   : > { %2492 = vmatmul.mubr.bf16.gmra.mrb[144].mxu0 %v18353_v39  ;;  %2395 = vmatmul.mubr.bf16.gmra.mrb[112].mxu1 %v18398_v45 }
 0x28d   : > { %2499 = vmatprep.mubr.bf16.mxu0 %v18357_v47  ;;  %2402 = vmatprep.mubr.bf16.mxu1 %v18402_v50  ;;  %v18395_v47 = vld [vmem:[#allocation11 + $0x168] ss:$16 sps:$4 sm:$0xff]  }
 0x28f   : > { %v15636_v53 = vpop.f32.mrb[8].mxu1 }
 0x290   : > { %v15637_v55 = vpop.f32.mrb[9].mxu1 }
 0x291   : > { %v19451_v60 = vadd.f32 %v15637_v55, %v15636_v53  ;;  %v15639_v61 = vpop.f32.mrb[10].mxu1  ;;  %v18399_v53 = vld [vmem:[#allocation11 + $0x18c] ss:$16 sps:$4 sm:$0xff]  }
 0x292   : > { %v15640_v52 = vpop.f32.mrb[11].mxu1 }
 0x293   : > { %v19453_v59 = vadd.f32 %v15640_v52, %v15639_v61 }
 0x294   : > { %2500 = vmatmul.mubr.bf16.gmra.mrb[148].mxu0 %v18359_v54  ;;  %2403 = vmatmul.mubr.bf16.gmra.mrb[116].mxu1 %v18404_v56 }
 0x295   : > { %2507 = vmatprep.mubr.bf16.mxu0 %v18363_v57  ;;  %2410 = vmatprep.mubr.bf16.mxu1 %v18408_v62 }
 0x297   : > { %v15642_v63 = vpop.f32.mrb[12].mxu1 }
 0x298   : > { %v15643_v1 = vpop.f32.mrb[13].mxu1 }
 0x299   : > { %v19455_v4 = vadd.f32 %v15643_v1, %v15642_v63  ;;  %v15645_v58 = vpop.f32.mrb[14].mxu1 }
 0x29a   : > { %v15646_v6 = vpop.f32.mrb[15].mxu1 }
 0x29b   : > { %v19457_v7 = vadd.f32 %v15646_v6, %v15645_v58  ;;  %v18405_v6 = vld [vmem:[#allocation11 + $0x1ac] ss:$16 sps:$4 sm:$0xff]  }
 0x29c   : > { %2508 = vmatmul.mubr.bf16.gmra.mrb[152].mxu0 %v18365_v0  ;;  %2411 = vmatmul.mubr.bf16.gmra.mrb[120].mxu1 %v18410_v2 }
 0x29d   : > { %2515 = vmatprep.mubr.bf16.mxu0 %v18369_v3  ;;  %2418 = vmatprep.mubr.bf16.mxu1 %v18414_v5  ;;  %v19491_v3 = vld [vmem:[#allocation11 + $0x188] ss:$16 sps:$4 sm:$0xff]  }
 0x29f   : > { %v15648_v8 = vpop.f32.mrb[16].mxu1 }
 0x2a0   : > { %v15649_v10 = vpop.f32.mrb[17].mxu1 }
 0x2a1   : > { %v19459_v13 = vadd.f32 %v15649_v10, %v15648_v8  ;;  %v15651_v14 = vpop.f32.mrb[18].mxu1  ;;  %v18420_v10 = vld [vmem:[%s21820_s2] sm:$0xff]  }
 0x2a2   : > { %v15652_v15 = vpop.f32.mrb[19].mxu1  ;;  %16748 = vmatprep.subr.bf16.mxu1 %v18420_v10 }
 0x2a3   : > { %v19461_v16 = vadd.f32 %v15652_v15, %v15651_v14  ;;  %16749 = vmatpush3.bf16.msra.mxu1 %v18420_v10 }
 0x2a4   : > { %2516 = vmatmul.mubr.bf16.gmra.mrb[156].mxu0 %v18371_v9  ;;  %2419 = vmatmul.mubr.bf16.gmra.mrb[124].mxu1 %v18416_v11 }
 0x2a5   : > { %2523 = vmatprep.mubr.bf16.mxu0 %v18375_v12 }
 0x2a7   : > { %v15654_v17 = vpop.f32.mrb[20].mxu1 }
 0x2a8   : > { %v15655_v19 = vpop.f32.mrb[21].mxu1 }
 0x2a9   : > { %v19463_v21 = vadd.f32 %v15655_v19, %v15654_v17  ;;  %v15657_v22 = vpop.f32.mrb[22].mxu1  ;;  %v18421_v19 = vld [vmem:[%s21820_s2 + $0x8] sm:$0xff]  }
 0x2aa   : > { %v15658_v23 = vpop.f32.mrb[23].mxu1  ;;  %16750 = vmatprep.subr.bf16.mxu1 %v18421_v19 }
 0x2ab   : > { %v19465_v25 = vadd.f32 %v15658_v23, %v15657_v22  ;;  %v18407_v23 = vld [vmem:[#allocation11 + $0x1a8] ss:$16 sps:$4 sm:$0xff]   ;;  %16751 = vmatpush3.bf16.msra.mxu1 %v18421_v19 }
 0x2ac   : > { %2524 = vmatmul.mubr.bf16.gmra.mrb[160].mxu0 %v18377_v18 }
 0x2ad   : > { %2531 = vmatprep.mubr.bf16.mxu0 %v18381_v20 }
 0x2af   : > { %v15660_v26 = vpop.f32.mrb[24].mxu1 }
 0x2b0   : > { %v15661_v29 = vpop.f32.mrb[25].mxu1 }
 0x2b1   : > { %v19467_v31 = vadd.f32 %v15661_v29, %v15660_v26  ;;  %v15663_v27 = vpop.f32.mrb[26].mxu1 }
 0x2b2   : > { %v15664_v33 = vpop.f32.mrb[27].mxu1 }
 0x2b3   : > { %v19469_v24 = vadd.f32 %v15664_v33, %v15663_v27 }
 0x2b4   : > { %2532 = vmatmul.mubr.bf16.gmra.mrb[164].mxu0 %v18383_v28 }
 0x2b5   : > { %2539 = vmatprep.mubr.bf16.mxu0 %v18387_v30  ;;  %v18411_v30 = vld [vmem:[#allocation11 + $0x1cc] ss:$16 sps:$4 sm:$0xff]  }
 0x2b7   : > { %v15666_v34 = vpop.f32.mrb[28].mxu1 }
 0x2b8   : > { %v15667_v36 = vpop.f32.mrb[29].mxu1 }
 0x2b9   : > { %v19471_v38 = vadd.f32 %v15667_v36, %v15666_v34  ;;  %v15669_v40 = vpop.f32.mrb[30].mxu1 }
 0x2ba   : > { %v15670_v41 = vpop.f32.mrb[31].mxu1 }
 0x2bb   : > { %v19473_v43 = vadd.f32 %v15670_v41, %v15669_v40 }
 0x2bc   : > { %2540 = vmatmul.mubr.bf16.gmra.mrb[168].mxu0 %v18389_v35 }
 0x2bd   : > { %2547 = vmatprep.mubr.bf16.mxu0 %v18393_v32 }
 0x2bf   : > { %v15736_v39 = vpop.f32.mrb[64].mxu0  ;;  %v15672_v44 = vpop.f32.mrb[32].mxu1 }
 0x2c0   : > { %v15737_v45 = vpop.f32.mrb[65].mxu0  ;;  %v15673_v49 = vpop.f32.mrb[33].mxu1 }
 0x2c1   : > { %v15738_v50 = vadd.f32 %v15737_v45, %v15736_v39  ;;  %v15739_v51 = vpop.f32.mrb[66].mxu0  ;;  %v19475_v54 = vadd.f32 %v15673_v49, %v15672_v44  ;;  %v15675_v55 = vpop.f32.mrb[34].mxu1  ;;  %v18423_v39 = vld [vmem:[%s21820_s2 + $0x18] sm:$0xff]  }
 0x2c2   : > { %v15740_v56 = vpop.f32.mrb[67].mxu0  ;;  %v15676_v57 = vpop.f32.mrb[35].mxu1 }
 0x2c3   : > { %v19478_v61 = vadd.f32 %v15738_v50, %v19443_v37  ;;  %v15741_v62 = vadd.f32 %v15740_v56, %v15739_v51  ;;  %v19480_v52 = vadd.f32 %v15676_v57, %v15675_v55  ;;  %v19072_v37 = vmov 0.0  }
 0x2c4   : > { %2548 = vmatmul.mubr.bf16.gmra.mrb[172].mxu0 %v18395_v47  ;;  %2654 = vst.msk [vmem:[#allocation2 + $0x8] sm:$0xff] %vm2652_vm1, %v19072_v37  ;;  %2653 = vst.msk [vmem:[#allocation2] sm:$0xff] %vm2652_vm1, %v19072_v37 }
 0x2c5   : > { %v19483_v63 = vadd.f32 %v15741_v62, %v19445_v42  ;;  %2555 = vmatprep.mubr.bf16.mxu0 %v18399_v53  ;;  %2655 = vst.msk [vmem:[#allocation2 + $0x10] sm:$0xff] %vm2652_vm1, %v19072_v37  ;;  %2656 = vst.msk [vmem:[#allocation2 + $0x18] sm:$0xff] %vm2652_vm1, %v19072_v37  ;;  %v18417_v53 = vld [vmem:[#allocation11 + $0x1ec] ss:$16 sps:$4 sm:$0xff]  }
 0x2c6   : > { %2657 = vst.msk [vmem:[#allocation2 + $0x20] sm:$0xff] %vm2652_vm1, %v19072_v37  ;;  %2658 = vst.msk [vmem:[#allocation2 + $0x28] sm:$0xff] %vm2652_vm1, %v19072_v37 }
 0x2c7   : > { %v19485_v0 = vpop.f32.mrb[68].mxu0  ;;  %v19487_v1 = vpop.f32.mrb[36].mxu1  ;;  %2659 = vst.msk [vmem:[#allocation2 + $0x30] sm:$0xff] %vm2652_vm1, %v19072_v37  ;;  %2660 = vst.msk [vmem:[#allocation2 + $0x38] sm:$0xff] %vm2652_vm1, %v19072_v37 }
 0x2c8   : > { %v19489_v2 = vpop.f32.mrb[69].mxu0  ;;  %v19493_v58 = vpop.f32.mrb[37].mxu1  ;;  %2661 = vst.msk [vmem:[#allocation2 + $0x40] sm:$0xff] %vm2652_vm1, %v19072_v37  ;;  %2662 = vst.msk [vmem:[#allocation2 + $0x48] sm:$0xff] %vm2652_vm1, %v19072_v37 }
 0x2c9   : > { %2663 = vst.msk [vmem:[#allocation2 + $0x50] sm:$0xff] %vm2652_vm1, %v19072_v37  ;;  %2664 = vst.msk [vmem:[#allocation2 + $0x58] sm:$0xff] %vm2652_vm1, %v19072_v37  ;;  %v15744_v42 = vadd.f32 %v19489_v2, %v19485_v0  ;;  %v15745_v5 = vpop.f32.mrb[70].mxu0  ;;  %v19619_v8 = vadd.f32 %v19493_v58, %v19487_v1  ;;  %v15681_v9 = vpop.f32.mrb[38].mxu1 }
 0x2ca   : > { %2665 = vst.msk [vmem:[#allocation2 + $0x60] sm:$0xff] %vm2652_vm1, %v19072_v37  ;;  %2666 = vst.msk [vmem:[#allocation2 + $0x68] sm:$0xff] %vm2652_vm1, %v19072_v37  ;;  %v15746_v11 = vpop.f32.mrb[71].mxu0  ;;  %v15682_v12 = vpop.f32.mrb[39].mxu1 }
 0x2cb   : > { %2667 = vst.msk [vmem:[#allocation2 + $0x70] sm:$0xff] %vm2652_vm1, %v19072_v37  ;;  %2668 = vst.msk [vmem:[#allocation2 + $0x78] sm:$0xff] %vm2652_vm1, %v19072_v37  ;;  %v19625_v14 = vadd.f32 %v15744_v42, %v19447_v48  ;;  %v15747_v15 = vadd.f32 %v15746_v11, %v15745_v5  ;;  %v19627_v17 = vadd.f32 %v15682_v12, %v15681_v9  ;;  %v18419_v42 = vld [vmem:[#allocation11 + $0x1e8] ss:$16 sps:$4 sm:$0xff]  }
 0x2cc   : > { %2669 = vst.msk [vmem:[#allocation2 + $0x80] sm:$0xff] %vm2652_vm1, %v19072_v37  ;;  %2670 = vst.msk [vmem:[#allocation2 + $0x88] sm:$0xff] %vm2652_vm1, %v19072_v37  ;;  %2556 = vmatmul.mubr.bf16.gmra.mrb[176].mxu0 %v19491_v3 }
 0x2cd   : > { %2671 = vst.msk [vmem:[#allocation2 + $0x90] sm:$0xff] %vm2652_vm1, %v19072_v37  ;;  %2672 = vst.msk [vmem:[#allocation2 + $0x98] sm:$0xff] %vm2652_vm1, %v19072_v37  ;;  %v19631_v18 = vadd.f32 %v15747_v15, %v19449_v46  ;;  %2563 = vmatprep.mubr.bf16.mxu0 %v18405_v6  ;;  %v18422_v46 = vld [vmem:[%s21820_s2 + $0x10] sm:$0xff]  }
 0x2ce   : > { %2673 = vst.msk [vmem:[#allocation2 + $0xa0] sm:$0xff] %vm2652_vm1, %v19072_v37  ;;  %2674 = vst.msk [vmem:[#allocation2 + $0xa8] sm:$0xff] %vm2652_vm1, %v19072_v37  ;;  %16752 = vmatprep.subr.bf16.mxu1 %v18422_v46 }
 0x2cf   : > { %2675 = vst.msk [vmem:[#allocation2 + $0xb0] sm:$0xff] %vm2652_vm1, %v19072_v37  ;;  %2676 = vst.msk [vmem:[#allocation2 + $0xb8] sm:$0xff] %vm2652_vm1, %v19072_v37  ;;  %v15748_v20 = vpop.f32.mrb[72].mxu0  ;;  %v15684_v22 = vpop.f32.mrb[40].mxu1  ;;  %16753 = vmatpush3.bf16.msra.mxu1 %v18422_v46 }
 0x2d0   : > { %2677 = vst.msk [vmem:[#allocation2 + $0xc0] sm:$0xff] %vm2652_vm1, %v19072_v37  ;;  %2678 = vst.msk [vmem:[#allocation2 + $0xc8] sm:$0xff] %vm2652_vm1, %v19072_v37  ;;  %v15749_v48 = vpop.f32.mrb[73].mxu0  ;;  %v15685_v26 = vpop.f32.mrb[41].mxu1  ;;  %16754 = vmatprep.subr.bf16.mxu1 %v18423_v39 }
 0x2d1   : > { %2679 = vst.msk [vmem:[#allocation2 + $0xd0] sm:$0xff] %vm2652_vm1, %v19072_v37  ;;  %2680 = vst.msk [vmem:[#allocation2 + $0xd8] sm:$0xff] %vm2652_vm1, %v19072_v37  ;;  %v15750_v28 = vadd.f32 %v15749_v48, %v15748_v20  ;;  %v15751_v29 = vpop.f32.mrb[74].mxu0  ;;  %v19636_v27 = vadd.f32 %v15685_v26, %v15684_v22  ;;  %v15687_v33 = vpop.f32.mrb[42].mxu1 }
 0x2d2   : > { %2681 = vst.msk [vmem:[#allocation2 + $0xe0] sm:$0xff] %vm2652_vm1, %v19072_v37  ;;  %2682 = vst.msk [vmem:[#allocation2 + $0xe8] sm:$0xff] %vm2652_vm1, %v19072_v37  ;;  %v15752_v34 = vpop.f32.mrb[75].mxu0  ;;  %v15688_v35 = vpop.f32.mrb[43].mxu1 }
 0x2d3   : > { %2683 = vst.msk [vmem:[#allocation2 + $0xf0] sm:$0xff] %vm2652_vm1, %v19072_v37  ;;  %2684 = vst.msk [vmem:[#allocation2 + $0xf8] sm:$0xff] %vm2652_vm1, %v19072_v37  ;;  %v19642_v36 = vadd.f32 %v15750_v28, %v19451_v60  ;;  %v15753_v32 = vadd.f32 %v15752_v34, %v15751_v29  ;;  %v19644_v40 = vadd.f32 %v15688_v35, %v15687_v33  ;;  %v18413_v60 = vld [vmem:[#allocation11 + $0x1c8] ss:$16 sps:$4 sm:$0xff]   ;;  %16755 = vmatpush3.bf16.msra.mxu1 %v18423_v39 }
 0x2d4   : > { %2685 = vst.msk [vmem:[#allocation2 + $0x100] sm:$0xff] %vm2652_vm1, %v19072_v37  ;;  %2686 = vst.msk [vmem:[#allocation2 + $0x108] sm:$0xff] %vm2652_vm1, %v19072_v37  ;;  %2564 = vmatmul.mubr.bf16.gmra.mrb[180].mxu0 %v18407_v23 }
 0x2d5   : > { %2687 = vst.msk [vmem:[#allocation2 + $0x110] sm:$0xff] %vm2652_vm1, %v19072_v37  ;;  %2688 = vst.msk [vmem:[#allocation2 + $0x118] sm:$0xff] %vm2652_vm1, %v19072_v37  ;;  %v19647_v41 = vadd.f32 %v15753_v32, %v19453_v59  ;;  %2571 = vmatprep.mubr.bf16.mxu0 %v18411_v30 }
 0x2d6   : > { %2689 = vst.msk [vmem:[#allocation2 + $0x120] sm:$0xff] %vm2652_vm1, %v19072_v37  ;;  %2690 = vst.msk [vmem:[#allocation2 + $0x128] sm:$0xff] %vm2652_vm1, %v19072_v37 }
 0x2d7   : > { %2691 = vst.msk [vmem:[#allocation2 + $0x130] sm:$0xff] %vm2652_vm1, %v19072_v37  ;;  %2692 = vst.msk [vmem:[#allocation2 + $0x138] sm:$0xff] %vm2652_vm1, %v19072_v37  ;;  %v15754_v44 = vpop.f32.mrb[76].mxu0  ;;  %v15690_v45 = vpop.f32.mrb[44].mxu1 }
 0x2d8   : > { %2693 = vst.msk [vmem:[#allocation2 + $0x140] sm:$0xff] %vm2652_vm1, %v19072_v37  ;;  %2694 = vst.msk [vmem:[#allocation2 + $0x148] sm:$0xff] %vm2652_vm1, %v19072_v37  ;;  %v15755_v47 = vpop.f32.mrb[77].mxu0  ;;  %v15691_v49 = vpop.f32.mrb[45].mxu1 }
 0x2d9   : > { %2695 = vst.msk [vmem:[#allocation2 + $0x150] sm:$0xff] %vm2652_vm1, %v19072_v37  ;;  %2696 = vst.msk [vmem:[#allocation2 + $0x158] sm:$0xff] %vm2652_vm1, %v19072_v37  ;;  %v15756_v50 = vadd.f32 %v15755_v47, %v15754_v44  ;;  %v15757_v51 = vpop.f32.mrb[78].mxu0  ;;  %v19652_v55 = vadd.f32 %v15691_v49, %v15690_v45  ;;  %v15693_v56 = vpop.f32.mrb[46].mxu1 }
 0x2da   : > { %2697 = vst.msk [vmem:[#allocation2 + $0x160] sm:$0xff] %vm2652_vm1, %v19072_v37  ;;  %2698 = vst.msk [vmem:[#allocation2 + $0x168] sm:$0xff] %vm2652_vm1, %v19072_v37  ;;  %v15758_v59 = vpop.f32.mrb[79].mxu0  ;;  %v15694_v57 = vpop.f32.mrb[47].mxu1 }
 0x2db   : > { %2699 = vst.msk [vmem:[#allocation2 + $0x170] sm:$0xff] %vm2652_vm1, %v19072_v37  ;;  %2700 = vst.msk [vmem:[#allocation2 + $0x178] sm:$0xff] %vm2652_vm1, %v19072_v37  ;;  %v19655_v62 = vadd.f32 %v15756_v50, %v19455_v4  ;;  %v15759_v0 = vadd.f32 %v15758_v59, %v15757_v51  ;;  %v19657_v1 = vadd.f32 %v15694_v57, %v15693_v56 }
 0x2dc   : > { %9406 = vst [vmem:[#allocation3] sm:$0xff] %v19072_v37  ;;  %9407 = vst [vmem:[#allocation3 + $0x8] sm:$0xff] %v19072_v37  ;;  %2572 = vmatmul.mubr.bf16.gmra.mrb[184].mxu0 %v18413_v60 }
 0x2dd   : > { %9408 = vst [vmem:[#allocation3 + $0x10] sm:$0xff] %v19072_v37  ;;  %9409 = vst [vmem:[#allocation3 + $0x18] sm:$0xff] %v19072_v37  ;;  %v19660_v2 = vadd.f32 %v15759_v0, %v19457_v7  ;;  %2579 = vmatprep.mubr.bf16.mxu0 %v18417_v53 }
 0x2de   : > { %9410 = vst [vmem:[#allocation3 + $0x20] sm:$0xff] %v19072_v37  ;;  %9411 = vst [vmem:[#allocation3 + $0x28] sm:$0xff] %v19072_v37 }
 0x2df   : > { %9412 = vst [vmem:[#allocation3 + $0x30] sm:$0xff] %v19072_v37  ;;  %9413 = vst [vmem:[#allocation3 + $0x38] sm:$0xff] %v19072_v37  ;;  %v15760_v3 = vpop.f32.mrb[80].mxu0  ;;  %v15696_v58 = vpop.f32.mrb[48].mxu1 }
 0x2e0   : > { %9414 = vst [vmem:[#allocation3 + $0x40] sm:$0xff] %v19072_v37  ;;  %9415 = vst [vmem:[#allocation3 + $0x48] sm:$0xff] %v19072_v37  ;;  %v15697_v5 = vpop.f32.mrb[49].mxu1 }
 0x2e1   : > { %9416 = vst [vmem:[#allocation3 + $0x50] sm:$0xff] %v19072_v37  ;;  %9417 = vst [vmem:[#allocation3 + $0x58] sm:$0xff] %v19072_v37  ;;  %v19662_v10 = vadd.f32 %v15697_v5, %v15696_v58  ;;  %v15699_v11 = vpop.f32.mrb[50].mxu1 }
 0x2e2   : > { %9418 = vst [vmem:[#allocation3 + $0x60] sm:$0xff] %v19072_v37  ;;  %9419 = vst [vmem:[#allocation3 + $0x68] sm:$0xff] %v19072_v37  ;;  %v15700_v12 = vpop.f32.mrb[51].mxu1 }
 0x2e3   : > { %9420 = vst [vmem:[#allocation3 + $0x70] sm:$0xff] %v19072_v37  ;;  %9421 = vst [vmem:[#allocation3 + $0x78] sm:$0xff] %v19072_v37  ;;  %v19667_v20 = vadd.f32 %v15700_v12, %v15699_v11 }
 0x2e4   : > { %9422 = vst [vmem:[#allocation3 + $0x80] sm:$0xff] %v19072_v37  ;;  %9423 = vst [vmem:[#allocation3 + $0x88] sm:$0xff] %v19072_v37  ;;  %2580 = vmatmul.mubr.bf16.gmra.mrb[188].mxu0 %v18419_v42 }
 0x2e5   : > { %9424 = vst [vmem:[#allocation3 + $0x90] sm:$0xff] %v19072_v37  ;;  %9425 = vst [vmem:[#allocation3 + $0x98] sm:$0xff] %v19072_v37 }
 0x2e6   : > { %9426 = vst [vmem:[#allocation3 + $0xa0] sm:$0xff] %v19072_v37  ;;  %9427 = vst [vmem:[#allocation3 + $0xa8] sm:$0xff] %v19072_v37 }
 0x2e7   : > { %9428 = vst [vmem:[#allocation3 + $0xb0] sm:$0xff] %v19072_v37  ;;  %9429 = vst [vmem:[#allocation3 + $0xb8] sm:$0xff] %v19072_v37  ;;  %v15761_v37 = vpop.f32.mrb[81].mxu0  ;;  %v15702_v48 = vpop.f32.mrb[52].mxu1 }
 0x2e8   : > { %v15762_v6 = vadd.f32 %v15761_v37, %v15760_v3  ;;  %v15763_v9 = vpop.f32.mrb[82].mxu0  ;;  %v15703_v26 = vpop.f32.mrb[53].mxu1 }
 0x2e9   : > { %v15764_v4 = vpop.f32.mrb[83].mxu0  ;;  %v19672_v30 = vadd.f32 %v15703_v26, %v15702_v48  ;;  %v15705_v33 = vpop.f32.mrb[54].mxu1 }
 0x2ea   : > { %v19665_v15 = vadd.f32 %v15762_v6, %v19459_v13  ;;  %v15765_v19 = vadd.f32 %v15764_v4, %v15763_v9  ;;  %v15766_v22 = vpop.f32.mrb[84].mxu0  ;;  %v15706_v34 = vpop.f32.mrb[55].mxu1 }
 0x2eb   : > { %v15767_v23 = vpop.f32.mrb[85].mxu0  ;;  %v19677_v32 = vadd.f32 %v15706_v34, %v15705_v33 }
 0x2ec   : > { %v19670_v7 = vadd.f32 %v15765_v19, %v19461_v16  ;;  %v15768_v28 = vadd.f32 %v15767_v23, %v15766_v22  ;;  %v15769_v29 = vpop.f32.mrb[86].mxu0 }
 0x2ed   : > { %v15770_v46 = vpop.f32.mrb[87].mxu0 }
 0x2ee   : > { %v19675_v13 = vadd.f32 %v15768_v28, %v19463_v21  ;;  %v15771_v35 = vadd.f32 %v15770_v46, %v15769_v29 }
 0x2ef   : > { %v15772_v39 = vpop.f32.mrb[88].mxu0  ;;  %v15708_v44 = vpop.f32.mrb[56].mxu1 }
 0x2f0   : > { %v19680_v16 = vadd.f32 %v15771_v35, %v19465_v25  ;;  %v15773_v45 = vpop.f32.mrb[89].mxu0  ;;  %v15709_v47 = vpop.f32.mrb[57].mxu1 }
 0x2f1   : > { %v15774_v60 = vadd.f32 %v15773_v45, %v15772_v39  ;;  %v15775_v49 = vpop.f32.mrb[90].mxu0  ;;  %v19682_v50 = vadd.f32 %v15709_v47, %v15708_v44  ;;  %v15711_v51 = vpop.f32.mrb[58].mxu1 }
 0x2f2   : > { %v15776_v53 = vpop.f32.mrb[91].mxu0  ;;  %v15712_v56 = vpop.f32.mrb[59].mxu1 }
 0x2f3   : > { %v19685_v21 = vadd.f32 %v15774_v60, %v19467_v31  ;;  %v15777_v59 = vadd.f32 %v15776_v53, %v15775_v49  ;;  %v19687_v57 = vadd.f32 %v15712_v56, %v15711_v51 }
 0x2f5   : > { %v19690_v25 = vadd.f32 %v15777_v59, %v19469_v24 }
 0x2f7   : > { %v15778_v0 = vpop.f32.mrb[92].mxu0  ;;  %v15714_v3 = vpop.f32.mrb[60].mxu1 }
 0x2f8   : > { %v15779_v58 = vpop.f32.mrb[93].mxu0  ;;  %v15715_v37 = vpop.f32.mrb[61].mxu1 }
 0x2f9   : > { %v15780_v42 = vadd.f32 %v15779_v58, %v15778_v0  ;;  %v15781_v5 = vpop.f32.mrb[94].mxu0  ;;  %v19692_v6 = vadd.f32 %v15715_v37, %v15714_v3  ;;  %v15717_v9 = vpop.f32.mrb[62].mxu1 }
 0x2fa   : > { %v15782_v11 = vpop.f32.mrb[95].mxu0  ;;  %v15718_v4 = vpop.f32.mrb[63].mxu1 }
 0x2fb   : > { %v19695_v31 = vadd.f32 %v15780_v42, %v19471_v38  ;;  %v15783_v12 = vadd.f32 %v15782_v11, %v15781_v5  ;;  %v19697_v19 = vadd.f32 %v15718_v4, %v15717_v9 }
 0x2fd   : > { %v19700_v24 = vadd.f32 %v15783_v12, %v19473_v43 }
 0x2ff   : > { %v15784_v22 = vpop.f32.mrb[96].mxu0  ;;  %v15848_v48 = vpop.f32.mrb[64].mxu1 }
 0x300   : > { %v15785_v23 = vpop.f32.mrb[97].mxu0  ;;  %v15849_v26 = vpop.f32.mrb[65].mxu1 }
 0x301   : > { %v15786_v28 = vadd.f32 %v15785_v23, %v15784_v22  ;;  %v15787_v29 = vpop.f32.mrb[98].mxu0  ;;  %v19702_v33 = vadd.f32 %v15849_v26, %v15848_v48  ;;  %v15851_v46 = vpop.f32.mrb[66].mxu1 }
 0x302   : > { %v15788_v34 = vpop.f32.mrb[99].mxu0  ;;  %v15852_v35 = vpop.f32.mrb[67].mxu1 }
 0x303   : > { %v19705_v38 = vadd.f32 %v15786_v28, %v19475_v54  ;;  %v15789_v39 = vadd.f32 %v15788_v34, %v15787_v29  ;;  %v19707_v44 = vadd.f32 %v15852_v35, %v15851_v46 }
 0x305   : > { %v19710_v43 = vadd.f32 %v15789_v39, %v19480_v52 }
 0x307   : > { %v15790_v45 = vpop.f32.mrb[100].mxu0  ;;  %v15854_v47 = vpop.f32.mrb[68].mxu1 }
 0x308   : > { %v15791_v60 = vpop.f32.mrb[101].mxu0  ;;  %v15855_v49 = vpop.f32.mrb[69].mxu1 }
 0x309   : > { %v15792_v51 = vadd.f32 %v15791_v60, %v15790_v45  ;;  %v15793_v53 = vpop.f32.mrb[102].mxu0  ;;  %v19712_v56 = vadd.f32 %v15855_v49, %v15854_v47  ;;  %v15857_v59 = vpop.f32.mrb[70].mxu1 }
 0x30a   : > { %v15794_v0 = vpop.f32.mrb[103].mxu0  ;;  %v15858_v3 = vpop.f32.mrb[71].mxu1 }
 0x30b   : > { %v19715_v54 = vadd.f32 %v15792_v51, %v19619_v8  ;;  %v15795_v58 = vadd.f32 %v15794_v0, %v15793_v53  ;;  %v19717_v37 = vadd.f32 %v15858_v3, %v15857_v59 }
 0x30d   : > { %v19720_v52 = vadd.f32 %v15795_v58, %v19627_v17 }
 0x30f   : > { %v15796_v42 = vpop.f32.mrb[104].mxu0  ;;  %v15860_v5 = vpop.f32.mrb[72].mxu1 }
 0x310   : > { %v15797_v9 = vpop.f32.mrb[105].mxu0  ;;  %v15861_v11 = vpop.f32.mrb[73].mxu1 }
 0x311   : > { %v15798_v4 = vadd.f32 %v15797_v9, %v15796_v42  ;;  %v15799_v12 = vpop.f32.mrb[106].mxu0  ;;  %v19722_v22 = vadd.f32 %v15861_v11, %v15860_v5  ;;  %v15863_v48 = vpop.f32.mrb[74].mxu1 }
 0x312   : > { %v15800_v23 = vpop.f32.mrb[107].mxu0  ;;  %v15864_v26 = vpop.f32.mrb[75].mxu1 }
 0x313   : > { %v19725_v8 = vadd.f32 %v15798_v4, %v19636_v27  ;;  %v15801_v28 = vadd.f32 %v15800_v23, %v15799_v12  ;;  %v19727_v29 = vadd.f32 %v15864_v26, %v15863_v48 }
 0x315   : > { %v19730_v17 = vadd.f32 %v15801_v28, %v19644_v40 }
 0x317   : > { %v15802_v46 = vpop.f32.mrb[108].mxu0  ;;  %v15866_v34 = vpop.f32.mrb[76].mxu1 }
 0x318   : > { %v15803_v35 = vpop.f32.mrb[109].mxu0  ;;  %v15867_v39 = vpop.f32.mrb[77].mxu1 }
 0x319   : > { %v15804_v45 = vadd.f32 %v15803_v35, %v15802_v46  ;;  %v15805_v47 = vpop.f32.mrb[110].mxu0  ;;  %v19732_v60 = vadd.f32 %v15867_v39, %v15866_v34  ;;  %v15869_v49 = vpop.f32.mrb[78].mxu1 }
 0x31a   : > { %v15806_v51 = vpop.f32.mrb[111].mxu0  ;;  %v15870_v53 = vpop.f32.mrb[79].mxu1 }
 0x31b   : > { %v19735_v27 = vadd.f32 %v15804_v45, %v19652_v55  ;;  %v15807_v59 = vadd.f32 %v15806_v51, %v15805_v47  ;;  %v19737_v0 = vadd.f32 %v15870_v53, %v15869_v49 }
 0x31d   : > { %v19740_v40 = vadd.f32 %v15807_v59, %v19657_v1 }
 0x31f   : > { %v15808_v3 = vpop.f32.mrb[112].mxu0  ;;  %v15872_v58 = vpop.f32.mrb[80].mxu1 }
 0x320   : > { %v15809_v42 = vpop.f32.mrb[113].mxu0  ;;  %v15873_v5 = vpop.f32.mrb[81].mxu1 }
 0x321   : > { %v15810_v9 = vadd.f32 %v15809_v42, %v15808_v3  ;;  %v15811_v11 = vpop.f32.mrb[114].mxu0  ;;  %v19742_v4 = vadd.f32 %v15873_v5, %v15872_v58  ;;  %v15875_v12 = vpop.f32.mrb[82].mxu1 }
 0x322   : > { %v15812_v48 = vpop.f32.mrb[115].mxu0  ;;  %v15876_v23 = vpop.f32.mrb[83].mxu1 }
 0x323   : > { %v19745_v55 = vadd.f32 %v15810_v9, %v19662_v10  ;;  %v15813_v26 = vadd.f32 %v15812_v48, %v15811_v11  ;;  %v19747_v28 = vadd.f32 %v15876_v23, %v15875_v12 }
 0x325   : > { %v19750_v1 = vadd.f32 %v15813_v26, %v19667_v20 }
 0x327   : > { %v15814_v46 = vpop.f32.mrb[116].mxu0  ;;  %v15878_v34 = vpop.f32.mrb[84].mxu1 }
 0x328   : > { %v15815_v35 = vpop.f32.mrb[117].mxu0  ;;  %v15879_v39 = vpop.f32.mrb[85].mxu1 }
 0x329   : > { %v15816_v45 = vadd.f32 %v15815_v35, %v15814_v46  ;;  %v15817_v47 = vpop.f32.mrb[118].mxu0  ;;  %v19752_v49 = vadd.f32 %v15879_v39, %v15878_v34  ;;  %v15881_v51 = vpop.f32.mrb[86].mxu1 }
 0x32a   : > { %v15818_v53 = vpop.f32.mrb[119].mxu0  ;;  %v15882_v59 = vpop.f32.mrb[87].mxu1 }
 0x32b   : > { %v19755_v10 = vadd.f32 %v15816_v45, %v19672_v30  ;;  %v15819_v3 = vadd.f32 %v15818_v53, %v15817_v47  ;;  %v19757_v58 = vadd.f32 %v15882_v59, %v15881_v51 }
 0x32d   : > { %v19760_v20 = vadd.f32 %v15819_v3, %v19677_v32 }
 0x32f   : > { %v15820_v42 = vpop.f32.mrb[120].mxu0  ;;  %v15884_v5 = vpop.f32.mrb[88].mxu1 }
 0x330   : > { %v15821_v9 = vpop.f32.mrb[121].mxu0  ;;  %v15885_v11 = vpop.f32.mrb[89].mxu1 }
 0x331   : > { %v15822_v12 = vadd.f32 %v15821_v9, %v15820_v42  ;;  %v15823_v48 = vpop.f32.mrb[122].mxu0  ;;  %v19762_v23 = vadd.f32 %v15885_v11, %v15884_v5  ;;  %v15887_v26 = vpop.f32.mrb[90].mxu1 }
 0x332   : > { %v15824_v46 = vpop.f32.mrb[123].mxu0  ;;  %v15888_v34 = vpop.f32.mrb[91].mxu1 }
 0x333   : > { %v19765_v30 = vadd.f32 %v15822_v12, %v19682_v50  ;;  %v15825_v35 = vadd.f32 %v15824_v46, %v15823_v48  ;;  %v19767_v39 = vadd.f32 %v15888_v34, %v15887_v26 }
 0x335   : > { %v19770_v32 = vadd.f32 %v15825_v35, %v19687_v57 }
 0x337   : > { %21862 = vst [vmem:[#allocation28_spill] sm:$0xff] %v19770_v32  ;;  %v15826_v45 = vpop.f32.mrb[124].mxu0  ;;  %v15890_v47 = vpop.f32.mrb[92].mxu1 }
 0x338   : > { %v15827_v51 = vpop.f32.mrb[125].mxu0  ;;  %v15891_v53 = vpop.f32.mrb[93].mxu1 }
 0x339   : > { %v15828_v59 = vadd.f32 %v15827_v51, %v15826_v45  ;;  %v15829_v3 = vpop.f32.mrb[126].mxu0  ;;  %v19772_v42 = vadd.f32 %v15891_v53, %v15890_v47  ;;  %v15893_v5 = vpop.f32.mrb[94].mxu1 }
 0x33a   : > { %v15830_v9 = vpop.f32.mrb[127].mxu0  ;;  %v15894_v11 = vpop.f32.mrb[95].mxu1 }
 0x33b   : > { %v19775_v50 = vadd.f32 %v15828_v59, %v19692_v6  ;;  %v15831_v12 = vadd.f32 %v15830_v9, %v15829_v3  ;;  %v19777_v48 = vadd.f32 %v15894_v11, %v15893_v5  ;;  %v19787_v6 = vld [vmem:[%s21820_s2 + $0x20] sm:$0xff]  }
 0x33c   : > { %16788 = vmatprep.subr.bf16.mxu1 %v19787_v6 }
 0x33d   : > { %21863 = vst [vmem:[#allocation29_spill] sm:$0xff] %v19775_v50  ;;  %v19780_v57 = vadd.f32 %v15831_v12, %v19697_v19 }
 0x33f   : > { %21864 = vst [vmem:[#allocation30_spill] sm:$0xff] %v19780_v57  ;;  %v15960_v26 = vpop.f32.mrb[128].mxu0  ;;  %v15896_v46 = vpop.f32.mrb[96].mxu1 }
 0x340   : > { %v15961_v34 = vpop.f32.mrb[129].mxu0  ;;  %v15897_v35 = vpop.f32.mrb[97].mxu1 }
 0x341   : > { %v15962_v45 = vadd.f32 %v15961_v34, %v15960_v26  ;;  %v15963_v51 = vpop.f32.mrb[130].mxu0  ;;  %v19782_v47 = vadd.f32 %v15897_v35, %v15896_v46  ;;  %v15899_v53 = vpop.f32.mrb[98].mxu1 }
 0x342   : > { %v15964_v59 = vpop.f32.mrb[131].mxu0  ;;  %v15900_v3 = vpop.f32.mrb[99].mxu1 }
 0x343   : > { %v2462_v5 = vadd.f32 %v15962_v45, %v19702_v33  ;;  %v15965_v19 = vadd.f32 %v15964_v59, %v15963_v51  ;;  %v19790_v9 = vadd.f32 %v15900_v3, %v15899_v53 }
 0x345   : > { %v2588_v11 = vmax.f32 %v19478_v61, %v2462_v5  ;;  %v2465_v12 = vadd.f32 %v15965_v19, %v19707_v44 }
 0x347   : > { %v2620_v26 = vmax.f32 %v2588_v11, 0.0  ;;  %v2589_v46 = vmax.f32 %v19483_v63, %v2465_v12  ;;  %v15966_v34 = vpop.f32.mrb[132].mxu0  ;;  %v15902_v35 = vpop.f32.mrb[100].mxu1  ;;  %v2765_v11 = vld [vmem:[#allocation2] sm:$0xff] }
 0x348   : > { %v15967_v57 = vpop.f32.mrb[133].mxu0  ;;  %v15903_v50 = vpop.f32.mrb[101].mxu1 }
 0x349   : > { %2701 = vst.msk [vmem:[#allocation2 + $0x8] sm:$0xff] %vm2652_vm1, %v2620_v26  ;;  %v2621_v32 = vmax.f32 %v2589_v46, 0.0  ;;  %v15968_v33 = vadd.f32 %v15967_v57, %v15966_v34  ;;  %v15969_v45 = vpop.f32.mrb[134].mxu0  ;;  %v19797_v51 = vadd.f32 %v15903_v50, %v15902_v35  ;;  %v15905_v53 = vpop.f32.mrb[102].mxu1 }
 0x34a   : > { %v15970_v59 = vpop.f32.mrb[135].mxu0  ;;  %v15906_v3 = vpop.f32.mrb[103].mxu1 }
 0x34b   : > { %2702 = vst.msk [vmem:[#allocation2 + $0x10] sm:$0xff] %vm2652_vm1, %v2621_v32  ;;  %v2470_v61 = vadd.f32 %v15968_v33, %v19712_v56  ;;  %v15971_v44 = vadd.f32 %v15970_v59, %v15969_v45  ;;  %v19801_v63 = vadd.f32 %v15906_v3, %v15905_v53 }
 0x34d   : > { %v2590_v5 = vmax.f32 %v19625_v14, %v2470_v61  ;;  %v2473_v19 = vadd.f32 %v15971_v44, %v19717_v37 }
 0x34f   : > { %v2622_v12 = vmax.f32 %v2590_v5, 0.0  ;;  %v2591_v57 = vmax.f32 %v19631_v18, %v2473_v19  ;;  %v15972_v50 = vpop.f32.mrb[136].mxu0  ;;  %v15908_v26 = vpop.f32.mrb[104].mxu1 }
 0x350   : > { %v15973_v46 = vpop.f32.mrb[137].mxu0  ;;  %v2766_v34 = vld [vmem:[#allocation2 + $0x8] sm:$0xff]  ;;  %v15909_v35 = vpop.f32.mrb[105].mxu1 }
 0x351   : > { %2703 = vst.msk [vmem:[#allocation2 + $0x18] sm:$0xff] %vm2652_vm1, %v2622_v12  ;;  %v2623_v32 = vmax.f32 %v2591_v57, 0.0  ;;  %v15974_v56 = vadd.f32 %v15973_v46, %v15972_v50  ;;  %v15975_v33 = vpop.f32.mrb[138].mxu0  ;;  %v2797_v45 = vpack.c.bf16 %v2766_v34, %v2765_v11  ;;  %v19807_v53 = vadd.f32 %v15909_v35, %v15908_v26  ;;  %v15911_v14 = vpop.f32.mrb[106].mxu1 }
 0x352   : > { %v15976_v59 = vpop.f32.mrb[139].mxu0  ;;  %v15912_v37 = vpop.f32.mrb[107].mxu1  ;;  %v2767_v26 = vld [vmem:[#allocation2 + $0x10] sm:$0xff] }
 0x353   : > { %2704 = vst.msk [vmem:[#allocation2 + $0x20] sm:$0xff] %vm2652_vm1, %v2623_v32  ;;  %v2478_v18 = vadd.f32 %v15974_v56, %v19722_v22  ;;  %v15977_v3 = vadd.f32 %v15976_v59, %v15975_v33  ;;  %16756 = vmatprep.mubr.msk.bf16.mxu1 %vm2652_vm1, %v2797_v45  ;;  %v19812_v61 = vadd.f32 %v15912_v37, %v15911_v14 }
 0x355   : > { %v2592_v44 = vmax.f32 %v19642_v36, %v2478_v18  ;;  %v2481_v5 = vadd.f32 %v15977_v3, %v19727_v29  ;;  %v18425_v29 = vld [vmem:[%s21820_s2 + $0x28] sm:$0xff]  }
 0x357   : > { %v2624_v19 = vmax.f32 %v2592_v44, 0.0  ;;  %v2593_v11 = vmax.f32 %v19647_v41, %v2481_v5  ;;  %v15978_v12 = vpop.f32.mrb[140].mxu0  ;;  %v15914_v57 = vpop.f32.mrb[108].mxu1  ;;  %v18426_v44 = vld [vmem:[%s21820_s2 + $0x30] sm:$0xff]  }
 0x358   : > { %v15979_v50 = vpop.f32.mrb[141].mxu0  ;;  %v2768_v46 = vld [vmem:[#allocation2 + $0x18] sm:$0xff]  ;;  %v15915_v34 = vpop.f32.mrb[109].mxu1  ;;  %v2769_v5 = vld [vmem:[#allocation2 + $0x30] sm:$0xff] }
 0x359   : > { %2705 = vst.msk [vmem:[#allocation2 + $0x38] sm:$0xff] %vm2652_vm1, %v2624_v19  ;;  %v2625_v22 = vmax.f32 %v2593_v11, 0.0  ;;  %v15980_v35 = vadd.f32 %v15979_v50, %v15978_v12  ;;  %v15981_v32 = vpop.f32.mrb[142].mxu0  ;;  %v2798_v56 = vpack.c.bf16 %v2768_v46, %v2767_v26  ;;  %v19818_v33 = vadd.f32 %v15915_v34, %v15914_v57  ;;  %v15917_v36 = vpop.f32.mrb[110].mxu1 }
 0x35a   : > { %v15982_v41 = vpop.f32.mrb[143].mxu0  ;;  %v15918_v45 = vpop.f32.mrb[111].mxu1 }
 0x35b   : > { %2706 = vst.msk [vmem:[#allocation2 + $0x40] sm:$0xff] %vm2652_vm1, %v2625_v22  ;;  %v2486_v14 = vadd.f32 %v15980_v35, %v19732_v60  ;;  %v15983_v59 = vadd.f32 %v15982_v41, %v15981_v32  ;;  %16757 = vmatmul.mubr.msk.bf16.vlgmr.msra.gmra.mrb[128].mxu1 %vm2652_vm1, %v2798_v56  ;;  %v19826_v37 = vadd.f32 %v15918_v45, %v15917_v36 }
 0x35c   : > { %16789 = vmatpush3.bf16.msra.mxu1 %v19787_v6 }
 0x35d   : > { %v2594_v18 = vmax.f32 %v19655_v62, %v2486_v14  ;;  %v2489_v3 = vadd.f32 %v15983_v59, %v19737_v0  ;;  %16790 = vmatprep.subr.bf16.mxu1 %v18425_v29 }
 0x35f   : > { %v2626_v19 = vmax.f32 %v2594_v18, 0.0  ;;  %v2595_v60 = vmax.f32 %v19660_v2, %v2489_v3  ;;  %v15984_v11 = vpop.f32.mrb[144].mxu0  ;;  %v15920_v12 = vpop.f32.mrb[112].mxu1  ;;  %v18427_v2 = vld [vmem:[%s21820_s2 + $0x38] sm:$0xff]  }
 0x360   : > { %v15985_v57 = vpop.f32.mrb[145].mxu0  ;;  %v2770_v50 = vld [vmem:[#allocation2 + $0x38] sm:$0xff]  ;;  %v15921_v26 = vpop.f32.mrb[113].mxu1  ;;  %16791 = vmatpush3.bf16.msra.mxu1 %v18425_v29 }
 0x361   : > { %2707 = vst.msk [vmem:[#allocation2 + $0x48] sm:$0xff] %vm2652_vm1, %v2626_v19  ;;  %v2627_v62 = vmax.f32 %v2595_v60, 0.0  ;;  %v15986_v6 = vadd.f32 %v15985_v57, %v15984_v11  ;;  %v15987_v0 = vpop.f32.mrb[146].mxu0  ;;  %v2799_v46 = vpack.c.bf16 %v2770_v50, %v2769_v5  ;;  %v19836_v34 = vadd.f32 %v15921_v26, %v15920_v12  ;;  %v15923_v22 = vpop.f32.mrb[114].mxu1  ;;  %16792 = vmatprep.subr.bf16.mxu1 %v18426_v44 }
 0x362   : > { %v15988_v35 = vpop.f32.mrb[147].mxu0  ;;  %v15924_v32 = vpop.f32.mrb[115].mxu1  ;;  %v2771_v19 = vld [vmem:[#allocation2 + $0x40] sm:$0xff] }
 0x363   : > { %2708 = vst.msk [vmem:[#allocation2 + $0x50] sm:$0xff] %vm2652_vm1, %v2627_v62  ;;  %v2494_v56 = vadd.f32 %v15986_v6, %v19742_v4  ;;  %v15989_v36 = vadd.f32 %v15988_v35, %v15987_v0  ;;  %16760 = vmatprep.mubr.msk.bf16.mxu1 %vm2652_vm1, %v2799_v46  ;;  %v19844_v29 = vadd.f32 %v15924_v32, %v15923_v22  ;;  %v2773_v22 = vld [vmem:[#allocation2 + $0x60] sm:$0xff] }
 0x364   : > { %16793 = vmatpush3.bf16.msra.mxu1 %v18426_v44 }
 0x365   : > { %v2596_v41 = vmax.f32 %v19665_v15, %v2494_v56  ;;  %v2497_v45 = vadd.f32 %v15989_v36, %v19747_v28  ;;  %16794 = vmatprep.subr.bf16.mxu1 %v18427_v2 }
 0x367   : > { %v2628_v14 = vmax.f32 %v2596_v41, 0.0  ;;  %v2597_v59 = vmax.f32 %v19670_v7, %v2497_v45  ;;  %v15990_v18 = vpop.f32.mrb[148].mxu0  ;;  %v15926_v3 = vpop.f32.mrb[116].mxu1 }
 0x368   : > { %v15991_v5 = vpop.f32.mrb[149].mxu0  ;;  %v2772_v60 = vld [vmem:[#allocation2 + $0x48] sm:$0xff]  ;;  %v15927_v4 = vpop.f32.mrb[117].mxu1  ;;  %16795 = vmatpush3.bf16.msra.mxu1 %v18427_v2 }
 0x369   : > { %2709 = vst.msk [vmem:[#allocation2 + $0x68] sm:$0xff] %vm2652_vm1, %v2628_v14  ;;  %v2629_v11 = vmax.f32 %v2597_v59, 0.0  ;;  %v15992_v12 = vadd.f32 %v15991_v5, %v15990_v18  ;;  %v15993_v44 = vpop.f32.mrb[150].mxu0  ;;  %v2800_v57 = vpack.c.bf16 %v2772_v60, %v2771_v19  ;;  %v19850_v15 = vadd.f32 %v15927_v4, %v15926_v3  ;;  %v15929_v28 = vpop.f32.mrb[118].mxu1 }
 0x36a   : > { %v15994_v50 = vpop.f32.mrb[151].mxu0  ;;  %v15930_v26 = vpop.f32.mrb[119].mxu1 }
 0x36b   : > { %2710 = vst.msk [vmem:[#allocation2 + $0x70] sm:$0xff] %vm2652_vm1, %v2629_v11  ;;  %v2502_v7 = vadd.f32 %v15992_v12, %v19752_v49  ;;  %v15995_v62 = vadd.f32 %v15994_v50, %v15993_v44  ;;  %16761 = vmatmul.mubr.msk.bf16.gmra.mrb[132].mxu1 %vm2652_vm1, %v2800_v57  ;;  %v19855_v6 = vadd.f32 %v15930_v26, %v15929_v28 }
 0x36d   : > { %v2598_v0 = vmax.f32 %v19675_v13, %v2502_v7  ;;  %v2505_v46 = vadd.f32 %v15995_v62, %v19757_v58 }
 0x36f   : > { %v2630_v2 = vmax.f32 %v2598_v0, 0.0  ;;  %v2599_v35 = vmax.f32 %v19680_v16, %v2505_v46  ;;  %v15996_v32 = vpop.f32.mrb[152].mxu0  ;;  %v15932_v56 = vpop.f32.mrb[120].mxu1 }
 0x370   : > { %v15997_v36 = vpop.f32.mrb[153].mxu0  ;;  %v2774_v41 = vld [vmem:[#allocation2 + $0x68] sm:$0xff]  ;;  %v15933_v45 = vpop.f32.mrb[121].mxu1 }
 0x371   : > { %2711 = vst.msk [vmem:[#allocation2 + $0x78] sm:$0xff] %vm2652_vm1, %v2630_v2  ;;  %v2631_v49 = vmax.f32 %v2599_v35, 0.0  ;;  %v15998_v14 = vadd.f32 %v15997_v36, %v15996_v32  ;;  %v15999_v59 = vpop.f32.mrb[154].mxu0  ;;  %v2801_v18 = vpack.c.bf16 %v2774_v41, %v2773_v22  ;;  %v19861_v3 = vadd.f32 %v15933_v45, %v15932_v56  ;;  %v15935_v13 = vpop.f32.mrb[122].mxu1  ;;  %v2777_v45 = vld [vmem:[#allocation2 + $0x90] sm:$0xff] }
 0x372   : > { %v16000_v5 = vpop.f32.mrb[155].mxu0  ;;  %v15936_v58 = vpop.f32.mrb[123].mxu1  ;;  %v2775_v26 = vld [vmem:[#allocation2 + $0x70] sm:$0xff] }
 0x373   : > { %2712 = vst.msk [vmem:[#allocation2 + $0x80] sm:$0xff] %vm2652_vm1, %v2631_v49  ;;  %v2510_v16 = vadd.f32 %v15998_v14, %v19762_v23  ;;  %v16001_v19 = vadd.f32 %v16000_v5, %v15999_v59  ;;  %16764 = vmatprep.mubr.msk.bf16.mxu1 %vm2652_vm1, %v2801_v18  ;;  %v19866_v60 = vadd.f32 %v15936_v58, %v15935_v13 }
 0x375   : > { %v2600_v4 = vmax.f32 %v19685_v21, %v2510_v16  ;;  %v2513_v11 = vadd.f32 %v16001_v19, %v19767_v39  ;;  %v19886_v19 = vld [vmem:[%s21820_s2 + $0x40] sm:$0xff]  }
 0x376   : > { %16828 = vmatprep.subr.bf16.mxu1 %v19886_v19 }
 0x377   : > { %v2632_v12 = vmax.f32 %v2600_v4, 0.0  ;;  %v2601_v44 = vmax.f32 %v19690_v25, %v2513_v11  ;;  %v16002_v57 = vpop.f32.mrb[156].mxu0  ;;  %v15938_v28 = vpop.f32.mrb[124].mxu1 }
 0x378   : > { %v16003_v50 = vpop.f32.mrb[157].mxu0  ;;  %v2776_v7 = vld [vmem:[#allocation2 + $0x78] sm:$0xff]  ;;  %v15939_v62 = vpop.f32.mrb[125].mxu1 }
 0x379   : > { %2713 = vst.msk [vmem:[#allocation2 + $0x98] sm:$0xff] %vm2652_vm1, %v2632_v12  ;;  %v2633_v23 = vmax.f32 %v2601_v44, 0.0  ;;  %v16004_v0 = vadd.f32 %v16003_v50, %v16002_v57  ;;  %v16005_v46 = vpop.f32.mrb[158].mxu0  ;;  %v2802_v22 = vpack.c.bf16 %v2776_v7, %v2775_v26  ;;  %v19872_v2 = vadd.f32 %v15939_v62, %v15938_v28  ;;  %v15941_v21 = vpop.f32.mrb[126].mxu1 }
 0x37a   : > { %v16006_v35 = vpop.f32.mrb[159].mxu0  ;;  %v15942_v39 = vpop.f32.mrb[127].mxu1 }
 0x37b   : > { %2714 = vst.msk [vmem:[#allocation2 + $0xa0] sm:$0xff] %vm2652_vm1, %v2633_v23  ;;  %v2518_v25 = vadd.f32 %v16004_v0, %v19772_v42  ;;  %v16007_v32 = vadd.f32 %v16006_v35, %v16005_v46  ;;  %16765 = vmatmul.mubr.msk.bf16.gmra.mrb[136].mxu1 %vm2652_vm1, %v2802_v22  ;;  %v19877_v56 = vadd.f32 %v15942_v39, %v15941_v21  ;;  %v2781_v22 = vld [vmem:[#allocation2 + $0xc0] sm:$0xff] }
 0x37d   : > { %v2602_v36 = vmax.f32 %v19695_v31, %v2518_v25  ;;  %v2521_v41 = vadd.f32 %v16007_v32, %v19777_v48 }
 0x37f   : > { %v2634_v49 = vmax.f32 %v2602_v36, 0.0  ;;  %v2603_v14 = vmax.f32 %v19700_v24, %v2521_v41  ;;  %v16008_v59 = vpop.f32.mrb[160].mxu0 }
 0x380   : > { %v16009_v18 = vpop.f32.mrb[161].mxu0  ;;  %v2778_v13 = vld [vmem:[#allocation2 + $0x98] sm:$0xff] }
 0x381   : > { %2715 = vst.msk [vmem:[#allocation2 + $0xa8] sm:$0xff] %vm2652_vm1, %v2634_v49  ;;  %v2635_v5 = vmax.f32 %v2603_v14, 0.0  ;;  %v16010_v42 = vadd.f32 %v16009_v18, %v16008_v59  ;;  %v16011_v58 = vpop.f32.mrb[162].mxu0  ;;  %v2803_v16 = vpack.c.bf16 %v2778_v13, %v2777_v45 }
 0x382   : > { %v16012_v31 = vpop.f32.mrb[163].mxu0  ;;  %v2779_v50 = vld [vmem:[#allocation2 + $0xa0] sm:$0xff] }
 0x383   : > { %2716 = vst.msk [vmem:[#allocation2 + $0xb0] sm:$0xff] %vm2652_vm1, %v2635_v5  ;;  %v2526_v48 = vadd.f32 %v16010_v42, %v19782_v47  ;;  %v16013_v24 = vadd.f32 %v16012_v31, %v16011_v58  ;;  %16768 = vmatprep.mubr.msk.bf16.mxu1 %vm2652_vm1, %v2803_v16 }
 0x385   : > { %v2604_v4 = vmax.f32 %v19705_v38, %v2526_v48  ;;  %v2529_v11 = vadd.f32 %v16013_v24, %v19790_v9 }
 0x387   : > { %v2636_v12 = vmax.f32 %v2604_v4, 0.0  ;;  %v2605_v44 = vmax.f32 %v19710_v43, %v2529_v11  ;;  %v16014_v57 = vpop.f32.mrb[164].mxu0  ;;  %v2785_v11 = vld [vmem:[#allocation2 + $0xf0] sm:$0xff] }
 0x388   : > { %v16015_v28 = vpop.f32.mrb[165].mxu0  ;;  %v2780_v26 = vld [vmem:[#allocation2 + $0xa8] sm:$0xff] }
 0x389   : > { %2717 = vst.msk [vmem:[#allocation2 + $0xc8] sm:$0xff] %vm2652_vm1, %v2636_v12  ;;  %v2637_v7 = vmax.f32 %v2605_v44, 0.0  ;;  %v16016_v47 = vadd.f32 %v16015_v28, %v16014_v57  ;;  %v16017_v62 = vpop.f32.mrb[166].mxu0  ;;  %v2804_v23 = vpack.c.bf16 %v2780_v26, %v2779_v50 }
 0x38a   : > { %v16018_v0 = vpop.f32.mrb[167].mxu0 }
 0x38b   : > { %2718 = vst.msk [vmem:[#allocation2 + $0xd0] sm:$0xff] %vm2652_vm1, %v2637_v7  ;;  %v2534_v38 = vadd.f32 %v16016_v47, %v19797_v51  ;;  %v16019_v46 = vadd.f32 %v16018_v0, %v16017_v62  ;;  %16769 = vmatmul.mubr.msk.bf16.gmra.mrb[140].mxu1 %vm2652_vm1, %v2804_v23 }
 0x38d   : > { %v2606_v43 = vmax.f32 %v19715_v54, %v2534_v38  ;;  %v2537_v9 = vadd.f32 %v16019_v46, %v19801_v63 }
 0x38f   : > { %v2638_v21 = vmax.f32 %v2606_v43, 0.0  ;;  %v2607_v35 = vmax.f32 %v19720_v52, %v2537_v9  ;;  %v16020_v39 = vpop.f32.mrb[168].mxu0 }
 0x390   : > { %v16021_v25 = vpop.f32.mrb[169].mxu0  ;;  %v2782_v32 = vld [vmem:[#allocation2 + $0xc8] sm:$0xff] }
 0x391   : > { %2719 = vst.msk [vmem:[#allocation2 + $0xd8] sm:$0xff] %vm2652_vm1, %v2638_v21  ;;  %v2639_v36 = vmax.f32 %v2607_v35, 0.0  ;;  %v16022_v41 = vadd.f32 %v16021_v25, %v16020_v39  ;;  %v16023_v45 = vpop.f32.mrb[170].mxu0  ;;  %v2805_v51 = vpack.c.bf16 %v2782_v32, %v2781_v22 }
 0x392   : > { %v16024_v49 = vpop.f32.mrb[171].mxu0  ;;  %v2783_v42 = vld [vmem:[#allocation2 + $0xd0] sm:$0xff] }
 0x393   : > { %2720 = vst.msk [vmem:[#allocation2 + $0xe0] sm:$0xff] %vm2652_vm1, %v2639_v36  ;;  %v2542_v54 = vadd.f32 %v16022_v41, %v19807_v53  ;;  %v16025_v14 = vadd.f32 %v16024_v49, %v16023_v45  ;;  %16772 = vmatprep.mubr.msk.bf16.mxu1 %vm2652_vm1, %v2805_v51  ;;  %v2789_v36 = vld [vmem:[#allocation2 + $0x120] sm:$0xff] }
 0x395   : > { %v2608_v63 = vmax.f32 %v19725_v8, %v2542_v54  ;;  %v2545_v52 = vadd.f32 %v16025_v14, %v19812_v61 }
 0x397   : > { %v2640_v59 = vmax.f32 %v2608_v63, 0.0  ;;  %v2609_v18 = vmax.f32 %v19730_v17, %v2545_v52  ;;  %v16026_v13 = vpop.f32.mrb[172].mxu0 }
 0x398   : > { %v16027_v5 = vpop.f32.mrb[173].mxu0  ;;  %v2784_v58 = vld [vmem:[#allocation2 + $0xd8] sm:$0xff] }
 0x399   : > { %2721 = vst.msk [vmem:[#allocation2 + $0xf8] sm:$0xff] %vm2652_vm1, %v2640_v59  ;;  %v2641_v16 = vmax.f32 %v2609_v18, 0.0  ;;  %v16028_v31 = vadd.f32 %v16027_v5, %v16026_v13  ;;  %v16029_v48 = vpop.f32.mrb[174].mxu0  ;;  %v2806_v53 = vpack.c.bf16 %v2784_v58, %v2783_v42  ;;  %v21865_v5 = vld [vmem:[#allocation28_spill] sm:$0xff] }
 0x39a   : > { %v16030_v24 = vpop.f32.mrb[175].mxu0 }
 0x39b   : > { %2722 = vst.msk [vmem:[#allocation2 + $0x100] sm:$0xff] %vm2652_vm1, %v2641_v16  ;;  %v2550_v8 = vadd.f32 %v16028_v31, %v19818_v33  ;;  %v16031_v4 = vadd.f32 %v16030_v24, %v16029_v48  ;;  %16773 = vmatmul.mubr.msk.bf16.gmra.mrb[144].mxu1 %vm2652_vm1, %v2806_v53 }
 0x39d   : > { %v2610_v17 = vmax.f32 %v19735_v27, %v2550_v8  ;;  %v2553_v61 = vadd.f32 %v16031_v4, %v19826_v37 }
 0x39f   : > { %v2642_v12 = vmax.f32 %v2610_v17, 0.0  ;;  %v2611_v44 = vmax.f32 %v19740_v40, %v2553_v61  ;;  %v16032_v57 = vpop.f32.mrb[176].mxu0 }
 0x3a0   : > { %v16033_v28 = vpop.f32.mrb[177].mxu0  ;;  %v2786_v50 = vld [vmem:[#allocation2 + $0xf8] sm:$0xff] }
 0x3a1   : > { %2723 = vst.msk [vmem:[#allocation2 + $0x108] sm:$0xff] %vm2652_vm1, %v2642_v12  ;;  %v2643_v26 = vmax.f32 %v2611_v44, 0.0  ;;  %v16034_v7 = vadd.f32 %v16033_v28, %v16032_v57  ;;  %v16035_v47 = vpop.f32.mrb[178].mxu0  ;;  %v2807_v33 = vpack.c.bf16 %v2786_v50, %v2785_v11  ;;  %v2793_v12 = vld [vmem:[#allocation2 + $0x150] sm:$0xff]  ;;  %v21867_v57 = vld [vmem:[#allocation30_spill] sm:$0xff] }
 0x3a2   : > { %v16036_v62 = vpop.f32.mrb[179].mxu0  ;;  %v2787_v9 = vld [vmem:[#allocation2 + $0x100] sm:$0xff] }
 0x3a3   : > { %2724 = vst.msk [vmem:[#allocation2 + $0x110] sm:$0xff] %vm2652_vm1, %v2643_v26  ;;  %v2558_v27 = vadd.f32 %v16034_v7, %v19836_v34  ;;  %v16037_v23 = vadd.f32 %v16036_v62, %v16035_v47  ;;  %16776 = vmatprep.mubr.msk.bf16.mxu1 %vm2652_vm1, %v2807_v33 }
 0x3a5   : > { %v2612_v37 = vmax.f32 %v19745_v55, %v2558_v27  ;;  %v2561_v40 = vadd.f32 %v16037_v23, %v19844_v29  ;;  %v3150_v27 = vld [vmem:[#allocation2 + $0x1] sm:$0xff] }
 0x3a7   : > { %v2644_v0 = vmax.f32 %v2612_v37, 0.0  ;;  %v2613_v38 = vmax.f32 %v19750_v1, %v2561_v40  ;;  %v16038_v46 = vpop.f32.mrb[180].mxu0  ;;  %v3155_v37 = vld [vmem:[#allocation2 + $0x39] sm:$0xff]  ;;  %v3152_v40 = vld [vmem:[#allocation2 + $0x11] sm:$0xff] }
 0x3a8   : > { %v16039_v43 = vpop.f32.mrb[181].mxu0  ;;  %v2788_v22 = vld [vmem:[#allocation2 + $0x108] sm:$0xff] }
 0x3a9   : > { %2725 = vst.msk [vmem:[#allocation2 + $0x128] sm:$0xff] %vm2652_vm1, %v2644_v0  ;;  %v2645_v21 = vmax.f32 %v2613_v38, 0.0  ;;  %v16040_v35 = vadd.f32 %v16039_v43, %v16038_v46  ;;  %v16041_v39 = vpop.f32.mrb[182].mxu0  ;;  %v2808_v34 = vpack.c.bf16 %v2788_v22, %v2787_v9  ;;  %v3154_v38 = vld [vmem:[#allocation2 + $0x31] sm:$0xff]  ;;  %v18429_v46 = vld [vmem:[%s21820_s2 + $0x48] sm:$0xff]  }
 0x3aa   : > { %v16042_v25 = vpop.f32.mrb[183].mxu0  ;;  %v3184_v43 = vpack.c.bf16 %v3155_v37, %v3154_v38  ;;  %v18430_v9 = vld [vmem:[%s21820_s2 + $0x50] sm:$0xff]   ;;  %v18435_v37 = vld [vmem:[%s21820_s2 + $0x78] sm:$0xff]  }
 0x3ab   : > { %2726 = vst.msk [vmem:[#allocation2 + $0x130] sm:$0xff] %vm2652_vm1, %v2645_v21  ;;  %v2566_v55 = vadd.f32 %v16040_v35, %v19850_v15  ;;  %v16043_v32 = vadd.f32 %v16042_v25, %v16041_v39  ;;  %16777 = vmatmul.mubr.msk.bf16.gmra.mrb[148].mxu1 %vm2652_vm1, %v2808_v34  ;;  %v3157_v22 = vld [vmem:[#allocation2 + $0x49] sm:$0xff]  ;;  %v3156_v35 = vld [vmem:[#allocation2 + $0x41] sm:$0xff]  ;;  %v18431_v25 = vld [vmem:[%s21820_s2 + $0x58] sm:$0xff]  }
 0x3ac   : > { %v3159_v21 = vld [vmem:[#allocation2 + $0x69] sm:$0xff]  ;;  %v3185_v39 = vpack.c.bf16 %v3157_v22, %v3156_v35  ;;  %v3158_v34 = vld [vmem:[#allocation2 + $0x61] sm:$0xff]  ;;  %v3548_v22 = vld [vmem:[#allocation2 + $0x92] sm:$0xff] }
 0x3ad   : > { %v2614_v1 = vmax.f32 %v19755_v10, %v2566_v55  ;;  %v2569_v29 = vadd.f32 %v16043_v32, %v19855_v6  ;;  %v3186_v55 = vpack.c.bf16 %v3159_v21, %v3158_v34  ;;  %v3161_v32 = vld [vmem:[#allocation2 + $0x79] sm:$0xff]  ;;  %v3551_v35 = vld [vmem:[#allocation2 + $0xaa] sm:$0xff]  ;;  %v3550_v34 = vld [vmem:[#allocation2 + $0xa2] sm:$0xff] }
 0x3ae   : > { %v3547_v38 = vld [vmem:[#allocation2 + $0x7a] sm:$0xff] }
 0x3af   : > { %v2646_v41 = vmax.f32 %v2614_v1, 0.0  ;;  %v2615_v45 = vmax.f32 %v19760_v20, %v2569_v29  ;;  %v16044_v51 = vpop.f32.mrb[184].mxu0  ;;  %v3163_v1 = vld [vmem:[#allocation2 + $0x99] sm:$0xff]  ;;  %v3160_v29 = vld [vmem:[#allocation2 + $0x71] sm:$0xff] }
 0x3b0   : > { %v16045_v49 = vpop.f32.mrb[185].mxu0  ;;  %v2790_v54 = vld [vmem:[#allocation2 + $0x128] sm:$0xff] }
 0x3b1   : > { %2727 = vst.msk [vmem:[#allocation2 + $0x138] sm:$0xff] %vm2652_vm1, %v2646_v41  ;;  %v2647_v14 = vmax.f32 %v2615_v45, 0.0  ;;  %v16046_v63 = vadd.f32 %v16045_v49, %v16044_v51  ;;  %v16047_v52 = vpop.f32.mrb[186].mxu0  ;;  %v2809_v15 = vpack.c.bf16 %v2790_v54, %v2789_v36  ;;  %v3187_v36 = vpack.c.bf16 %v3161_v32, %v3160_v29  ;;  %v3162_v41 = vld [vmem:[#allocation2 + $0x91] sm:$0xff]  ;;  %v3165_v51 = vld [vmem:[#allocation2 + $0xa9] sm:$0xff]  ;;  %v3164_v54 = vld [vmem:[#allocation2 + $0xa1] sm:$0xff] }
 0x3b2   : > { %v16048_v59 = vpop.f32.mrb[187].mxu0  ;;  %v2791_v31 = vld [vmem:[#allocation2 + $0x130] sm:$0xff]  ;;  %v3188_v45 = vpack.c.bf16 %v3163_v1, %v3162_v41  ;;  %v3555_v32 = vld [vmem:[#allocation2 + $0xda] sm:$0xff] }
 0x3b3   : > { %2728 = vst.msk [vmem:[#allocation2 + $0x140] sm:$0xff] %vm2652_vm1, %v2647_v14  ;;  %v2574_v10 = vadd.f32 %v16046_v63, %v19861_v3  ;;  %v16049_v18 = vadd.f32 %v16048_v59, %v16047_v52  ;;  %16780 = vmatprep.mubr.msk.bf16.mxu1 %vm2652_vm1, %v2809_v15  ;;  %v3167_v49 = vld [vmem:[#allocation2 + $0xc9] sm:$0xff]  ;;  %v3189_v14 = vpack.c.bf16 %v3165_v51, %v3164_v54  ;;  %v3166_v63 = vld [vmem:[#allocation2 + $0xc1] sm:$0xff]  ;;  %v3169_v15 = vld [vmem:[#allocation2 + $0xd9] sm:$0xff] }
 0x3b4   : > { %v3190_v52 = vpack.c.bf16 %v3167_v49, %v3166_v63  ;;  %v3171_v59 = vld [vmem:[#allocation2 + $0xf9] sm:$0xff]  ;;  %v3559_v51 = vld [vmem:[#allocation2 + $0x10a] sm:$0xff]  ;;  %v3558_v54 = vld [vmem:[#allocation2 + $0x102] sm:$0xff] }
 0x3b5   : > { %v2616_v6 = vmax.f32 %v19765_v30, %v2574_v10  ;;  %v2577_v20 = vadd.f32 %v16049_v18, %v19866_v60  ;;  %v21866_v60 = vld [vmem:[#allocation29_spill] sm:$0xff]  ;;  %v3561_v49 = vld [vmem:[#allocation2 + $0x12a] sm:$0xff]  ;;  %v3560_v63 = vld [vmem:[#allocation2 + $0x122] sm:$0xff] }
 0x3b6   : > { %v3168_v10 = vld [vmem:[#allocation2 + $0xd1] sm:$0xff]  ;;  %v3557_v1 = vld [vmem:[#allocation2 + $0xfa] sm:$0xff] }
 0x3b7   : > { %v2648_v13 = vmax.f32 %v2616_v6, 0.0  ;;  %v2617_v42 = vmax.f32 %v21865_v5, %v2577_v20  ;;  %v16050_v58 = vpop.f32.mrb[188].mxu0  ;;  %v3191_v18 = vpack.c.bf16 %v3169_v15, %v3168_v10  ;;  %v3170_v6 = vld [vmem:[#allocation2 + $0xf1] sm:$0xff]  ;;  %v3175_v5 = vld [vmem:[#allocation2 + $0x129] sm:$0xff] }
 0x3b8   : > { %v16051_v16 = vpop.f32.mrb[189].mxu0  ;;  %v2792_v48 = vld [vmem:[#allocation2 + $0x138] sm:$0xff]  ;;  %v3192_v20 = vpack.c.bf16 %v3171_v59, %v3170_v6 }
 0x3b9   : > { %2729 = vst.msk [vmem:[#allocation2 + $0x158] sm:$0xff] %vm2652_vm1, %v2648_v13  ;;  %v2649_v53 = vmax.f32 %v2617_v42, 0.0  ;;  %v16052_v24 = vadd.f32 %v16051_v16, %v16050_v58  ;;  %v16053_v8 = vpop.f32.mrb[190].mxu0  ;;  %v2810_v3 = vpack.c.bf16 %v2792_v48, %v2791_v31  ;;  %v3173_v13 = vld [vmem:[#allocation2 + $0x109] sm:$0xff]  ;;  %v3172_v42 = vld [vmem:[#allocation2 + $0x101] sm:$0xff]  ;;  %v3554_v29 = vld [vmem:[#allocation2 + $0xd2] sm:$0xff] }
 0x3ba   : > { %v16054_v4 = vpop.f32.mrb[191].mxu0  ;;  %v3193_v58 = vpack.c.bf16 %v3173_v13, %v3172_v42  ;;  %v3174_v16 = vld [vmem:[#allocation2 + $0x121] sm:$0xff]  ;;  %v3177_v48 = vld [vmem:[#allocation2 + $0x139] sm:$0xff] }
 0x3bb   : > { %2730 = vst.msk [vmem:[#allocation2 + $0x160] sm:$0xff] %vm2652_vm1, %v2649_v53  ;;  %v2582_v30 = vadd.f32 %v16052_v24, %v19872_v2  ;;  %v16055_v17 = vadd.f32 %v16054_v4, %v16053_v8  ;;  %16781 = vmatmul.mubr.msk.bf16.gmra.mrb[152].mxu1 %vm2652_vm1, %v2810_v3  ;;  %v3151_v2 = vld [vmem:[#allocation2 + $0x9] sm:$0xff]  ;;  %v3194_v31 = vpack.c.bf16 %v3175_v5, %v3174_v16  ;;  %v3176_v24 = vld [vmem:[#allocation2 + $0x131] sm:$0xff]  ;;  %v3563_v15 = vld [vmem:[#allocation2 + $0x13a] sm:$0xff] }
 0x3bc   : > { %v3182_v23 = vpack.c.bf16 %v3151_v2, %v3150_v27  ;;  %v3195_v8 = vpack.c.bf16 %v3177_v48, %v3176_v24  ;;  %v3542_v27 = vld [vmem:[#allocation2 + $0x42] sm:$0xff]  ;;  %v3556_v41 = vld [vmem:[#allocation2 + $0xf2] sm:$0xff] }
 0x3bd   : > { %v2618_v61 = vmax.f32 %v21866_v60, %v2582_v30  ;;  %v2585_v11 = vadd.f32 %v16055_v17, %v19877_v56  ;;  %v3153_v56 = vld [vmem:[#allocation2 + $0x19] sm:$0xff]  ;;  %v3537_v17 = vld [vmem:[#allocation2 + $0xa] sm:$0xff] }
 0x3be   : > { %v3183_v0 = vpack.c.bf16 %v3153_v56, %v3152_v40  ;;  %v3544_v56 = vld [vmem:[#allocation2 + $0x62] sm:$0xff]  ;;  %v3562_v10 = vld [vmem:[#allocation2 + $0x132] sm:$0xff] }
 0x3bf   : > { %v2650_v44 = vmax.f32 %v2618_v61, 0.0  ;;  %v2619_v28 = vmax.f32 %v21867_v57, %v2585_v11  ;;  %v3536_v11 = vld [vmem:[#allocation2 + $0x2] sm:$0xff]  ;;  %v3541_v57 = vld [vmem:[#allocation2 + $0x3a] sm:$0xff]  ;;  %v3923_v5 = vld [vmem:[#allocation2 + $0xb] sm:$0xff] }
 0x3c0   : > { %v2794_v50 = vld [vmem:[#allocation2 + $0x158] sm:$0xff]  ;;  %v3922_v16 = vld [vmem:[#allocation2 + $0x3] sm:$0xff] }
 0x3c1   : > { %2731 = vst.msk [vmem:[#allocation2 + $0x168] sm:$0xff] %vm2652_vm1, %v2650_v44  ;;  %v2651_v26 = vmax.f32 %v2619_v28, 0.0  ;;  %v2811_v7 = vpack.c.bf16 %v2794_v50, %v2793_v12  ;;  %v3178_v3 = vld [vmem:[#allocation2 + $0x151] sm:$0xff]  ;;  %v3568_v12 = vpack.c.bf16 %v3537_v17, %v3536_v11  ;;  %v3539_v44 = vld [vmem:[#allocation2 + $0x1a] sm:$0xff]  ;;  %v3928_v11 = vld [vmem:[#allocation2 + $0x43] sm:$0xff] }
 0x3c2   : > { %v2795_v47 = vld [vmem:[#allocation2 + $0x160] sm:$0xff]  ;;  %v3538_v28 = vld [vmem:[#allocation2 + $0x12] sm:$0xff] }
 0x3c3   : > { %2732 = vst.msk [vmem:[#allocation2 + $0x170] sm:$0xff] %vm2652_vm1, %v2651_v26  ;;  %16784 = vmatprep.mubr.msk.bf16.mxu1 %vm2652_vm1, %v2811_v7  ;;  %v3179_v53 = vld [vmem:[#allocation2 + $0x159] sm:$0xff]  ;;  %v3569_v50 = vpack.c.bf16 %v3539_v44, %v3538_v28  ;;  %v18433_v7 = vld [vmem:[%s21820_s2 + $0x68] sm:$0xff]   ;;  %v18438_v17 = vld [vmem:[%s21820_s2 + $0x90] sm:$0xff]  }
 0x3c4   : > { %v3196_v4 = vpack.c.bf16 %v3179_v53, %v3178_v3  ;;  %v3540_v26 = vld [vmem:[#allocation2 + $0x32] sm:$0xff]  ;;  %v3565_v59 = vld [vmem:[#allocation2 + $0x15a] sm:$0xff]  ;;  %v3930_v44 = vld [vmem:[#allocation2 + $0x63] sm:$0xff] }
 0x3c5   : > { %v3570_v2 = vpack.c.bf16 %v3541_v57, %v3540_v26  ;;  %v3564_v6 = vld [vmem:[#allocation2 + $0x152] sm:$0xff]  ;;  %v3925_v48 = vld [vmem:[#allocation2 + $0x1b] sm:$0xff] }
 0x3c6   : > { %v3927_v53 = vld [vmem:[#allocation2 + $0x3b] sm:$0xff]  ;;  %v3924_v24 = vld [vmem:[#allocation2 + $0x13] sm:$0xff] }
 0x3c7   : > { %v3926_v3 = vld [vmem:[#allocation2 + $0x33] sm:$0xff]  ;;  %v3933_v26 = vld [vmem:[#allocation2 + $0x7b] sm:$0xff] }
 0x3c8   : > { %v2796_v33 = vld [vmem:[#allocation2 + $0x168] sm:$0xff]  ;;  %v18439_v57 = vld [vmem:[%s21820_s2 + $0x98] sm:$0xff]  }
 0x3c9   : > { %v2812_v62 = vpack.c.bf16 %v2796_v33, %v2795_v47  ;;  %v3180_v60 = vld [vmem:[#allocation2 + $0x161] sm:$0xff]  ;;  %v18434_v47 = vld [vmem:[%s21820_s2 + $0x70] sm:$0xff]  }
 0x3ca   : > { %v3181_v30 = vld [vmem:[#allocation2 + $0x169] sm:$0xff] }
 0x3cb   : > { %16785 = vmatmul.mubr.msk.bf16.gmra.mrb[156].mxu1 %vm2652_vm1, %v2812_v62  ;;  %v3197_v61 = vpack.c.bf16 %v3181_v30, %v3180_v60  ;;  %v3543_v33 = vld [vmem:[#allocation2 + $0x4a] sm:$0xff]  ;;  %v3566_v42 = vld [vmem:[#allocation2 + $0x162] sm:$0xff]  ;;  %v3956_v30 = vpack.c.bf16 %v3927_v53, %v3926_v3  ;;  %v18443_v53 = vld [vmem:[%s21820_s2 + $0xb8] sm:$0xff]  }
 0x3cc   : > { %16796 = vmatprep.mubr.msk.bf16.mxu1 %vm2652_vm1, %v3182_v23  ;;  %v3545_v62 = vld [vmem:[#allocation2 + $0x6a] sm:$0xff]  ;;  %v3571_v23 = vpack.c.bf16 %v3543_v33, %v3542_v27  ;;  %v3934_v33 = vld [vmem:[#allocation2 + $0x93] sm:$0xff]  ;;  %v4319_v3 = vld [vmem:[#allocation2 + $0x7c] sm:$0xff] }
 0x3cd   : > { %v3572_v40 = vpack.c.bf16 %v3545_v62, %v3544_v56  ;;  %v3567_v13 = vld [vmem:[#allocation2 + $0x16a] sm:$0xff] }
 0x3ce   : > { %v3929_v60 = vld [vmem:[#allocation2 + $0x4b] sm:$0xff]  ;;  %v3936_v56 = vld [vmem:[#allocation2 + $0xa3] sm:$0xff] }
 0x3cf   : > { %v3937_v27 = vld [vmem:[#allocation2 + $0xab] sm:$0xff] }
 0x3d3   : > { %16797 = vmatmul.mubr.msk.bf16.vlgmr.msra.gmra.mrb[128].mxu1 %vm2652_vm1, %v3183_v0  ;;  %v18436_v0 = vld [vmem:[%s21820_s2 + $0x80] sm:$0xff]  }
 0x3d4   : > { %16800 = vmatprep.mubr.msk.bf16.mxu1 %vm2652_vm1, %v3184_v43  ;;  %16829 = vmatpush3.bf16.msra.mxu1 %v19886_v19  ;;  %v18432_v19 = vld [vmem:[%s21820_s2 + $0x60] sm:$0xff]   ;;  %v3546_v43 = vld [vmem:[#allocation2 + $0x72] sm:$0xff] }
 0x3d5   : > { %16830 = vmatprep.subr.bf16.mxu1 %v18429_v46 }
 0x3d8   : > { %16831 = vmatpush3.bf16.msra.mxu1 %v18429_v46  ;;  %v3549_v46 = vld [vmem:[#allocation2 + $0x9a] sm:$0xff] }
 0x3d9   : > { %16832 = vmatprep.subr.bf16.mxu1 %v18430_v9  ;;  %v3574_v21 = vpack.c.bf16 %v3549_v46, %v3548_v22  ;;  %v3943_v46 = vld [vmem:[#allocation2 + $0xfb] sm:$0xff]  ;;  %v3942_v22 = vld [vmem:[#allocation2 + $0xf3] sm:$0xff] }
 0x3db   : > { %16801 = vmatmul.mubr.msk.bf16.gmra.mrb[132].mxu1 %vm2652_vm1, %v3185_v39  ;;  %v3553_v39 = vld [vmem:[#allocation2 + $0xca] sm:$0xff] }
 0x3dc   : > { %16804 = vmatprep.mubr.msk.bf16.mxu1 %vm2652_vm1, %v3186_v55  ;;  %16833 = vmatpush3.bf16.msra.mxu1 %v18430_v9  ;;  %v3573_v9 = vpack.c.bf16 %v3547_v38, %v3546_v43  ;;  %v3552_v55 = vld [vmem:[#allocation2 + $0xc2] sm:$0xff]  ;;  %v3940_v43 = vld [vmem:[#allocation2 + $0xd3] sm:$0xff] }
 0x3dd   : > { %16834 = vmatprep.subr.bf16.mxu1 %v18431_v25  ;;  %v3941_v38 = vld [vmem:[#allocation2 + $0xdb] sm:$0xff] }
 0x3e0   : > { %16835 = vmatpush3.bf16.msra.mxu1 %v18431_v25  ;;  %v3575_v25 = vpack.c.bf16 %v3551_v35, %v3550_v34  ;;  %v3945_v35 = vld [vmem:[#allocation2 + $0x10b] sm:$0xff]  ;;  %v3944_v34 = vld [vmem:[#allocation2 + $0x103] sm:$0xff] }
 0x3e1   : > { %16868 = vmatprep.subr.bf16.mxu1 %v18432_v19 }
 0x3e3   : > { %16805 = vmatmul.mubr.msk.bf16.gmra.mrb[136].mxu1 %vm2652_vm1, %v3187_v36  ;;  %v3577_v36 = vpack.c.bf16 %v3555_v32, %v3554_v29  ;;  %v3949_v32 = vld [vmem:[#allocation2 + $0x13b] sm:$0xff]  ;;  %v3948_v29 = vld [vmem:[#allocation2 + $0x133] sm:$0xff] }
 0x3e4   : > { %16808 = vmatprep.mubr.msk.bf16.mxu1 %vm2652_vm1, %v3188_v45  ;;  %v3578_v45 = vpack.c.bf16 %v3557_v1, %v3556_v41  ;;  %v3951_v1 = vld [vmem:[#allocation2 + $0x15b] sm:$0xff]  ;;  %v3950_v41 = vld [vmem:[#allocation2 + $0x153] sm:$0xff] }
 0x3eb   : > { %16809 = vmatmul.mubr.msk.bf16.gmra.mrb[140].mxu1 %vm2652_vm1, %v3189_v14  ;;  %v3579_v14 = vpack.c.bf16 %v3559_v51, %v3558_v54  ;;  %v3953_v51 = vld [vmem:[#allocation2 + $0x16b] sm:$0xff]  ;;  %v3952_v54 = vld [vmem:[#allocation2 + $0x163] sm:$0xff] }
 0x3ec   : > { %16812 = vmatprep.mubr.msk.bf16.mxu1 %vm2652_vm1, %v3190_v52  ;;  %v3580_v52 = vpack.c.bf16 %v3561_v49, %v3560_v63  ;;  %v4309_v49 = vld [vmem:[#allocation2 + $0xc] sm:$0xff]  ;;  %v4308_v63 = vld [vmem:[#allocation2 + $0x4] sm:$0xff] }
 0x3f3   : > { %16813 = vmatmul.mubr.msk.bf16.gmra.mrb[144].mxu1 %vm2652_vm1, %v3191_v18  ;;  %v3581_v18 = vpack.c.bf16 %v3563_v15, %v3562_v10  ;;  %v4311_v15 = vld [vmem:[#allocation2 + $0x1c] sm:$0xff]  ;;  %v4310_v10 = vld [vmem:[#allocation2 + $0x14] sm:$0xff] }
 0x3f4   : > { %16816 = vmatprep.mubr.msk.bf16.mxu1 %vm2652_vm1, %v3192_v20  ;;  %v3582_v20 = vpack.c.bf16 %v3565_v59, %v3564_v6  ;;  %v4313_v59 = vld [vmem:[#allocation2 + $0x3c] sm:$0xff]  ;;  %v4312_v6 = vld [vmem:[#allocation2 + $0x34] sm:$0xff] }
 0x3fb   : > { %16817 = vmatmul.mubr.msk.bf16.gmra.mrb[148].mxu1 %vm2652_vm1, %v3193_v58  ;;  %v3583_v58 = vpack.c.bf16 %v3567_v13, %v3566_v42  ;;  %v4342_v13 = vpack.c.bf16 %v4313_v59, %v4312_v6  ;;  %v4315_v42 = vld [vmem:[#allocation2 + $0x4c] sm:$0xff]  ;;  %v18447_v59 = vld [vmem:[%s21820_s2 + $0xd8] sm:$0xff]  }
 0x3fc   : > { %16820 = vmatprep.mubr.msk.bf16.mxu1 %vm2652_vm1, %v3194_v31  ;;  %v3954_v31 = vpack.c.bf16 %v3923_v5, %v3922_v16  ;;  %v18442_v5 = vld [vmem:[%s21820_s2 + $0xb0] sm:$0xff]   ;;  %v4314_v16 = vld [vmem:[#allocation2 + $0x44] sm:$0xff] }
 0x3fd   : > { %v4705_v6 = vld [vmem:[#allocation2 + $0x7d] sm:$0xff] }
 0x403   : > { %16821 = vmatmul.mubr.msk.bf16.gmra.mrb[152].mxu1 %vm2652_vm1, %v3195_v8  ;;  %v3955_v8 = vpack.c.bf16 %v3925_v48, %v3924_v24  ;;  %v4316_v48 = vld [vmem:[#allocation2 + $0x64] sm:$0xff] }
 0x404   : > { %16824 = vmatprep.mubr.msk.bf16.mxu1 %vm2652_vm1, %v3196_v4  ;;  %v18437_v4 = vld [vmem:[%s21820_s2 + $0x88] sm:$0xff]  }
 0x40b   : > { %16825 = vmatmul.mubr.msk.bf16.gmra.mrb[156].mxu1 %vm2652_vm1, %v3197_v61  ;;  %v3931_v61 = vld [vmem:[#allocation2 + $0x6b] sm:$0xff] }
 0x40c   : > { %16836 = vmatprep.mubr.msk.bf16.mxu1 %vm2652_vm1, %v3568_v12  ;;  %v3957_v12 = vpack.c.bf16 %v3929_v60, %v3928_v11  ;;  %v3958_v28 = vpack.c.bf16 %v3931_v61, %v3930_v44  ;;  %v4320_v60 = vld [vmem:[#allocation2 + $0x94] sm:$0xff]  ;;  %v4323_v11 = vld [vmem:[#allocation2 + $0xac] sm:$0xff]  ;;  %v4322_v44 = vld [vmem:[#allocation2 + $0xa4] sm:$0xff] }
 0x413   : > { %16837 = vmatmul.mubr.msk.bf16.vlgmr.msra.gmra.mrb[128].mxu1 %vm2652_vm1, %v3569_v50  ;;  %v18440_v50 = vld [vmem:[%s21820_s2 + $0xa0] sm:$0xff]  }
 0x414   : > { %16840 = vmatprep.mubr.msk.bf16.mxu1 %vm2652_vm1, %v3570_v2  ;;  %16869 = vmatpush3.bf16.msra.mxu1 %v18432_v19  ;;  %v3576_v19 = vpack.c.bf16 %v3553_v39, %v3552_v55  ;;  %v3932_v2 = vld [vmem:[#allocation2 + $0x73] sm:$0xff]  ;;  %v3947_v39 = vld [vmem:[#allocation2 + $0x12b] sm:$0xff]  ;;  %v3946_v55 = vld [vmem:[#allocation2 + $0x123] sm:$0xff] }
 0x415   : > { %16870 = vmatprep.subr.bf16.mxu1 %v18433_v7 }
 0x418   : > { %16871 = vmatpush3.bf16.msra.mxu1 %v18433_v7  ;;  %v3935_v7 = vld [vmem:[#allocation2 + $0x9b] sm:$0xff] }
 0x419   : > { %16872 = vmatprep.subr.bf16.mxu1 %v18434_v47  ;;  %v3960_v62 = vpack.c.bf16 %v3935_v7, %v3934_v33  ;;  %v4329_v7 = vld [vmem:[#allocation2 + $0xfc] sm:$0xff]  ;;  %v4328_v33 = vld [vmem:[#allocation2 + $0xf4] sm:$0xff] }
 0x41b   : > { %16841 = vmatmul.mubr.msk.bf16.gmra.mrb[132].mxu1 %vm2652_vm1, %v3571_v23  ;;  %v3939_v23 = vld [vmem:[#allocation2 + $0xcb] sm:$0xff] }
 0x41c   : > { %16844 = vmatprep.mubr.msk.bf16.mxu1 %vm2652_vm1, %v3572_v40  ;;  %16873 = vmatpush3.bf16.msra.mxu1 %v18434_v47  ;;  %v3959_v47 = vpack.c.bf16 %v3933_v26, %v3932_v2  ;;  %v3938_v40 = vld [vmem:[#allocation2 + $0xc3] sm:$0xff]  ;;  %v4326_v2 = vld [vmem:[#allocation2 + $0xd4] sm:$0xff] }
 0x41d   : > { %16874 = vmatprep.subr.bf16.mxu1 %v18435_v37  ;;  %v4327_v26 = vld [vmem:[#allocation2 + $0xdc] sm:$0xff] }
 0x420   : > { %16875 = vmatpush3.bf16.msra.mxu1 %v18435_v37  ;;  %v3961_v37 = vpack.c.bf16 %v3937_v27, %v3936_v56  ;;  %v4331_v27 = vld [vmem:[#allocation2 + $0x10c] sm:$0xff]  ;;  %v4330_v56 = vld [vmem:[#allocation2 + $0x104] sm:$0xff] }
 0x421   : > { %16908 = vmatprep.subr.bf16.mxu1 %v18436_v0 }
 0x423   : > { %16845 = vmatmul.mubr.msk.bf16.gmra.mrb[136].mxu1 %vm2652_vm1, %v3573_v9  ;;  %v3963_v9 = vpack.c.bf16 %v3941_v38, %v3940_v43  ;;  %v4335_v38 = vld [vmem:[#allocation2 + $0x13c] sm:$0xff]  ;;  %v4334_v43 = vld [vmem:[#allocation2 + $0x134] sm:$0xff] }
 0x424   : > { %16848 = vmatprep.mubr.msk.bf16.mxu1 %vm2652_vm1, %v3574_v21  ;;  %v3964_v21 = vpack.c.bf16 %v3943_v46, %v3942_v22  ;;  %v4337_v46 = vld [vmem:[#allocation2 + $0x15c] sm:$0xff]  ;;  %v4336_v22 = vld [vmem:[#allocation2 + $0x154] sm:$0xff] }
 0x42b   : > { %16849 = vmatmul.mubr.msk.bf16.gmra.mrb[140].mxu1 %vm2652_vm1, %v3575_v25  ;;  %v3965_v25 = vpack.c.bf16 %v3945_v35, %v3944_v34  ;;  %v4339_v35 = vld [vmem:[#allocation2 + $0x16c] sm:$0xff]  ;;  %v4338_v34 = vld [vmem:[#allocation2 + $0x164] sm:$0xff] }
 0x42c   : > { %16852 = vmatprep.mubr.msk.bf16.mxu1 %vm2652_vm1, %v3576_v19  ;;  %v3966_v19 = vpack.c.bf16 %v3947_v39, %v3946_v55  ;;  %v4695_v39 = vld [vmem:[#allocation2 + $0xd] sm:$0xff]  ;;  %v4694_v55 = vld [vmem:[#allocation2 + $0x5] sm:$0xff] }
 0x433   : > { %16853 = vmatmul.mubr.msk.bf16.gmra.mrb[144].mxu1 %vm2652_vm1, %v3577_v36  ;;  %v3967_v36 = vpack.c.bf16 %v3949_v32, %v3948_v29  ;;  %v4697_v32 = vld [vmem:[#allocation2 + $0x1d] sm:$0xff]  ;;  %v4696_v29 = vld [vmem:[#allocation2 + $0x15] sm:$0xff] }
 0x434   : > { %16856 = vmatprep.mubr.msk.bf16.mxu1 %vm2652_vm1, %v3578_v45  ;;  %v3968_v45 = vpack.c.bf16 %v3951_v1, %v3950_v41  ;;  %v4699_v1 = vld [vmem:[#allocation2 + $0x3d] sm:$0xff]  ;;  %v4698_v41 = vld [vmem:[#allocation2 + $0x35] sm:$0xff] }
 0x43b   : > { %16857 = vmatmul.mubr.msk.bf16.gmra.mrb[148].mxu1 %vm2652_vm1, %v3579_v14  ;;  %v3969_v14 = vpack.c.bf16 %v3953_v51, %v3952_v54  ;;  %v4728_v51 = vpack.c.bf16 %v4699_v1, %v4698_v41  ;;  %v4701_v54 = vld [vmem:[#allocation2 + $0x4d] sm:$0xff]  ;;  %v18451_v1 = vld [vmem:[%s21820_s2 + $0xf8] sm:$0xff]  }
 0x43c   : > { %16860 = vmatprep.mubr.msk.bf16.mxu1 %vm2652_vm1, %v3580_v52  ;;  %v4340_v52 = vpack.c.bf16 %v4309_v49, %v4308_v63  ;;  %v18446_v49 = vld [vmem:[%s21820_s2 + $0xd0] sm:$0xff]   ;;  %v4700_v63 = vld [vmem:[#allocation2 + $0x45] sm:$0xff] }
 0x43d   : > { %v5091_v41 = vld [vmem:[#allocation2 + $0x7e] sm:$0xff] }
 0x443   : > { %16861 = vmatmul.mubr.msk.bf16.gmra.mrb[152].mxu1 %vm2652_vm1, %v3581_v18  ;;  %v4341_v18 = vpack.c.bf16 %v4311_v15, %v4310_v10  ;;  %v4702_v15 = vld [vmem:[#allocation2 + $0x65] sm:$0xff] }
 0x444   : > { %16864 = vmatprep.mubr.msk.bf16.mxu1 %vm2652_vm1, %v3582_v20  ;;  %v18441_v20 = vld [vmem:[%s21820_s2 + $0xa8] sm:$0xff]  }
 0x44b   : > { %16865 = vmatmul.mubr.msk.bf16.gmra.mrb[156].mxu1 %vm2652_vm1, %v3583_v58  ;;  %v4317_v58 = vld [vmem:[#allocation2 + $0x6c] sm:$0xff] }
 0x44c   : > { %16876 = vmatprep.mubr.msk.bf16.mxu1 %vm2652_vm1, %v3954_v31  ;;  %v4343_v31 = vpack.c.bf16 %v4315_v42, %v4314_v16  ;;  %v4344_v24 = vpack.c.bf16 %v4317_v58, %v4316_v48  ;;  %v4706_v42 = vld [vmem:[#allocation2 + $0x95] sm:$0xff]  ;;  %v4709_v16 = vld [vmem:[#allocation2 + $0xad] sm:$0xff]  ;;  %v4708_v48 = vld [vmem:[#allocation2 + $0xa5] sm:$0xff] }
 0x453   : > { %16877 = vmatmul.mubr.msk.bf16.vlgmr.msra.gmra.mrb[128].mxu1 %vm2652_vm1, %v3955_v8  ;;  %v18444_v8 = vld [vmem:[%s21820_s2 + $0xc0] sm:$0xff]  }
 0x454   : > { %16880 = vmatprep.mubr.msk.bf16.mxu1 %vm2652_vm1, %v3956_v30  ;;  %16909 = vmatpush3.bf16.msra.mxu1 %v18436_v0  ;;  %v3962_v0 = vpack.c.bf16 %v3939_v23, %v3938_v40  ;;  %v4318_v30 = vld [vmem:[#allocation2 + $0x74] sm:$0xff]  ;;  %v4333_v23 = vld [vmem:[#allocation2 + $0x12c] sm:$0xff]  ;;  %v4332_v40 = vld [vmem:[#allocation2 + $0x124] sm:$0xff] }
 0x455   : > { %16910 = vmatprep.subr.bf16.mxu1 %v18437_v4 }
 0x458   : > { %16911 = vmatpush3.bf16.msra.mxu1 %v18437_v4  ;;  %v4321_v4 = vld [vmem:[#allocation2 + $0x9c] sm:$0xff] }
 0x459   : > { %16912 = vmatprep.subr.bf16.mxu1 %v18438_v17  ;;  %v4346_v61 = vpack.c.bf16 %v4321_v4, %v4320_v60  ;;  %v4715_v4 = vld [vmem:[#allocation2 + $0xfd] sm:$0xff]  ;;  %v4714_v60 = vld [vmem:[#allocation2 + $0xf5] sm:$0xff] }
 0x45b   : > { %16881 = vmatmul.mubr.msk.bf16.gmra.mrb[132].mxu1 %vm2652_vm1, %v3957_v12  ;;  %v4325_v12 = vld [vmem:[#allocation2 + $0xcc] sm:$0xff] }
 0x45c   : > { %16884 = vmatprep.mubr.msk.bf16.mxu1 %vm2652_vm1, %v3958_v28  ;;  %16913 = vmatpush3.bf16.msra.mxu1 %v18438_v17  ;;  %v4345_v17 = vpack.c.bf16 %v4319_v3, %v4318_v30  ;;  %v4324_v28 = vld [vmem:[#allocation2 + $0xc4] sm:$0xff]  ;;  %v4712_v30 = vld [vmem:[#allocation2 + $0xd5] sm:$0xff] }
 0x45d   : > { %16914 = vmatprep.subr.bf16.mxu1 %v18439_v57  ;;  %v4713_v3 = vld [vmem:[#allocation2 + $0xdd] sm:$0xff] }
 0x460   : > { %16915 = vmatpush3.bf16.msra.mxu1 %v18439_v57  ;;  %v4347_v57 = vpack.c.bf16 %v4323_v11, %v4322_v44  ;;  %v4717_v11 = vld [vmem:[#allocation2 + $0x10d] sm:$0xff]  ;;  %v4716_v44 = vld [vmem:[#allocation2 + $0x105] sm:$0xff] }
 0x461   : > { %16948 = vmatprep.subr.bf16.mxu1 %v18440_v50 }
 0x463   : > { %16885 = vmatmul.mubr.msk.bf16.gmra.mrb[136].mxu1 %vm2652_vm1, %v3959_v47  ;;  %v4349_v47 = vpack.c.bf16 %v4327_v26, %v4326_v2  ;;  %v4721_v26 = vld [vmem:[#allocation2 + $0x13d] sm:$0xff]  ;;  %v4720_v2 = vld [vmem:[#allocation2 + $0x135] sm:$0xff] }
 0x464   : > { %16888 = vmatprep.mubr.msk.bf16.mxu1 %vm2652_vm1, %v3960_v62  ;;  %v4350_v62 = vpack.c.bf16 %v4329_v7, %v4328_v33  ;;  %v4723_v7 = vld [vmem:[#allocation2 + $0x15d] sm:$0xff]  ;;  %v4722_v33 = vld [vmem:[#allocation2 + $0x155] sm:$0xff] }
 0x46b   : > { %16889 = vmatmul.mubr.msk.bf16.gmra.mrb[140].mxu1 %vm2652_vm1, %v3961_v37  ;;  %v4351_v37 = vpack.c.bf16 %v4331_v27, %v4330_v56  ;;  %v4725_v27 = vld [vmem:[#allocation2 + $0x16d] sm:$0xff]  ;;  %v4724_v56 = vld [vmem:[#allocation2 + $0x165] sm:$0xff] }
 0x46c   : > { %16892 = vmatprep.mubr.msk.bf16.mxu1 %vm2652_vm1, %v3962_v0  ;;  %v4352_v0 = vpack.c.bf16 %v4333_v23, %v4332_v40  ;;  %v5081_v23 = vld [vmem:[#allocation2 + $0xe] sm:$0xff]  ;;  %v5080_v40 = vld [vmem:[#allocation2 + $0x6] sm:$0xff] }
 0x473   : > { %16893 = vmatmul.mubr.msk.bf16.gmra.mrb[144].mxu1 %vm2652_vm1, %v3963_v9  ;;  %v4353_v9 = vpack.c.bf16 %v4335_v38, %v4334_v43  ;;  %v5083_v38 = vld [vmem:[#allocation2 + $0x1e] sm:$0xff]  ;;  %v5082_v43 = vld [vmem:[#allocation2 + $0x16] sm:$0xff] }
 0x474   : > { %16896 = vmatprep.mubr.msk.bf16.mxu1 %vm2652_vm1, %v3964_v21  ;;  %v4354_v21 = vpack.c.bf16 %v4337_v46, %v4336_v22  ;;  %v5085_v46 = vld [vmem:[#allocation2 + $0x3e] sm:$0xff]  ;;  %v5084_v22 = vld [vmem:[#allocation2 + $0x36] sm:$0xff] }
 0x47b   : > { %16897 = vmatmul.mubr.msk.bf16.gmra.mrb[148].mxu1 %vm2652_vm1, %v3965_v25  ;;  %v4355_v25 = vpack.c.bf16 %v4339_v35, %v4338_v34  ;;  %v5114_v35 = vpack.c.bf16 %v5085_v46, %v5084_v22  ;;  %v5087_v34 = vld [vmem:[#allocation2 + $0x4e] sm:$0xff]  ;;  %v18455_v46 = vld [vmem:[%s21820_s2 + $0x118] sm:$0xff]  }
 0x47c   : > { %16900 = vmatprep.mubr.msk.bf16.mxu1 %vm2652_vm1, %v3966_v19  ;;  %v4726_v19 = vpack.c.bf16 %v4695_v39, %v4694_v55  ;;  %v18450_v39 = vld [vmem:[%s21820_s2 + $0xf0] sm:$0xff]   ;;  %v5086_v55 = vld [vmem:[#allocation2 + $0x46] sm:$0xff] }
 0x47d   : > { %v5477_v22 = vld [vmem:[#allocation2 + $0x7f] sm:$0xff] }
 0x483   : > { %16901 = vmatmul.mubr.msk.bf16.gmra.mrb[152].mxu1 %vm2652_vm1, %v3967_v36  ;;  %v4727_v36 = vpack.c.bf16 %v4697_v32, %v4696_v29  ;;  %v5088_v32 = vld [vmem:[#allocation2 + $0x66] sm:$0xff] }
 0x484   : > { %16904 = vmatprep.mubr.msk.bf16.mxu1 %vm2652_vm1, %v3968_v45  ;;  %v18445_v45 = vld [vmem:[%s21820_s2 + $0xc8] sm:$0xff]  }
 0x48b   : > { %16905 = vmatmul.mubr.msk.bf16.gmra.mrb[156].mxu1 %vm2652_vm1, %v3969_v14  ;;  %v4703_v14 = vld [vmem:[#allocation2 + $0x6d] sm:$0xff] }
 0x48c   : > { %16916 = vmatprep.mubr.msk.bf16.mxu1 %vm2652_vm1, %v4340_v52  ;;  %v4729_v52 = vpack.c.bf16 %v4701_v54, %v4700_v63  ;;  %v4730_v10 = vpack.c.bf16 %v4703_v14, %v4702_v15  ;;  %v5092_v54 = vld [vmem:[#allocation2 + $0x96] sm:$0xff]  ;;  %v5095_v63 = vld [vmem:[#allocation2 + $0xae] sm:$0xff]  ;;  %v5094_v15 = vld [vmem:[#allocation2 + $0xa6] sm:$0xff] }
 0x493   : > { %16917 = vmatmul.mubr.msk.bf16.vlgmr.msra.gmra.mrb[128].mxu1 %vm2652_vm1, %v4341_v18  ;;  %v18448_v18 = vld [vmem:[%s21820_s2 + $0xe0] sm:$0xff]  }
 0x494   : > { %16920 = vmatprep.mubr.msk.bf16.mxu1 %vm2652_vm1, %v4342_v13  ;;  %16949 = vmatpush3.bf16.msra.mxu1 %v18440_v50  ;;  %v4348_v50 = vpack.c.bf16 %v4325_v12, %v4324_v28  ;;  %v4704_v13 = vld [vmem:[#allocation2 + $0x75] sm:$0xff]  ;;  %v4719_v12 = vld [vmem:[#allocation2 + $0x12d] sm:$0xff]  ;;  %v4718_v28 = vld [vmem:[#allocation2 + $0x125] sm:$0xff] }
 0x495   : > { %16950 = vmatprep.subr.bf16.mxu1 %v18441_v20 }
 0x498   : > { %16951 = vmatpush3.bf16.msra.mxu1 %v18441_v20  ;;  %v4707_v20 = vld [vmem:[#allocation2 + $0x9d] sm:$0xff] }
 0x499   : > { %16952 = vmatprep.subr.bf16.mxu1 %v18442_v5  ;;  %v4732_v58 = vpack.c.bf16 %v4707_v20, %v4706_v42  ;;  %v5101_v20 = vld [vmem:[#allocation2 + $0xfe] sm:$0xff]  ;;  %v5100_v42 = vld [vmem:[#allocation2 + $0xf6] sm:$0xff] }
 0x49b   : > { %16921 = vmatmul.mubr.msk.bf16.gmra.mrb[132].mxu1 %vm2652_vm1, %v4343_v31  ;;  %v4711_v31 = vld [vmem:[#allocation2 + $0xcd] sm:$0xff] }
 0x49c   : > { %16924 = vmatprep.mubr.msk.bf16.mxu1 %vm2652_vm1, %v4344_v24  ;;  %16953 = vmatpush3.bf16.msra.mxu1 %v18442_v5  ;;  %v4731_v5 = vpack.c.bf16 %v4705_v6, %v4704_v13  ;;  %v4710_v24 = vld [vmem:[#allocation2 + $0xc5] sm:$0xff]  ;;  %v5098_v13 = vld [vmem:[#allocation2 + $0xd6] sm:$0xff] }
 0x49d   : > { %16954 = vmatprep.subr.bf16.mxu1 %v18443_v53  ;;  %v5099_v6 = vld [vmem:[#allocation2 + $0xde] sm:$0xff] }
 0x4a0   : > { %16955 = vmatpush3.bf16.msra.mxu1 %v18443_v53  ;;  %v4733_v53 = vpack.c.bf16 %v4709_v16, %v4708_v48  ;;  %v5103_v16 = vld [vmem:[#allocation2 + $0x10e] sm:$0xff]  ;;  %v5102_v48 = vld [vmem:[#allocation2 + $0x106] sm:$0xff] }
 0x4a1   : > { %16988 = vmatprep.subr.bf16.mxu1 %v18444_v8 }
 0x4a3   : > { %16925 = vmatmul.mubr.msk.bf16.gmra.mrb[136].mxu1 %vm2652_vm1, %v4345_v17  ;;  %v4735_v17 = vpack.c.bf16 %v4713_v3, %v4712_v30  ;;  %v5107_v3 = vld [vmem:[#allocation2 + $0x13e] sm:$0xff]  ;;  %v5106_v30 = vld [vmem:[#allocation2 + $0x136] sm:$0xff] }
 0x4a4   : > { %16928 = vmatprep.mubr.msk.bf16.mxu1 %vm2652_vm1, %v4346_v61  ;;  %v4736_v61 = vpack.c.bf16 %v4715_v4, %v4714_v60  ;;  %v5109_v4 = vld [vmem:[#allocation2 + $0x15e] sm:$0xff]  ;;  %v5108_v60 = vld [vmem:[#allocation2 + $0x156] sm:$0xff] }
 0x4ab   : > { %16929 = vmatmul.mubr.msk.bf16.gmra.mrb[140].mxu1 %vm2652_vm1, %v4347_v57  ;;  %v4737_v57 = vpack.c.bf16 %v4717_v11, %v4716_v44  ;;  %v5111_v11 = vld [vmem:[#allocation2 + $0x16e] sm:$0xff]  ;;  %v5110_v44 = vld [vmem:[#allocation2 + $0x166] sm:$0xff] }
 0x4ac   : > { %16932 = vmatprep.mubr.msk.bf16.mxu1 %vm2652_vm1, %v4348_v50  ;;  %v4738_v50 = vpack.c.bf16 %v4719_v12, %v4718_v28  ;;  %v5467_v12 = vld [vmem:[#allocation2 + $0xf] sm:$0xff]  ;;  %v5466_v28 = vld [vmem:[#allocation2 + $0x7] sm:$0xff] }
 0x4b3   : > { %16933 = vmatmul.mubr.msk.bf16.gmra.mrb[144].mxu1 %vm2652_vm1, %v4349_v47  ;;  %v4739_v47 = vpack.c.bf16 %v4721_v26, %v4720_v2  ;;  %v5469_v26 = vld [vmem:[#allocation2 + $0x1f] sm:$0xff]  ;;  %v5468_v2 = vld [vmem:[#allocation2 + $0x17] sm:$0xff] }
 0x4b4   : > { %16936 = vmatprep.mubr.msk.bf16.mxu1 %vm2652_vm1, %v4350_v62  ;;  %v4740_v62 = vpack.c.bf16 %v4723_v7, %v4722_v33  ;;  %v5471_v7 = vld [vmem:[#allocation2 + $0x3f] sm:$0xff]  ;;  %v5470_v33 = vld [vmem:[#allocation2 + $0x37] sm:$0xff] }
 0x4bb   : > { %16937 = vmatmul.mubr.msk.bf16.gmra.mrb[148].mxu1 %vm2652_vm1, %v4351_v37  ;;  %v4741_v37 = vpack.c.bf16 %v4725_v27, %v4724_v56  ;;  %v5500_v27 = vpack.c.bf16 %v5471_v7, %v5470_v33  ;;  %v5473_v56 = vld [vmem:[#allocation2 + $0x4f] sm:$0xff]  ;;  %v18459_v7 = vld [vmem:[%s21820_s2 + $0x138] sm:$0xff]   ;;  %v5863_v33 = vld [vmem:[#allocation2 + $0x80] sm:$0xff] }
 0x4bc   : > { %16940 = vmatprep.mubr.msk.bf16.mxu1 %vm2652_vm1, %v4352_v0  ;;  %v5112_v0 = vpack.c.bf16 %v5081_v23, %v5080_v40  ;;  %v18454_v23 = vld [vmem:[%s21820_s2 + $0x110] sm:$0xff]   ;;  %v5472_v40 = vld [vmem:[#allocation2 + $0x47] sm:$0xff] }
 0x4c3   : > { %16941 = vmatmul.mubr.msk.bf16.gmra.mrb[152].mxu1 %vm2652_vm1, %v4353_v9  ;;  %v5113_v9 = vpack.c.bf16 %v5083_v38, %v5082_v43  ;;  %v5474_v38 = vld [vmem:[#allocation2 + $0x67] sm:$0xff] }
 0x4c4   : > { %16944 = vmatprep.mubr.msk.bf16.mxu1 %vm2652_vm1, %v4354_v21  ;;  %v18449_v21 = vld [vmem:[%s21820_s2 + $0xe8] sm:$0xff]  }
 0x4cb   : > { %16945 = vmatmul.mubr.msk.bf16.gmra.mrb[156].mxu1 %vm2652_vm1, %v4355_v25  ;;  %v5089_v25 = vld [vmem:[#allocation2 + $0x6e] sm:$0xff] }
 0x4cc   : > { %16956 = vmatprep.mubr.msk.bf16.mxu1 %vm2652_vm1, %v4726_v19  ;;  %v5115_v19 = vpack.c.bf16 %v5087_v34, %v5086_v55  ;;  %v5116_v29 = vpack.c.bf16 %v5089_v25, %v5088_v32  ;;  %v5478_v34 = vld [vmem:[#allocation2 + $0x97] sm:$0xff]  ;;  %v5481_v55 = vld [vmem:[#allocation2 + $0xaf] sm:$0xff]  ;;  %v5480_v32 = vld [vmem:[#allocation2 + $0xa7] sm:$0xff] }
 0x4d3   : > { %16957 = vmatmul.mubr.msk.bf16.vlgmr.msra.gmra.mrb[128].mxu1 %vm2652_vm1, %v4727_v36  ;;  %v18452_v36 = vld [vmem:[%s21820_s2 + $0x100] sm:$0xff]  }
 0x4d4   : > { %16960 = vmatprep.mubr.msk.bf16.mxu1 %vm2652_vm1, %v4728_v51  ;;  %16989 = vmatpush3.bf16.msra.mxu1 %v18444_v8  ;;  %v4734_v8 = vpack.c.bf16 %v4711_v31, %v4710_v24  ;;  %v5090_v51 = vld [vmem:[#allocation2 + $0x76] sm:$0xff]  ;;  %v5105_v31 = vld [vmem:[#allocation2 + $0x12e] sm:$0xff]  ;;  %v5104_v24 = vld [vmem:[#allocation2 + $0x126] sm:$0xff] }
 0x4d5   : > { %16990 = vmatprep.subr.bf16.mxu1 %v18445_v45 }
 0x4d8   : > { %16991 = vmatpush3.bf16.msra.mxu1 %v18445_v45  ;;  %v5093_v45 = vld [vmem:[#allocation2 + $0x9e] sm:$0xff] }
 0x4d9   : > { %16992 = vmatprep.subr.bf16.mxu1 %v18446_v49  ;;  %v5118_v14 = vpack.c.bf16 %v5093_v45, %v5092_v54  ;;  %v5487_v45 = vld [vmem:[#allocation2 + $0xff] sm:$0xff]  ;;  %v5486_v54 = vld [vmem:[#allocation2 + $0xf7] sm:$0xff] }
 0x4db   : > { %16961 = vmatmul.mubr.msk.bf16.gmra.mrb[132].mxu1 %vm2652_vm1, %v4729_v52  ;;  %v5097_v52 = vld [vmem:[#allocation2 + $0xce] sm:$0xff] }
 0x4dc   : > { %16964 = vmatprep.mubr.msk.bf16.mxu1 %vm2652_vm1, %v4730_v10  ;;  %16993 = vmatpush3.bf16.msra.mxu1 %v18446_v49  ;;  %v5117_v49 = vpack.c.bf16 %v5091_v41, %v5090_v51  ;;  %v5096_v10 = vld [vmem:[#allocation2 + $0xc6] sm:$0xff]  ;;  %v5484_v51 = vld [vmem:[#allocation2 + $0xd7] sm:$0xff] }
 0x4dd   : > { %16994 = vmatprep.subr.bf16.mxu1 %v18447_v59  ;;  %v5485_v41 = vld [vmem:[#allocation2 + $0xdf] sm:$0xff] }
 0x4e0   : > { %16995 = vmatpush3.bf16.msra.mxu1 %v18447_v59  ;;  %v5119_v59 = vpack.c.bf16 %v5095_v63, %v5094_v15  ;;  %v5489_v63 = vld [vmem:[#allocation2 + $0x10f] sm:$0xff]  ;;  %v5488_v15 = vld [vmem:[#allocation2 + $0x107] sm:$0xff] }
 0x4e1   : > { %17028 = vmatprep.subr.bf16.mxu1 %v18448_v18 }
 0x4e3   : > { %16965 = vmatmul.mubr.msk.bf16.gmra.mrb[136].mxu1 %vm2652_vm1, %v4731_v5  ;;  %v5121_v5 = vpack.c.bf16 %v5099_v6, %v5098_v13  ;;  %v5493_v6 = vld [vmem:[#allocation2 + $0x13f] sm:$0xff]  ;;  %v5492_v13 = vld [vmem:[#allocation2 + $0x137] sm:$0xff] }
 0x4e4   : > { %16968 = vmatprep.mubr.msk.bf16.mxu1 %vm2652_vm1, %v4732_v58  ;;  %v5122_v58 = vpack.c.bf16 %v5101_v20, %v5100_v42  ;;  %v5495_v20 = vld [vmem:[#allocation2 + $0x15f] sm:$0xff]  ;;  %v5494_v42 = vld [vmem:[#allocation2 + $0x157] sm:$0xff] }
 0x4eb   : > { %16969 = vmatmul.mubr.msk.bf16.gmra.mrb[140].mxu1 %vm2652_vm1, %v4733_v53  ;;  %v5123_v53 = vpack.c.bf16 %v5103_v16, %v5102_v48  ;;  %v5497_v16 = vld [vmem:[#allocation2 + $0x16f] sm:$0xff]  ;;  %v5496_v48 = vld [vmem:[#allocation2 + $0x167] sm:$0xff] }
 0x4ec   : > { %16972 = vmatprep.mubr.msk.bf16.mxu1 %vm2652_vm1, %v4734_v8  ;;  %v5124_v8 = vpack.c.bf16 %v5105_v31, %v5104_v24  ;;  %v5853_v31 = vld [vmem:[#allocation2 + $0x10] sm:$0xff]  ;;  %v5852_v24 = vld [vmem:[#allocation2 + $0x8] sm:$0xff] }
 0x4f3   : > { %16973 = vmatmul.mubr.msk.bf16.gmra.mrb[144].mxu1 %vm2652_vm1, %v4735_v17  ;;  %v5125_v17 = vpack.c.bf16 %v5107_v3, %v5106_v30  ;;  %v5855_v3 = vld [vmem:[#allocation2 + $0x20] sm:$0xff]  ;;  %v5854_v30 = vld [vmem:[#allocation2 + $0x18] sm:$0xff] }
 0x4f4   : > { %16976 = vmatprep.mubr.msk.bf16.mxu1 %vm2652_vm1, %v4736_v61  ;;  %v5126_v61 = vpack.c.bf16 %v5109_v4, %v5108_v60  ;;  %v5857_v4 = vld [vmem:[#allocation2 + $0x40] sm:$0xff]  ;;  %v5856_v60 = vld [vmem:[#allocation2 + $0x38] sm:$0xff] }
 0x4fb   : > { %16977 = vmatmul.mubr.msk.bf16.gmra.mrb[148].mxu1 %vm2652_vm1, %v4737_v57  ;;  %v5127_v57 = vpack.c.bf16 %v5111_v11, %v5110_v44  ;;  %v5886_v11 = vpack.c.bf16 %v5857_v4, %v5856_v60  ;;  %v5859_v44 = vld [vmem:[#allocation2 + $0x50] sm:$0xff]  ;;  %v18463_v4 = vld [vmem:[%s21820_s2 + $0x158] sm:$0xff]  }
 0x4fc   : > { %16980 = vmatprep.mubr.msk.bf16.mxu1 %vm2652_vm1, %v4738_v50  ;;  %v5498_v50 = vpack.c.bf16 %v5467_v12, %v5466_v28  ;;  %v18458_v12 = vld [vmem:[%s21820_s2 + $0x130] sm:$0xff]   ;;  %v5858_v28 = vld [vmem:[#allocation2 + $0x48] sm:$0xff]  ;;  %v6248_v60 = vld [vmem:[#allocation2 + $0x79] sm:$0xff] }
 0x503   : > { %16981 = vmatmul.mubr.msk.bf16.gmra.mrb[152].mxu1 %vm2652_vm1, %v4739_v47  ;;  %v5499_v47 = vpack.c.bf16 %v5469_v26, %v5468_v2  ;;  %v5860_v26 = vld [vmem:[#allocation2 + $0x68] sm:$0xff] }
 0x504   : > { %16984 = vmatprep.mubr.msk.bf16.mxu1 %vm2652_vm1, %v4740_v62  ;;  %v18453_v62 = vld [vmem:[%s21820_s2 + $0x108] sm:$0xff]  }
 0x50b   : > { %16985 = vmatmul.mubr.msk.bf16.gmra.mrb[156].mxu1 %vm2652_vm1, %v4741_v37  ;;  %v5475_v37 = vld [vmem:[#allocation2 + $0x6f] sm:$0xff] }
 0x50c   : > { %16996 = vmatprep.mubr.msk.bf16.mxu1 %vm2652_vm1, %v5112_v0  ;;  %v5501_v0 = vpack.c.bf16 %v5473_v56, %v5472_v40  ;;  %v5502_v43 = vpack.c.bf16 %v5475_v37, %v5474_v38  ;;  %v5864_v56 = vld [vmem:[#allocation2 + $0x98] sm:$0xff]  ;;  %v5867_v40 = vld [vmem:[#allocation2 + $0xb0] sm:$0xff]  ;;  %v5866_v38 = vld [vmem:[#allocation2 + $0xa8] sm:$0xff] }
 0x513   : > { %16997 = vmatmul.mubr.msk.bf16.vlgmr.msra.gmra.mrb[128].mxu1 %vm2652_vm1, %v5113_v9  ;;  %v18456_v9 = vld [vmem:[%s21820_s2 + $0x120] sm:$0xff]  }
 0x514   : > { %17000 = vmatprep.mubr.msk.bf16.mxu1 %vm2652_vm1, %v5114_v35  ;;  %17029 = vmatpush3.bf16.msra.mxu1 %v18448_v18  ;;  %v5120_v18 = vpack.c.bf16 %v5097_v52, %v5096_v10  ;;  %v5476_v35 = vld [vmem:[#allocation2 + $0x77] sm:$0xff]  ;;  %v5491_v52 = vld [vmem:[#allocation2 + $0x12f] sm:$0xff]  ;;  %v5490_v10 = vld [vmem:[#allocation2 + $0x127] sm:$0xff] }
 0x515   : > { %17030 = vmatprep.subr.bf16.mxu1 %v18449_v21 }
 0x518   : > { %17031 = vmatpush3.bf16.msra.mxu1 %v18449_v21  ;;  %v5479_v21 = vld [vmem:[#allocation2 + $0x9f] sm:$0xff] }
 0x519   : > { %17032 = vmatprep.subr.bf16.mxu1 %v18450_v39  ;;  %v5504_v25 = vpack.c.bf16 %v5479_v21, %v5478_v34  ;;  %v5873_v21 = vld [vmem:[#allocation2 + $0x100] sm:$0xff]  ;;  %v5872_v34 = vld [vmem:[#allocation2 + $0xf8] sm:$0xff] }
 0x51b   : > { %17001 = vmatmul.mubr.msk.bf16.gmra.mrb[132].mxu1 %vm2652_vm1, %v5115_v19  ;;  %v5483_v19 = vld [vmem:[#allocation2 + $0xcf] sm:$0xff] }
 0x51c   : > { %17004 = vmatprep.mubr.msk.bf16.mxu1 %vm2652_vm1, %v5116_v29  ;;  %17033 = vmatpush3.bf16.msra.mxu1 %v18450_v39  ;;  %v5503_v39 = vpack.c.bf16 %v5477_v22, %v5476_v35  ;;  %v5482_v29 = vld [vmem:[#allocation2 + $0xc7] sm:$0xff]  ;;  %v5870_v35 = vld [vmem:[#allocation2 + $0xd8] sm:$0xff] }
 0x51d   : > { %17034 = vmatprep.subr.bf16.mxu1 %v18451_v1  ;;  %v5871_v22 = vld [vmem:[#allocation2 + $0xe0] sm:$0xff] }
 0x520   : > { %17035 = vmatpush3.bf16.msra.mxu1 %v18451_v1  ;;  %v5505_v1 = vpack.c.bf16 %v5481_v55, %v5480_v32  ;;  %v5875_v55 = vld [vmem:[#allocation2 + $0x110] sm:$0xff]  ;;  %v5874_v32 = vld [vmem:[#allocation2 + $0x108] sm:$0xff] }
 0x521   : > { %17068 = vmatprep.subr.bf16.mxu1 %v18452_v36 }
 0x523   : > { %17005 = vmatmul.mubr.msk.bf16.gmra.mrb[136].mxu1 %vm2652_vm1, %v5117_v49  ;;  %v5507_v49 = vpack.c.bf16 %v5485_v41, %v5484_v51  ;;  %v5879_v41 = vld [vmem:[#allocation2 + $0x140] sm:$0xff]  ;;  %v5878_v51 = vld [vmem:[#allocation2 + $0x138] sm:$0xff] }
 0x524   : > { %17008 = vmatprep.mubr.msk.bf16.mxu1 %vm2652_vm1, %v5118_v14  ;;  %v5508_v14 = vpack.c.bf16 %v5487_v45, %v5486_v54  ;;  %v5881_v45 = vld [vmem:[#allocation2 + $0x160] sm:$0xff]  ;;  %v5880_v54 = vld [vmem:[#allocation2 + $0x158] sm:$0xff] }
 0x52b   : > { %17009 = vmatmul.mubr.msk.bf16.gmra.mrb[140].mxu1 %vm2652_vm1, %v5119_v59  ;;  %v5509_v59 = vpack.c.bf16 %v5489_v63, %v5488_v15  ;;  %v5883_v63 = vld [vmem:[#allocation2 + $0x170] sm:$0xff]  ;;  %v5882_v15 = vld [vmem:[#allocation2 + $0x168] sm:$0xff] }
 0x52c   : > { %17012 = vmatprep.mubr.msk.bf16.mxu1 %vm2652_vm1, %v5120_v18  ;;  %v5510_v18 = vpack.c.bf16 %v5491_v52, %v5490_v10  ;;  %v6239_v52 = vld [vmem:[#allocation2 + $0x11] sm:$0xff]  ;;  %v6238_v10 = vld [vmem:[#allocation2 + $0x9] sm:$0xff] }
 0x533   : > { %17013 = vmatmul.mubr.msk.bf16.gmra.mrb[144].mxu1 %vm2652_vm1, %v5121_v5  ;;  %v5511_v5 = vpack.c.bf16 %v5493_v6, %v5492_v13  ;;  %v6240_v6 = vld [vmem:[#allocation2 + $0x19] sm:$0xff]  ;;  %v6243_v13 = vld [vmem:[#allocation2 + $0x41] sm:$0xff] }
 0x534   : > { %17016 = vmatprep.mubr.msk.bf16.mxu1 %vm2652_vm1, %v5122_v58  ;;  %v5512_v58 = vpack.c.bf16 %v5495_v20, %v5494_v42  ;;  %v6241_v20 = vld [vmem:[#allocation2 + $0x21] sm:$0xff]  ;;  %v6242_v42 = vld [vmem:[#allocation2 + $0x39] sm:$0xff] }
 0x53b   : > { %17017 = vmatmul.mubr.msk.bf16.gmra.mrb[148].mxu1 %vm2652_vm1, %v5123_v53  ;;  %v5513_v53 = vpack.c.bf16 %v5497_v16, %v5496_v48  ;;  %v6272_v16 = vpack.c.bf16 %v6243_v13, %v6242_v42  ;;  %v6244_v48 = vld [vmem:[#allocation2 + $0x49] sm:$0xff]  ;;  %v6634_v42 = vld [vmem:[#allocation2 + $0x7a] sm:$0xff] }
 0x53c   : > { %17020 = vmatprep.mubr.msk.bf16.mxu1 %vm2652_vm1, %v5124_v8  ;;  %v5884_v8 = vpack.c.bf16 %v5853_v31, %v5852_v24  ;;  %v18462_v31 = vld [vmem:[%s21820_s2 + $0x150] sm:$0xff]  }
 0x53d   : > { %v6247_v24 = vld [vmem:[#allocation2 + $0x71] sm:$0xff] }
 0x543   : > { %17021 = vmatmul.mubr.msk.bf16.gmra.mrb[152].mxu1 %vm2652_vm1, %v5125_v17  ;;  %v5885_v17 = vpack.c.bf16 %v5855_v3, %v5854_v30  ;;  %v6246_v3 = vld [vmem:[#allocation2 + $0x69] sm:$0xff] }
 0x544   : > { %17024 = vmatprep.mubr.msk.bf16.mxu1 %vm2652_vm1, %v5126_v61  ;;  %v18457_v61 = vld [vmem:[%s21820_s2 + $0x128] sm:$0xff]   ;;  %v6274_v30 = vpack.c.bf16 %v6247_v24, %v6246_v3  ;;  %v6641_v3 = vld [vmem:[#allocation2 + $0xd2] sm:$0xff] }
 0x545   : > { %v6638_v24 = vld [vmem:[#allocation2 + $0xaa] sm:$0xff] }
 0x54b   : > { %17025 = vmatmul.mubr.msk.bf16.gmra.mrb[156].mxu1 %vm2652_vm1, %v5127_v57  ;;  %v5861_v57 = vld [vmem:[#allocation2 + $0x70] sm:$0xff] }
 0x54c   : > { %17036 = vmatprep.mubr.msk.bf16.mxu1 %vm2652_vm1, %v5498_v50  ;;  %v5887_v50 = vpack.c.bf16 %v5859_v44, %v5858_v28  ;;  %v5888_v2 = vpack.c.bf16 %v5861_v57, %v5860_v26  ;;  %v6250_v44 = vld [vmem:[#allocation2 + $0x99] sm:$0xff]  ;;  %v6252_v28 = vld [vmem:[#allocation2 + $0xa9] sm:$0xff]  ;;  %v6255_v26 = vld [vmem:[#allocation2 + $0xd1] sm:$0xff] }
 0x553   : > { %17037 = vmatmul.mubr.msk.bf16.vlgmr.msra.gmra.mrb[128].mxu1 %vm2652_vm1, %v5499_v47  ;;  %v18460_v47 = vld [vmem:[%s21820_s2 + $0x140] sm:$0xff]  }
 0x554   : > { %17040 = vmatprep.mubr.msk.bf16.mxu1 %vm2652_vm1, %v5500_v27  ;;  %17069 = vmatpush3.bf16.msra.mxu1 %v18452_v36  ;;  %v5506_v36 = vpack.c.bf16 %v5483_v19, %v5482_v29  ;;  %v5862_v27 = vld [vmem:[#allocation2 + $0x78] sm:$0xff]  ;;  %v5877_v19 = vld [vmem:[#allocation2 + $0x130] sm:$0xff]  ;;  %v5876_v29 = vld [vmem:[#allocation2 + $0x128] sm:$0xff] }
 0x555   : > { %17070 = vmatprep.subr.bf16.mxu1 %v18453_v62 }
 0x558   : > { %17071 = vmatpush3.bf16.msra.mxu1 %v18453_v62  ;;  %v5865_v62 = vld [vmem:[#allocation2 + $0xa0] sm:$0xff] }
 0x559   : > { %17072 = vmatprep.subr.bf16.mxu1 %v18454_v23  ;;  %v5890_v37 = vpack.c.bf16 %v5865_v62, %v5864_v56  ;;  %v6257_v62 = vld [vmem:[#allocation2 + $0xe1] sm:$0xff]  ;;  %v6258_v56 = vld [vmem:[#allocation2 + $0xf9] sm:$0xff] }
 0x55b   : > { %17041 = vmatmul.mubr.msk.bf16.gmra.mrb[132].mxu1 %vm2652_vm1, %v5501_v0  ;;  %v5869_v0 = vld [vmem:[#allocation2 + $0xd0] sm:$0xff] }
 0x55c   : > { %17044 = vmatprep.mubr.msk.bf16.mxu1 %vm2652_vm1, %v5502_v43  ;;  %17073 = vmatpush3.bf16.msra.mxu1 %v18454_v23  ;;  %v5889_v23 = vpack.c.bf16 %v5863_v33, %v5862_v27  ;;  %v5868_v43 = vld [vmem:[#allocation2 + $0xc8] sm:$0xff]  ;;  %v6256_v33 = vld [vmem:[#allocation2 + $0xd9] sm:$0xff] }
 0x55d   : > { %17074 = vmatprep.subr.bf16.mxu1 %v18455_v46  ;;  %v6259_v27 = vld [vmem:[#allocation2 + $0x101] sm:$0xff] }
 0x560   : > { %17075 = vmatpush3.bf16.msra.mxu1 %v18455_v46  ;;  %v5891_v46 = vpack.c.bf16 %v5867_v40, %v5866_v38  ;;  %v6260_v40 = vld [vmem:[#allocation2 + $0x109] sm:$0xff]  ;;  %v6263_v38 = vld [vmem:[#allocation2 + $0x131] sm:$0xff] }
 0x561   : > { %17108 = vmatprep.subr.bf16.mxu1 %v18456_v9 }
 0x563   : > { %17045 = vmatmul.mubr.msk.bf16.gmra.mrb[136].mxu1 %vm2652_vm1, %v5503_v39  ;;  %v5893_v39 = vpack.c.bf16 %v5871_v22, %v5870_v35  ;;  %v6264_v22 = vld [vmem:[#allocation2 + $0x139] sm:$0xff]  ;;  %v6267_v35 = vld [vmem:[#allocation2 + $0x161] sm:$0xff] }
 0x564   : > { %17048 = vmatprep.mubr.msk.bf16.mxu1 %vm2652_vm1, %v5504_v25  ;;  %v5894_v25 = vpack.c.bf16 %v5873_v21, %v5872_v34  ;;  %v6265_v21 = vld [vmem:[#allocation2 + $0x141] sm:$0xff]  ;;  %v6266_v34 = vld [vmem:[#allocation2 + $0x159] sm:$0xff] }
 0x56b   : > { %17049 = vmatmul.mubr.msk.bf16.gmra.mrb[140].mxu1 %vm2652_vm1, %v5505_v1  ;;  %v5895_v1 = vpack.c.bf16 %v5875_v55, %v5874_v32  ;;  %v6268_v55 = vld [vmem:[#allocation2 + $0x169] sm:$0xff]  ;;  %v6625_v32 = vld [vmem:[#allocation2 + $0x12] sm:$0xff] }
 0x56c   : > { %17052 = vmatprep.mubr.msk.bf16.mxu1 %vm2652_vm1, %v5506_v36  ;;  %v5896_v36 = vpack.c.bf16 %v5877_v19, %v5876_v29  ;;  %v6269_v19 = vld [vmem:[#allocation2 + $0x171] sm:$0xff] }
 0x56d   : > { %v6624_v29 = vld [vmem:[#allocation2 + $0xa] sm:$0xff] }
 0x573   : > { %17053 = vmatmul.mubr.msk.bf16.gmra.mrb[144].mxu1 %vm2652_vm1, %v5507_v49  ;;  %v5897_v49 = vpack.c.bf16 %v5879_v41, %v5878_v51  ;;  %v6626_v41 = vld [vmem:[#allocation2 + $0x1a] sm:$0xff]  ;;  %v6629_v51 = vld [vmem:[#allocation2 + $0x42] sm:$0xff] }
 0x574   : > { %17056 = vmatprep.mubr.msk.bf16.mxu1 %vm2652_vm1, %v5508_v14  ;;  %v5898_v14 = vpack.c.bf16 %v5881_v45, %v5880_v54  ;;  %v6627_v45 = vld [vmem:[#allocation2 + $0x22] sm:$0xff]  ;;  %v6628_v54 = vld [vmem:[#allocation2 + $0x3a] sm:$0xff] }
 0x57b   : > { %17057 = vmatmul.mubr.msk.bf16.gmra.mrb[148].mxu1 %vm2652_vm1, %v5509_v59  ;;  %v5899_v59 = vpack.c.bf16 %v5883_v63, %v5882_v15  ;;  %v6658_v63 = vpack.c.bf16 %v6629_v51, %v6628_v54  ;;  %v6630_v15 = vld [vmem:[#allocation2 + $0x4a] sm:$0xff]  ;;  %v7020_v54 = vld [vmem:[#allocation2 + $0x7b] sm:$0xff] }
 0x57c   : > { %17060 = vmatprep.mubr.msk.bf16.mxu1 %vm2652_vm1, %v5510_v18  ;;  %v6270_v18 = vpack.c.bf16 %v6239_v52, %v6238_v10  ;;  %v18466_v52 = vld [vmem:[%s21820_s2 + $0x170] sm:$0xff]  }
 0x57d   : > { %v6633_v10 = vld [vmem:[#allocation2 + $0x72] sm:$0xff] }
 0x583   : > { %17061 = vmatmul.mubr.msk.bf16.gmra.mrb[152].mxu1 %vm2652_vm1, %v5511_v5  ;;  %v6271_v5 = vpack.c.bf16 %v6241_v20, %v6240_v6  ;;  %v6632_v6 = vld [vmem:[#allocation2 + $0x6a] sm:$0xff]  ;;  %v18467_v20 = vld [vmem:[%s21820_s2 + $0x178] sm:$0xff]  }
 0x584   : > { %17064 = vmatprep.mubr.msk.bf16.mxu1 %vm2652_vm1, %v5512_v58  ;;  %v18461_v58 = vld [vmem:[%s21820_s2 + $0x148] sm:$0xff]   ;;  %v6660_v13 = vpack.c.bf16 %v6633_v10, %v6632_v6  ;;  %v7027_v6 = vld [vmem:[#allocation2 + $0xd3] sm:$0xff] }
 0x585   : > { %v7024_v10 = vld [vmem:[#allocation2 + $0xab] sm:$0xff] }
 0x58b   : > { %17065 = vmatmul.mubr.msk.bf16.gmra.mrb[156].mxu1 %vm2652_vm1, %v5513_v53  ;;  %v6245_v53 = vld [vmem:[#allocation2 + $0x51] sm:$0xff] }
 0x58c   : > { %17076 = vmatprep.mubr.msk.bf16.mxu1 %vm2652_vm1, %v5884_v8  ;;  %v6273_v8 = vpack.c.bf16 %v6245_v53, %v6244_v48  ;;  %v6636_v48 = vld [vmem:[#allocation2 + $0x9a] sm:$0xff] }
 0x593   : > { %17077 = vmatmul.mubr.msk.bf16.vlgmr.msra.gmra.mrb[128].mxu1 %vm2652_vm1, %v5885_v17  ;;  %v18464_v17 = vld [vmem:[%s21820_s2 + $0x160] sm:$0xff]  }
 0x594   : > { %17080 = vmatprep.mubr.msk.bf16.mxu1 %vm2652_vm1, %v5886_v11  ;;  %17109 = vmatpush3.bf16.msra.mxu1 %v18456_v9  ;;  %v5892_v9 = vpack.c.bf16 %v5869_v0, %v5868_v43  ;;  %v6251_v11 = vld [vmem:[#allocation2 + $0xa1] sm:$0xff]  ;;  %v6261_v0 = vld [vmem:[#allocation2 + $0x111] sm:$0xff]  ;;  %v6262_v43 = vld [vmem:[#allocation2 + $0x129] sm:$0xff] }
 0x595   : > { %17110 = vmatprep.subr.bf16.mxu1 %v18457_v61  ;;  %v6276_v57 = vpack.c.bf16 %v6251_v11, %v6250_v44  ;;  %v6645_v11 = vld [vmem:[#allocation2 + $0x102] sm:$0xff]  ;;  %v6644_v44 = vld [vmem:[#allocation2 + $0xfa] sm:$0xff] }
 0x598   : > { %17111 = vmatpush3.bf16.msra.mxu1 %v18457_v61  ;;  %v6249_v61 = vld [vmem:[#allocation2 + $0x81] sm:$0xff] }
 0x599   : > { %17112 = vmatprep.subr.bf16.mxu1 %v18458_v12 }
 0x59b   : > { %17081 = vmatmul.mubr.msk.bf16.gmra.mrb[132].mxu1 %vm2652_vm1, %v5887_v50  ;;  %v6253_v50 = vld [vmem:[#allocation2 + $0xb1] sm:$0xff] }
 0x59c   : > { %17084 = vmatprep.mubr.msk.bf16.mxu1 %vm2652_vm1, %v5888_v2  ;;  %17113 = vmatpush3.bf16.msra.mxu1 %v18458_v12  ;;  %v6275_v12 = vpack.c.bf16 %v6249_v61, %v6248_v60  ;;  %v6254_v2 = vld [vmem:[#allocation2 + $0xc9] sm:$0xff]  ;;  %v6642_v60 = vld [vmem:[#allocation2 + $0xda] sm:$0xff] }
 0x59d   : > { %17114 = vmatprep.subr.bf16.mxu1 %v18459_v7  ;;  %v6643_v61 = vld [vmem:[#allocation2 + $0xe2] sm:$0xff] }
 0x5a0   : > { %17115 = vmatpush3.bf16.msra.mxu1 %v18459_v7  ;;  %v6277_v7 = vpack.c.bf16 %v6253_v50, %v6252_v28  ;;  %v6646_v28 = vld [vmem:[#allocation2 + $0x10a] sm:$0xff]  ;;  %v6647_v50 = vld [vmem:[#allocation2 + $0x112] sm:$0xff] }
 0x5a1   : > { %17148 = vmatprep.subr.bf16.mxu1 %v18460_v47 }
 0x5a3   : > { %17085 = vmatmul.mubr.msk.bf16.gmra.mrb[136].mxu1 %vm2652_vm1, %v5889_v23  ;;  %v6279_v23 = vpack.c.bf16 %v6257_v62, %v6256_v33  ;;  %v6650_v33 = vld [vmem:[#allocation2 + $0x13a] sm:$0xff]  ;;  %v6651_v62 = vld [vmem:[#allocation2 + $0x142] sm:$0xff] }
 0x5a4   : > { %17088 = vmatprep.mubr.msk.bf16.mxu1 %vm2652_vm1, %v5890_v37  ;;  %v6280_v37 = vpack.c.bf16 %v6259_v27, %v6258_v56  ;;  %v6653_v27 = vld [vmem:[#allocation2 + $0x162] sm:$0xff]  ;;  %v6652_v56 = vld [vmem:[#allocation2 + $0x15a] sm:$0xff] }
 0x5ab   : > { %17089 = vmatmul.mubr.msk.bf16.gmra.mrb[140].mxu1 %vm2652_vm1, %v5891_v46  ;;  %v6281_v46 = vpack.c.bf16 %v6261_v0, %v6260_v40  ;;  %v6654_v40 = vld [vmem:[#allocation2 + $0x16a] sm:$0xff]  ;;  %v6655_v0 = vld [vmem:[#allocation2 + $0x172] sm:$0xff] }
 0x5ac   : > { %17092 = vmatprep.mubr.msk.bf16.mxu1 %vm2652_vm1, %v5892_v9  ;;  %v6282_v9 = vpack.c.bf16 %v6263_v38, %v6262_v43  ;;  %v7011_v38 = vld [vmem:[#allocation2 + $0x13] sm:$0xff]  ;;  %v7010_v43 = vld [vmem:[#allocation2 + $0xb] sm:$0xff] }
 0x5b3   : > { %17093 = vmatmul.mubr.msk.bf16.gmra.mrb[144].mxu1 %vm2652_vm1, %v5893_v39  ;;  %v6283_v39 = vpack.c.bf16 %v6265_v21, %v6264_v22  ;;  %v7012_v22 = vld [vmem:[#allocation2 + $0x1b] sm:$0xff]  ;;  %v7013_v21 = vld [vmem:[#allocation2 + $0x23] sm:$0xff] }
 0x5b4   : > { %17096 = vmatprep.mubr.msk.bf16.mxu1 %vm2652_vm1, %v5894_v25  ;;  %v6284_v25 = vpack.c.bf16 %v6267_v35, %v6266_v34  ;;  %v7015_v35 = vld [vmem:[#allocation2 + $0x43] sm:$0xff]  ;;  %v7014_v34 = vld [vmem:[#allocation2 + $0x3b] sm:$0xff] }
 0x5bb   : > { %17097 = vmatmul.mubr.msk.bf16.gmra.mrb[148].mxu1 %vm2652_vm1, %v5895_v1  ;;  %v6285_v1 = vpack.c.bf16 %v6269_v19, %v6268_v55  ;;  %v7044_v55 = vpack.c.bf16 %v7015_v35, %v7014_v34  ;;  %v18470_v19 = vld [vmem:[%s21820_s2 + $0x190] sm:$0xff]   ;;  %v7406_v34 = vld [vmem:[#allocation2 + $0x7c] sm:$0xff] }
 0x5bc   : > { %17100 = vmatprep.mubr.msk.bf16.mxu1 %vm2652_vm1, %v5896_v36  ;;  %v6656_v36 = vpack.c.bf16 %v6625_v32, %v6624_v29  ;;  %v7016_v32 = vld [vmem:[#allocation2 + $0x4b] sm:$0xff]  ;;  %v7019_v29 = vld [vmem:[#allocation2 + $0x73] sm:$0xff] }
 0x5c3   : > { %17101 = vmatmul.mubr.msk.bf16.gmra.mrb[152].mxu1 %vm2652_vm1, %v5897_v49  ;;  %v6657_v49 = vpack.c.bf16 %v6627_v45, %v6626_v41  ;;  %v7018_v41 = vld [vmem:[#allocation2 + $0x6b] sm:$0xff]  ;;  %v18471_v45 = vld [vmem:[%s21820_s2 + $0x198] sm:$0xff]  }
 0x5c4   : > { %17104 = vmatprep.mubr.msk.bf16.mxu1 %vm2652_vm1, %v5898_v14  ;;  %v18465_v14 = vld [vmem:[%s21820_s2 + $0x168] sm:$0xff]   ;;  %v7046_v51 = vpack.c.bf16 %v7019_v29, %v7018_v41  ;;  %v7413_v41 = vld [vmem:[#allocation2 + $0xd4] sm:$0xff] }
 0x5c5   : > { %v7410_v29 = vld [vmem:[#allocation2 + $0xac] sm:$0xff] }
 0x5cb   : > { %17105 = vmatmul.mubr.msk.bf16.gmra.mrb[156].mxu1 %vm2652_vm1, %v5899_v59  ;;  %v6631_v59 = vld [vmem:[#allocation2 + $0x52] sm:$0xff] }
 0x5cc   : > { %17116 = vmatprep.mubr.msk.bf16.mxu1 %vm2652_vm1, %v6270_v18  ;;  %v6659_v18 = vpack.c.bf16 %v6631_v59, %v6630_v15  ;;  %v7022_v15 = vld [vmem:[#allocation2 + $0x9b] sm:$0xff] }
 0x5d3   : > { %17117 = vmatmul.mubr.msk.bf16.vlgmr.msra.gmra.mrb[128].mxu1 %vm2652_vm1, %v6271_v5  ;;  %v18468_v5 = vld [vmem:[%s21820_s2 + $0x180] sm:$0xff]  }
 0x5d4   : > { %17120 = vmatprep.mubr.msk.bf16.mxu1 %vm2652_vm1, %v6272_v16  ;;  %17149 = vmatpush3.bf16.msra.mxu1 %v18460_v47  ;;  %v6278_v47 = vpack.c.bf16 %v6255_v26, %v6254_v2  ;;  %v6637_v16 = vld [vmem:[#allocation2 + $0xa2] sm:$0xff]  ;;  %v6649_v26 = vld [vmem:[#allocation2 + $0x132] sm:$0xff]  ;;  %v6648_v2 = vld [vmem:[#allocation2 + $0x12a] sm:$0xff] }
 0x5d5   : > { %17150 = vmatprep.subr.bf16.mxu1 %v18461_v58  ;;  %v6662_v53 = vpack.c.bf16 %v6637_v16, %v6636_v48  ;;  %v7031_v16 = vld [vmem:[#allocation2 + $0x103] sm:$0xff]  ;;  %v7030_v48 = vld [vmem:[#allocation2 + $0xfb] sm:$0xff] }
 0x5d8   : > { %17151 = vmatpush3.bf16.msra.mxu1 %v18461_v58  ;;  %v6635_v58 = vld [vmem:[#allocation2 + $0x82] sm:$0xff] }
 0x5d9   : > { %17152 = vmatprep.subr.bf16.mxu1 %v18462_v31 }
 0x5db   : > { %17121 = vmatmul.mubr.msk.bf16.gmra.mrb[132].mxu1 %vm2652_vm1, %v6273_v8  ;;  %v6639_v8 = vld [vmem:[#allocation2 + $0xb2] sm:$0xff] }
 0x5dc   : > { %17124 = vmatprep.mubr.msk.bf16.mxu1 %vm2652_vm1, %v6274_v30  ;;  %17153 = vmatpush3.bf16.msra.mxu1 %v18462_v31  ;;  %v6661_v31 = vpack.c.bf16 %v6635_v58, %v6634_v42  ;;  %v6640_v30 = vld [vmem:[#allocation2 + $0xca] sm:$0xff]  ;;  %v7028_v42 = vld [vmem:[#allocation2 + $0xdb] sm:$0xff] }
 0x5dd   : > { %17154 = vmatprep.subr.bf16.mxu1 %v18463_v4  ;;  %v7029_v58 = vld [vmem:[#allocation2 + $0xe3] sm:$0xff] }
 0x5e0   : > { %17155 = vmatpush3.bf16.msra.mxu1 %v18463_v4  ;;  %v6663_v4 = vpack.c.bf16 %v6639_v8, %v6638_v24  ;;  %v7032_v24 = vld [vmem:[#allocation2 + $0x10b] sm:$0xff]  ;;  %v7033_v8 = vld [vmem:[#allocation2 + $0x113] sm:$0xff] }
 0x5e1   : > { %17188 = vmatprep.subr.bf16.mxu1 %v18464_v17 }
 0x5e3   : > { %17125 = vmatmul.mubr.msk.bf16.gmra.mrb[136].mxu1 %vm2652_vm1, %v6275_v12  ;;  %v6665_v12 = vpack.c.bf16 %v6643_v61, %v6642_v60  ;;  %v7036_v60 = vld [vmem:[#allocation2 + $0x13b] sm:$0xff]  ;;  %v7037_v61 = vld [vmem:[#allocation2 + $0x143] sm:$0xff] }
 0x5e4   : > { %17128 = vmatprep.mubr.msk.bf16.mxu1 %vm2652_vm1, %v6276_v57  ;;  %v6666_v57 = vpack.c.bf16 %v6645_v11, %v6644_v44  ;;  %v7039_v11 = vld [vmem:[#allocation2 + $0x163] sm:$0xff]  ;;  %v7038_v44 = vld [vmem:[#allocation2 + $0x15b] sm:$0xff] }
 0x5eb   : > { %17129 = vmatmul.mubr.msk.bf16.gmra.mrb[140].mxu1 %vm2652_vm1, %v6277_v7  ;;  %v6667_v7 = vpack.c.bf16 %v6647_v50, %v6646_v28  ;;  %v7040_v28 = vld [vmem:[#allocation2 + $0x16b] sm:$0xff]  ;;  %v7041_v50 = vld [vmem:[#allocation2 + $0x173] sm:$0xff] }
 0x5ec   : > { %17132 = vmatprep.mubr.msk.bf16.mxu1 %vm2652_vm1, %v6278_v47  ;;  %v6668_v47 = vpack.c.bf16 %v6649_v26, %v6648_v2  ;;  %v7397_v26 = vld [vmem:[#allocation2 + $0x14] sm:$0xff]  ;;  %v7396_v2 = vld [vmem:[#allocation2 + $0xc] sm:$0xff] }
 0x5f3   : > { %17133 = vmatmul.mubr.msk.bf16.gmra.mrb[144].mxu1 %vm2652_vm1, %v6279_v23  ;;  %v6669_v23 = vpack.c.bf16 %v6651_v62, %v6650_v33  ;;  %v7398_v33 = vld [vmem:[#allocation2 + $0x1c] sm:$0xff]  ;;  %v7399_v62 = vld [vmem:[#allocation2 + $0x24] sm:$0xff] }
 0x5f4   : > { %17136 = vmatprep.mubr.msk.bf16.mxu1 %vm2652_vm1, %v6280_v37  ;;  %v6670_v37 = vpack.c.bf16 %v6653_v27, %v6652_v56  ;;  %v7401_v27 = vld [vmem:[#allocation2 + $0x44] sm:$0xff]  ;;  %v7400_v56 = vld [vmem:[#allocation2 + $0x3c] sm:$0xff] }
 0x5fb   : > { %17137 = vmatmul.mubr.msk.bf16.gmra.mrb[148].mxu1 %vm2652_vm1, %v6281_v46  ;;  %v6671_v46 = vpack.c.bf16 %v6655_v0, %v6654_v40  ;;  %v7430_v40 = vpack.c.bf16 %v7401_v27, %v7400_v56  ;;  %v18474_v0 = vld [vmem:[%s21820_s2 + $0x1b0] sm:$0xff]   ;;  %v7792_v56 = vld [vmem:[#allocation2 + $0x7d] sm:$0xff] }
 0x5fc   : > { %17140 = vmatprep.mubr.msk.bf16.mxu1 %vm2652_vm1, %v6282_v9  ;;  %v7042_v9 = vpack.c.bf16 %v7011_v38, %v7010_v43  ;;  %v7402_v38 = vld [vmem:[#allocation2 + $0x4c] sm:$0xff]  ;;  %v7405_v43 = vld [vmem:[#allocation2 + $0x74] sm:$0xff] }
 0x603   : > { %17141 = vmatmul.mubr.msk.bf16.gmra.mrb[152].mxu1 %vm2652_vm1, %v6283_v39  ;;  %v7043_v39 = vpack.c.bf16 %v7013_v21, %v7012_v22  ;;  %v7404_v22 = vld [vmem:[#allocation2 + $0x6c] sm:$0xff]  ;;  %v18475_v21 = vld [vmem:[%s21820_s2 + $0x1b8] sm:$0xff]  }
 0x604   : > { %17144 = vmatprep.mubr.msk.bf16.mxu1 %vm2652_vm1, %v6284_v25  ;;  %v18469_v25 = vld [vmem:[%s21820_s2 + $0x188] sm:$0xff]   ;;  %v7432_v35 = vpack.c.bf16 %v7405_v43, %v7404_v22  ;;  %v7799_v22 = vld [vmem:[#allocation2 + $0xd5] sm:$0xff] }
 0x605   : > { %v7796_v43 = vld [vmem:[#allocation2 + $0xad] sm:$0xff] }
 0x60b   : > { %17145 = vmatmul.mubr.msk.bf16.gmra.mrb[156].mxu1 %vm2652_vm1, %v6285_v1  ;;  %v7017_v1 = vld [vmem:[#allocation2 + $0x53] sm:$0xff] }
 0x60c   : > { %17156 = vmatprep.mubr.msk.bf16.mxu1 %vm2652_vm1, %v6656_v36  ;;  %v7045_v36 = vpack.c.bf16 %v7017_v1, %v7016_v32  ;;  %v7408_v32 = vld [vmem:[#allocation2 + $0x9c] sm:$0xff] }
 0x613   : > { %17157 = vmatmul.mubr.msk.bf16.vlgmr.msra.gmra.mrb[128].mxu1 %vm2652_vm1, %v6657_v49  ;;  %v18472_v49 = vld [vmem:[%s21820_s2 + $0x1a0] sm:$0xff]  }
 0x614   : > { %17160 = vmatprep.mubr.msk.bf16.mxu1 %vm2652_vm1, %v6658_v63  ;;  %17189 = vmatpush3.bf16.msra.mxu1 %v18464_v17  ;;  %v6664_v17 = vpack.c.bf16 %v6641_v3, %v6640_v30  ;;  %v7023_v63 = vld [vmem:[#allocation2 + $0xa3] sm:$0xff]  ;;  %v7035_v3 = vld [vmem:[#allocation2 + $0x133] sm:$0xff]  ;;  %v7034_v30 = vld [vmem:[#allocation2 + $0x12b] sm:$0xff] }
 0x615   : > { %17190 = vmatprep.subr.bf16.mxu1 %v18465_v14  ;;  %v7048_v59 = vpack.c.bf16 %v7023_v63, %v7022_v15  ;;  %v7417_v63 = vld [vmem:[#allocation2 + $0x104] sm:$0xff]  ;;  %v7416_v15 = vld [vmem:[#allocation2 + $0xfc] sm:$0xff] }
 0x618   : > { %17191 = vmatpush3.bf16.msra.mxu1 %v18465_v14  ;;  %v7021_v14 = vld [vmem:[#allocation2 + $0x83] sm:$0xff] }
 0x619   : > { %17192 = vmatprep.subr.bf16.mxu1 %v18466_v52 }
 0x61b   : > { %17161 = vmatmul.mubr.msk.bf16.gmra.mrb[132].mxu1 %vm2652_vm1, %v6659_v18  ;;  %v7025_v18 = vld [vmem:[#allocation2 + $0xb3] sm:$0xff] }
 0x61c   : > { %17164 = vmatprep.mubr.msk.bf16.mxu1 %vm2652_vm1, %v6660_v13  ;;  %17193 = vmatpush3.bf16.msra.mxu1 %v18466_v52  ;;  %v7047_v52 = vpack.c.bf16 %v7021_v14, %v7020_v54  ;;  %v7026_v13 = vld [vmem:[#allocation2 + $0xcb] sm:$0xff]  ;;  %v7414_v54 = vld [vmem:[#allocation2 + $0xdc] sm:$0xff] }
 0x61d   : > { %17194 = vmatprep.subr.bf16.mxu1 %v18467_v20  ;;  %v7415_v14 = vld [vmem:[#allocation2 + $0xe4] sm:$0xff] }
 0x620   : > { %17195 = vmatpush3.bf16.msra.mxu1 %v18467_v20  ;;  %v7049_v20 = vpack.c.bf16 %v7025_v18, %v7024_v10  ;;  %v7418_v10 = vld [vmem:[#allocation2 + $0x10c] sm:$0xff]  ;;  %v7419_v18 = vld [vmem:[#allocation2 + $0x114] sm:$0xff] }
 0x621   : > { %17228 = vmatprep.subr.bf16.mxu1 %v18468_v5 }
 0x623   : > { %17165 = vmatmul.mubr.msk.bf16.gmra.mrb[136].mxu1 %vm2652_vm1, %v6661_v31  ;;  %v7051_v31 = vpack.c.bf16 %v7029_v58, %v7028_v42  ;;  %v7422_v42 = vld [vmem:[#allocation2 + $0x13c] sm:$0xff]  ;;  %v7423_v58 = vld [vmem:[#allocation2 + $0x144] sm:$0xff] }
 0x624   : > { %17168 = vmatprep.mubr.msk.bf16.mxu1 %vm2652_vm1, %v6662_v53  ;;  %v7052_v53 = vpack.c.bf16 %v7031_v16, %v7030_v48  ;;  %v7425_v16 = vld [vmem:[#allocation2 + $0x164] sm:$0xff]  ;;  %v7424_v48 = vld [vmem:[#allocation2 + $0x15c] sm:$0xff] }
 0x62b   : > { %17169 = vmatmul.mubr.msk.bf16.gmra.mrb[140].mxu1 %vm2652_vm1, %v6663_v4  ;;  %v7053_v4 = vpack.c.bf16 %v7033_v8, %v7032_v24  ;;  %v7426_v24 = vld [vmem:[#allocation2 + $0x16c] sm:$0xff]  ;;  %v7427_v8 = vld [vmem:[#allocation2 + $0x174] sm:$0xff] }
 0x62c   : > { %17172 = vmatprep.mubr.msk.bf16.mxu1 %vm2652_vm1, %v6664_v17  ;;  %v7054_v17 = vpack.c.bf16 %v7035_v3, %v7034_v30  ;;  %v7783_v3 = vld [vmem:[#allocation2 + $0x15] sm:$0xff]  ;;  %v7782_v30 = vld [vmem:[#allocation2 + $0xd] sm:$0xff] }
 0x633   : > { %17173 = vmatmul.mubr.msk.bf16.gmra.mrb[144].mxu1 %vm2652_vm1, %v6665_v12  ;;  %v7055_v12 = vpack.c.bf16 %v7037_v61, %v7036_v60  ;;  %v7784_v60 = vld [vmem:[#allocation2 + $0x1d] sm:$0xff]  ;;  %v7785_v61 = vld [vmem:[#allocation2 + $0x25] sm:$0xff] }
 0x634   : > { %17176 = vmatprep.mubr.msk.bf16.mxu1 %vm2652_vm1, %v6666_v57  ;;  %v7056_v57 = vpack.c.bf16 %v7039_v11, %v7038_v44  ;;  %v7787_v11 = vld [vmem:[#allocation2 + $0x45] sm:$0xff]  ;;  %v7786_v44 = vld [vmem:[#allocation2 + $0x3d] sm:$0xff] }
 0x63b   : > { %17177 = vmatmul.mubr.msk.bf16.gmra.mrb[148].mxu1 %vm2652_vm1, %v6667_v7  ;;  %v7057_v7 = vpack.c.bf16 %v7041_v50, %v7040_v28  ;;  %v7816_v28 = vpack.c.bf16 %v7787_v11, %v7786_v44  ;;  %v18478_v50 = vld [vmem:[%s21820_s2 + $0x1d0] sm:$0xff]   ;;  %v8179_v44 = vld [vmem:[#allocation2 + $0x86] sm:$0xff] }
 0x63c   : > { %17180 = vmatprep.mubr.msk.bf16.mxu1 %vm2652_vm1, %v6668_v47  ;;  %v7428_v47 = vpack.c.bf16 %v7397_v26, %v7396_v2  ;;  %v7788_v26 = vld [vmem:[#allocation2 + $0x4d] sm:$0xff]  ;;  %v7791_v2 = vld [vmem:[#allocation2 + $0x75] sm:$0xff] }
 0x643   : > { %17181 = vmatmul.mubr.msk.bf16.gmra.mrb[152].mxu1 %vm2652_vm1, %v6669_v23  ;;  %v7429_v23 = vpack.c.bf16 %v7399_v62, %v7398_v33  ;;  %v7790_v33 = vld [vmem:[#allocation2 + $0x6d] sm:$0xff]  ;;  %v18479_v62 = vld [vmem:[%s21820_s2 + $0x1d8] sm:$0xff]  }
 0x644   : > { %17184 = vmatprep.mubr.msk.bf16.mxu1 %vm2652_vm1, %v6670_v37  ;;  %v18473_v37 = vld [vmem:[%s21820_s2 + $0x1a8] sm:$0xff]   ;;  %v7818_v27 = vpack.c.bf16 %v7791_v2, %v7790_v33  ;;  %v8183_v2 = vld [vmem:[#allocation2 + $0xb6] sm:$0xff] }
 0x64b   : > { %17185 = vmatmul.mubr.msk.bf16.gmra.mrb[156].mxu1 %vm2652_vm1, %v6671_v46  ;;  %v7403_v46 = vld [vmem:[#allocation2 + $0x54] sm:$0xff] }
 0x64c   : > { %17196 = vmatprep.mubr.msk.bf16.mxu1 %vm2652_vm1, %v7042_v9  ;;  %v7431_v9 = vpack.c.bf16 %v7403_v46, %v7402_v38  ;;  %v7794_v38 = vld [vmem:[#allocation2 + $0x9d] sm:$0xff] }
 0x653   : > { %17197 = vmatmul.mubr.msk.bf16.vlgmr.msra.gmra.mrb[128].mxu1 %vm2652_vm1, %v7043_v39  ;;  %v18476_v39 = vld [vmem:[%s21820_s2 + $0x1c0] sm:$0xff]  }
 0x654   : > { %17200 = vmatprep.mubr.msk.bf16.mxu1 %vm2652_vm1, %v7044_v55  ;;  %17229 = vmatpush3.bf16.msra.mxu1 %v18468_v5  ;;  %v7050_v5 = vpack.c.bf16 %v7027_v6, %v7026_v13  ;;  %v7409_v55 = vld [vmem:[#allocation2 + $0xa4] sm:$0xff]  ;;  %v7421_v6 = vld [vmem:[#allocation2 + $0x134] sm:$0xff]  ;;  %v7420_v13 = vld [vmem:[#allocation2 + $0x12c] sm:$0xff] }
 0x655   : > { %17230 = vmatprep.subr.bf16.mxu1 %v18469_v25  ;;  %v7434_v1 = vpack.c.bf16 %v7409_v55, %v7408_v32  ;;  %v7803_v55 = vld [vmem:[#allocation2 + $0x105] sm:$0xff]  ;;  %v7802_v32 = vld [vmem:[#allocation2 + $0xfd] sm:$0xff] }
 0x658   : > { %17231 = vmatpush3.bf16.msra.mxu1 %v18469_v25  ;;  %v7407_v25 = vld [vmem:[#allocation2 + $0x84] sm:$0xff] }
 0x659   : > { %17232 = vmatprep.subr.bf16.mxu1 %v18470_v19 }
 0x65b   : > { %17201 = vmatmul.mubr.msk.bf16.gmra.mrb[132].mxu1 %vm2652_vm1, %v7045_v36  ;;  %v7411_v36 = vld [vmem:[#allocation2 + $0xb4] sm:$0xff] }
 0x65c   : > { %17204 = vmatprep.mubr.msk.bf16.mxu1 %vm2652_vm1, %v7046_v51  ;;  %17233 = vmatpush3.bf16.msra.mxu1 %v18470_v19  ;;  %v7433_v19 = vpack.c.bf16 %v7407_v25, %v7406_v34  ;;  %v7412_v51 = vld [vmem:[#allocation2 + $0xcc] sm:$0xff]  ;;  %v7800_v34 = vld [vmem:[#allocation2 + $0xdd] sm:$0xff] }
 0x65d   : > { %17234 = vmatprep.subr.bf16.mxu1 %v18471_v45  ;;  %v7801_v25 = vld [vmem:[#allocation2 + $0xe5] sm:$0xff] }
 0x660   : > { %17235 = vmatpush3.bf16.msra.mxu1 %v18471_v45  ;;  %v7435_v45 = vpack.c.bf16 %v7411_v36, %v7410_v29  ;;  %v7804_v29 = vld [vmem:[#allocation2 + $0x10d] sm:$0xff]  ;;  %v7805_v36 = vld [vmem:[#allocation2 + $0x115] sm:$0xff] }
 0x661   : > { %17268 = vmatprep.subr.bf16.mxu1 %v18472_v49 }
 0x663   : > { %17205 = vmatmul.mubr.msk.bf16.gmra.mrb[136].mxu1 %vm2652_vm1, %v7047_v52  ;;  %v7437_v52 = vpack.c.bf16 %v7415_v14, %v7414_v54  ;;  %v7808_v54 = vld [vmem:[#allocation2 + $0x13d] sm:$0xff]  ;;  %v7809_v14 = vld [vmem:[#allocation2 + $0x145] sm:$0xff] }
 0x664   : > { %17208 = vmatprep.mubr.msk.bf16.mxu1 %vm2652_vm1, %v7048_v59  ;;  %v7438_v59 = vpack.c.bf16 %v7417_v63, %v7416_v15  ;;  %v7811_v63 = vld [vmem:[#allocation2 + $0x165] sm:$0xff]  ;;  %v7810_v15 = vld [vmem:[#allocation2 + $0x15d] sm:$0xff] }
 0x66b   : > { %17209 = vmatmul.mubr.msk.bf16.gmra.mrb[140].mxu1 %vm2652_vm1, %v7049_v20  ;;  %v7439_v20 = vpack.c.bf16 %v7419_v18, %v7418_v10  ;;  %v7812_v10 = vld [vmem:[#allocation2 + $0x16d] sm:$0xff]  ;;  %v7813_v18 = vld [vmem:[#allocation2 + $0x175] sm:$0xff] }
 0x66c   : > { %17212 = vmatprep.mubr.msk.bf16.mxu1 %vm2652_vm1, %v7050_v5  ;;  %v7440_v5 = vpack.c.bf16 %v7421_v6, %v7420_v13  ;;  %v8169_v6 = vld [vmem:[#allocation2 + $0x16] sm:$0xff]  ;;  %v8168_v13 = vld [vmem:[#allocation2 + $0xe] sm:$0xff] }
 0x673   : > { %17213 = vmatmul.mubr.msk.bf16.gmra.mrb[144].mxu1 %vm2652_vm1, %v7051_v31  ;;  %v7441_v31 = vpack.c.bf16 %v7423_v58, %v7422_v42  ;;  %v8170_v42 = vld [vmem:[#allocation2 + $0x1e] sm:$0xff]  ;;  %v8171_v58 = vld [vmem:[#allocation2 + $0x26] sm:$0xff] }
 0x674   : > { %17216 = vmatprep.mubr.msk.bf16.mxu1 %vm2652_vm1, %v7052_v53  ;;  %v7442_v53 = vpack.c.bf16 %v7425_v16, %v7424_v48  ;;  %v8173_v16 = vld [vmem:[#allocation2 + $0x46] sm:$0xff]  ;;  %v8172_v48 = vld [vmem:[#allocation2 + $0x3e] sm:$0xff] }
 0x67b   : > { %17217 = vmatmul.mubr.msk.bf16.gmra.mrb[148].mxu1 %vm2652_vm1, %v7053_v4  ;;  %v7443_v4 = vpack.c.bf16 %v7427_v8, %v7426_v24  ;;  %v8202_v24 = vpack.c.bf16 %v8173_v16, %v8172_v48  ;;  %v18482_v8 = vld [vmem:[%s21820_s2 + $0x1f0] sm:$0xff]  }
 0x67c   : > { %17220 = vmatprep.mubr.msk.bf16.mxu1 %vm2652_vm1, %v7054_v17  ;;  %v7814_v17 = vpack.c.bf16 %v7783_v3, %v7782_v30  ;;  %v8174_v3 = vld [vmem:[#allocation2 + $0x4e] sm:$0xff]  ;;  %v8177_v30 = vld [vmem:[#allocation2 + $0x76] sm:$0xff] }
 0x683   : > { %17221 = vmatmul.mubr.msk.bf16.gmra.mrb[152].mxu1 %vm2652_vm1, %v7055_v12  ;;  %v7815_v12 = vpack.c.bf16 %v7785_v61, %v7784_v60  ;;  %v8176_v60 = vld [vmem:[#allocation2 + $0x6e] sm:$0xff]  ;;  %v18483_v61 = vld [vmem:[%s21820_s2 + $0x1f8] sm:$0xff]  }
 0x684   : > { %17224 = vmatprep.mubr.msk.bf16.mxu1 %vm2652_vm1, %v7056_v57  ;;  %v18477_v57 = vld [vmem:[%s21820_s2 + $0x1c8] sm:$0xff]   ;;  %v8204_v11 = vpack.c.bf16 %v8177_v30, %v8176_v60 }
 0x685   : > { %v8573_v60 = vld [vmem:[#allocation2 + $0xe7] sm:$0xff] }
 0x68b   : > { %17225 = vmatmul.mubr.msk.bf16.gmra.mrb[156].mxu1 %vm2652_vm1, %v7057_v7  ;;  %v7789_v7 = vld [vmem:[#allocation2 + $0x55] sm:$0xff] }
 0x68c   : > { %17236 = vmatprep.mubr.msk.bf16.mxu1 %vm2652_vm1, %v7428_v47  ;;  %v7817_v47 = vpack.c.bf16 %v7789_v7, %v7788_v26  ;;  %v8182_v7 = vld [vmem:[#allocation2 + $0xae] sm:$0xff] }
 0x68d   : > { %v8207_v33 = vpack.c.bf16 %v8183_v2, %v8182_v7  ;;  %v8578_v7 = vld [vmem:[#allocation2 + $0x12f] sm:$0xff] }
 0x693   : > { %17237 = vmatmul.mubr.msk.bf16.vlgmr.msra.gmra.mrb[128].mxu1 %vm2652_vm1, %v7429_v23  ;;  %v18480_v23 = vld [vmem:[%s21820_s2 + $0x1e0] sm:$0xff]  }
 0x694   : > { %17240 = vmatprep.mubr.msk.bf16.mxu1 %vm2652_vm1, %v7430_v40  ;;  %17269 = vmatpush3.bf16.msra.mxu1 %v18472_v49  ;;  %v7436_v49 = vpack.c.bf16 %v7413_v41, %v7412_v51  ;;  %v7795_v40 = vld [vmem:[#allocation2 + $0xa5] sm:$0xff]  ;;  %v7807_v41 = vld [vmem:[#allocation2 + $0x135] sm:$0xff]  ;;  %v7806_v51 = vld [vmem:[#allocation2 + $0x12d] sm:$0xff] }
 0x695   : > { %17270 = vmatprep.subr.bf16.mxu1 %v18473_v37  ;;  %v7820_v46 = vpack.c.bf16 %v7795_v40, %v7794_v38 }
 0x698   : > { %17271 = vmatpush3.bf16.msra.mxu1 %v18473_v37  ;;  %v7793_v37 = vld [vmem:[#allocation2 + $0x85] sm:$0xff] }
 0x699   : > { %17272 = vmatprep.subr.bf16.mxu1 %v18474_v0 }
 0x69b   : > { %17241 = vmatmul.mubr.msk.bf16.gmra.mrb[132].mxu1 %vm2652_vm1, %v7431_v9  ;;  %v7797_v9 = vld [vmem:[#allocation2 + $0xb5] sm:$0xff] }
 0x69c   : > { %17244 = vmatprep.mubr.msk.bf16.mxu1 %vm2652_vm1, %v7432_v35  ;;  %17273 = vmatpush3.bf16.msra.mxu1 %v18474_v0  ;;  %v7819_v0 = vpack.c.bf16 %v7793_v37, %v7792_v56  ;;  %v7798_v35 = vld [vmem:[#allocation2 + $0xcd] sm:$0xff] }
 0x69d   : > { %17274 = vmatprep.subr.bf16.mxu1 %v18475_v21  ;;  %v8187_v56 = vld [vmem:[#allocation2 + $0xe6] sm:$0xff] }
 0x69e   : > { %v8189_v37 = vld [vmem:[#allocation2 + $0x106] sm:$0xff] }
 0x6a0   : > { %17275 = vmatpush3.bf16.msra.mxu1 %v18475_v21  ;;  %v7821_v21 = vpack.c.bf16 %v7797_v9, %v7796_v43  ;;  %v8191_v43 = vld [vmem:[#allocation2 + $0x116] sm:$0xff] }
 0x6a1   : > { %17308 = vmatprep.subr.bf16.mxu1 %v18476_v39  ;;  %v8193_v9 = vld [vmem:[#allocation2 + $0x136] sm:$0xff] }
 0x6a3   : > { %17245 = vmatmul.mubr.msk.bf16.gmra.mrb[136].mxu1 %vm2652_vm1, %v7433_v19  ;;  %v7823_v19 = vpack.c.bf16 %v7801_v25, %v7800_v34  ;;  %v8195_v34 = vld [vmem:[#allocation2 + $0x146] sm:$0xff] }
 0x6a4   : > { %17248 = vmatprep.mubr.msk.bf16.mxu1 %vm2652_vm1, %v7434_v1  ;;  %v7824_v1 = vpack.c.bf16 %v7803_v55, %v7802_v32  ;;  %v8197_v25 = vld [vmem:[#allocation2 + $0x166] sm:$0xff] }
 0x6ab   : > { %17249 = vmatmul.mubr.msk.bf16.gmra.mrb[140].mxu1 %vm2652_vm1, %v7435_v45  ;;  %v7825_v45 = vpack.c.bf16 %v7805_v36, %v7804_v29  ;;  %v8199_v29 = vld [vmem:[#allocation2 + $0x176] sm:$0xff] }
 0x6ac   : > { %17252 = vmatprep.mubr.msk.bf16.mxu1 %vm2652_vm1, %v7436_v49  ;;  %v7826_v49 = vpack.c.bf16 %v7807_v41, %v7806_v51  ;;  %v8555_v36 = vld [vmem:[#allocation2 + $0x17] sm:$0xff] }
 0x6b3   : > { %17253 = vmatmul.mubr.msk.bf16.gmra.mrb[144].mxu1 %vm2652_vm1, %v7437_v52  ;;  %v7827_v52 = vpack.c.bf16 %v7809_v14, %v7808_v54  ;;  %v8557_v54 = vld [vmem:[#allocation2 + $0x27] sm:$0xff] }
 0x6b4   : > { %17256 = vmatprep.mubr.msk.bf16.mxu1 %vm2652_vm1, %v7438_v59  ;;  %v7828_v59 = vpack.c.bf16 %v7811_v63, %v7810_v15  ;;  %v8559_v14 = vld [vmem:[#allocation2 + $0x47] sm:$0xff] }
 0x6bb   : > { %17257 = vmatmul.mubr.msk.bf16.gmra.mrb[148].mxu1 %vm2652_vm1, %v7439_v20  ;;  %v7829_v20 = vpack.c.bf16 %v7813_v18, %v7812_v10  ;;  %v8561_v10 = vld [vmem:[#allocation2 + $0x57] sm:$0xff] }
 0x6bc   : > { %17260 = vmatprep.mubr.msk.bf16.mxu1 %vm2652_vm1, %v7440_v5  ;;  %v8200_v5 = vpack.c.bf16 %v8169_v6, %v8168_v13  ;;  %v8563_v18 = vld [vmem:[#allocation2 + $0x77] sm:$0xff] }
 0x6c3   : > { %17261 = vmatmul.mubr.msk.bf16.gmra.mrb[152].mxu1 %vm2652_vm1, %v7441_v31  ;;  %v8201_v31 = vpack.c.bf16 %v8171_v58, %v8170_v42  ;;  %v8565_v42 = vld [vmem:[#allocation2 + $0x87] sm:$0xff] }
 0x6c4   : > { %17264 = vmatprep.mubr.msk.bf16.mxu1 %vm2652_vm1, %v7442_v53  ;;  %v18481_v53 = vld [vmem:[%s21820_s2 + $0x1e8] sm:$0xff]  }
 0x6c5   : > { %v8567_v58 = vld [vmem:[#allocation2 + $0xa7] sm:$0xff] }
 0x6cb   : > { %17265 = vmatmul.mubr.msk.bf16.gmra.mrb[156].mxu1 %vm2652_vm1, %v7443_v4  ;;  %v8175_v4 = vld [vmem:[#allocation2 + $0x56] sm:$0xff] }
 0x6cc   : > { %17276 = vmatprep.mubr.msk.bf16.mxu1 %vm2652_vm1, %v7814_v17  ;;  %v8203_v17 = vpack.c.bf16 %v8175_v4, %v8174_v3  ;;  %v8570_v4 = vld [vmem:[#allocation2 + $0xcf] sm:$0xff] }
 0x6d3   : > { %17277 = vmatmul.mubr.msk.bf16.vlgmr.msra.gmra.mrb[128].mxu1 %vm2652_vm1, %v7815_v12  ;;  %v8178_v12 = vld [vmem:[#allocation2 + $0x7e] sm:$0xff] }
 0x6d4   : > { %17280 = vmatprep.mubr.msk.bf16.mxu1 %vm2652_vm1, %v7816_v28  ;;  %17309 = vmatpush3.bf16.msra.mxu1 %v18476_v39  ;;  %v7822_v39 = vpack.c.bf16 %v7799_v22, %v7798_v35  ;;  %v8205_v28 = vpack.c.bf16 %v8179_v44, %v8178_v12  ;;  %v8574_v12 = vld [vmem:[#allocation2 + $0xff] sm:$0xff] }
 0x6d5   : > { %17310 = vmatprep.subr.bf16.mxu1 %v18477_v57 }
 0x6d8   : > { %17311 = vmatpush3.bf16.msra.mxu1 %v18477_v57  ;;  %v8181_v57 = vld [vmem:[#allocation2 + $0xa6] sm:$0xff] }
 0x6d9   : > { %17312 = vmatprep.subr.bf16.mxu1 %v18478_v50 }
 0x6db   : > { %17281 = vmatmul.mubr.msk.bf16.gmra.mrb[132].mxu1 %vm2652_vm1, %v7817_v47  ;;  %v8185_v47 = vld [vmem:[#allocation2 + $0xd6] sm:$0xff] }
 0x6dc   : > { %17284 = vmatprep.mubr.msk.bf16.mxu1 %vm2652_vm1, %v7818_v27  ;;  %17313 = vmatpush3.bf16.msra.mxu1 %v18478_v50  ;;  %v8180_v50 = vld [vmem:[#allocation2 + $0x9e] sm:$0xff] }
 0x6dd   : > { %17314 = vmatprep.subr.bf16.mxu1 %v18479_v62  ;;  %v8206_v26 = vpack.c.bf16 %v8181_v57, %v8180_v50  ;;  %v8576_v57 = vld [vmem:[#allocation2 + $0x10f] sm:$0xff]  ;;  %v8579_v50 = vld [vmem:[#allocation2 + $0x137] sm:$0xff] }
 0x6de   : > { %v8598_v2 = vpack.c.bf16 %v8579_v50, %v8578_v7  ;;  %v18489_v50 = vld [vmem:[#allocation13 + $0x10] ss:$8 sps:$4 sm:$0xff]   ;;  %v18492_v7 = vld [vmem:[#allocation13 + $0x20] ss:$8 sps:$4 sm:$0xff]  }
 0x6e0   : > { %17315 = vmatpush3.bf16.msra.mxu1 %v18479_v62  ;;  %v8184_v62 = vld [vmem:[#allocation2 + $0xce] sm:$0xff] }
 0x6e1   : > { %17348 = vmatprep.subr.bf16.mxu1 %v18480_v23  ;;  %v8208_v27 = vpack.c.bf16 %v8185_v47, %v8184_v62  ;;  %v8580_v47 = vld [vmem:[#allocation2 + $0x13f] sm:$0xff]  ;;  %v8583_v62 = vld [vmem:[#allocation2 + $0x167] sm:$0xff] }
 0x6e3   : > { %17285 = vmatmul.mubr.msk.bf16.gmra.mrb[136].mxu1 %vm2652_vm1, %v7819_v0  ;;  %v8188_v0 = vld [vmem:[#allocation2 + $0xfe] sm:$0xff] }
 0x6e4   : > { %17288 = vmatprep.mubr.msk.bf16.mxu1 %vm2652_vm1, %v7820_v46  ;;  %v8210_v38 = vpack.c.bf16 %v8189_v37, %v8188_v0  ;;  %v8190_v46 = vld [vmem:[#allocation2 + $0x10e] sm:$0xff] }
 0x6e5   : > { %v8211_v22 = vpack.c.bf16 %v8191_v43, %v8190_v46  ;;  %v8584_v37 = vld [vmem:[#allocation2 + $0x16f] sm:$0xff] }
 0x6eb   : > { %17289 = vmatmul.mubr.msk.bf16.gmra.mrb[140].mxu1 %vm2652_vm1, %v7821_v21  ;;  %v8192_v21 = vld [vmem:[#allocation2 + $0x12e] sm:$0xff] }
 0x6ec   : > { %17292 = vmatprep.mubr.msk.bf16.mxu1 %vm2652_vm1, %v7822_v39  ;;  %v8212_v35 = vpack.c.bf16 %v8193_v9, %v8192_v21  ;;  %v8194_v39 = vld [vmem:[#allocation2 + $0x13e] sm:$0xff] }
 0x6ed   : > { %v8213_v55 = vpack.c.bf16 %v8195_v34, %v8194_v39 }
 0x6f3   : > { %17293 = vmatmul.mubr.msk.bf16.gmra.mrb[144].mxu1 %vm2652_vm1, %v7823_v19  ;;  %v8196_v19 = vld [vmem:[#allocation2 + $0x15e] sm:$0xff] }
 0x6f4   : > { %17296 = vmatprep.mubr.msk.bf16.mxu1 %vm2652_vm1, %v7824_v1  ;;  %v8214_v32 = vpack.c.bf16 %v8197_v25, %v8196_v19  ;;  %v8198_v1 = vld [vmem:[#allocation2 + $0x16e] sm:$0xff] }
 0x6f5   : > { %v8215_v41 = vpack.c.bf16 %v8199_v29, %v8198_v1 }
 0x6fb   : > { %17297 = vmatmul.mubr.msk.bf16.gmra.mrb[148].mxu1 %vm2652_vm1, %v7825_v45  ;;  %v8554_v45 = vld [vmem:[#allocation2 + $0xf] sm:$0xff] }
 0x6fc   : > { %17300 = vmatprep.mubr.msk.bf16.mxu1 %vm2652_vm1, %v7826_v49  ;;  %v8586_v51 = vpack.c.bf16 %v8555_v36, %v8554_v45  ;;  %v8556_v49 = vld [vmem:[#allocation2 + $0x1f] sm:$0xff] }
 0x6fd   : > { %v8587_v63 = vpack.c.bf16 %v8557_v54, %v8556_v49 }
 0x703   : > { %17301 = vmatmul.mubr.msk.bf16.gmra.mrb[152].mxu1 %vm2652_vm1, %v7827_v52  ;;  %v8558_v52 = vld [vmem:[#allocation2 + $0x3f] sm:$0xff] }
 0x704   : > { %17304 = vmatprep.mubr.msk.bf16.mxu1 %vm2652_vm1, %v7828_v59  ;;  %v8588_v15 = vpack.c.bf16 %v8559_v14, %v8558_v52  ;;  %v8560_v59 = vld [vmem:[#allocation2 + $0x4f] sm:$0xff] }
 0x705   : > { %v8589_v6 = vpack.c.bf16 %v8561_v10, %v8560_v59 }
 0x70b   : > { %17305 = vmatmul.mubr.msk.bf16.gmra.mrb[156].mxu1 %vm2652_vm1, %v7829_v20  ;;  %v8562_v20 = vld [vmem:[#allocation2 + $0x6f] sm:$0xff] }
 0x70c   : > { %17316 = vmatprep.mubr.msk.bf16.mxu1 %vm2652_vm1, %v8200_v5  ;;  %v8590_v13 = vpack.c.bf16 %v8563_v18, %v8562_v20  ;;  %v8564_v5 = vld [vmem:[#allocation2 + $0x7f] sm:$0xff] }
 0x70d   : > { %v8591_v16 = vpack.c.bf16 %v8565_v42, %v8564_v5 }
 0x713   : > { %17317 = vmatmul.mubr.msk.bf16.vlgmr.msra.gmra.mrb[128].mxu1 %vm2652_vm1, %v8201_v31  ;;  %v8566_v31 = vld [vmem:[#allocation2 + $0x9f] sm:$0xff] }
 0x714   : > { %17320 = vmatprep.mubr.msk.bf16.mxu1 %vm2652_vm1, %v8202_v24  ;;  %17349 = vmatpush3.bf16.msra.mxu1 %v18480_v23  ;;  %v8186_v23 = vld [vmem:[#allocation2 + $0xde] sm:$0xff]  ;;  %v8592_v48 = vpack.c.bf16 %v8567_v58, %v8566_v31 }
 0x715   : > { %17350 = vmatprep.subr.bf16.mxu1 %v18481_v53  ;;  %v8209_v40 = vpack.c.bf16 %v8187_v56, %v8186_v23  ;;  %v8569_v24 = vld [vmem:[#allocation2 + $0xb7] sm:$0xff]  ;;  %v8582_v23 = vld [vmem:[#allocation2 + $0x15f] sm:$0xff] }
 0x716   : > { %v8600_v56 = vpack.c.bf16 %v8583_v62, %v8582_v23  ;;  %v18498_v62 = vld [vmem:[#allocation13 + $0x40] ss:$8 sps:$4 sm:$0xff]   ;;  %v18501_v23 = vld [vmem:[#allocation13 + $0x50] ss:$8 sps:$4 sm:$0xff]  }
 0x718   : > { %17351 = vmatpush3.bf16.msra.mxu1 %v18481_v53  ;;  %v8568_v53 = vld [vmem:[#allocation2 + $0xaf] sm:$0xff] }
 0x719   : > { %17352 = vmatprep.subr.bf16.mxu1 %v18482_v8  ;;  %v8593_v3 = vpack.c.bf16 %v8569_v24, %v8568_v53 }
 0x71b   : > { %17321 = vmatmul.mubr.msk.bf16.gmra.mrb[132].mxu1 %vm2652_vm1, %v8203_v17  ;;  %v8572_v17 = vld [vmem:[#allocation2 + $0xdf] sm:$0xff] }
 0x71c   : > { %17324 = vmatprep.mubr.msk.bf16.mxu1 %vm2652_vm1, %v8204_v11  ;;  %17353 = vmatpush3.bf16.msra.mxu1 %v18482_v8  ;;  %v8571_v8 = vld [vmem:[#allocation2 + $0xd7] sm:$0xff]  ;;  %v8595_v11 = vpack.c.bf16 %v8573_v60, %v8572_v17 }
 0x71d   : > { %17354 = vmatprep.subr.bf16.mxu1 %v18483_v61  ;;  %v8594_v30 = vpack.c.bf16 %v8571_v8, %v8570_v4 }
 0x720   : > { %17355 = vmatpush3.bf16.msra.mxu1 %v18483_v61  ;;  %v8575_v61 = vld [vmem:[#allocation2 + $0x107] sm:$0xff] }
 0x721   : > { %v8596_v44 = vpack.c.bf16 %v8575_v61, %v8574_v12 }
 0x723   : > { %17325 = vmatmul.mubr.msk.bf16.gmra.mrb[136].mxu1 %vm2652_vm1, %v8205_v28  ;;  %v8577_v28 = vld [vmem:[#allocation2 + $0x117] sm:$0xff] }
 0x724   : > { %17328 = vmatprep.mubr.msk.bf16.mxu1 %vm2652_vm1, %v8206_v26  ;;  %v8597_v26 = vpack.c.bf16 %v8577_v28, %v8576_v57  ;;  %v18484_v57 = vld [vmem:[#allocation13] ss:$8 sps:$4 sm:$0xff]   ;;  %v18487_v28 = vld [vmem:[#allocation13 + $0x14] ss:$8 sps:$4 sm:$0xff]  }
 0x72b   : > { %17329 = vmatmul.mubr.msk.bf16.gmra.mrb[140].mxu1 %vm2652_vm1, %v8207_v33  ;;  %v8581_v33 = vld [vmem:[#allocation2 + $0x147] sm:$0xff] }
 0x72c   : > { %17332 = vmatprep.mubr.msk.bf16.mxu1 %vm2652_vm1, %v8208_v27  ;;  %v8599_v27 = vpack.c.bf16 %v8581_v33, %v8580_v47  ;;  %v18495_v47 = vld [vmem:[#allocation13 + $0x30] ss:$8 sps:$4 sm:$0xff]   ;;  %v18496_v33 = vld [vmem:[#allocation13 + $0x44] ss:$8 sps:$4 sm:$0xff]  }
 0x733   : > { %17333 = vmatmul.mubr.msk.bf16.gmra.mrb[144].mxu1 %vm2652_vm1, %v8209_v40  ;;  %v8585_v40 = vld [vmem:[#allocation2 + $0x177] sm:$0xff] }
 0x734   : > { %17336 = vmatprep.mubr.msk.bf16.mxu1 %vm2652_vm1, %v8210_v38  ;;  %v8601_v0 = vpack.c.bf16 %v8585_v40, %v8584_v37  ;;  %v18486_v38 = vld [vmem:[#allocation13 + $0x4] ss:$8 sps:$4 sm:$0xff]   ;;  %v18504_v37 = vld [vmem:[#allocation13 + $0x60] ss:$8 sps:$4 sm:$0xff]   ;;  %v18505_v40 = vld [vmem:[#allocation13 + $0x74] ss:$8 sps:$4 sm:$0xff]  }
 0x735   : > { %9116 = vmatprep.mubr.bf16.mxu0 %v18486_v38  ;;  %v18510_v38 = vld [vmem:[#allocation14 + $0x4] ss:$8 sps:$4 sm:$0xff]  }
 0x73b   : > { %17337 = vmatmul.mubr.msk.bf16.gmra.mrb[148].mxu1 %vm2652_vm1, %v8211_v22 }
 0x73c   : > { %17340 = vmatprep.mubr.msk.bf16.mxu1 %vm2652_vm1, %v8212_v35 }
 0x743   : > { %17341 = vmatmul.mubr.msk.bf16.gmra.mrb[152].mxu1 %vm2652_vm1, %v8213_v55 }
 0x744   : > { %17344 = vmatprep.mubr.msk.bf16.mxu1 %vm2652_vm1, %v8214_v32 }
 0x74b   : > { %17345 = vmatmul.mubr.msk.bf16.gmra.mrb[156].mxu1 %vm2652_vm1, %v8215_v41 }
 0x74c   : > { %17356 = vmatprep.mubr.msk.bf16.mxu1 %vm2652_vm1, %v8586_v51 }
 0x753   : > { %17357 = vmatmul.mubr.msk.bf16.vlgmr.msra.gmra.mrb[128].mxu1 %vm2652_vm1, %v8587_v63 }
 0x754   : > { %17360 = vmatprep.mubr.msk.bf16.mxu1 %vm2652_vm1, %v8588_v15 }
 0x75b   : > { %17361 = vmatmul.mubr.msk.bf16.gmra.mrb[132].mxu1 %vm2652_vm1, %v8589_v6 }
 0x75c   : > { %17364 = vmatprep.mubr.msk.bf16.mxu1 %vm2652_vm1, %v8590_v13 }
 0x763   : > { %17365 = vmatmul.mubr.msk.bf16.gmra.mrb[136].mxu1 %vm2652_vm1, %v8591_v16 }
 0x764   : > { %17368 = vmatprep.mubr.msk.bf16.mxu1 %vm2652_vm1, %v8592_v48 }
 0x76b   : > { %17369 = vmatmul.mubr.msk.bf16.gmra.mrb[140].mxu1 %vm2652_vm1, %v8593_v3 }
 0x76c   : > { %17372 = vmatprep.mubr.msk.bf16.mxu1 %vm2652_vm1, %v8594_v30 }
 0x773   : > { %17373 = vmatmul.mubr.msk.bf16.gmra.mrb[144].mxu1 %vm2652_vm1, %v8595_v11 }
 0x774   : > { %17376 = vmatprep.mubr.msk.bf16.mxu1 %vm2652_vm1, %v8596_v44 }
 0x77b   : > { %17377 = vmatmul.mubr.msk.bf16.gmra.mrb[148].mxu1 %vm2652_vm1, %v8597_v26  ;;  %v18490_v26 = vld [vmem:[#allocation13 + $0x24] ss:$8 sps:$4 sm:$0xff]  }
 0x77c   : > { %17380 = vmatprep.mubr.msk.bf16.mxu1 %vm2652_vm1, %v8598_v2  ;;  %v18493_v2 = vld [vmem:[#allocation13 + $0x34] ss:$8 sps:$4 sm:$0xff]  }
 0x783   : > { %17381 = vmatmul.mubr.msk.bf16.gmra.mrb[152].mxu1 %vm2652_vm1, %v8599_v27  ;;  %v18499_v27 = vld [vmem:[#allocation13 + $0x54] ss:$8 sps:$4 sm:$0xff]  }
 0x784   : > { %17384 = vmatprep.mubr.msk.bf16.mxu1 %vm2652_vm1, %v8600_v56  ;;  %v18502_v56 = vld [vmem:[#allocation13 + $0x64] ss:$8 sps:$4 sm:$0xff]  }
 0x78b   : > { %17385 = vmatmul.mubr.msk.bf16.gmra.mrb[156].mxu1 %vm2652_vm1, %v8601_v0  ;;  %v18507_v0 = vld [vmem:[#allocation13 + $0x70] ss:$8 sps:$4 sm:$0xff]  }
 0x826   : > { %v17358_v46 = vpop.f32.mrb[128].mxu1 }
 0x827   : > { %v8749_v43 = vpop.f32.mrb[129].mxu1 }
 0x828   : > { %v17359_v9 = vpop.f32.mrb[130].mxu1 }
 0x829   : > { %v20354_v22 = vpack.c.bf16 %v17359_v9, %v17358_v46  ;;  %v8752_v21 = vpop.f32.mrb[131].mxu1  ;;  %v18508_v46 = vld [vmem:[#allocation14] ss:$8 sps:$4 sm:$0xff]   ;;  %v18513_v9 = vld [vmem:[#allocation14 + $0x10] ss:$8 sps:$4 sm:$0xff]  }
 0x82a   : > { %v8972_v35 = vpack.c.bf16 %v8752_v21, %v8749_v43  ;;  %v18511_v43 = vld [vmem:[#allocation14 + $0x14] ss:$8 sps:$4 sm:$0xff]   ;;  %v18516_v21 = vld [vmem:[#allocation14 + $0x20] ss:$8 sps:$4 sm:$0xff]  }
 0x82e   : > { %v17362_v39 = vpop.f32.mrb[132].mxu1 }
 0x82f   : > { %v8765_v34 = vpop.f32.mrb[133].mxu1 }
 0x830   : > { %v17363_v25 = vpop.f32.mrb[134].mxu1 }
 0x831   : > { %v20356_v55 = vpack.c.bf16 %v17363_v25, %v17362_v39  ;;  %v8768_v19 = vpop.f32.mrb[135].mxu1  ;;  %v18519_v39 = vld [vmem:[#allocation14 + $0x30] ss:$8 sps:$4 sm:$0xff]   ;;  %v18522_v25 = vld [vmem:[#allocation14 + $0x40] ss:$8 sps:$4 sm:$0xff]  }
 0x832   : > { %v20358_v32 = vpack.c.bf16 %v8768_v19, %v8765_v34  ;;  %v18520_v34 = vld [vmem:[#allocation14 + $0x44] ss:$8 sps:$4 sm:$0xff]   ;;  %v18525_v19 = vld [vmem:[#allocation14 + $0x50] ss:$8 sps:$4 sm:$0xff]  }
 0x836   : > { %v17366_v1 = vpop.f32.mrb[136].mxu1 }
 0x837   : > { %v8781_v29 = vpop.f32.mrb[137].mxu1 }
 0x838   : > { %v17367_v36 = vpop.f32.mrb[138].mxu1 }
 0x839   : > { %v20360_v41 = vpack.c.bf16 %v17367_v36, %v17366_v1  ;;  %v8784_v45 = vpop.f32.mrb[139].mxu1  ;;  %v18528_v1 = vld [vmem:[#allocation14 + $0x60] ss:$8 sps:$4 sm:$0xff]   ;;  %v18531_v36 = vld [vmem:[#allocation14 + $0x70] ss:$8 sps:$4 sm:$0xff]  }
 0x83a   : > { %v20362_v51 = vpack.c.bf16 %v8784_v45, %v8781_v29  ;;  %v18529_v29 = vld [vmem:[#allocation14 + $0x74] ss:$8 sps:$4 sm:$0xff]   ;;  %v18534_v45 = vld [vmem:[%s21821_s3 + $0x4] ss:$8 sps:$4 sm:$0xff]  }
 0x83e   : > { %v17370_v49 = vpop.f32.mrb[140].mxu1 }
 0x83f   : > { %v8797_v54 = vpop.f32.mrb[141].mxu1 }
 0x840   : > { %v17371_v14 = vpop.f32.mrb[142].mxu1 }
 0x841   : > { %v20364_v63 = vpack.c.bf16 %v17371_v14, %v17370_v49  ;;  %v8800_v52 = vpop.f32.mrb[143].mxu1  ;;  %v18537_v49 = vld [vmem:[%s21821_s3 + $0x14] ss:$8 sps:$4 sm:$0xff]   ;;  %v18540_v14 = vld [vmem:[%s21821_s3 + $0x24] ss:$8 sps:$4 sm:$0xff]  }
 0x842   : > { %v20366_v15 = vpack.c.bf16 %v8800_v52, %v8797_v54  ;;  %v18538_v54 = vld [vmem:[%s21821_s3 + $0x20] ss:$8 sps:$4 sm:$0xff]   ;;  %v18543_v52 = vld [vmem:[%s21821_s3 + $0x34] ss:$8 sps:$4 sm:$0xff]  }
 0x846   : > { %v17374_v59 = vpop.f32.mrb[144].mxu1 }
 0x847   : > { %v8813_v10 = vpop.f32.mrb[145].mxu1 }
 0x848   : > { %v17375_v18 = vpop.f32.mrb[146].mxu1 }
 0x849   : > { %v8981_v6 = vpack.c.bf16 %v17375_v18, %v17374_v59  ;;  %v8816_v20 = vpop.f32.mrb[147].mxu1  ;;  %v18546_v59 = vld [vmem:[%s21821_s3 + $0x44] ss:$8 sps:$4 sm:$0xff]   ;;  %v18547_v18 = vld [vmem:[%s21821_s3 + $0x50] ss:$8 sps:$4 sm:$0xff]  }
 0x84a   : > { %v8980_v13 = vpack.c.bf16 %v8816_v20, %v8813_v10  ;;  %v18549_v10 = vld [vmem:[%s21821_s3 + $0x54] ss:$8 sps:$4 sm:$0xff]   ;;  %v18552_v20 = vld [vmem:[%s21821_s3 + $0x64] ss:$8 sps:$4 sm:$0xff]  }
 0x84c   : > { %16376 = vmatprep.subr.bf16.mxu0 %v8980_v13 }
 0x84d   : > { %16377 = vmatpush3.bf16.msra.mxu0 %v8972_v35 }
 0x84e   : > { %v17378_v5 = vpop.f32.mrb[148].mxu1  ;;  %16378 = vmatprep.subr.bf16.mxu0 %v8981_v6 }
 0x84f   : > { %v8829_v42 = vpop.f32.mrb[149].mxu1 }
 0x850   : > { %v17379_v58 = vpop.f32.mrb[150].mxu1 }
 0x851   : > { %v8983_v16 = vpack.c.bf16 %v17379_v58, %v17378_v5  ;;  %v8832_v31 = vpop.f32.mrb[151].mxu1  ;;  %16379 = vmatpush3.bf16.msra.mxu0 %v20354_v22  ;;  %v18553_v5 = vld [vmem:[%s21821_s3 + $0x70] ss:$8 sps:$4 sm:$0xff]   ;;  %v18558_v58 = vld [vmem:[%s21821_s3 + $0x84] ss:$8 sps:$4 sm:$0xff]  }
 0x852   : > { %v8982_v48 = vpack.c.bf16 %v8832_v31, %v8829_v42  ;;  %v19073_v42 = vmov 0  }
 0x854   : > { %16380 = vmatprep.subr.bf16.mxu0 %v8982_v48 }
 0x855   : > { %16381 = vmatpush3.bf16.msra.mxu0 %v20358_v32 }
 0x856   : > { %v17382_v53 = vpop.f32.mrb[152].mxu1  ;;  %16382 = vmatprep.subr.bf16.mxu0 %v8983_v16 }
 0x857   : > { %v8845_v24 = vpop.f32.mrb[153].mxu1 }
 0x858   : > { %v17383_v8 = vpop.f32.mrb[154].mxu1 }
 0x859   : > { %v8985_v3 = vpack.c.bf16 %v17383_v8, %v17382_v53  ;;  %v8848_v4 = vpop.f32.mrb[155].mxu1  ;;  %16383 = vmatpush3.bf16.msra.mxu0 %v20356_v55 }
 0x85a   : > { %v8984_v30 = vpack.c.bf16 %v8848_v4, %v8845_v24 }
 0x85c   : > { %16384 = vmatprep.subr.bf16.mxu0 %v8984_v30 }
 0x85d   : > { %16385 = vmatpush3.bf16.msra.mxu0 %v20362_v51 }
 0x85e   : > { %v17386_v17 = vpop.f32.mrb[156].mxu1  ;;  %16386 = vmatprep.subr.bf16.mxu0 %v8985_v3 }
 0x85f   : > { %v8861_v60 = vpop.f32.mrb[157].mxu1 }
 0x860   : > { %v17387_v61 = vpop.f32.mrb[158].mxu1 }
 0x861   : > { %v8987_v11 = vpack.c.bf16 %v17387_v61, %v17386_v17  ;;  %v8864_v12 = vpop.f32.mrb[159].mxu1  ;;  %16387 = vmatpush3.bf16.msra.mxu0 %v20360_v41 }
 0x862   : > { %v8986_v44 = vpack.c.bf16 %v8864_v12, %v8861_v60 }
 0x864   : > { %16388 = vmatprep.subr.bf16.mxu0 %v8986_v44 }
 0x865   : > { %16389 = vmatpush3.bf16.msra.mxu0 %v20366_v15 }
 0x866   : > { %16390 = vmatprep.subr.bf16.mxu0 %v8987_v11 }
 0x869   : > { %16391 = vmatpush3.bf16.msra.mxu0 %v20364_v63 }
 0x86a   : > { %16440 = vmatprep.subr.bf16.mxu0 %v8980_v13  ;;  %v18555_v13 = vld [vmem:[%s21821_s3 + $0x74] ss:$8 sps:$4 sm:$0xff]  }
 0x86c   : > { %9117 = vmatmul.mubr.bf16.vlgmr.msra.gmra.mrb[192].mxu0 %v18484_v57 }
 0x86d   : > { %16441 = vmatpush3.bf16.msra.mxu0 %v8972_v35  ;;  %9124 = vmatprep.mubr.bf16.mxu0 %v18487_v28  ;;  %v18517_v35 = vld [vmem:[#allocation14 + $0x34] ss:$8 sps:$4 sm:$0xff]  }
 0x86e   : > { %16442 = vmatprep.subr.bf16.mxu0 %v8981_v6  ;;  %v18550_v6 = vld [vmem:[%s21821_s3 + $0x60] ss:$8 sps:$4 sm:$0xff]  }
 0x871   : > { %16443 = vmatpush3.bf16.msra.mxu0 %v20354_v22  ;;  %v18514_v22 = vld [vmem:[#allocation14 + $0x24] ss:$8 sps:$4 sm:$0xff]  }
 0x872   : > { %16444 = vmatprep.subr.bf16.mxu0 %v8982_v48 }
 0x874   : > { %9125 = vmatmul.mubr.bf16.gmra.mrb[196].mxu0 %v18489_v50 }
 0x875   : > { %16445 = vmatpush3.bf16.msra.mxu0 %v20358_v32  ;;  %9132 = vmatprep.mubr.bf16.mxu0 %v18490_v26  ;;  %v18526_v32 = vld [vmem:[#allocation14 + $0x64] ss:$8 sps:$4 sm:$0xff]  }
 0x876   : > { %16446 = vmatprep.subr.bf16.mxu0 %v8983_v16 }
 0x879   : > { %16447 = vmatpush3.bf16.msra.mxu0 %v20356_v55  ;;  %v18523_v55 = vld [vmem:[#allocation14 + $0x54] ss:$8 sps:$4 sm:$0xff]  }
 0x87a   : > { %16448 = vmatprep.subr.bf16.mxu0 %v8984_v30 }
 0x87c   : > { %9133 = vmatmul.mubr.bf16.gmra.mrb[200].mxu0 %v18492_v7 }
 0x87d   : > { %16449 = vmatpush3.bf16.msra.mxu0 %v20362_v51  ;;  %9140 = vmatprep.mubr.bf16.mxu0 %v18493_v2  ;;  %v18535_v51 = vld [vmem:[%s21821_s3 + $0x10] ss:$8 sps:$4 sm:$0xff]  }
 0x87e   : > { %16450 = vmatprep.subr.bf16.mxu0 %v8985_v3 }
 0x881   : > { %16451 = vmatpush3.bf16.msra.mxu0 %v20360_v41  ;;  %v18532_v41 = vld [vmem:[%s21821_s3] ss:$8 sps:$4 sm:$0xff]  }
 0x882   : > { %16452 = vmatprep.subr.bf16.mxu0 %v8986_v44 }
 0x884   : > { %9141 = vmatmul.mubr.bf16.gmra.mrb[204].mxu0 %v18495_v47 }
 0x885   : > { %16453 = vmatpush3.bf16.msra.mxu0 %v20366_v15  ;;  %9148 = vmatprep.mubr.bf16.mxu0 %v18496_v33  ;;  %v18544_v15 = vld [vmem:[%s21821_s3 + $0x40] ss:$8 sps:$4 sm:$0xff]  }
 0x886   : > { %16454 = vmatprep.subr.bf16.mxu0 %v8987_v11 }
 0x889   : > { %16455 = vmatpush3.bf16.msra.mxu0 %v20364_v63  ;;  %v18541_v63 = vld [vmem:[%s21821_s3 + $0x30] ss:$8 sps:$4 sm:$0xff]  }
 0x88a   : > { %9630 = vmatprep.subr.bf16.mxu0 %v18534_v45 }
 0x88c   : > { %9149 = vmatmul.mubr.bf16.gmra.mrb[208].mxu0 %v18498_v62 }
 0x88d   : > { %9156 = vmatprep.mubr.bf16.mxu0 %v18499_v27 }
 0x894   : > { %9157 = vmatmul.mubr.bf16.gmra.mrb[212].mxu0 %v18501_v23 }
 0x895   : > { %9164 = vmatprep.mubr.bf16.mxu0 %v18502_v56 }
 0x89c   : > { %9165 = vmatmul.mubr.bf16.gmra.mrb[216].mxu0 %v18504_v37 }
 0x89d   : > { %9172 = vmatprep.mubr.bf16.mxu0 %v18505_v40 }
 0x8a4   : > { %9173 = vmatmul.mubr.bf16.gmra.mrb[220].mxu0 %v18507_v0 }
 0x8a5   : > { %9309 = vmatprep.mubr.bf16.mxu0 %v18510_v38 }
 0x8ac   : > { %9310 = vmatmul.mubr.bf16.vlgmr.msra.gmra.mrb[224].mxu0 %v18508_v46 }
 0x8ad   : > { %9317 = vmatprep.mubr.bf16.mxu0 %v18511_v43  ;;  %9631 = vmatpush1.bf16.msra.mxu0 %v18532_v41 }
 0x8ae   : > { %9632 = vmatprep.subr.bf16.mxu0 %v18537_v49 }
 0x8b1   : > { %9633 = vmatpush1.bf16.msra.mxu0 %v18535_v51 }
 0x8b2   : > { %9634 = vmatprep.subr.bf16.mxu0 %v18540_v14 }
 0x8b4   : > { %9318 = vmatmul.mubr.bf16.gmra.mrb[228].mxu0 %v18513_v9 }
 0x8b5   : > { %9325 = vmatprep.mubr.bf16.mxu0 %v18514_v22  ;;  %9635 = vmatpush1.bf16.msra.mxu0 %v18538_v54 }
 0x8b6   : > { %9636 = vmatprep.subr.bf16.mxu0 %v18543_v52 }
 0x8b9   : > { %9637 = vmatpush1.bf16.msra.mxu0 %v18541_v63 }
 0x8ba   : > { %9638 = vmatprep.subr.bf16.mxu0 %v18546_v59 }
 0x8bc   : > { %9326 = vmatmul.mubr.bf16.gmra.mrb[232].mxu0 %v18516_v21 }
 0x8bd   : > { %9333 = vmatprep.mubr.bf16.mxu0 %v18517_v35  ;;  %9639 = vmatpush1.bf16.msra.mxu0 %v18544_v15 }
 0x8be   : > { %9640 = vmatprep.subr.bf16.mxu0 %v18549_v10 }
 0x8c1   : > { %9641 = vmatpush1.bf16.msra.mxu0 %v18547_v18 }
 0x8c2   : > { %9642 = vmatprep.subr.bf16.mxu0 %v18552_v20 }
 0x8c4   : > { %9334 = vmatmul.mubr.bf16.gmra.mrb[236].mxu0 %v18519_v39 }
 0x8c5   : > { %9341 = vmatprep.mubr.bf16.mxu0 %v18520_v34  ;;  %9643 = vmatpush1.bf16.msra.mxu0 %v18550_v6 }
 0x8c6   : > { %9644 = vmatprep.subr.bf16.mxu0 %v18555_v13 }
 0x8c9   : > { %9645 = vmatpush1.bf16.msra.mxu0 %v18553_v5 }
 0x8ca   : > { %9960 = vmatprep.subr.bf16.mxu0 %v18558_v58 }
 0x8cc   : > { %9342 = vmatmul.mubr.bf16.gmra.mrb[240].mxu0 %v18522_v25 }
 0x8cd   : > { %9349 = vmatprep.mubr.bf16.mxu0 %v18523_v55 }
 0x8d4   : > { %9350 = vmatmul.mubr.bf16.gmra.mrb[244].mxu0 %v18525_v19 }
 0x8d5   : > { %9357 = vmatprep.mubr.bf16.mxu0 %v18526_v32 }
 0x8dc   : > { %9358 = vmatmul.mubr.bf16.gmra.mrb[248].mxu0 %v18528_v1 }
 0x8dd   : > { %9365 = vmatprep.mubr.bf16.mxu0 %v18529_v29 }
 0x8e4   : > { %9366 = vmatmul.mubr.bf16.gmra.mrb[252].mxu0 %v18531_v36 }
 0x8e5   : > { %9662 = vmatprep.mubr.bf16.mxu0 %v19073_v42 }
 0x93f   : > { %v16392_v16 = vpop.f32.mrb[192].mxu0 }
 0x940   : > { %v16393_v31 = vpop.f32.mrb[193].mxu0 }
 0x941   : > { %v16394_v48 = vadd.f32 %v16393_v31, %v16392_v16  ;;  %v16395_v53 = vpop.f32.mrb[194].mxu0 }
 0x942   : > { %v16396_v24 = vpop.f32.mrb[195].mxu0 }
 0x943   : > { %v16397_v8 = vadd.f32 %v16396_v24, %v16395_v53 }
 0x947   : > { %v16398_v3 = vpop.f32.mrb[196].mxu0 }
 0x948   : > { %v16399_v4 = vpop.f32.mrb[197].mxu0 }
 0x949   : > { %v16400_v30 = vadd.f32 %v16399_v4, %v16398_v3  ;;  %v16401_v17 = vpop.f32.mrb[198].mxu0 }
 0x94a   : > { %v16402_v60 = vpop.f32.mrb[199].mxu0 }
 0x94b   : > { %v16403_v61 = vadd.f32 %v16402_v60, %v16401_v17  ;;  %v18556_v60 = vld [vmem:[%s21821_s3 + $0x80] ss:$8 sps:$4 sm:$0xff]  }
 0x94f   : > { %v16404_v11 = vpop.f32.mrb[200].mxu0 }
 0x950   : > { %v16405_v12 = vpop.f32.mrb[201].mxu0 }
 0x951   : > { %v20434_v44 = vadd.f32 %v16405_v12, %v16404_v11  ;;  %v16407_v57 = vpop.f32.mrb[202].mxu0 }
 0x952   : > { %v16408_v28 = vpop.f32.mrb[203].mxu0 }
 0x953   : > { %v20436_v50 = vadd.f32 %v16408_v28, %v16407_v57 }
 0x957   : > { %v16410_v26 = vpop.f32.mrb[204].mxu0 }
 0x958   : > { %v16411_v7 = vpop.f32.mrb[205].mxu0 }
 0x959   : > { %v20438_v2 = vadd.f32 %v16411_v7, %v16410_v26  ;;  %v16413_v47 = vpop.f32.mrb[206].mxu0  ;;  %v18559_v7 = vld [vmem:[%s21821_s3 + $0x90] ss:$8 sps:$4 sm:$0xff]  }
 0x95a   : > { %v16414_v33 = vpop.f32.mrb[207].mxu0 }
 0x95b   : > { %v20440_v62 = vadd.f32 %v16414_v33, %v16413_v47 }
 0x95f   : > { %v16416_v27 = vpop.f32.mrb[208].mxu0 }
 0x960   : > { %v16417_v23 = vpop.f32.mrb[209].mxu0 }
 0x961   : > { %v20442_v56 = vadd.f32 %v16417_v23, %v16416_v27  ;;  %v16419_v37 = vpop.f32.mrb[210].mxu0  ;;  %v18564_v27 = vld [vmem:[%s21821_s3 + $0xa4] ss:$8 sps:$4 sm:$0xff]  }
 0x962   : > { %v16420_v40 = vpop.f32.mrb[211].mxu0 }
 0x963   : > { %v20444_v0 = vadd.f32 %v16420_v40, %v16419_v37 }
 0x967   : > { %v16422_v38 = vpop.f32.mrb[212].mxu0 }
 0x968   : > { %v16423_v46 = vpop.f32.mrb[213].mxu0 }
 0x969   : > { %v20446_v43 = vadd.f32 %v16423_v46, %v16422_v38  ;;  %v16425_v9 = vpop.f32.mrb[214].mxu0  ;;  %v18562_v46 = vld [vmem:[%s21821_s3 + $0xa0] ss:$8 sps:$4 sm:$0xff]  }
 0x96a   : > { %v16426_v22 = vpop.f32.mrb[215].mxu0 }
 0x96b   : > { %v20448_v21 = vadd.f32 %v16426_v22, %v16425_v9 }
 0x96f   : > { %v16428_v35 = vpop.f32.mrb[216].mxu0 }
 0x970   : > { %v16429_v39 = vpop.f32.mrb[217].mxu0 }
 0x971   : > { %v20450_v34 = vadd.f32 %v16429_v39, %v16428_v35  ;;  %v16431_v25 = vpop.f32.mrb[218].mxu0  ;;  %v18567_v35 = vld [vmem:[%s21821_s3 + $0xb4] ss:$8 sps:$4 sm:$0xff]  }
 0x972   : > { %v16432_v55 = vpop.f32.mrb[219].mxu0 }
 0x973   : > { %v20452_v19 = vadd.f32 %v16432_v55, %v16431_v25 }
 0x977   : > { %v16434_v32 = vpop.f32.mrb[220].mxu0 }
 0x978   : > { %v16435_v1 = vpop.f32.mrb[221].mxu0 }
 0x979   : > { %v20454_v29 = vadd.f32 %v16435_v1, %v16434_v32  ;;  %v16437_v36 = vpop.f32.mrb[222].mxu0  ;;  %v18565_v32 = vld [vmem:[%s21821_s3 + $0xb0] ss:$8 sps:$4 sm:$0xff]  }
 0x97a   : > { %v16438_v41 = vpop.f32.mrb[223].mxu0 }
 0x97b   : > { %v20456_v45 = vadd.f32 %v16438_v41, %v16437_v36  ;;  %v18570_v41 = vld [vmem:[%s21821_s3 + $0xc4] ss:$8 sps:$4 sm:$0xff]  }
 0x97f   : > { %v16456_v51 = vpop.f32.mrb[224].mxu0 }
 0x980   : > { %v16457_v49 = vpop.f32.mrb[225].mxu0 }
 0x981   : > { %v16458_v54 = vadd.f32 %v16457_v49, %v16456_v51  ;;  %v16459_v14 = vpop.f32.mrb[226].mxu0 }
 0x982   : > { %v16460_v63 = vpop.f32.mrb[227].mxu0 }
 0x983   : > { %v9374_v52 = vmax.f32 %v16394_v48, %v16458_v54  ;;  %v16461_v15 = vadd.f32 %v16460_v63, %v16459_v14  ;;  %v18568_v63 = vld [vmem:[%s21821_s3 + $0xc0] ss:$8 sps:$4 sm:$0xff]  }
 0x985   : > { %v20458_v59 = vmax.f32 %v9374_v52, 0.0  ;;  %v9375_v10 = vmax.f32 %v16397_v8, %v16461_v15 }
 0x987   : > { %9430 = vst [vmem:[#allocation3 + $0x4] sm:$0xff] %v20458_v59  ;;  %v20461_v18 = vmax.f32 %v9375_v10, 0.0  ;;  %v16462_v6 = vpop.f32.mrb[228].mxu0  ;;  %v18573_v10 = vld [vmem:[%s21821_s3 + $0xd4] ss:$8 sps:$4 sm:$0xff]  }
 0x988   : > { %v16463_v20 = vpop.f32.mrb[229].mxu0 }
 0x989   : > { %9431 = vst [vmem:[#allocation3 + $0xc] sm:$0xff] %v20461_v18  ;;  %v16464_v13 = vadd.f32 %v16463_v20, %v16462_v6  ;;  %v16465_v5 = vpop.f32.mrb[230].mxu0 }
 0x98a   : > { %v16466_v58 = vpop.f32.mrb[231].mxu0 }
 0x98b   : > { %v9376_v16 = vmax.f32 %v16400_v30, %v16464_v13  ;;  %v16467_v31 = vadd.f32 %v16466_v58, %v16465_v5  ;;  %v18571_v5 = vld [vmem:[%s21821_s3 + $0xd0] ss:$8 sps:$4 sm:$0xff]  }
 0x98d   : > { %v20464_v53 = vmax.f32 %v9376_v16, 0.0  ;;  %v9377_v48 = vmax.f32 %v16403_v61, %v16467_v31  ;;  %v18561_v61 = vld [vmem:[%s21821_s3 + $0x94] ss:$8 sps:$4 sm:$0xff]   ;;  %v18576_v31 = vld [vmem:[%s21821_s3 + $0xe4] ss:$8 sps:$4 sm:$0xff]  }
 0x98e   : > { %v9478_v4 = vld [vmem:[#allocation3] sm:$0xff] }
 0x98f   : > { %9432 = vst [vmem:[#allocation3 + $0x1c] sm:$0xff] %v20464_v53  ;;  %v20467_v24 = vmax.f32 %v9377_v48, 0.0  ;;  %v16468_v8 = vpop.f32.mrb[232].mxu0 }
 0x990   : > { %v16469_v3 = vpop.f32.mrb[233].mxu0  ;;  %v9479_v17 = vld [vmem:[#allocation3 + $0x8] sm:$0xff] }
 0x991   : > { %9433 = vst [vmem:[#allocation3 + $0x24] sm:$0xff] %v20467_v24  ;;  %v16470_v11 = vadd.f32 %v16469_v3, %v16468_v8  ;;  %v16471_v30 = vpop.f32.mrb[234].mxu0  ;;  %v9494_v12 = vpack.c.bf16 %v9479_v17, %v9478_v4  ;;  %v10813_v8 = vpack.c.bf16 %v20461_v18, %v20458_v59  ;;  %v18663_v59 = vld [vmem:[%s21821_s3 + $0x2b4] ss:$8 sps:$4 sm:$0xff]   ;;  %v18661_v18 = vld [vmem:[%s21821_s3 + $0x2b0] ss:$8 sps:$4 sm:$0xff]  }
 0x992   : > { %v16472_v57 = vpop.f32.mrb[235].mxu0 }
 0x993   : > { %v9378_v28 = vmax.f32 %v20434_v44, %v16470_v11  ;;  %v16473_v26 = vadd.f32 %v16472_v57, %v16471_v30  ;;  %9663 = vmatmul.mubr.bf16.vlgmr.msra.gmra.mrb[0].mxu0 %v9494_v12  ;;  %v18579_v12 = vld [vmem:[%s21821_s3 + $0xf4] ss:$8 sps:$4 sm:$0xff]  }
 0x994   : > { %9672 = vmatprep.mubr.bf16.mxu0 %v19073_v42  ;;  %9961 = vmatpush1.bf16.msra.mxu0 %v18556_v60 }
 0x995   : > { %v20481_v47 = vmax.f32 %v9378_v28, 0.0  ;;  %v9379_v33 = vmax.f32 %v20436_v50, %v16473_v26  ;;  %9962 = vmatprep.subr.bf16.mxu0 %v18561_v61  ;;  %v18577_v26 = vld [vmem:[%s21821_s3 + $0xf0] ss:$8 sps:$4 sm:$0xff]  }
 0x996   : > { %v9480_v40 = vld [vmem:[#allocation3 + $0x18] sm:$0xff] }
 0x997   : > { %9434 = vst [vmem:[#allocation3 + $0x34] sm:$0xff] %v20481_v47  ;;  %v20488_v44 = vmax.f32 %v9379_v33, 0.0  ;;  %v16474_v23 = vpop.f32.mrb[236].mxu0 }
 0x998   : > { %v16475_v37 = vpop.f32.mrb[237].mxu0  ;;  %v9481_v38 = vld [vmem:[#allocation3 + $0x20] sm:$0xff]  ;;  %9963 = vmatpush1.bf16.msra.mxu0 %v18559_v7 }
 0x999   : > { %9435 = vst [vmem:[#allocation3 + $0x3c] sm:$0xff] %v20488_v44  ;;  %v16476_v50 = vadd.f32 %v16475_v37, %v16474_v23  ;;  %v16477_v9 = vpop.f32.mrb[238].mxu0  ;;  %v9495_v22 = vpack.c.bf16 %v9481_v38, %v9480_v40  ;;  %9964 = vmatprep.subr.bf16.mxu0 %v18564_v27  ;;  %v18582_v27 = vld [vmem:[%s21821_s3 + $0x104] ss:$8 sps:$4 sm:$0xff]   ;;  %v10814_v37 = vpack.c.bf16 %v20467_v24, %v20464_v53  ;;  %v18669_v53 = vld [vmem:[%s21821_s3 + $0x2d4] ss:$8 sps:$4 sm:$0xff]  }
 0x99a   : > { %v16478_v39 = vpop.f32.mrb[239].mxu0  ;;  %v18667_v24 = vld [vmem:[%s21821_s3 + $0x2d0] ss:$8 sps:$4 sm:$0xff]  }
 0x99b   : > { %v9380_v25 = vmax.f32 %v20438_v2, %v16476_v50  ;;  %v16479_v55 = vadd.f32 %v16478_v39, %v16477_v9  ;;  %9673 = vmatmul.mubr.bf16.gmra.mrb[4].mxu0 %v9495_v22 }
 0x99c   : > { %9682 = vmatprep.mubr.bf16.mxu0 %v19073_v42  ;;  %9965 = vmatpush1.bf16.msra.mxu0 %v18562_v46 }
 0x99d   : > { %v20502_v1 = vmax.f32 %v9380_v25, 0.0  ;;  %v9381_v36 = vmax.f32 %v20440_v62, %v16479_v55  ;;  %9966 = vmatprep.subr.bf16.mxu0 %v18567_v35 }
 0x99e   : > { %v9482_v54 = vld [vmem:[#allocation3 + $0x30] sm:$0xff] }
 0x99f   : > { %9436 = vst [vmem:[#allocation3 + $0x4c] sm:$0xff] %v20502_v1  ;;  %v20509_v2 = vmax.f32 %v9381_v36, 0.0  ;;  %v16480_v51 = vpop.f32.mrb[240].mxu0 }
 0x9a0   : > { %v16481_v49 = vpop.f32.mrb[241].mxu0  ;;  %v9483_v14 = vld [vmem:[#allocation3 + $0x38] sm:$0xff]  ;;  %9967 = vmatpush1.bf16.msra.mxu0 %v18565_v32 }
 0x9a1   : > { %9437 = vst [vmem:[#allocation3 + $0x54] sm:$0xff] %v20509_v2  ;;  %v16482_v62 = vadd.f32 %v16481_v49, %v16480_v51  ;;  %v16483_v52 = vpop.f32.mrb[242].mxu0  ;;  %v9496_v15 = vpack.c.bf16 %v9483_v14, %v9482_v54  ;;  %9968 = vmatprep.subr.bf16.mxu0 %v18570_v41  ;;  %v10815_v41 = vpack.c.bf16 %v20488_v44, %v20481_v47  ;;  %v18675_v47 = vld [vmem:[%s21821_s3 + $0x2f4] ss:$8 sps:$4 sm:$0xff]   ;;  %v18673_v44 = vld [vmem:[%s21821_s3 + $0x2f0] ss:$8 sps:$4 sm:$0xff]  }
 0x9a2   : > { %v16484_v6 = vpop.f32.mrb[243].mxu0 }
 0x9a3   : > { %v9382_v20 = vmax.f32 %v20442_v56, %v16482_v62  ;;  %v16485_v13 = vadd.f32 %v16484_v6, %v16483_v52  ;;  %9683 = vmatmul.mubr.bf16.gmra.mrb[8].mxu0 %v9496_v15 }
 0x9a4   : > { %9692 = vmatprep.mubr.bf16.mxu0 %v19073_v42  ;;  %9969 = vmatpush1.bf16.msra.mxu0 %v18568_v63 }
 0x9a5   : > { %v20523_v58 = vmax.f32 %v9382_v20, 0.0  ;;  %v9383_v16 = vmax.f32 %v20444_v0, %v16485_v13  ;;  %9970 = vmatprep.subr.bf16.mxu0 %v18573_v10  ;;  %v18574_v0 = vld [vmem:[%s21821_s3 + $0xe0] ss:$8 sps:$4 sm:$0xff]   ;;  %v10816_v20 = vpack.c.bf16 %v20509_v2, %v20502_v1  ;;  %v11128_v2 = vld [vmem:[#allocation3 + $0xd] sm:$0xff] }
 0x9a6   : > { %v9484_v4 = vld [vmem:[#allocation3 + $0x48] sm:$0xff] }
 0x9a7   : > { %9438 = vst [vmem:[#allocation3 + $0x64] sm:$0xff] %v20523_v58  ;;  %v20530_v56 = vmax.f32 %v9383_v16, 0.0  ;;  %v16486_v48 = vpop.f32.mrb[244].mxu0  ;;  %v11127_v1 = vld [vmem:[#allocation3 + $0x5] sm:$0xff] }
 0x9a8   : > { %v16487_v3 = vpop.f32.mrb[245].mxu0  ;;  %v9485_v17 = vld [vmem:[#allocation3 + $0x50] sm:$0xff]  ;;  %9971 = vmatpush1.bf16.msra.mxu0 %v18571_v5 }
 0x9a9   : > { %9439 = vst [vmem:[#allocation3 + $0x6c] sm:$0xff] %v20530_v56  ;;  %v16488_v60 = vadd.f32 %v16487_v3, %v16486_v48  ;;  %v16489_v11 = vpop.f32.mrb[246].mxu0  ;;  %v9497_v30 = vpack.c.bf16 %v9485_v17, %v9484_v4  ;;  %9972 = vmatprep.subr.bf16.mxu0 %v18576_v31  ;;  %v10817_v16 = vpack.c.bf16 %v20530_v56, %v20523_v58  ;;  %v9808_v3 = vld [vmem:[#allocation3 + $0x9] sm:$0xff]  ;;  %v9807_v17 = vld [vmem:[#allocation3 + $0x1] sm:$0xff] }
 0x9aa   : > { %v16490_v61 = vpop.f32.mrb[247].mxu0  ;;  %v18676_v58 = vld [vmem:[%s21821_s3 + $0x300] ss:$8 sps:$4 sm:$0xff]   ;;  %v11143_v56 = vpack.c.bf16 %v11128_v2, %v11127_v1 }
 0x9ab   : > { %v9384_v57 = vmax.f32 %v20446_v43, %v16488_v60  ;;  %v16491_v28 = vadd.f32 %v16490_v61, %v16489_v11  ;;  %9693 = vmatmul.mubr.bf16.gmra.mrb[12].mxu0 %v9497_v30  ;;  %v9823_v60 = vpack.c.bf16 %v9808_v3, %v9807_v17  ;;  %v18585_v11 = vld [vmem:[%s21821_s3 + $0x114] ss:$8 sps:$4 sm:$0xff]   ;;  %v18583_v30 = vld [vmem:[%s21821_s3 + $0x110] ss:$8 sps:$4 sm:$0xff]   ;;  %v9810_v61 = vld [vmem:[#allocation3 + $0x21] sm:$0xff] }
 0x9ac   : > { %9702 = vmatprep.mubr.bf16.mxu0 %v19073_v42  ;;  %9973 = vmatpush1.bf16.msra.mxu0 %v18574_v0  ;;  %v18580_v0 = vld [vmem:[%s21821_s3 + $0x100] ss:$8 sps:$4 sm:$0xff]  }
 0x9ad   : > { %v20546_v7 = vmax.f32 %v9384_v57, 0.0  ;;  %v9385_v33 = vmax.f32 %v20448_v21, %v16491_v28  ;;  %9974 = vmatprep.subr.bf16.mxu0 %v18579_v12  ;;  %v18588_v12 = vld [vmem:[%s21821_s3 + $0x124] ss:$8 sps:$4 sm:$0xff]   ;;  %v9809_v28 = vld [vmem:[#allocation3 + $0x19] sm:$0xff] }
 0x9ae   : > { %v9486_v38 = vld [vmem:[#allocation3 + $0x60] sm:$0xff]  ;;  %v10138_v17 = vld [vmem:[#allocation3 + $0xa] sm:$0xff] }
 0x9af   : > { %9440 = vst [vmem:[#allocation3 + $0x7c] sm:$0xff] %v20546_v7  ;;  %v20553_v43 = vmax.f32 %v9385_v33, 0.0  ;;  %v16492_v23 = vpop.f32.mrb[248].mxu0  ;;  %v9824_v33 = vpack.c.bf16 %v9810_v61, %v9809_v28  ;;  %v18612_v61 = vld [vmem:[%s21821_s3 + $0x1a4] ss:$8 sps:$4 sm:$0xff]  }
 0x9b0   : > { %v16493_v40 = vpop.f32.mrb[249].mxu0  ;;  %v9487_v46 = vld [vmem:[#allocation3 + $0x68] sm:$0xff]  ;;  %9975 = vmatpush1.bf16.msra.mxu0 %v18577_v26 }
 0x9b1   : > { %9441 = vst [vmem:[#allocation3 + $0x84] sm:$0xff] %v20553_v43  ;;  %v16494_v21 = vadd.f32 %v16493_v40, %v16492_v23  ;;  %v16495_v50 = vpop.f32.mrb[250].mxu0  ;;  %v9498_v9 = vpack.c.bf16 %v9487_v46, %v9486_v38  ;;  %10290 = vmatprep.subr.bf16.mxu0 %v18582_v27  ;;  %v10818_v4 = vpack.c.bf16 %v20553_v43, %v20546_v7  ;;  %v18586_v26 = vld [vmem:[%s21821_s3 + $0x120] ss:$8 sps:$4 sm:$0xff]   ;;  %v18591_v27 = vld [vmem:[%s21821_s3 + $0x134] ss:$8 sps:$4 sm:$0xff]  }
 0x9b2   : > { %v16496_v22 = vpop.f32.mrb[251].mxu0  ;;  %v18589_v23 = vld [vmem:[%s21821_s3 + $0x130] ss:$8 sps:$4 sm:$0xff]   ;;  %v18594_v40 = vld [vmem:[%s21821_s3 + $0x144] ss:$8 sps:$4 sm:$0xff]  }
 0x9b3   : > { %v9386_v35 = vmax.f32 %v20450_v34, %v16494_v21  ;;  %v16497_v39 = vadd.f32 %v16496_v22, %v16495_v50  ;;  %9703 = vmatmul.mubr.bf16.gmra.mrb[16].mxu0 %v9498_v9  ;;  %v9812_v38 = vld [vmem:[#allocation3 + $0x39] sm:$0xff]  ;;  %v9811_v21 = vld [vmem:[#allocation3 + $0x31] sm:$0xff]  ;;  %v10140_v28 = vld [vmem:[#allocation3 + $0x22] sm:$0xff] }
 0x9b4   : > { %9712 = vmatprep.mubr.bf16.mxu0 %v19073_v42  ;;  %v18592_v50 = vld [vmem:[%s21821_s3 + $0x140] ss:$8 sps:$4 sm:$0xff]   ;;  %v9825_v9 = vpack.c.bf16 %v9812_v38, %v9811_v21  ;;  %v18597_v22 = vld [vmem:[%s21821_s3 + $0x154] ss:$8 sps:$4 sm:$0xff]   ;;  %v18618_v38 = vld [vmem:[%s21821_s3 + $0x1c4] ss:$8 sps:$4 sm:$0xff]  }
 0x9b5   : > { %v20560_v25 = vmax.f32 %v9386_v35, 0.0  ;;  %v9387_v55 = vmax.f32 %v20452_v19, %v16497_v39  ;;  %v18595_v35 = vld [vmem:[%s21821_s3 + $0x150] ss:$8 sps:$4 sm:$0xff]   ;;  %v18600_v39 = vld [vmem:[%s21821_s3 + $0x164] ss:$8 sps:$4 sm:$0xff]  }
 0x9b6   : > { %v9488_v49 = vld [vmem:[#allocation3 + $0x78] sm:$0xff]  ;;  %v18718_v1 = vld [vmem:[%s21821_s3 + $0x3e0] ss:$8 sps:$4 sm:$0xff]  }
 0x9b7   : > { %9442 = vst [vmem:[#allocation3 + $0x94] sm:$0xff] %v20560_v25  ;;  %v20564_v32 = vmax.f32 %v9387_v55, 0.0  ;;  %v16498_v36 = vpop.f32.mrb[252].mxu0  ;;  %v9814_v55 = vld [vmem:[#allocation3 + $0x51] sm:$0xff]  ;;  %v10142_v21 = vld [vmem:[#allocation3 + $0x3a] sm:$0xff] }
 0x9b8   : > { %v16499_v51 = vpop.f32.mrb[253].mxu0  ;;  %v9489_v54 = vld [vmem:[#allocation3 + $0x80] sm:$0xff]  ;;  %v18681_v7 = vld [vmem:[%s21821_s3 + $0x314] ss:$8 sps:$4 sm:$0xff]   ;;  %v18679_v43 = vld [vmem:[%s21821_s3 + $0x310] ss:$8 sps:$4 sm:$0xff]  }
 0x9b9   : > { %9443 = vst [vmem:[#allocation3 + $0x9c] sm:$0xff] %v20564_v32  ;;  %v16500_v34 = vadd.f32 %v16499_v51, %v16498_v36  ;;  %v16501_v14 = vpop.f32.mrb[254].mxu0  ;;  %v9499_v63 = vpack.c.bf16 %v9489_v54, %v9488_v49  ;;  %v10819_v57 = vpack.c.bf16 %v20564_v32, %v20560_v25  ;;  %v9813_v36 = vld [vmem:[#allocation3 + $0x49] sm:$0xff]  ;;  %v18603_v54 = vld [vmem:[%s21821_s3 + $0x174] ss:$8 sps:$4 sm:$0xff]  }
 0x9ba   : > { %v16502_v62 = vpop.f32.mrb[255].mxu0  ;;  %v18598_v51 = vld [vmem:[%s21821_s3 + $0x160] ss:$8 sps:$4 sm:$0xff]   ;;  %v9826_v49 = vpack.c.bf16 %v9814_v55, %v9813_v36  ;;  %v18624_v55 = vld [vmem:[%s21821_s3 + $0x1e4] ss:$8 sps:$4 sm:$0xff]   ;;  %v10144_v36 = vld [vmem:[#allocation3 + $0x52] sm:$0xff] }
 0x9bb   : > { %v9388_v52 = vmax.f32 %v20454_v29, %v16500_v34  ;;  %v16503_v19 = vadd.f32 %v16502_v62, %v16501_v14  ;;  %9713 = vmatmul.mubr.bf16.gmra.mrb[20].mxu0 %v9499_v63  ;;  %v18601_v34 = vld [vmem:[%s21821_s3 + $0x170] ss:$8 sps:$4 sm:$0xff]   ;;  %v18606_v14 = vld [vmem:[%s21821_s3 + $0x184] ss:$8 sps:$4 sm:$0xff]  }
 0x9bc   : > { %9722 = vmatprep.mubr.bf16.mxu0 %v19073_v42  ;;  %v9816_v63 = vld [vmem:[#allocation3 + $0x69] sm:$0xff]  ;;  %v9815_v62 = vld [vmem:[#allocation3 + $0x61] sm:$0xff] }
 0x9bd   : > { %v20571_v15 = vmax.f32 %v9388_v52, 0.0  ;;  %v9389_v10 = vmax.f32 %v20456_v45, %v16503_v19  ;;  %v9827_v52 = vpack.c.bf16 %v9816_v63, %v9815_v62  ;;  %v9818_v19 = vld [vmem:[#allocation3 + $0x81] sm:$0xff]  ;;  %v10146_v62 = vld [vmem:[#allocation3 + $0x6a] sm:$0xff] }
 0x9be   : > { %v9490_v13 = vld [vmem:[#allocation3 + $0x90] sm:$0xff]  ;;  %v18630_v63 = vld [vmem:[%s21821_s3 + $0x204] ss:$8 sps:$4 sm:$0xff]  }
 0x9bf   : > { %9444 = vst [vmem:[#allocation3 + $0xac] sm:$0xff] %v20571_v15  ;;  %v20575_v6 = vmax.f32 %v9389_v10, 0.0  ;;  %v9817_v10 = vld [vmem:[#allocation3 + $0x79] sm:$0xff]  ;;  %v18684_v25 = vld [vmem:[%s21821_s3 + $0x324] ss:$8 sps:$4 sm:$0xff]  }
 0x9c0   : > { %v9491_v5 = vld [vmem:[#allocation3 + $0x98] sm:$0xff] }
 0x9c1   : > { %9445 = vst [vmem:[#allocation3 + $0xb4] sm:$0xff] %v20575_v6  ;;  %v9500_v29 = vpack.c.bf16 %v9491_v5, %v9490_v13  ;;  %v10820_v46 = vpack.c.bf16 %v20575_v6, %v20571_v15  ;;  %v9828_v13 = vpack.c.bf16 %v9818_v19, %v9817_v10  ;;  %v9820_v5 = vld [vmem:[#allocation3 + $0x99] sm:$0xff]  ;;  %v10148_v10 = vld [vmem:[#allocation3 + $0x82] sm:$0xff] }
 0x9c2   : > { %v11129_v32 = vld [vmem:[#allocation3 + $0x1d] sm:$0xff]  ;;  %v11130_v15 = vld [vmem:[#allocation3 + $0x25] sm:$0xff] }
 0x9c3   : > { %9723 = vmatmul.mubr.bf16.gmra.mrb[24].mxu0 %v9500_v29  ;;  %v9819_v29 = vld [vmem:[#allocation3 + $0x91] sm:$0xff]  ;;  %v18682_v6 = vld [vmem:[%s21821_s3 + $0x320] ss:$8 sps:$4 sm:$0xff]  }
 0x9c4   : > { %9732 = vmatprep.mubr.bf16.mxu0 %v19073_v42 }
 0x9c6   : > { %v9492_v31 = vld [vmem:[#allocation3 + $0xa8] sm:$0xff] }
 0x9c8   : > { %v9493_v45 = vld [vmem:[#allocation3 + $0xb0] sm:$0xff] }
 0x9c9   : > { %v9501_v48 = vpack.c.bf16 %v9493_v45, %v9492_v31  ;;  %v9829_v31 = vpack.c.bf16 %v9820_v5, %v9819_v29  ;;  %v9822_v45 = vld [vmem:[#allocation3 + $0xb1] sm:$0xff]  ;;  %v10150_v29 = vld [vmem:[#allocation3 + $0x9a] sm:$0xff] }
 0x9cb   : > { %9733 = vmatmul.mubr.bf16.gmra.mrb[28].mxu0 %v9501_v48  ;;  %v9821_v48 = vld [vmem:[#allocation3 + $0xa9] sm:$0xff] }
 0x9cc   : > { %9992 = vmatprep.mubr.bf16.mxu0 %v19073_v42  ;;  %v9830_v3 = vpack.c.bf16 %v9822_v45, %v9821_v48  ;;  %v10152_v48 = vld [vmem:[#allocation3 + $0xb2] sm:$0xff] }
 0x9d3   : > { %9993 = vmatmul.mubr.bf16.vlgmr.msra.gmra.mrb[0].mxu0 %v9823_v60  ;;  %v18604_v60 = vld [vmem:[%s21821_s3 + $0x180] ss:$8 sps:$4 sm:$0xff]  }
 0x9d4   : > { %10002 = vmatprep.mubr.bf16.mxu0 %v19073_v42  ;;  %10291 = vmatpush1.bf16.msra.mxu0 %v18580_v0  ;;  %v10137_v0 = vld [vmem:[#allocation3 + $0x2] sm:$0xff] }
 0x9d5   : > { %10292 = vmatprep.subr.bf16.mxu0 %v18585_v11  ;;  %v10153_v11 = vpack.c.bf16 %v10138_v17, %v10137_v0  ;;  %v10468_v0 = vld [vmem:[#allocation3 + $0xb] sm:$0xff] }
 0x9d8   : > { %10293 = vmatpush1.bf16.msra.mxu0 %v18583_v30  ;;  %v18609_v30 = vld [vmem:[%s21821_s3 + $0x194] ss:$8 sps:$4 sm:$0xff]  }
 0x9d9   : > { %10294 = vmatprep.subr.bf16.mxu0 %v18588_v12  ;;  %v18607_v12 = vld [vmem:[%s21821_s3 + $0x190] ss:$8 sps:$4 sm:$0xff]  }
 0x9db   : > { %10003 = vmatmul.mubr.bf16.gmra.mrb[4].mxu0 %v9824_v33  ;;  %v18610_v33 = vld [vmem:[%s21821_s3 + $0x1a0] ss:$8 sps:$4 sm:$0xff]  }
 0x9dc   : > { %10012 = vmatprep.mubr.bf16.mxu0 %v19073_v42  ;;  %10295 = vmatpush1.bf16.msra.mxu0 %v18586_v26  ;;  %v10139_v26 = vld [vmem:[#allocation3 + $0x1a] sm:$0xff] }
 0x9dd   : > { %10296 = vmatprep.subr.bf16.mxu0 %v18591_v27  ;;  %v10154_v27 = vpack.c.bf16 %v10140_v28, %v10139_v26  ;;  %v18636_v28 = vld [vmem:[%s21821_s3 + $0x224] ss:$8 sps:$4 sm:$0xff]  }
 0x9de   : > { %v10470_v26 = vld [vmem:[#allocation3 + $0x23] sm:$0xff] }
 0x9e0   : > { %10297 = vmatpush1.bf16.msra.mxu0 %v18589_v23  ;;  %v18615_v23 = vld [vmem:[%s21821_s3 + $0x1b4] ss:$8 sps:$4 sm:$0xff]  }
 0x9e1   : > { %10298 = vmatprep.subr.bf16.mxu0 %v18594_v40  ;;  %v18613_v40 = vld [vmem:[%s21821_s3 + $0x1b0] ss:$8 sps:$4 sm:$0xff]  }
 0x9e3   : > { %10013 = vmatmul.mubr.bf16.gmra.mrb[8].mxu0 %v9825_v9  ;;  %v18616_v9 = vld [vmem:[%s21821_s3 + $0x1c0] ss:$8 sps:$4 sm:$0xff]  }
 0x9e4   : > { %10022 = vmatprep.mubr.bf16.mxu0 %v19073_v42  ;;  %10299 = vmatpush1.bf16.msra.mxu0 %v18592_v50  ;;  %v10141_v50 = vld [vmem:[#allocation3 + $0x32] sm:$0xff] }
 0x9e5   : > { %10300 = vmatprep.subr.bf16.mxu0 %v18597_v22  ;;  %v10155_v22 = vpack.c.bf16 %v10142_v21, %v10141_v50  ;;  %v18642_v21 = vld [vmem:[%s21821_s3 + $0x244] ss:$8 sps:$4 sm:$0xff]   ;;  %v10472_v50 = vld [vmem:[#allocation3 + $0x3b] sm:$0xff] }
 0x9e8   : > { %10301 = vmatpush1.bf16.msra.mxu0 %v18595_v35  ;;  %v18621_v35 = vld [vmem:[%s21821_s3 + $0x1d4] ss:$8 sps:$4 sm:$0xff]  }
 0x9e9   : > { %10302 = vmatprep.subr.bf16.mxu0 %v18600_v39  ;;  %v18619_v39 = vld [vmem:[%s21821_s3 + $0x1d0] ss:$8 sps:$4 sm:$0xff]  }
 0x9eb   : > { %10023 = vmatmul.mubr.bf16.gmra.mrb[12].mxu0 %v9826_v49  ;;  %v18622_v49 = vld [vmem:[%s21821_s3 + $0x1e0] ss:$8 sps:$4 sm:$0xff]  }
 0x9ec   : > { %10032 = vmatprep.mubr.bf16.mxu0 %v19073_v42  ;;  %10303 = vmatpush1.bf16.msra.mxu0 %v18598_v51  ;;  %v10143_v51 = vld [vmem:[#allocation3 + $0x4a] sm:$0xff] }
 0x9ed   : > { %10304 = vmatprep.subr.bf16.mxu0 %v18603_v54  ;;  %v10156_v54 = vpack.c.bf16 %v10144_v36, %v10143_v51  ;;  %v18648_v36 = vld [vmem:[%s21821_s3 + $0x264] ss:$8 sps:$4 sm:$0xff]   ;;  %v10474_v51 = vld [vmem:[#allocation3 + $0x53] sm:$0xff] }
 0x9f0   : > { %10305 = vmatpush1.bf16.msra.mxu0 %v18601_v34  ;;  %v18627_v34 = vld [vmem:[%s21821_s3 + $0x1f4] ss:$8 sps:$4 sm:$0xff]  }
 0x9f1   : > { %10620 = vmatprep.subr.bf16.mxu0 %v18606_v14  ;;  %v18625_v14 = vld [vmem:[%s21821_s3 + $0x1f0] ss:$8 sps:$4 sm:$0xff]  }
 0x9f3   : > { %10033 = vmatmul.mubr.bf16.gmra.mrb[16].mxu0 %v9827_v52  ;;  %v10145_v52 = vld [vmem:[#allocation3 + $0x62] sm:$0xff] }
 0x9f4   : > { %10042 = vmatprep.mubr.bf16.mxu0 %v19073_v42  ;;  %v10157_v19 = vpack.c.bf16 %v10146_v62, %v10145_v52  ;;  %v18654_v62 = vld [vmem:[%s21821_s3 + $0x284] ss:$8 sps:$4 sm:$0xff]  }
 0x9f5   : > { %v10476_v52 = vld [vmem:[#allocation3 + $0x6b] sm:$0xff] }
 0x9fb   : > { %10043 = vmatmul.mubr.bf16.gmra.mrb[20].mxu0 %v9828_v13  ;;  %v10147_v13 = vld [vmem:[#allocation3 + $0x7a] sm:$0xff] }
 0x9fc   : > { %10052 = vmatprep.mubr.bf16.mxu0 %v19073_v42  ;;  %v10158_v5 = vpack.c.bf16 %v10148_v10, %v10147_v13  ;;  %v10478_v13 = vld [vmem:[#allocation3 + $0x83] sm:$0xff] }
 0xa03   : > { %10053 = vmatmul.mubr.bf16.gmra.mrb[24].mxu0 %v9829_v31  ;;  %v10149_v31 = vld [vmem:[#allocation3 + $0x92] sm:$0xff] }
 0xa04   : > { %10062 = vmatprep.mubr.bf16.mxu0 %v19073_v42  ;;  %v10159_v45 = vpack.c.bf16 %v10150_v29, %v10149_v31  ;;  %v10480_v31 = vld [vmem:[#allocation3 + $0x9b] sm:$0xff] }
 0xa0b   : > { %10063 = vmatmul.mubr.bf16.gmra.mrb[28].mxu0 %v9830_v3  ;;  %v10151_v3 = vld [vmem:[#allocation3 + $0xaa] sm:$0xff] }
 0xa0c   : > { %10322 = vmatprep.mubr.bf16.mxu0 %v19073_v42  ;;  %v10160_v17 = vpack.c.bf16 %v10152_v48, %v10151_v3  ;;  %v10482_v3 = vld [vmem:[#allocation3 + $0xb3] sm:$0xff] }
 0xa13   : > { %10323 = vmatmul.mubr.bf16.vlgmr.msra.gmra.mrb[0].mxu0 %v10153_v11  ;;  %v18628_v11 = vld [vmem:[%s21821_s3 + $0x200] ss:$8 sps:$4 sm:$0xff]  }
 0xa14   : > { %10332 = vmatprep.mubr.bf16.mxu0 %v19073_v42  ;;  %10621 = vmatpush1.bf16.msra.mxu0 %v18604_v60  ;;  %v10467_v60 = vld [vmem:[#allocation3 + $0x3] sm:$0xff] }
 0xa15   : > { %10622 = vmatprep.subr.bf16.mxu0 %v18609_v30  ;;  %v10483_v30 = vpack.c.bf16 %v10468_v0, %v10467_v60  ;;  %v18652_v60 = vld [vmem:[%s21821_s3 + $0x280] ss:$8 sps:$4 sm:$0xff]  }
 0xa18   : > { %10623 = vmatpush1.bf16.msra.mxu0 %v18607_v12  ;;  %v18633_v12 = vld [vmem:[%s21821_s3 + $0x214] ss:$8 sps:$4 sm:$0xff]  }
 0xa19   : > { %10624 = vmatprep.subr.bf16.mxu0 %v18612_v61  ;;  %v18631_v61 = vld [vmem:[%s21821_s3 + $0x210] ss:$8 sps:$4 sm:$0xff]  }
 0xa1b   : > { %10333 = vmatmul.mubr.bf16.gmra.mrb[4].mxu0 %v10154_v27  ;;  %v18634_v27 = vld [vmem:[%s21821_s3 + $0x220] ss:$8 sps:$4 sm:$0xff]  }
 0xa1c   : > { %10342 = vmatprep.mubr.bf16.mxu0 %v19073_v42  ;;  %10625 = vmatpush1.bf16.msra.mxu0 %v18610_v33  ;;  %v10469_v33 = vld [vmem:[#allocation3 + $0x1b] sm:$0xff] }
 0xa1d   : > { %10626 = vmatprep.subr.bf16.mxu0 %v18615_v23  ;;  %v10484_v23 = vpack.c.bf16 %v10470_v26, %v10469_v33  ;;  %v18670_v26 = vld [vmem:[%s21821_s3 + $0x2e0] ss:$8 sps:$4 sm:$0xff]  }
 0xa1e   : > { %v11132_v33 = vld [vmem:[#allocation3 + $0x3d] sm:$0xff] }
 0xa20   : > { %10627 = vmatpush1.bf16.msra.mxu0 %v18613_v40  ;;  %v18639_v40 = vld [vmem:[%s21821_s3 + $0x234] ss:$8 sps:$4 sm:$0xff]  }
 0xa21   : > { %10628 = vmatprep.subr.bf16.mxu0 %v18618_v38  ;;  %v18637_v38 = vld [vmem:[%s21821_s3 + $0x230] ss:$8 sps:$4 sm:$0xff]  }
 0xa23   : > { %10343 = vmatmul.mubr.bf16.gmra.mrb[8].mxu0 %v10155_v22  ;;  %v18640_v22 = vld [vmem:[%s21821_s3 + $0x240] ss:$8 sps:$4 sm:$0xff]  }
 0xa24   : > { %10352 = vmatprep.mubr.bf16.mxu0 %v19073_v42  ;;  %10629 = vmatpush1.bf16.msra.mxu0 %v18616_v9  ;;  %v10471_v9 = vld [vmem:[#allocation3 + $0x33] sm:$0xff] }
 0xa25   : > { %10630 = vmatprep.subr.bf16.mxu0 %v18621_v35  ;;  %v10485_v35 = vpack.c.bf16 %v10472_v50, %v10471_v9  ;;  %v11133_v50 = vld [vmem:[#allocation3 + $0x4d] sm:$0xff]  ;;  %v11134_v9 = vld [vmem:[#allocation3 + $0x55] sm:$0xff] }
 0xa28   : > { %10631 = vmatpush1.bf16.msra.mxu0 %v18619_v39  ;;  %v18645_v39 = vld [vmem:[%s21821_s3 + $0x254] ss:$8 sps:$4 sm:$0xff]  }
 0xa29   : > { %10632 = vmatprep.subr.bf16.mxu0 %v18624_v55  ;;  %v18643_v55 = vld [vmem:[%s21821_s3 + $0x250] ss:$8 sps:$4 sm:$0xff]  }
 0xa2b   : > { %10353 = vmatmul.mubr.bf16.gmra.mrb[12].mxu0 %v10156_v54  ;;  %v18646_v54 = vld [vmem:[%s21821_s3 + $0x260] ss:$8 sps:$4 sm:$0xff]  }
 0xa2c   : > { %10362 = vmatprep.mubr.bf16.mxu0 %v19073_v42  ;;  %10633 = vmatpush1.bf16.msra.mxu0 %v18622_v49  ;;  %v10473_v49 = vld [vmem:[#allocation3 + $0x4b] sm:$0xff] }
 0xa2d   : > { %10634 = vmatprep.subr.bf16.mxu0 %v18627_v34  ;;  %v10486_v34 = vpack.c.bf16 %v10474_v51, %v10473_v49  ;;  %v11135_v51 = vld [vmem:[#allocation3 + $0x65] sm:$0xff]  ;;  %v11136_v49 = vld [vmem:[#allocation3 + $0x6d] sm:$0xff] }
 0xa30   : > { %10635 = vmatpush1.bf16.msra.mxu0 %v18625_v14  ;;  %v18651_v14 = vld [vmem:[%s21821_s3 + $0x274] ss:$8 sps:$4 sm:$0xff]  }
 0xa31   : > { %10950 = vmatprep.subr.bf16.mxu0 %v18630_v63  ;;  %v18649_v63 = vld [vmem:[%s21821_s3 + $0x270] ss:$8 sps:$4 sm:$0xff]  }
 0xa33   : > { %10363 = vmatmul.mubr.bf16.gmra.mrb[16].mxu0 %v10157_v19  ;;  %v10475_v19 = vld [vmem:[#allocation3 + $0x63] sm:$0xff] }
 0xa34   : > { %10372 = vmatprep.mubr.bf16.mxu0 %v19073_v42  ;;  %v10487_v10 = vpack.c.bf16 %v10476_v52, %v10475_v19  ;;  %v11140_v52 = vld [vmem:[#allocation3 + $0x9d] sm:$0xff] }
 0xa3b   : > { %10373 = vmatmul.mubr.bf16.gmra.mrb[20].mxu0 %v10158_v5  ;;  %v10477_v5 = vld [vmem:[#allocation3 + $0x7b] sm:$0xff] }
 0xa3c   : > { %10382 = vmatprep.mubr.bf16.mxu0 %v19073_v42  ;;  %v10488_v29 = vpack.c.bf16 %v10478_v13, %v10477_v5  ;;  %v11142_v13 = vld [vmem:[#allocation3 + $0xb5] sm:$0xff] }
 0xa43   : > { %10383 = vmatmul.mubr.bf16.gmra.mrb[24].mxu0 %v10159_v45  ;;  %v10479_v45 = vld [vmem:[#allocation3 + $0x93] sm:$0xff] }
 0xa44   : > { %10392 = vmatprep.mubr.bf16.mxu0 %v19073_v42  ;;  %v10489_v48 = vpack.c.bf16 %v10480_v31, %v10479_v45  ;;  %v11458_v31 = vld [vmem:[#allocation3 + $0xe] sm:$0xff]  ;;  %v18700_v45 = vld [vmem:[%s21821_s3 + $0x380] ss:$8 sps:$4 sm:$0xff]  }
 0xa4b   : > { %10393 = vmatmul.mubr.bf16.gmra.mrb[28].mxu0 %v10160_v17  ;;  %v10481_v17 = vld [vmem:[#allocation3 + $0xab] sm:$0xff] }
 0xa4c   : > { %10652 = vmatprep.mubr.bf16.mxu0 %v19073_v42  ;;  %v10490_v0 = vpack.c.bf16 %v10482_v3, %v10481_v17  ;;  %v18705_v3 = vld [vmem:[%s21821_s3 + $0x394] ss:$8 sps:$4 sm:$0xff]   ;;  %v18703_v17 = vld [vmem:[%s21821_s3 + $0x390] ss:$8 sps:$4 sm:$0xff]  }
 0xa53   : > { %10653 = vmatmul.mubr.bf16.vlgmr.msra.gmra.mrb[0].mxu0 %v10483_v30  ;;  %v18655_v30 = vld [vmem:[%s21821_s3 + $0x290] ss:$8 sps:$4 sm:$0xff]  }
 0xa54   : > { %10662 = vmatprep.mubr.bf16.mxu0 %v19073_v42  ;;  %10951 = vmatpush1.bf16.msra.mxu0 %v18628_v11  ;;  %v18657_v11 = vld [vmem:[%s21821_s3 + $0x294] ss:$8 sps:$4 sm:$0xff]  }
 0xa55   : > { %10952 = vmatprep.subr.bf16.mxu0 %v18633_v12  ;;  %v18660_v12 = vld [vmem:[%s21821_s3 + $0x2a4] ss:$8 sps:$4 sm:$0xff]  }
 0xa58   : > { %10953 = vmatpush1.bf16.msra.mxu0 %v18631_v61  ;;  %v18658_v61 = vld [vmem:[%s21821_s3 + $0x2a0] ss:$8 sps:$4 sm:$0xff]  }
 0xa59   : > { %10954 = vmatprep.subr.bf16.mxu0 %v18636_v28  ;;  %v18664_v28 = vld [vmem:[%s21821_s3 + $0x2c0] ss:$8 sps:$4 sm:$0xff]  }
 0xa5b   : > { %10663 = vmatmul.mubr.bf16.gmra.mrb[4].mxu0 %v10484_v23 }
 0xa5c   : > { %10672 = vmatprep.mubr.bf16.mxu0 %v19073_v42  ;;  %10955 = vmatpush1.bf16.msra.mxu0 %v18634_v27  ;;  %v18688_v27 = vld [vmem:[%s21821_s3 + $0x340] ss:$8 sps:$4 sm:$0xff]  }
 0xa5d   : > { %10956 = vmatprep.subr.bf16.mxu0 %v18639_v40  ;;  %v18693_v40 = vld [vmem:[%s21821_s3 + $0x354] ss:$8 sps:$4 sm:$0xff]  }
 0xa60   : > { %10957 = vmatpush1.bf16.msra.mxu0 %v18637_v38  ;;  %v18691_v38 = vld [vmem:[%s21821_s3 + $0x350] ss:$8 sps:$4 sm:$0xff]  }
 0xa61   : > { %10958 = vmatprep.subr.bf16.mxu0 %v18642_v21  ;;  %v18696_v21 = vld [vmem:[%s21821_s3 + $0x364] ss:$8 sps:$4 sm:$0xff]  }
 0xa63   : > { %10673 = vmatmul.mubr.bf16.gmra.mrb[8].mxu0 %v10485_v35  ;;  %v11146_v35 = vpack.c.bf16 %v11134_v9, %v11133_v50  ;;  %v11791_v9 = vld [vmem:[#allocation3 + $0x37] sm:$0xff] }
 0xa64   : > { %10682 = vmatprep.mubr.bf16.mxu0 %v19073_v42  ;;  %10959 = vmatpush1.bf16.msra.mxu0 %v18640_v22  ;;  %v18694_v22 = vld [vmem:[%s21821_s3 + $0x360] ss:$8 sps:$4 sm:$0xff]  }
 0xa65   : > { %10960 = vmatprep.subr.bf16.mxu0 %v18645_v39  ;;  %v18699_v39 = vld [vmem:[%s21821_s3 + $0x374] ss:$8 sps:$4 sm:$0xff]  }
 0xa68   : > { %10961 = vmatpush1.bf16.msra.mxu0 %v18643_v55  ;;  %v18697_v55 = vld [vmem:[%s21821_s3 + $0x370] ss:$8 sps:$4 sm:$0xff]  }
 0xa69   : > { %10962 = vmatprep.subr.bf16.mxu0 %v18648_v36  ;;  %v18702_v36 = vld [vmem:[%s21821_s3 + $0x384] ss:$8 sps:$4 sm:$0xff]  }
 0xa6b   : > { %10683 = vmatmul.mubr.bf16.gmra.mrb[12].mxu0 %v10486_v34  ;;  %v11137_v34 = vld [vmem:[#allocation3 + $0x7d] sm:$0xff] }
 0xa6c   : > { %10692 = vmatprep.mubr.bf16.mxu0 %v19073_v42  ;;  %10963 = vmatpush1.bf16.msra.mxu0 %v18646_v54  ;;  %v11147_v54 = vpack.c.bf16 %v11136_v49, %v11135_v51  ;;  %v11795_v51 = vld [vmem:[#allocation3 + $0x67] sm:$0xff]  ;;  %v11796_v49 = vld [vmem:[#allocation3 + $0x6f] sm:$0xff] }
 0xa6d   : > { %10964 = vmatprep.subr.bf16.mxu0 %v18651_v14  ;;  %v11138_v14 = vld [vmem:[#allocation3 + $0x85] sm:$0xff] }
 0xa70   : > { %10965 = vmatpush1.bf16.msra.mxu0 %v18649_v63  ;;  %v11148_v63 = vpack.c.bf16 %v11138_v14, %v11137_v34  ;;  %v11797_v34 = vld [vmem:[#allocation3 + $0x7f] sm:$0xff]  ;;  %v11798_v14 = vld [vmem:[#allocation3 + $0x87] sm:$0xff] }
 0xa71   : > { %11280 = vmatprep.subr.bf16.mxu0 %v18654_v62  ;;  %v11139_v62 = vld [vmem:[#allocation3 + $0x95] sm:$0xff] }
 0xa72   : > { %v11149_v19 = vpack.c.bf16 %v11140_v52, %v11139_v62  ;;  %v11799_v62 = vld [vmem:[#allocation3 + $0x97] sm:$0xff]  ;;  %v11800_v52 = vld [vmem:[#allocation3 + $0x9f] sm:$0xff] }
 0xa73   : > { %10693 = vmatmul.mubr.bf16.gmra.mrb[16].mxu0 %v10487_v10  ;;  %v11141_v10 = vld [vmem:[#allocation3 + $0xad] sm:$0xff] }
 0xa74   : > { %10702 = vmatprep.mubr.bf16.mxu0 %v19073_v42  ;;  %v11150_v5 = vpack.c.bf16 %v11142_v13, %v11141_v10  ;;  %v11801_v10 = vld [vmem:[#allocation3 + $0xaf] sm:$0xff]  ;;  %v11802_v13 = vld [vmem:[#allocation3 + $0xb7] sm:$0xff] }
 0xa7b   : > { %10703 = vmatmul.mubr.bf16.gmra.mrb[20].mxu0 %v10488_v29  ;;  %v11457_v29 = vld [vmem:[#allocation3 + $0x6] sm:$0xff] }
 0xa7c   : > { %10712 = vmatprep.mubr.bf16.mxu0 %v19073_v42 }
 0xa83   : > { %10713 = vmatmul.mubr.bf16.gmra.mrb[24].mxu0 %v10489_v48  ;;  %v11473_v48 = vpack.c.bf16 %v11458_v31, %v11457_v29 }
 0xa84   : > { %10722 = vmatprep.mubr.bf16.mxu0 %v19073_v42 }
 0xa8b   : > { %10723 = vmatmul.mubr.bf16.gmra.mrb[28].mxu0 %v10490_v0  ;;  %v18708_v0 = vld [vmem:[%s21821_s3 + $0x3a4] ss:$8 sps:$4 sm:$0xff]  }
 0xa8c   : > { %10982 = vmatprep.mubr.bf16.mxu0 %v19073_v42 }
 0xa93   : > { %10983 = vmatmul.mubr.bf16.vlgmr.msra.gmra.mrb[0].mxu0 %v10813_v8  ;;  %v18666_v8 = vld [vmem:[%s21821_s3 + $0x2c4] ss:$8 sps:$4 sm:$0xff]  }
 0xa94   : > { %10992 = vmatprep.mubr.bf16.mxu0 %v19073_v42  ;;  %11281 = vmatpush1.bf16.msra.mxu0 %v18652_v60  ;;  %v11459_v60 = vld [vmem:[#allocation3 + $0x1e] sm:$0xff] }
 0xa95   : > { %11282 = vmatprep.subr.bf16.mxu0 %v18657_v11  ;;  %v11460_v11 = vld [vmem:[#allocation3 + $0x26] sm:$0xff] }
 0xa98   : > { %11283 = vmatpush1.bf16.msra.mxu0 %v18655_v30  ;;  %v18706_v30 = vld [vmem:[%s21821_s3 + $0x3a0] ss:$8 sps:$4 sm:$0xff]  }
 0xa99   : > { %11284 = vmatprep.subr.bf16.mxu0 %v18660_v12  ;;  %v11474_v12 = vpack.c.bf16 %v11460_v11, %v11459_v60 }
 0xa9b   : > { %10993 = vmatmul.mubr.bf16.gmra.mrb[4].mxu0 %v10814_v37  ;;  %v18672_v37 = vld [vmem:[%s21821_s3 + $0x2e4] ss:$8 sps:$4 sm:$0xff]  }
 0xa9c   : > { %11002 = vmatprep.mubr.bf16.mxu0 %v19073_v42  ;;  %11285 = vmatpush1.bf16.msra.mxu0 %v18658_v61  ;;  %v18711_v61 = vld [vmem:[%s21821_s3 + $0x3b4] ss:$8 sps:$4 sm:$0xff]  }
 0xa9d   : > { %11286 = vmatprep.subr.bf16.mxu0 %v18663_v59  ;;  %v18709_v59 = vld [vmem:[%s21821_s3 + $0x3b0] ss:$8 sps:$4 sm:$0xff]  }
 0xaa0   : > { %11287 = vmatpush1.bf16.msra.mxu0 %v18661_v18  ;;  %v18714_v18 = vld [vmem:[%s21821_s3 + $0x3c4] ss:$8 sps:$4 sm:$0xff]  }
 0xaa1   : > { %11288 = vmatprep.subr.bf16.mxu0 %v18666_v8  ;;  %v11461_v8 = vld [vmem:[#allocation3 + $0x36] sm:$0xff] }
 0xaa3   : > { %11003 = vmatmul.mubr.bf16.gmra.mrb[8].mxu0 %v10815_v41  ;;  %v18678_v41 = vld [vmem:[%s21821_s3 + $0x304] ss:$8 sps:$4 sm:$0xff]  }
 0xaa4   : > { %11012 = vmatprep.mubr.bf16.mxu0 %v19073_v42  ;;  %11289 = vmatpush1.bf16.msra.mxu0 %v18664_v28  ;;  %v11462_v28 = vld [vmem:[#allocation3 + $0x3e] sm:$0xff] }
 0xaa5   : > { %11290 = vmatprep.subr.bf16.mxu0 %v18669_v53  ;;  %v18712_v53 = vld [vmem:[%s21821_s3 + $0x3c0] ss:$8 sps:$4 sm:$0xff]  }
 0xaa8   : > { %11291 = vmatpush1.bf16.msra.mxu0 %v18667_v24  ;;  %v11475_v24 = vpack.c.bf16 %v11462_v28, %v11461_v8 }
 0xaa9   : > { %11292 = vmatprep.subr.bf16.mxu0 %v18672_v37  ;;  %v18717_v37 = vld [vmem:[%s21821_s3 + $0x3d4] ss:$8 sps:$4 sm:$0xff]  }
 0xaab   : > { %11013 = vmatmul.mubr.bf16.gmra.mrb[12].mxu0 %v10816_v20  ;;  %v11144_v20 = vpack.c.bf16 %v11130_v15, %v11129_v32  ;;  %v11467_v32 = vld [vmem:[#allocation3 + $0x7e] sm:$0xff]  ;;  %v11468_v15 = vld [vmem:[#allocation3 + $0x86] sm:$0xff] }
 0xaac   : > { %11022 = vmatprep.mubr.bf16.mxu0 %v19073_v42  ;;  %11293 = vmatpush1.bf16.msra.mxu0 %v18670_v26  ;;  %v18715_v26 = vld [vmem:[%s21821_s3 + $0x3d0] ss:$8 sps:$4 sm:$0xff]  }
 0xaad   : > { %11294 = vmatprep.subr.bf16.mxu0 %v18675_v47  ;;  %v18720_v47 = vld [vmem:[%s21821_s3 + $0x3e4] ss:$8 sps:$4 sm:$0xff]  }
 0xab0   : > { %11295 = vmatpush1.bf16.msra.mxu0 %v18673_v44  ;;  %v11463_v44 = vld [vmem:[#allocation3 + $0x4e] sm:$0xff] }
 0xab1   : > { %11610 = vmatprep.subr.bf16.mxu0 %v18678_v41  ;;  %v11464_v41 = vld [vmem:[#allocation3 + $0x56] sm:$0xff] }
 0xab2   : > { %v11476_v2 = vpack.c.bf16 %v11464_v41, %v11463_v44 }
 0xab3   : > { %11023 = vmatmul.mubr.bf16.gmra.mrb[16].mxu0 %v10817_v16  ;;  %v18687_v16 = vld [vmem:[%s21821_s3 + $0x334] ss:$8 sps:$4 sm:$0xff]  }
 0xab4   : > { %11032 = vmatprep.mubr.bf16.mxu0 %v19073_v42 }
 0xabb   : > { %11033 = vmatmul.mubr.bf16.gmra.mrb[20].mxu0 %v10818_v4  ;;  %v18685_v4 = vld [vmem:[%s21821_s3 + $0x330] ss:$8 sps:$4 sm:$0xff]  }
 0xabc   : > { %11042 = vmatprep.mubr.bf16.mxu0 %v19073_v42 }
 0xac3   : > { %11043 = vmatmul.mubr.bf16.gmra.mrb[24].mxu0 %v10819_v57  ;;  %v18690_v57 = vld [vmem:[%s21821_s3 + $0x344] ss:$8 sps:$4 sm:$0xff]  }
 0xac4   : > { %11052 = vmatprep.mubr.bf16.mxu0 %v19073_v42 }
 0xacb   : > { %11053 = vmatmul.mubr.bf16.gmra.mrb[28].mxu0 %v10820_v46  ;;  %v11131_v46 = vld [vmem:[#allocation3 + $0x35] sm:$0xff] }
 0xacc   : > { %11312 = vmatprep.mubr.bf16.mxu0 %v19073_v42  ;;  %v11145_v23 = vpack.c.bf16 %v11132_v33, %v11131_v46  ;;  %v11472_v46 = vld [vmem:[#allocation3 + $0xb6] sm:$0xff] }
 0xad3   : > { %11313 = vmatmul.mubr.bf16.vlgmr.msra.gmra.mrb[0].mxu0 %v11143_v56  ;;  %v18721_v56 = vld [vmem:[%s21821_s3 + $0x3f0] ss:$8 sps:$4 sm:$0xff]  }
 0xad4   : > { %11322 = vmatprep.mubr.bf16.mxu0 %v19073_v42  ;;  %11611 = vmatpush1.bf16.msra.mxu0 %v18676_v58  ;;  %v18723_v58 = vld [vmem:[%s21821_s3 + $0x3f4] ss:$8 sps:$4 sm:$0xff]  }
 0xad5   : > { %11612 = vmatprep.subr.bf16.mxu0 %v18681_v7  ;;  %v11465_v7 = vld [vmem:[#allocation3 + $0x66] sm:$0xff] }
 0xad8   : > { %11613 = vmatpush1.bf16.msra.mxu0 %v18679_v43  ;;  %v11466_v43 = vld [vmem:[#allocation3 + $0x6e] sm:$0xff] }
 0xad9   : > { %11614 = vmatprep.subr.bf16.mxu0 %v18684_v25  ;;  %v11477_v25 = vpack.c.bf16 %v11466_v43, %v11465_v7 }
 0xadb   : > { %11323 = vmatmul.mubr.bf16.gmra.mrb[4].mxu0 %v11144_v20  ;;  %v11469_v20 = vld [vmem:[#allocation3 + $0x96] sm:$0xff] }
 0xadc   : > { %11332 = vmatprep.mubr.bf16.mxu0 %v19073_v42  ;;  %11615 = vmatpush1.bf16.msra.mxu0 %v18682_v6  ;;  %v11478_v6 = vpack.c.bf16 %v11468_v15, %v11467_v32 }
 0xadd   : > { %11616 = vmatprep.subr.bf16.mxu0 %v18687_v16  ;;  %v11470_v16 = vld [vmem:[#allocation3 + $0x9e] sm:$0xff] }
 0xae0   : > { %11617 = vmatpush1.bf16.msra.mxu0 %v18685_v4  ;;  %v11479_v4 = vpack.c.bf16 %v11470_v16, %v11469_v20 }
 0xae1   : > { %11618 = vmatprep.subr.bf16.mxu0 %v18690_v57  ;;  %v11471_v57 = vld [vmem:[#allocation3 + $0xae] sm:$0xff] }
 0xae2   : > { %v11480_v33 = vpack.c.bf16 %v11472_v46, %v11471_v57 }
 0xae3   : > { %11333 = vmatmul.mubr.bf16.gmra.mrb[8].mxu0 %v11145_v23  ;;  %v11788_v23 = vld [vmem:[#allocation3 + $0xf] sm:$0xff] }
 0xae4   : > { %11342 = vmatprep.mubr.bf16.mxu0 %v19073_v42  ;;  %11619 = vmatpush1.bf16.msra.mxu0 %v18688_v27  ;;  %v11787_v27 = vld [vmem:[#allocation3 + $0x7] sm:$0xff] }
 0xae5   : > { %11620 = vmatprep.subr.bf16.mxu0 %v18693_v40  ;;  %v11803_v40 = vpack.c.bf16 %v11788_v23, %v11787_v27 }
 0xae8   : > { %11621 = vmatpush1.bf16.msra.mxu0 %v18691_v38  ;;  %v11789_v38 = vld [vmem:[#allocation3 + $0x1f] sm:$0xff] }
 0xae9   : > { %11622 = vmatprep.subr.bf16.mxu0 %v18696_v21  ;;  %v11790_v21 = vld [vmem:[#allocation3 + $0x27] sm:$0xff] }
 0xaea   : > { %v11804_v50 = vpack.c.bf16 %v11790_v21, %v11789_v38 }
 0xaeb   : > { %11343 = vmatmul.mubr.bf16.gmra.mrb[12].mxu0 %v11146_v35 }
 0xaec   : > { %11352 = vmatprep.mubr.bf16.mxu0 %v19073_v42  ;;  %11623 = vmatpush1.bf16.msra.mxu0 %v18694_v22  ;;  %v11792_v22 = vld [vmem:[#allocation3 + $0x3f] sm:$0xff] }
 0xaed   : > { %11624 = vmatprep.subr.bf16.mxu0 %v18699_v39  ;;  %v11805_v35 = vpack.c.bf16 %v11792_v22, %v11791_v9  ;;  %v11793_v39 = vld [vmem:[#allocation3 + $0x4f] sm:$0xff] }
 0xaf0   : > { %11625 = vmatpush1.bf16.msra.mxu0 %v18697_v55  ;;  %v11794_v55 = vld [vmem:[#allocation3 + $0x57] sm:$0xff] }
 0xaf1   : > { %11940 = vmatprep.subr.bf16.mxu0 %v18702_v36  ;;  %v11806_v36 = vpack.c.bf16 %v11794_v55, %v11793_v39  ;;  %v18724_v39 = vld [vmem:[%s21826_s8] sm:$0xff]   ;;  %v18725_v55 = vld [vmem:[%s21826_s8 + $0x8] sm:$0xff]  }
 0xaf3   : > { %11353 = vmatmul.mubr.bf16.gmra.mrb[16].mxu0 %v11147_v54  ;;  %v11807_v54 = vpack.c.bf16 %v11796_v49, %v11795_v51  ;;  %v18727_v51 = vld [vmem:[%s21826_s8 + $0x18] sm:$0xff]   ;;  %v18728_v49 = vld [vmem:[%s21827_s9] sm:$0xff]  }
 0xaf4   : > { %11362 = vmatprep.mubr.bf16.mxu0 %v19073_v42 }
 0xafb   : > { %11363 = vmatmul.mubr.bf16.gmra.mrb[20].mxu0 %v11148_v63  ;;  %v11808_v63 = vpack.c.bf16 %v11798_v14, %v11797_v34  ;;  %v18730_v34 = vld [vmem:[%s21827_s9 + $0x10] sm:$0xff]   ;;  %v18731_v14 = vld [vmem:[%s21827_s9 + $0x18] sm:$0xff]  }
 0xafc   : > { %11372 = vmatprep.mubr.bf16.mxu0 %v19073_v42 }
 0xb03   : > { %11373 = vmatmul.mubr.bf16.gmra.mrb[24].mxu0 %v11149_v19  ;;  %v11809_v19 = vpack.c.bf16 %v11800_v52, %v11799_v62  ;;  %v18733_v62 = vld [vmem:[%s21828_s10] sm:$0xff]   ;;  %v18734_v52 = vld [vmem:[%s21828_s10 + $0x48] sm:$0xff]  }
 0xb04   : > { %11382 = vmatprep.mubr.bf16.mxu0 %v19073_v42 }
 0xb0b   : > { %11383 = vmatmul.mubr.bf16.gmra.mrb[28].mxu0 %v11150_v5  ;;  %v11810_v5 = vpack.c.bf16 %v11802_v13, %v11801_v10  ;;  %v18737_v10 = vld [vmem:[%s21828_s10 + $0x10] sm:$0xff]   ;;  %v18738_v13 = vld [vmem:[%s21828_s10 + $0x58] sm:$0xff]  }
 0xb0c   : > { %11642 = vmatprep.mubr.bf16.mxu0 %v19073_v42 }
 0xb13   : > { %11643 = vmatmul.mubr.bf16.vlgmr.msra.gmra.mrb[0].mxu0 %v11473_v48 }
 0xb14   : > { %11652 = vmatprep.mubr.bf16.mxu0 %v19073_v42  ;;  %11941 = vmatpush1.bf16.msra.mxu0 %v18700_v45 }
 0xb15   : > { %11942 = vmatprep.subr.bf16.mxu0 %v18705_v3 }
 0xb18   : > { %11943 = vmatpush1.bf16.msra.mxu0 %v18703_v17 }
 0xb19   : > { %11944 = vmatprep.subr.bf16.mxu0 %v18708_v0 }
 0xb1b   : > { %11653 = vmatmul.mubr.bf16.gmra.mrb[4].mxu0 %v11474_v12 }
 0xb1c   : > { %11662 = vmatprep.mubr.bf16.mxu0 %v19073_v42  ;;  %11945 = vmatpush1.bf16.msra.mxu0 %v18706_v30 }
 0xb1d   : > { %11946 = vmatprep.subr.bf16.mxu0 %v18711_v61 }
 0xb20   : > { %11947 = vmatpush1.bf16.msra.mxu0 %v18709_v59 }
 0xb21   : > { %11948 = vmatprep.subr.bf16.mxu0 %v18714_v18 }
 0xb23   : > { %11663 = vmatmul.mubr.bf16.gmra.mrb[8].mxu0 %v11475_v24 }
 0xb24   : > { %11672 = vmatprep.mubr.bf16.mxu0 %v19073_v42  ;;  %11949 = vmatpush1.bf16.msra.mxu0 %v18712_v53 }
 0xb25   : > { %11950 = vmatprep.subr.bf16.mxu0 %v18717_v37 }
 0xb28   : > { %11951 = vmatpush1.bf16.msra.mxu0 %v18715_v26 }
 0xb29   : > { %11952 = vmatprep.subr.bf16.mxu0 %v18720_v47 }
 0xb2b   : > { %11673 = vmatmul.mubr.bf16.gmra.mrb[12].mxu0 %v11476_v2 }
 0xb2c   : > { %11682 = vmatprep.mubr.bf16.mxu0 %v19073_v42  ;;  %11953 = vmatpush1.bf16.msra.mxu0 %v18718_v1 }
 0xb2d   : > { %11954 = vmatprep.subr.bf16.mxu0 %v18723_v58 }
 0xb30   : > { %11955 = vmatpush1.bf16.msra.mxu0 %v18721_v56 }
 0xb33   : > { %11683 = vmatmul.mubr.bf16.gmra.mrb[16].mxu0 %v11477_v25 }
 0xb34   : > { %11692 = vmatprep.mubr.bf16.mxu0 %v19073_v42 }
 0xb3b   : > { %11693 = vmatmul.mubr.bf16.gmra.mrb[20].mxu0 %v11478_v6 }
 0xb3c   : > { %11702 = vmatprep.mubr.bf16.mxu0 %v19073_v42 }
 0xb43   : > { %11703 = vmatmul.mubr.bf16.gmra.mrb[24].mxu0 %v11479_v4 }
 0xb44   : > { %11712 = vmatprep.mubr.bf16.mxu0 %v19073_v42 }
 0xb4b   : > { %11713 = vmatmul.mubr.bf16.gmra.mrb[28].mxu0 %v11480_v33 }
 0xb4c   : > { %11972 = vmatprep.mubr.bf16.mxu0 %v19073_v42 }
 0xb53   : > { %11973 = vmatmul.mubr.bf16.vlgmr.msra.gmra.mrb[0].mxu0 %v11803_v40 }
 0xb54   : > { %11982 = vmatprep.mubr.bf16.mxu0 %v19073_v42 }
 0xb5b   : > { %11983 = vmatmul.mubr.bf16.gmra.mrb[4].mxu0 %v11804_v50 }
 0xb5c   : > { %11992 = vmatprep.mubr.bf16.mxu0 %v19073_v42 }
 0xb63   : > { %11993 = vmatmul.mubr.bf16.gmra.mrb[8].mxu0 %v11805_v35 }
 0xb64   : > { %12002 = vmatprep.mubr.bf16.mxu0 %v19073_v42 }
 0xb6b   : > { %12003 = vmatmul.mubr.bf16.gmra.mrb[12].mxu0 %v11806_v36  ;;  %v18726_v36 = vld [vmem:[%s21826_s8 + $0x10] sm:$0xff]  }
 0xb6c   : > { %12012 = vmatprep.mubr.bf16.mxu0 %v19073_v42 }
 0xb73   : > { %12013 = vmatmul.mubr.bf16.gmra.mrb[16].mxu0 %v11807_v54  ;;  %v18729_v54 = vld [vmem:[%s21827_s9 + $0x8] sm:$0xff]  }
 0xb74   : > { %12022 = vmatprep.mubr.bf16.mxu0 %v19073_v42 }
 0xb7b   : > { %12023 = vmatmul.mubr.bf16.gmra.mrb[20].mxu0 %v11808_v63  ;;  %v18732_v63 = vld [vmem:[%s21828_s10 + $0x40] sm:$0xff]  }
 0xb7c   : > { %12032 = vmatprep.mubr.bf16.mxu0 %v19073_v42 }
 0xb83   : > { %12033 = vmatmul.mubr.bf16.gmra.mrb[24].mxu0 %v11809_v19  ;;  %v18736_v19 = vld [vmem:[%s21828_s10 + $0x50] sm:$0xff]  }
 0xb84   : > { %12042 = vmatprep.mubr.bf16.mxu0 %v19073_v42 }
 0xb8b   : > { %12043 = vmatmul.mubr.bf16.gmra.mrb[28].mxu0 %v11810_v5  ;;  %v18739_v5 = vld [vmem:[%s21828_s10 + $0x18] sm:$0xff]  }
 0xb8c   : > { %12229 = vmatprep.mubr.bf16.mxu0 %v19073_v42 }
 0xc26   : > { %v11974_v29 = vpop.f32.mrb[0].mxu0 }
 0xc27   : > { %v11976_v31 = vpop.f32.mrb[1].mxu0 }
 0xc28   : > { %v11978_v45 = vpop.f32.mrb[2].mxu0 }
 0xc29   : > { %v20955_v48 = vpack.c.bf16 %v11978_v45, %v11974_v29  ;;  %v11980_v3 = vpop.f32.mrb[3].mxu0  ;;  %v18740_v29 = vld [vmem:[%s21828_s10 + $0x60] sm:$0xff]   ;;  %v18742_v45 = vld [vmem:[%s21828_s10 + $0x68] sm:$0xff]  }
 0xc2a   : > { %v12150_v17 = vpack.c.bf16 %v11980_v3, %v11976_v31  ;;  %v18741_v31 = vld [vmem:[%s21828_s10 + $0x20] sm:$0xff]   ;;  %v18744_v3 = vld [vmem:[%s21828_s10 + $0x70] sm:$0xff]  }
 0xc2c   : > { %12197 = vmatprep.subr.bf16.mxu0 %v12150_v17 }
 0xc2d   : > { %12198 = vmatpush1.bf16.msra.mxu0 %v20955_v48 }
 0xc2e   : > { %v11984_v0 = vpop.f32.mrb[4].mxu0 }
 0xc2f   : > { %v11986_v60 = vpop.f32.mrb[5].mxu0 }
 0xc30   : > { %v11988_v11 = vpop.f32.mrb[6].mxu0 }
 0xc31   : > { %v12151_v30 = vpack.c.bf16 %v11988_v11, %v11984_v0  ;;  %v11990_v12 = vpop.f32.mrb[7].mxu0  ;;  %v18746_v0 = vld [vmem:[%s21828_s10 + $0x78] sm:$0xff]   ;;  %v18748_v11 = vld [vmem:[%s21828_s10 + $0xc0] sm:$0xff]  }
 0xc32   : > { %v12152_v61 = vpack.c.bf16 %v11990_v12, %v11986_v60  ;;  %v18747_v60 = vld [vmem:[%s21828_s10 + $0x38] sm:$0xff]   ;;  %v18755_v12 = vld [vmem:[%s21828_s10 + $0x380] sm:$0xff]  }
 0xc34   : > { %12199 = vmatprep.subr.bf16.mxu0 %v12152_v61 }
 0xc35   : > { %12200 = vmatpush1.bf16.msra.mxu0 %v12151_v30 }
 0xc36   : > { %v11994_v59 = vpop.f32.mrb[8].mxu0 }
 0xc37   : > { %v11996_v18 = vpop.f32.mrb[9].mxu0 }
 0xc38   : > { %v11998_v8 = vpop.f32.mrb[10].mxu0 }
 0xc39   : > { %v12153_v28 = vpack.c.bf16 %v11998_v8, %v11994_v59  ;;  %v12000_v53 = vpop.f32.mrb[11].mxu0  ;;  %v18759_v59 = vld [vmem:[%s21828_s10 + $0x388] sm:$0xff]   ;;  %v18763_v8 = vld [vmem:[%s21828_s10 + $0x390] sm:$0xff]  }
 0xc3a   : > { %v12154_v24 = vpack.c.bf16 %v12000_v53, %v11996_v18  ;;  %v18762_v18 = vld [vmem:[%s21828_s10 + $0x3d0] sm:$0xff]   ;;  %v18767_v53 = vld [vmem:[%s21828_s10 + $0x398] sm:$0xff]  }
 0xc3c   : > { %12201 = vmatprep.subr.bf16.mxu0 %v12154_v24 }
 0xc3d   : > { %12202 = vmatpush1.bf16.msra.mxu0 %v12153_v28 }
 0xc3e   : > { %v12004_v37 = vpop.f32.mrb[12].mxu0 }
 0xc3f   : > { %v12006_v26 = vpop.f32.mrb[13].mxu0 }
 0xc40   : > { %v12008_v47 = vpop.f32.mrb[14].mxu0 }
 0xc41   : > { %v12155_v44 = vpack.c.bf16 %v12008_v47, %v12004_v37  ;;  %v12010_v41 = vpop.f32.mrb[15].mxu0  ;;  %v18771_v37 = vld [vmem:[%s21828_s10 + $0x3a0] sm:$0xff]   ;;  %v18775_v47 = vld [vmem:[%s21828_s10 + $0x3a8] sm:$0xff]  }
 0xc42   : > { %v12156_v1 = vpack.c.bf16 %v12010_v41, %v12006_v26  ;;  %v18774_v26 = vld [vmem:[%s21828_s10 + $0x3e8] sm:$0xff]   ;;  %v18779_v41 = vld [vmem:[%s21828_s10 + $0x3b0] sm:$0xff]  }
 0xc44   : > { %12203 = vmatprep.subr.bf16.mxu0 %v12156_v1 }
 0xc45   : > { %12204 = vmatpush1.bf16.msra.mxu0 %v12155_v44 }
 0xc46   : > { %v12014_v2 = vpop.f32.mrb[16].mxu0 }
 0xc47   : > { %v12016_v58 = vpop.f32.mrb[17].mxu0 }
 0xc48   : > { %v12018_v56 = vpop.f32.mrb[18].mxu0 }
 0xc49   : > { %v12157_v7 = vpack.c.bf16 %v12018_v56, %v12014_v2  ;;  %v12020_v43 = vpop.f32.mrb[19].mxu0  ;;  %v18783_v2 = vld [vmem:[%s21828_s10 + $0x3b8] sm:$0xff]  }
 0xc4a   : > { %v12158_v25 = vpack.c.bf16 %v12020_v43, %v12016_v58 }
 0xc4c   : > { %12205 = vmatprep.subr.bf16.mxu0 %v12158_v25 }
 0xc4d   : > { %12206 = vmatpush1.bf16.msra.mxu0 %v12157_v7 }
 0xc4e   : > { %v12024_v32 = vpop.f32.mrb[20].mxu0 }
 0xc4f   : > { %v12026_v15 = vpop.f32.mrb[21].mxu0 }
 0xc50   : > { %v12028_v6 = vpop.f32.mrb[22].mxu0 }
 0xc51   : > { %v12159_v20 = vpack.c.bf16 %v12028_v6, %v12024_v32  ;;  %v12030_v16 = vpop.f32.mrb[23].mxu0 }
 0xc52   : > { %v12160_v4 = vpack.c.bf16 %v12030_v16, %v12026_v15 }
 0xc54   : > { %12207 = vmatprep.subr.bf16.mxu0 %v12160_v4 }
 0xc55   : > { %12208 = vmatpush1.bf16.msra.mxu0 %v12159_v20 }
 0xc56   : > { %v12034_v57 = vpop.f32.mrb[24].mxu0 }
 0xc57   : > { %v12036_v46 = vpop.f32.mrb[25].mxu0 }
 0xc58   : > { %v12038_v33 = vpop.f32.mrb[26].mxu0 }
 0xc59   : > { %v12161_v27 = vpack.c.bf16 %v12038_v33, %v12034_v57  ;;  %v12040_v23 = vpop.f32.mrb[27].mxu0 }
 0xc5a   : > { %v12162_v40 = vpack.c.bf16 %v12040_v23, %v12036_v46 }
 0xc5c   : > { %12209 = vmatprep.subr.bf16.mxu0 %v12162_v40 }
 0xc5d   : > { %12210 = vmatpush1.bf16.msra.mxu0 %v12161_v27 }
 0xc5e   : > { %v12044_v38 = vpop.f32.mrb[28].mxu0 }
 0xc5f   : > { %v12046_v21 = vpop.f32.mrb[29].mxu0 }
 0xc60   : > { %v12048_v50 = vpop.f32.mrb[30].mxu0 }
 0xc61   : > { %v12163_v9 = vpack.c.bf16 %v12048_v50, %v12044_v38  ;;  %v12050_v22 = vpop.f32.mrb[31].mxu0 }
 0xc62   : > { %v12164_v35 = vpack.c.bf16 %v12050_v22, %v12046_v21 }
 0xc64   : > { %12211 = vmatprep.subr.bf16.mxu0 %v12164_v35 }
 0xc65   : > { %12212 = vmatpush1.bf16.msra.mxu0 %v12163_v9 }
 0xc66   : > { %12302 = vmatprep.subr.bf16.mxu0 %v12150_v17  ;;  %v18745_v17 = vld [vmem:[%s21828_s10 + $0x30] sm:$0xff]  }
 0xc68   : > { %12230 = vmatmul.mubr.bf16.vlgmr.msra.gmra.mrb[32].mxu0 %v18724_v39 }
 0xc69   : > { %12303 = vmatpush1.bf16.msra.mxu0 %v20955_v48  ;;  %12239 = vmatprep.mubr.bf16.mxu0 %v19073_v42  ;;  %v18743_v48 = vld [vmem:[%s21828_s10 + $0x28] sm:$0xff]  }
 0xc6a   : > { %12304 = vmatprep.subr.bf16.mxu0 %v12152_v61  ;;  %v18758_v61 = vld [vmem:[%s21828_s10 + $0x3c8] sm:$0xff]  }
 0xc6d   : > { %12305 = vmatpush1.bf16.msra.mxu0 %v12151_v30  ;;  %v18754_v30 = vld [vmem:[%s21828_s10 + $0x3c0] sm:$0xff]  }
 0xc6e   : > { %12306 = vmatprep.subr.bf16.mxu0 %v12154_v24  ;;  %16658 = vmatprep.subr.bf16.mxu1 %v18754_v30  ;;  %v18770_v24 = vld [vmem:[%s21828_s10 + $0x3e0] sm:$0xff]  }
 0xc6f   : > { %16659 = vmatpush3.bf16.msra.mxu1 %v18755_v12 }
 0xc70   : > { %12240 = vmatmul.mubr.bf16.gmra.mrb[36].mxu0 %v18725_v55  ;;  %16660 = vmatprep.subr.bf16.mxu1 %v18758_v61 }
 0xc71   : > { %12307 = vmatpush1.bf16.msra.mxu0 %v12153_v28  ;;  %12249 = vmatprep.mubr.bf16.mxu0 %v19073_v42  ;;  %v18766_v28 = vld [vmem:[%s21828_s10 + $0x3d8] sm:$0xff]  }
 0xc72   : > { %12308 = vmatprep.subr.bf16.mxu0 %v12156_v1  ;;  %v18782_v1 = vld [vmem:[%s21828_s10 + $0x3f8] sm:$0xff]  }
 0xc73   : > { %16661 = vmatpush3.bf16.msra.mxu1 %v18759_v59 }
 0xc74   : > { %16662 = vmatprep.subr.bf16.mxu1 %v18762_v18 }
 0xc75   : > { %12309 = vmatpush1.bf16.msra.mxu0 %v12155_v44  ;;  %v18778_v44 = vld [vmem:[%s21828_s10 + $0x3f0] sm:$0xff]  }
 0xc76   : > { %12310 = vmatprep.subr.bf16.mxu0 %v12158_v25 }
 0xc77   : > { %16663 = vmatpush3.bf16.msra.mxu1 %v18763_v8 }
 0xc78   : > { %12250 = vmatmul.mubr.bf16.gmra.mrb[40].mxu0 %v18726_v36  ;;  %16664 = vmatprep.subr.bf16.mxu1 %v18766_v28 }
 0xc79   : > { %12311 = vmatpush1.bf16.msra.mxu0 %v12157_v7  ;;  %12259 = vmatprep.mubr.bf16.mxu0 %v19073_v42 }
 0xc7a   : > { %12312 = vmatprep.subr.bf16.mxu0 %v12160_v4 }
 0xc7b   : > { %16665 = vmatpush3.bf16.msra.mxu1 %v18767_v53 }
 0xc7c   : > { %16666 = vmatprep.subr.bf16.mxu1 %v18770_v24 }
 0xc7d   : > { %12313 = vmatpush1.bf16.msra.mxu0 %v12159_v20 }
 0xc7e   : > { %12314 = vmatprep.subr.bf16.mxu0 %v12162_v40 }
 0xc7f   : > { %16667 = vmatpush3.bf16.msra.mxu1 %v18771_v37 }
 0xc80   : > { %12260 = vmatmul.mubr.bf16.gmra.mrb[44].mxu0 %v18727_v51  ;;  %16668 = vmatprep.subr.bf16.mxu1 %v18774_v26 }
 0xc81   : > { %12315 = vmatpush1.bf16.msra.mxu0 %v12161_v27  ;;  %12334 = vmatprep.mubr.bf16.mxu0 %v19073_v42 }
 0xc82   : > { %12316 = vmatprep.subr.bf16.mxu0 %v12164_v35 }
 0xc83   : > { %16669 = vmatpush3.bf16.msra.mxu1 %v18775_v47 }
 0xc84   : > { %16670 = vmatprep.subr.bf16.mxu1 %v18778_v44 }
 0xc85   : > { %12317 = vmatpush1.bf16.msra.mxu0 %v12163_v9 }
 0xc86   : > { %16504 = vmatprep.subr.bf16.mxu0 %v18732_v63 }
 0xc87   : > { %16671 = vmatpush3.bf16.msra.mxu1 %v18779_v41 }
 0xc88   : > { %12335 = vmatmul.mubr.bf16.vlgmr.msra.gmra.mrb[48].mxu0 %v18728_v49  ;;  %16672 = vmatprep.subr.bf16.mxu1 %v18782_v1 }
 0xc89   : > { %12344 = vmatprep.mubr.bf16.mxu0 %v19073_v42  ;;  %16505 = vmatpush3.bf16.msra.mxu0 %v18733_v62 }
 0xc8a   : > { %16506 = vmatprep.subr.bf16.mxu0 %v18734_v52 }
 0xc8b   : > { %16673 = vmatpush3.bf16.msra.mxu1 %v18783_v2 }
 0xc90   : > { %12345 = vmatmul.mubr.bf16.gmra.mrb[52].mxu0 %v18729_v54 }
 0xc91   : > { %12354 = vmatprep.mubr.bf16.mxu0 %v19073_v42 }
 0xc98   : > { %12355 = vmatmul.mubr.bf16.gmra.mrb[56].mxu0 %v18730_v34 }
 0xc99   : > { %12364 = vmatprep.mubr.bf16.mxu0 %v19073_v42  ;;  %v18735_v42 = vld [vmem:[%s21828_s10 + $0x8] sm:$0xff]  }
 0xc9a   : > { %16507 = vmatpush3.bf16.msra.mxu0 %v18735_v42 }
 0xc9b   : > { %16508 = vmatprep.subr.bf16.mxu0 %v18736_v19 }
 0xc9e   : > { %16509 = vmatpush3.bf16.msra.mxu0 %v18737_v10 }
 0xc9f   : > { %16510 = vmatprep.subr.bf16.mxu0 %v18738_v13 }
 0xca0   : > { %12365 = vmatmul.mubr.bf16.gmra.mrb[60].mxu0 %v18731_v14 }
 0xca2   : > { %16511 = vmatpush3.bf16.msra.mxu0 %v18739_v5 }
 0xca3   : > { %16512 = vmatprep.subr.bf16.mxu0 %v18740_v29 }
 0xca6   : > { %16513 = vmatpush3.bf16.msra.mxu0 %v18741_v31 }
 0xca7   : > { %16514 = vmatprep.subr.bf16.mxu0 %v18742_v45 }
 0xcaa   : > { %16515 = vmatpush3.bf16.msra.mxu0 %v18743_v48 }
 0xcab   : > { %16516 = vmatprep.subr.bf16.mxu0 %v18744_v3 }
 0xcae   : > { %16517 = vmatpush3.bf16.msra.mxu0 %v18745_v17 }
 0xcaf   : > { %16518 = vmatprep.subr.bf16.mxu0 %v18746_v0 }
 0xcb2   : > { %16519 = vmatpush3.bf16.msra.mxu0 %v18747_v60 }
 0xcb3   : > { %16526 = vmatprep.subr.bf16.mxu0 %v18748_v11 }
 0xd3b   : > { %v12231_v58 = vpop.f32.mrb[32].mxu0 }
 0xd3c   : > { %v12233_v56 = vpop.f32.mrb[33].mxu0 }
 0xd3d   : > { %v12235_v7 = vpop.f32.mrb[34].mxu0 }
 0xd3e   : > { %v12237_v43 = vpop.f32.mrb[35].mxu0 }
 0xd43   : > { %v12241_v25 = vpop.f32.mrb[36].mxu0 }
 0xd44   : > { %v21089_v32 = vpop.f32.mrb[37].mxu0 }
 0xd45   : > { %v12245_v15 = vpop.f32.mrb[38].mxu0 }
 0xd46   : > { %v21091_v6 = vpop.f32.mrb[39].mxu0 }
 0xd4b   : > { %v21093_v20 = vpop.f32.mrb[40].mxu0 }
 0xd4c   : > { %v21095_v16 = vpop.f32.mrb[41].mxu0 }
 0xd4d   : > { %v21097_v4 = vpop.f32.mrb[42].mxu0 }
 0xd4e   : > { %v21099_v57 = vpop.f32.mrb[43].mxu0 }
 0xd53   : > { %v21101_v46 = vpop.f32.mrb[44].mxu0 }
 0xd54   : > { %v21103_v33 = vpop.f32.mrb[45].mxu0 }
 0xd55   : > { %v21105_v27 = vpop.f32.mrb[46].mxu0 }
 0xd56   : > { %v21107_v23 = vpop.f32.mrb[47].mxu0 }
 0xd5b   : > { %v12336_v40 = vpop.f32.mrb[48].mxu0 }
 0xd5c   : > { %v12375_v38 = vmax.f32 %v12231_v58, %v12336_v40  ;;  %v12338_v21 = vpop.f32.mrb[49].mxu0 }
 0xd5d   : > { %v12376_v50 = vmax.f32 %v12233_v56, %v12338_v21  ;;  %v12340_v9 = vpop.f32.mrb[50].mxu0 }
 0xd5e   : > { %v12391_v22 = vmax.f32 %v12375_v38, 0.0  ;;  %v12377_v35 = vmax.f32 %v12235_v7, %v12340_v9  ;;  %v12342_v39 = vpop.f32.mrb[51].mxu0 }
 0xd5f   : > { %v12392_v55 = vmax.f32 %v12376_v50, 0.0  ;;  %v12378_v36 = vmax.f32 %v12237_v43, %v12342_v39 }
 0xd60   : > { %v12447_v51 = vpack.c.bf16 %v12391_v22, %v12391_v22  ;;  %v12393_v49 = vmax.f32 %v12377_v35, 0.0 }
 0xd61   : > { %v12448_v54 = vpack.c.bf16 %v12392_v55, %v12392_v55  ;;  %v12394_v34 = vmax.f32 %v12378_v36, 0.0 }
 0xd62   : > { %v21109_v14 = vunpack.c.l.b16 %v12447_v51  ;;  %v12449_v63 = vpack.c.bf16 %v12393_v49, %v12393_v49 }
 0xd63   : > { %v21111_v62 = vunpack.c.l.b16 %v12448_v54  ;;  %v12450_v52 = vpack.c.bf16 %v12394_v34, %v12394_v34  ;;  %v12346_v42 = vpop.f32.mrb[52].mxu0 }
 0xd64   : > { %v12738_v19 = vrot.slane %v21109_v14, 1  ;;  %v12942_v10 = vrot.slane %v21109_v14, 2  ;;  %v13350_v13 = vrot.slane %v21109_v14, 4  ;;  %v12348_v5 = vpop.f32.mrb[53].mxu0  ;;  %v13554_v29 = vrot.slane %v21109_v14, 5 }
 0xd65   : > { %v13758_v31 = vrot.slane %v21109_v14, 6  ;;  %v21118_v45 = vunpack.c.l.b16 %v12449_v63  ;;  %v21120_v48 = vunpack.c.l.b16 %v12450_v52  ;;  %v12350_v3 = vpop.f32.mrb[54].mxu0  ;;  %v12379_v17 = vmax.f32 %v12241_v25, %v12346_v42 }
 0xd66   : > { %v12380_v0 = vmax.f32 %v21089_v32, %v12348_v5  ;;  %v12381_v60 = vmax.f32 %v12245_v15, %v12350_v3  ;;  %v12352_v11 = vpop.f32.mrb[55].mxu0  ;;  %v12752_v30 = vrot.slane %v21111_v62, 1  ;;  %v13146_v37 = vrot.slane %v21109_v14, 3 }
 0xd67   : > { %v12527_v12 = vrot.slane %v21118_v45, 7  ;;  %v12739_v61 = vsel %vm12528_vm2, %v21118_v45, %v12738_v19  ;;  %v12943_v59 = vrot.slane %v21118_v45, 1  ;;  %v13147_v18 = vrot.slane %v21118_v45, 2 }
 0xd68   : > { %v13351_v8 = vrot.slane %v21118_v45, 3  ;;  %v13555_v28 = vrot.slane %v21118_v45, 4  ;;  %v13759_v53 = vrot.slane %v21118_v45, 5  ;;  %v12395_v24 = vmax.f32 %v12379_v17, 0.0 }
 0xd69   : > { %v12529_v26 = vsel %vm12528_vm2, %v12527_v12, %v21109_v14  ;;  %v12944_v47 = vsel %vm12528_vm2, %v12943_v59, %v12942_v10  ;;  %v12397_v44 = vmax.f32 %v12381_v60, 0.0  ;;  %v13148_v7 = vsel %vm12528_vm2, %v13147_v18, %v13146_v37 }
 0xd6a   : > { %v13352_v41 = vsel %vm12528_vm2, %v13351_v8, %v13350_v13  ;;  %v13556_v1 = vsel %vm12528_vm2, %v13555_v28, %v13554_v29  ;;  %v13760_v2 = vsel %vm12528_vm2, %v13759_v53, %v13758_v31  ;;  %v12451_v58 = vpack.c.bf16 %v12395_v24, %v12395_v24 }
 0xd6b   : > { %v12453_v56 = vpack.c.bf16 %v12397_v44, %v12397_v44  ;;  %v12382_v43 = vmax.f32 %v21091_v6, %v12352_v11  ;;  %v12356_v25 = vpop.f32.mrb[56].mxu0  ;;  %v21146_v38 = vsel %vm12528_vm2, %v21120_v48, %v12752_v30  ;;  %v12396_v21 = vmax.f32 %v12380_v0, 0.0 }
 0xd6c   : > { %v21141_v32 = vunpack.c.l.b16 %v12451_v58  ;;  %v12383_v15 = vmax.f32 %v21093_v20, %v12356_v25  ;;  %v12358_v40 = vpop.f32.mrb[57].mxu0 }
 0xd6d   : > { %v21148_v50 = vunpack.c.l.b16 %v12453_v56  ;;  %v21150_v9 = vmax.f32 %v12382_v43, 0.0  ;;  %v12384_v22 = vmax.f32 %v21095_v16, %v12358_v40  ;;  %v12360_v35 = vpop.f32.mrb[58].mxu0 }
 0xd6e   : > { %v12530_v6 = vrot.slane %v21141_v32, 6  ;;  %v12740_v39 = vrot.slane %v21141_v32, 7  ;;  %v12945_v20 = vsel %vm12531_vm3, %v21141_v32, %v12944_v47  ;;  %v13149_v55 = vrot.slane %v21141_v32, 1  ;;  %v12362_v36 = vpop.f32.mrb[59].mxu0 }
 0xd6f   : > { %v13353_v51 = vrot.slane %v21141_v32, 2  ;;  %v13557_v49 = vrot.slane %v21141_v32, 3  ;;  %v13761_v54 = vrot.slane %v21141_v32, 4  ;;  %v12533_v34 = vrot.slane %v21148_v50, 5 }
 0xd70   : > { %v12532_v16 = vsel %vm12531_vm3, %v12530_v6, %v12529_v26  ;;  %v12741_v63 = vsel %vm12531_vm3, %v12740_v39, %v12739_v61  ;;  %v12742_v52 = vrot.slane %v21148_v50, 6  ;;  %v12946_v42 = vrot.slane %v21148_v50, 7 }
 0xd71   : > { %v13558_v19 = vsel %vm12531_vm3, %v13557_v49, %v13556_v1  ;;  %v13762_v10 = vsel %vm12531_vm3, %v13761_v54, %v13760_v2  ;;  %v12535_v13 = vsel %vm12534_vm4, %v12533_v34, %v12532_v16  ;;  %v13150_v5 = vsel %vm12531_vm3, %v13149_v55, %v13148_v7 }
 0xd72   : > { %v21171_v29 = vsel %vm12534_vm4, %v12742_v52, %v12741_v63  ;;  %v21174_v31 = vsel %vm12534_vm4, %v12946_v42, %v12945_v20  ;;  %v21178_v3 = vsel %vm12534_vm4, %v21148_v50, %v13150_v5  ;;  %v13355_v17 = vrot.slane %v21148_v50, 1 }
 0xd73   : > { %v13559_v0 = vrot.slane %v21148_v50, 2  ;;  %v13763_v60 = vrot.slane %v21148_v50, 3  ;;  %v12399_v11 = vmax.f32 %v12383_v15, 0.0  ;;  %v12366_v30 = vpop.f32.mrb[60].mxu0  ;;  %v13354_v12 = vsel %vm12531_vm3, %v13353_v51, %v13352_v41 }
 0xd74   : > { %v12400_v61 = vmax.f32 %v12384_v22, 0.0  ;;  %v12385_v59 = vmax.f32 %v21097_v4, %v12360_v35  ;;  %v12386_v18 = vmax.f32 %v21099_v57, %v12362_v36  ;;  %v12368_v8 = vpop.f32.mrb[61].mxu0  ;;  %v13356_v24 = vsel %vm12534_vm4, %v13355_v17, %v13354_v12 }
 0xd75   : > { %v21187_v28 = vsel %vm12534_vm4, %v13763_v60, %v13762_v10  ;;  %v12455_v53 = vpack.c.bf16 %v12399_v11, %v12399_v11  ;;  %v12370_v37 = vpop.f32.mrb[62].mxu0  ;;  %v12452_v26 = vpack.c.bf16 %v12396_v21, %v12396_v21  ;;  %v12454_v47 = vpack.c.bf16 %v21150_v9, %v21150_v9 }
 0xd76   : > { %v12401_v44 = vmax.f32 %v12385_v59, 0.0  ;;  %v13560_v41 = vsel %vm12534_vm4, %v13559_v0, %v13558_v19  ;;  %v12372_v1 = vpop.f32.mrb[63].mxu0  ;;  %v12387_v57 = vmax.f32 %v21101_v46, %v12366_v30  ;;  %v12388_v2 = vmax.f32 %v21103_v33, %v12368_v8 }
 0xd77   : > { %v21193_v4 = vunpack.c.l.b16 %v12455_v53  ;;  %v12389_v58 = vmax.f32 %v21105_v27, %v12370_v37  ;;  %v12456_v56 = vpack.c.bf16 %v12400_v61, %v12400_v61  ;;  %v12402_v43 = vmax.f32 %v12386_v18, 0.0 }
 0xd78   : > { %v12457_v7 = vpack.c.bf16 %v12401_v44, %v12401_v44  ;;  %v12390_v25 = vmax.f32 %v21107_v23, %v12372_v1  ;;  %v12548_v46 = vrot.slane %v21120_v48, 7  ;;  %v21208_v33 = vunpack.c.l.b16 %v12452_v26 }
 0xd79   : > { %v12536_v15 = vrot.slane %v21193_v4, 4  ;;  %v21202_v40 = vsel %vm12537_vm5, %v21193_v4, %v13356_v24  ;;  %v13561_v21 = vrot.slane %v21193_v4, 1  ;;  %v12403_v22 = vmax.f32 %v12387_v57, 0.0 }
 0xd7a   : > { %v21205_v9 = vunpack.c.l.b16 %v12457_v7  ;;  %v12404_v23 = vmax.f32 %v12388_v2, 0.0  ;;  %v21211_v35 = vunpack.c.l.b16 %v12454_v47  ;;  %v21213_v6 = vunpack.c.l.b16 %v12456_v56 }
 0xd7b   : > { %v12538_v27 = vsel %vm12537_vm5, %v12536_v15, %v12535_v13  ;;  %v12458_v20 = vpack.c.bf16 %v12402_v43, %v12402_v43  ;;  %v12744_v55 = vrot.slane %v21193_v4, 5  ;;  %v12948_v36 = vrot.slane %v21193_v4, 6 }
 0xd7c   : > { %v12539_v39 = vrot.slane %v21205_v9, 3  ;;  %v13562_v51 = vsel %vm12537_vm5, %v13561_v21, %v13560_v41  ;;  %v12459_v49 = vpack.c.bf16 %v12403_v22, %v12403_v22  ;;  %v12460_v16 = vpack.c.bf16 %v12404_v23, %v12404_v23 }
 0xd7d   : > { %v21222_v34 = vsel %vm12540_vm6, %v21205_v9, %v13562_v51  ;;  %v12405_v63 = vmax.f32 %v12389_v58, 0.0  ;;  %v12406_v42 = vmax.f32 %v12390_v25, 0.0  ;;  %v12549_v19 = vsel %vm12528_vm2, %v12548_v46, %v21111_v62 }
 0xd7e   : > { %v12541_v54 = vsel %vm12540_vm6, %v12539_v39, %v12538_v27  ;;  %v21224_v52 = vunpack.c.l.b16 %v12459_v49  ;;  %v12550_v10 = vrot.slane %v21208_v33, 6  ;;  %v13152_v13 = vrot.slane %v21193_v4, 7 }
 0xd7f   : > { %v12746_v5 = vrot.slane %v21205_v9, 4  ;;  %v21231_v17 = vunpack.c.l.b16 %v12458_v20  ;;  %v12461_v0 = vpack.c.bf16 %v12405_v63, %v12405_v63  ;;  %v12950_v60 = vrot.slane %v21205_v9, 5 }
 0xd80   : > { %v13154_v11 = vrot.slane %v21205_v9, 6  ;;  %v12542_v30 = vrot.slane %v21224_v52, 2  ;;  %v21236_v12 = vunpack.c.l.b16 %v12460_v16  ;;  %v13358_v61 = vrot.slane %v21205_v9, 7 }
 0xd81   : > { %v21239_v59 = vunpack.c.l.b16 %v12461_v0  ;;  %v12462_v18 = vpack.c.bf16 %v12406_v42, %v12406_v42  ;;  %v12552_v8 = vrot.slane %v21211_v35, 5  ;;  %v12748_v24 = vrot.slane %v21224_v52, 3 }
 0xd82   : > { %v12544_v53 = vsel %vm12543_vm7, %v12542_v30, %v12541_v54  ;;  %v12551_v37 = vsel %vm12531_vm3, %v12550_v10, %v12549_v19  ;;  %v12554_v26 = vrot.slane %v21213_v6, 4  ;;  %v12952_v47 = vrot.slane %v21224_v52, 4  ;;  %v18749_v30 = vld [vmem:[%s21828_s10 + $0x80] sm:$0xff]  }
 0xd83   : > { %v13156_v44 = vrot.slane %v21224_v52, 5  ;;  %v12545_v41 = vrot.slane %v21239_v59, 1  ;;  %v12556_v1 = vrot.slane %v21231_v17, 3  ;;  %v13360_v57 = vrot.slane %v21224_v52, 6 }
 0xd84   : > { %v12750_v2 = vrot.slane %v21239_v59, 2  ;;  %v21252_v58 = vunpack.c.l.b16 %v12462_v18  ;;  %v12558_v56 = vrot.slane %v21236_v12, 2  ;;  %v12553_v43 = vsel %vm12534_vm4, %v12552_v8, %v12551_v37 }
 0xd85   : > { %v12547_v7 = vsel %vm12546_vm8, %v12545_v41, %v12544_v53  ;;  %v12754_v25 = vrot.slane %v21208_v33, 7  ;;  %v12756_v15 = vrot.slane %v21211_v35, 6  ;;  %v12555_v46 = vsel %vm12537_vm5, %v12554_v26, %v12553_v43 }
 0xd86   : > { %v12562_v21 = vpack.c.b16 %v12547_v7, %v12547_v7  ;;  %v12560_v27 = vrot.slane %v21252_v58, 1  ;;  %v12758_v22 = vrot.slane %v21213_v6, 5  ;;  %v12557_v23 = vsel %vm12540_vm6, %v12556_v1, %v12555_v46 }
 0xd87   : > { %v12755_v39 = vsel %vm12531_vm3, %v12754_v25, %v21146_v38  ;;  %v12760_v20 = vrot.slane %v21231_v17, 4  ;;  %v12762_v51 = vrot.slane %v21236_v12, 3  ;;  %v12559_v49 = vsel %vm12543_vm7, %v12558_v56, %v12557_v23  ;;  %v18752_v23 = vld [vmem:[%s21828_s10 + $0xd0] sm:$0xff]  }
 0xd88   : > { %v12757_v54 = vsel %vm12534_vm4, %v12756_v15, %v12755_v39  ;;  %v12764_v16 = vrot.slane %v21252_v58, 2  ;;  %v12745_v63 = vsel %vm12537_vm5, %v12744_v55, %v21171_v29  ;;  %v12561_v42 = vsel %vm12546_vm8, %v12560_v27, %v12559_v49  ;;  %v18750_v29 = vld [vmem:[%s21828_s10 + $0xc8] sm:$0xff]  }
 0xd89   : > { %v12759_v19 = vsel %vm12537_vm5, %v12758_v22, %v12757_v54  ;;  %v12747_v10 = vsel %vm12540_vm6, %v12746_v5, %v12745_v63  ;;  %v13976_v38 = vrot.slane %v21111_v62, 7  ;;  %v12563_v0 = vpack.c.b16 %v12561_v42, %v12561_v42  ;;  %v18751_v15 = vld [vmem:[%s21828_s10 + $0x88] sm:$0xff]  }
 0xd8a   : > { %v12761_v18 = vsel %vm12540_vm6, %v12760_v20, %v12759_v19  ;;  %v12749_v8 = vsel %vm12543_vm7, %v12748_v24, %v12747_v10  ;;  %v13977_v53 = vrot.slane %v21120_v48, 6  ;;  %v13979_v37 = vrot.slane %v21208_v33, 5  ;;  %v18753_v19 = vld [vmem:[%s21828_s10 + $0x90] sm:$0xff]  }
 0xd8b   : > { %v12763_v55 = vsel %vm12543_vm7, %v12762_v51, %v12761_v18  ;;  %v21287_v5 = vsel %vm12546_vm8, %v12750_v2, %v12749_v8  ;;  %v13981_v26 = vrot.slane %v21211_v35, 4  ;;  %v12954_v41 = vrot.slane %v21239_v59, 3  ;;  %12694 = vmatprep.mubr.bf16.mxu0 %v12563_v0  ;;  %v18756_v18 = vld [vmem:[%s21828_s10 + $0xd8] sm:$0xff]  }
 0xd8c   : > { %v12765_v24 = vsel %vm12546_vm8, %v12764_v16, %v12763_v55  ;;  %v13978_v1 = vsel %vm12528_vm2, %v13977_v53, %v13976_v38  ;;  %v13983_v56 = vrot.slane %v21213_v6, 3  ;;  %12695 = vmatmul.mubr.bf16.vlgmr.msra.gmra.mrb[64].mxu0 %v12562_v21  ;;  %v13985_v2 = vrot.slane %v21231_v17, 2 }
 0xd8d   : > { %v12767_v7 = vpack.c.b16 %v12765_v24, %v12765_v24  ;;  %v13980_v43 = vsel %vm12531_vm3, %v13979_v37, %v13978_v1  ;;  %v13987_v25 = vrot.slane %v21236_v12, 1  ;;  %16527 = vmatpush3.bf16.msra.mxu0 %v18749_v30  ;;  %v13962_v27 = vrot.slane %v21109_v14, 7 }
 0xd8e   : > { %v13982_v46 = vsel %vm12534_vm4, %v13981_v26, %v13980_v43  ;;  %v13963_v22 = vrot.slane %v21118_v45, 6  ;;  %v13965_v21 = vrot.slane %v21141_v32, 5  ;;  %16528 = vmatprep.subr.bf16.mxu0 %v18750_v29  ;;  %v13967_v20 = vrot.slane %v21148_v50, 4 }
 0xd8f   : > { %12898 = vmatprep.mubr.bf16.mxu0 %v12767_v7  ;;  %v13984_v39 = vsel %vm12537_vm5, %v13983_v56, %v13982_v46  ;;  %v13969_v51 = vrot.slane %v21193_v4, 3  ;;  %v13971_v49 = vrot.slane %v21205_v9, 2  ;;  %v13973_v32 = vrot.slane %v21224_v52, 1 }
 0xd90   : > { %v13986_v14 = vsel %vm12540_vm6, %v13985_v2, %v13984_v39  ;;  %v13964_v45 = vsel %vm12528_vm2, %v13963_v22, %v13962_v27  ;;  %v12956_v54 = vrot.slane %v21111_v62, 2  ;;  %v12957_v42 = vrot.slane %v21120_v48, 1 }
 0xd91   : > { %v13988_v16 = vsel %vm12543_vm7, %v13987_v25, %v13986_v14  ;;  %v13966_v63 = vsel %vm12531_vm3, %v13965_v21, %v13964_v45  ;;  %v12960_v50 = vrot.slane %v21211_v35, 7  ;;  %16529 = vmatpush3.bf16.msra.mxu0 %v18751_v15  ;;  %v12962_v0 = vrot.slane %v21213_v6, 6  ;;  %v18757_v25 = vld [vmem:[%s21828_s10 + $0x98] sm:$0xff]  }
 0xd92   : > { %v13989_v10 = vsel %vm12546_vm8, %v21252_v58, %v13988_v16  ;;  %v13968_v38 = vsel %vm12534_vm4, %v13967_v20, %v13966_v63  ;;  %v12964_v30 = vrot.slane %v21231_v17, 5  ;;  %16530 = vmatprep.subr.bf16.mxu0 %v18752_v23  ;;  %v12958_v29 = vsel %vm12528_vm2, %v12957_v42, %v12956_v54  ;;  %v18761_v54 = vld [vmem:[%s21828_s10 + $0xa0] sm:$0xff]  }
 0xd93   : > { %v13991_v8 = vpack.c.b16 %v13989_v10, %v13989_v10  ;;  %v13970_v53 = vsel %vm12537_vm5, %v13969_v51, %v13968_v38  ;;  %v12966_v55 = vrot.slane %v21236_v12, 4  ;;  %v12959_v26 = vsel %vm12531_vm3, %v21208_v33, %v12958_v29 }
 0xd94   : > { %v13972_v37 = vsel %vm12540_vm6, %v13971_v49, %v13970_v53  ;;  %v12968_v24 = vrot.slane %v21252_v58, 3  ;;  %v12949_v1 = vsel %vm12537_vm5, %v12948_v36, %v21174_v31  ;;  %v12961_v7 = vsel %vm12534_vm4, %v12960_v50, %v12959_v26  ;;  %v18764_v50 = vld [vmem:[%s21828_s10 + $0xe8] sm:$0xff]  }
 0xd95   : > { %14122 = vmatprep.mubr.bf16.mxu1 %v13991_v8  ;;  %v13974_v56 = vsel %vm12543_vm7, %v13973_v32, %v13972_v37  ;;  %v12951_v43 = vsel %vm12540_vm6, %v12950_v60, %v12949_v1  ;;  %v13160_v2 = vrot.slane %v21111_v62, 3  ;;  %16531 = vmatpush3.bf16.msra.mxu0 %v18753_v19  ;;  %v12963_v31 = vsel %vm12537_vm5, %v12962_v0, %v12961_v7  ;;  %v18760_v60 = vld [vmem:[%s21828_s10 + $0xe0] sm:$0xff]  }
 0xd96   : > { %v13975_v15 = vsel %vm12546_vm8, %v21239_v59, %v13974_v56  ;;  %v12953_v36 = vsel %vm12543_vm7, %v12952_v47, %v12951_v43  ;;  %v13161_v46 = vrot.slane %v21120_v48, 2  ;;  %16532 = vmatprep.subr.bf16.mxu0 %v18756_v18  ;;  %v12965_v22 = vsel %vm12540_vm6, %v12964_v30, %v12963_v31  ;;  %v18768_v56 = vld [vmem:[%s21828_s10 + $0xf0] sm:$0xff]  }
 0xd97   : > { %v13990_v27 = vpack.c.b16 %v13975_v15, %v13975_v15  ;;  %v21365_v21 = vsel %vm12546_vm8, %v12954_v41, %v12953_v36  ;;  %v13163_v23 = vrot.slane %v21208_v33, 1  ;;  %v13158_v39 = vrot.slane %v21239_v59, 4 }
 0xd98   : > { %v12967_v47 = vsel %vm12543_vm7, %v12966_v55, %v12965_v22  ;;  %v13162_v20 = vsel %vm12528_vm2, %v13161_v46, %v13160_v2  ;;  %v13166_v51 = vrot.slane %v21213_v6, 7  ;;  %v13168_v45 = vrot.slane %v21231_v17, 6 }
 0xd99   : > { %14123 = vmatmul.mubr.bf16.vlgmr.msra.gmra.mrb[160].mxu1 %v13990_v27  ;;  %v21373_v49 = vsel %vm12546_vm8, %v12968_v24, %v12967_v47  ;;  %v13164_v14 = vsel %vm12531_vm3, %v13163_v23, %v13162_v20  ;;  %v13170_v41 = vrot.slane %v21236_v12, 5  ;;  %v13362_v32 = vrot.slane %v21239_v59, 5  ;;  %16533 = vmatpush3.bf16.msra.mxu0 %v18757_v25  ;;  %v18772_v20 = vld [vmem:[%s21828_s10 + $0xf8] sm:$0xff]  }
 0xd9a   : > { %v13165_v16 = vsel %vm12534_vm4, %v21211_v35, %v13164_v14  ;;  %v13172_v63 = vrot.slane %v21252_v58, 4  ;;  %v13153_v42 = vsel %vm12537_vm5, %v13152_v13, %v21178_v3  ;;  %16534 = vmatprep.subr.bf16.mxu0 %v18760_v60  ;;  %v13364_v38 = vrot.slane %v21111_v62, 4 }
 0xd9b   : > { %v13167_v19 = vsel %vm12537_vm5, %v13166_v51, %v13165_v16  ;;  %v13155_v10 = vsel %vm12540_vm6, %v13154_v11, %v13153_v42  ;;  %v13365_v0 = vrot.slane %v21120_v48, 3  ;;  %v13367_v13 = vrot.slane %v21208_v33, 2 }
 0xd9c   : > { %v13169_v30 = vsel %vm12540_vm6, %v13168_v45, %v13167_v19  ;;  %v13157_v3 = vsel %vm12543_vm7, %v13156_v44, %v13155_v10  ;;  %v13369_v18 = vrot.slane %v21211_v35, 1  ;;  %v13372_v29 = vrot.slane %v21231_v17, 7  ;;  %v18765_v44 = vld [vmem:[%s21828_s10 + $0xa8] sm:$0xff]  }
 0xd9d   : > { %v13171_v8 = vsel %vm12543_vm7, %v13170_v41, %v13169_v30  ;;  %v21406_v53 = vsel %vm12546_vm8, %v13158_v39, %v13157_v3  ;;  %v13366_v11 = vsel %vm12528_vm2, %v13365_v0, %v13364_v38  ;;  %v13564_v55 = vrot.slane %v21224_v52, 7  ;;  %16535 = vmatpush3.bf16.msra.mxu0 %v18761_v54 }
 0xd9e   : > { %v21415_v37 = vsel %vm12546_vm8, %v13172_v63, %v13171_v8  ;;  %v13368_v26 = vsel %vm12531_vm3, %v13367_v13, %v13366_v11  ;;  %v13374_v24 = vrot.slane %v21236_v12, 6  ;;  %v13566_v1 = vrot.slane %v21239_v59, 6  ;;  %16536 = vmatprep.subr.bf16.mxu0 %v18764_v50  ;;  %v18773_v50 = vld [vmem:[%s21828_s10 + $0xb8] sm:$0xff]  }
 0xd9f   : > { %v13370_v7 = vsel %vm12534_vm4, %v13369_v18, %v13368_v26  ;;  %v13376_v43 = vrot.slane %v21252_v58, 5  ;;  %v13359_v2 = vsel %vm12540_vm6, %v13358_v61, %v21202_v40  ;;  %v13568_v31 = vrot.slane %v21111_v62, 5  ;;  %v18777_v18 = vld [vmem:[%s21828_s10 + $0x100] sm:$0xff]   ;;  %v18784_v26 = vld [vmem:[%s21828_s10 + $0x150] sm:$0xff]  }
 0xda0   : > { %v13371_v25 = vsel %vm12537_vm5, %v21213_v6, %v13370_v7  ;;  %v13361_v15 = vsel %vm12543_vm7, %v13360_v57, %v13359_v2  ;;  %v13569_v36 = vrot.slane %v21120_v48, 4  ;;  %v13571_v27 = vrot.slane %v21208_v33, 3  ;;  %v18769_v57 = vld [vmem:[%s21828_s10 + $0xb0] sm:$0xff]   ;;  %v18790_v7 = vld [vmem:[%s21828_s10 + $0x168] sm:$0xff]  }
 0xda1   : > { %v13373_v46 = vsel %vm12540_vm6, %v13372_v29, %v13371_v25  ;;  %v21438_v60 = vsel %vm12546_vm8, %v13362_v32, %v13361_v15  ;;  %v13573_v40 = vrot.slane %v21211_v35, 2  ;;  %v13765_v61 = vrot.slane %v21193_v4, 2  ;;  %16537 = vmatpush3.bf16.msra.mxu0 %v18765_v44  ;;  %v18792_v2 = vld [vmem:[%s21828_s10 + $0x170] sm:$0xff]   ;;  %v18794_v15 = vld [vmem:[%s21828_s10 + $0x178] sm:$0xff]  }
 0xda2   : > { %v13375_v22 = vsel %vm12543_vm7, %v13374_v24, %v13373_v46  ;;  %v13570_v23 = vsel %vm12528_vm2, %v13569_v36, %v13568_v31  ;;  %v13575_v39 = vrot.slane %v21213_v6, 1  ;;  %v13767_v47 = vrot.slane %v21205_v9, 1  ;;  %16538 = vmatprep.subr.bf16.mxu0 %v18768_v56  ;;  %v18787_v24 = vld [vmem:[%s21828_s10 + $0x118] sm:$0xff]   ;;  %v18789_v56 = vld [vmem:[%s21828_s10 + $0x120] sm:$0xff]   ;;  %v18793_v25 = vld [vmem:[%s21828_s10 + $0x130] sm:$0xff]  }
 0xda3   : > { %v21454_v4 = vsel %vm12546_vm8, %v13376_v43, %v13375_v22  ;;  %v13572_v51 = vsel %vm12531_vm3, %v13571_v27, %v13570_v23  ;;  %v13578_v14 = vrot.slane %v21236_v12, 7  ;;  %v13580_v41 = vrot.slane %v21252_v58, 6  ;;  %v18791_v43 = vld [vmem:[%s21828_s10 + $0x128] sm:$0xff]   ;;  %v18795_v31 = vld [vmem:[%s21828_s10 + $0x138] sm:$0xff]   ;;  %v18796_v36 = vld [vmem:[%s21828_s10 + $0x1c0] sm:$0xff]  }
 0xda4   : > { %v13574_v45 = vsel %vm12534_vm4, %v13573_v40, %v13572_v51  ;;  %v13565_v32 = vsel %vm12543_vm7, %v13564_v55, %v21222_v34  ;;  %v13772_v9 = vrot.slane %v21111_v62, 6  ;;  %v13773_v63 = vrot.slane %v21120_v48, 5  ;;  %v18776_v48 = vld [vmem:[%s21828_s10 + $0x140] sm:$0xff]   ;;  %v18798_v40 = vld [vmem:[%s21828_s10 + $0x1c8] sm:$0xff]   ;;  %v18801_v22 = vld [vmem:[%s21828_s10 + $0x190] sm:$0xff]  }
 0xda5   : > { %v13576_v54 = vsel %vm12537_vm5, %v13575_v39, %v13574_v45  ;;  %v21465_v16 = vsel %vm12546_vm8, %v13566_v1, %v13565_v32  ;;  %v13775_v42 = vrot.slane %v21208_v33, 4  ;;  %16539 = vmatpush3.bf16.msra.mxu0 %v18769_v57  ;;  %v13777_v34 = vrot.slane %v21211_v35, 3  ;;  %v18788_v1 = vld [vmem:[%s21828_s10 + $0x160] sm:$0xff]   ;;  %v18799_v57 = vld [vmem:[%s21828_s10 + $0x188] sm:$0xff]   ;;  %v18803_v23 = vld [vmem:[%s21828_s10 + $0x198] sm:$0xff]  }
 0xda6   : > { %v13577_v19 = vsel %vm12540_vm6, %v21231_v17, %v13576_v54  ;;  %v13779_v62 = vrot.slane %v21213_v6, 2  ;;  %v13770_v10 = vrot.slane %v21239_v59, 7  ;;  %16540 = vmatprep.subr.bf16.mxu0 %v18772_v20  ;;  %v13774_v38 = vsel %vm12528_vm2, %v13773_v63, %v13772_v9  ;;  %v18797_v46 = vld [vmem:[%s21828_s10 + $0x180] sm:$0xff]   ;;  %v18806_v20 = vld [vmem:[%s21828_s10 + $0x1e8] sm:$0xff]   ;;  %v18809_v45 = vld [vmem:[%s21828_s10 + $0x1b0] sm:$0xff]  }
 0xda7   : > { %v13579_v33 = vsel %vm12543_vm7, %v13578_v14, %v13577_v19  ;;  %v13781_v0 = vrot.slane %v21231_v17, 1  ;;  %v13776_v35 = vsel %vm12531_vm3, %v13775_v42, %v13774_v38  ;;  %v13766_v6 = vsel %vm12537_vm5, %v13765_v61, %v21187_v28  ;;  %v18804_v39 = vld [vmem:[%s21828_s10 + $0x1e0] sm:$0xff]   ;;  %v18807_v51 = vld [vmem:[%s21828_s10 + $0x1a8] sm:$0xff]   ;;  %v18808_v14 = vld [vmem:[%s21828_s10 + $0x1f0] sm:$0xff]  }
 0xda8   : > { %v21484_v30 = vsel %vm12546_vm8, %v13580_v41, %v13579_v33  ;;  %v13778_v59 = vsel %vm12534_vm4, %v13777_v34, %v13776_v35  ;;  %v13784_v3 = vrot.slane %v21252_v58, 7  ;;  %v13768_v13 = vsel %vm12540_vm6, %v13767_v47, %v13766_v6  ;;  %v18780_v58 = vld [vmem:[%s21828_s10 + $0x148] sm:$0xff]   ;;  %v18805_v47 = vld [vmem:[%s21828_s10 + $0x1a0] sm:$0xff]   ;;  %v18810_v41 = vld [vmem:[%s21828_s10 + $0x1f8] sm:$0xff]  }
 0xda9   : > { %16541 = vmatpush3.bf16.msra.mxu0 %v18773_v50  ;;  %v13780_v17 = vsel %vm12537_vm5, %v13779_v62, %v13778_v59  ;;  %v13769_v8 = vsel %vm12543_vm7, %v21224_v52, %v13768_v13  ;;  %v12766_v28 = vpack.c.b16 %v21287_v5, %v21287_v5  ;;  %v12971_v55 = vpack.c.b16 %v21373_v49, %v21373_v49  ;;  %v18781_v5 = vld [vmem:[%s21828_s10 + $0x108] sm:$0xff]   ;;  %v18786_v49 = vld [vmem:[%s21828_s10 + $0x158] sm:$0xff]   ;;  %v18812_v9 = vld [vmem:[%s21828_s10 + $0x240] sm:$0xff]  }
 0xdaa   : > { %16548 = vmatprep.subr.bf16.mxu0 %v18776_v48  ;;  %v13782_v11 = vsel %vm12540_vm6, %v13781_v0, %v13780_v17  ;;  %v21505_v29 = vsel %vm12546_vm8, %v13770_v10, %v13769_v8  ;;  %v12970_v27 = vpack.c.b16 %v21365_v21, %v21365_v21  ;;  %v13175_v61 = vpack.c.b16 %v21415_v37, %v21415_v37  ;;  %v18800_v21 = vld [vmem:[%s21828_s10 + $0x1d0] sm:$0xff]   ;;  %v18802_v37 = vld [vmem:[%s21828_s10 + $0x1d8] sm:$0xff]   ;;  %v18813_v54 = vld [vmem:[%s21828_s10 + $0x200] sm:$0xff]  }
 0xdab   : > { %v13783_v44 = vsel %vm12543_vm7, %v21236_v12, %v13782_v11  ;;  %v18785_v12 = vld [vmem:[%s21828_s10 + $0x110] sm:$0xff]   ;;  %v18811_v32 = vld [vmem:[%s21828_s10 + $0x1b8] sm:$0xff]   ;;  %v13174_v63 = vpack.c.b16 %v21406_v53, %v21406_v53  ;;  %v18814_v42 = vld [vmem:[%s21828_s10 + $0x248] sm:$0xff]   ;;  %v13379_v50 = vpack.c.b16 %v21454_v4, %v21454_v4  ;;  %v13583_v8 = vpack.c.b16 %v21484_v30, %v21484_v30 }
 0xdac   : > { %12899 = vmatmul.mubr.bf16.vlgmr.msra.gmra.mrb[68].mxu0 %v12766_v28  ;;  %v21512_v52 = vsel %vm12546_vm8, %v13784_v3, %v13783_v44  ;;  %v18815_v19 = vld [vmem:[%s21828_s10 + $0x208] sm:$0xff]   ;;  %v18816_v53 = vld [vmem:[%s21828_s10 + $0x250] sm:$0xff]   ;;  %v18818_v4 = vld [vmem:[%s21828_s10 + $0x258] sm:$0xff]  }
 0xdad   : > { %16549 = vmatpush3.bf16.msra.mxu0 %v18777_v18  ;;  %13102 = vmatprep.mubr.bf16.mxu0 %v12971_v55  ;;  %v18817_v34 = vld [vmem:[%s21828_s10 + $0x210] sm:$0xff]   ;;  %v18819_v62 = vld [vmem:[%s21828_s10 + $0x218] sm:$0xff]   ;;  %v18820_v10 = vld [vmem:[%s21828_s10 + $0x260] sm:$0xff]   ;;  %v13378_v18 = vpack.c.b16 %v21438_v60, %v21438_v60 }
 0xdae   : > { %16550 = vmatprep.subr.bf16.mxu0 %v18780_v58  ;;  %v18821_v48 = vld [vmem:[%s21828_s10 + $0x220] sm:$0xff]   ;;  %v18822_v33 = vld [vmem:[%s21828_s10 + $0x268] sm:$0xff]   ;;  %v18824_v0 = vld [vmem:[%s21828_s10 + $0x270] sm:$0xff]  }
 0xdaf   : > { %v18823_v38 = vld [vmem:[%s21828_s10 + $0x228] sm:$0xff]   ;;  %v18825_v35 = vld [vmem:[%s21828_s10 + $0x230] sm:$0xff]   ;;  %v18826_v6 = vld [vmem:[%s21828_s10 + $0x278] sm:$0xff]  }
 0xdb0   : > { %v18827_v59 = vld [vmem:[%s21828_s10 + $0x238] sm:$0xff]   ;;  %v18828_v3 = vld [vmem:[%s21828_s10 + $0x2c0] sm:$0xff]   ;;  %v18830_v17 = vld [vmem:[%s21828_s10 + $0x2c8] sm:$0xff]  }
 0xdb1   : > { %16551 = vmatpush3.bf16.msra.mxu0 %v18781_v5  ;;  %v18829_v13 = vld [vmem:[%s21828_s10 + $0x280] sm:$0xff]   ;;  %v18831_v28 = vld [vmem:[%s21828_s10 + $0x288] sm:$0xff]   ;;  %v18832_v60 = vld [vmem:[%s21828_s10 + $0x2d0] sm:$0xff]  }
 0xdb2   : > { %16552 = vmatprep.subr.bf16.mxu0 %v18784_v26  ;;  %v18833_v58 = vld [vmem:[%s21828_s10 + $0x290] sm:$0xff]   ;;  %v18834_v30 = vld [vmem:[%s21828_s10 + $0x2d8] sm:$0xff]   ;;  %v18836_v55 = vld [vmem:[%s21828_s10 + $0x2e0] sm:$0xff]  }
 0xdb3   : > { %v18835_v11 = vld [vmem:[%s21828_s10 + $0x298] sm:$0xff]   ;;  %v18837_v44 = vld [vmem:[%s21828_s10 + $0x2a0] sm:$0xff]   ;;  %v18838_v5 = vld [vmem:[%s21828_s10 + $0x2e8] sm:$0xff]  }
 0xdb4   : > { %v18839_v26 = vld [vmem:[%s21828_s10 + $0x2a8] sm:$0xff]  }
 0xdb5   : > { %16553 = vmatpush3.bf16.msra.mxu0 %v18785_v12  ;;  %v18840_v12 = vld [vmem:[%s21828_s10 + $0x2f0] sm:$0xff]  }
 0xdb6   : > { %16554 = vmatprep.subr.bf16.mxu0 %v18786_v49  ;;  %v18841_v49 = vld [vmem:[%s21828_s10 + $0x2b0] sm:$0xff]  }
 0xdb9   : > { %16555 = vmatpush3.bf16.msra.mxu0 %v18787_v24  ;;  %v18842_v24 = vld [vmem:[%s21828_s10 + $0x2f8] sm:$0xff]  }
 0xdba   : > { %16556 = vmatprep.subr.bf16.mxu0 %v18788_v1  ;;  %v18843_v1 = vld [vmem:[%s21828_s10 + $0x2b8] sm:$0xff]  }
 0xdbd   : > { %16557 = vmatpush3.bf16.msra.mxu0 %v18789_v56  ;;  %v18844_v56 = vld [vmem:[%s21828_s10 + $0x340] sm:$0xff]  }
 0xdbe   : > { %16558 = vmatprep.subr.bf16.mxu0 %v18790_v7  ;;  %v18845_v7 = vld [vmem:[%s21828_s10 + $0x300] sm:$0xff]  }
 0xdc1   : > { %16559 = vmatpush3.bf16.msra.mxu0 %v18791_v43  ;;  %v13582_v43 = vpack.c.b16 %v21465_v16, %v21465_v16  ;;  %v18848_v16 = vld [vmem:[%s21828_s10 + $0x350] sm:$0xff]  }
 0xdc2   : > { %16560 = vmatprep.subr.bf16.mxu0 %v18792_v2  ;;  %v18846_v2 = vld [vmem:[%s21828_s10 + $0x348] sm:$0xff]  }
 0xdc5   : > { %16561 = vmatpush3.bf16.msra.mxu0 %v18793_v25  ;;  %v13787_v25 = vpack.c.b16 %v21512_v52, %v21512_v52  ;;  %v18850_v52 = vld [vmem:[%s21828_s10 + $0x358] sm:$0xff]  }
 0xdc6   : > { %16562 = vmatprep.subr.bf16.mxu0 %v18794_v15  ;;  %v18847_v15 = vld [vmem:[%s21828_s10 + $0x308] sm:$0xff]  }
 0xdc9   : > { %16563 = vmatpush3.bf16.msra.mxu0 %v18795_v31  ;;  %v18849_v31 = vld [vmem:[%s21828_s10 + $0x310] sm:$0xff]  }
 0xdca   : > { %16570 = vmatprep.subr.bf16.mxu0 %v18796_v36  ;;  %v18851_v36 = vld [vmem:[%s21828_s10 + $0x318] sm:$0xff]  }
 0xdcc   : > { %13103 = vmatmul.mubr.bf16.vlgmr.msra.gmra.mrb[72].mxu0 %v12970_v27  ;;  %v18853_v27 = vld [vmem:[%s21828_s10 + $0x320] sm:$0xff]  }
 0xdcd   : > { %16571 = vmatpush3.bf16.msra.mxu0 %v18797_v46  ;;  %13306 = vmatprep.mubr.bf16.mxu0 %v13175_v61  ;;  %v18852_v46 = vld [vmem:[%s21828_s10 + $0x360] sm:$0xff]   ;;  %v18855_v61 = vld [vmem:[%s21828_s10 + $0x328] sm:$0xff]  }
 0xdce   : > { %16572 = vmatprep.subr.bf16.mxu0 %v18798_v40  ;;  %v18854_v40 = vld [vmem:[%s21828_s10 + $0x368] sm:$0xff]  }
 0xdd1   : > { %16573 = vmatpush3.bf16.msra.mxu0 %v18799_v57  ;;  %v18856_v57 = vld [vmem:[%s21828_s10 + $0x370] sm:$0xff]  }
 0xdd2   : > { %16574 = vmatprep.subr.bf16.mxu0 %v18800_v21  ;;  %v18857_v21 = vld [vmem:[%s21828_s10 + $0x330] sm:$0xff]  }
 0xdd5   : > { %16575 = vmatpush3.bf16.msra.mxu0 %v18801_v22  ;;  %v18858_v22 = vld [vmem:[%s21828_s10 + $0x378] sm:$0xff]  }
 0xdd6   : > { %16576 = vmatprep.subr.bf16.mxu0 %v18802_v37  ;;  %v18859_v37 = vld [vmem:[%s21828_s10 + $0x338] sm:$0xff]  }
 0xdd9   : > { %16577 = vmatpush3.bf16.msra.mxu0 %v18803_v23  ;;  %v13786_v23 = vpack.c.b16 %v21505_v29, %v21505_v29 }
 0xdda   : > { %16578 = vmatprep.subr.bf16.mxu0 %v18804_v39 }
 0xddd   : > { %16579 = vmatpush3.bf16.msra.mxu0 %v18805_v47 }
 0xdde   : > { %16580 = vmatprep.subr.bf16.mxu0 %v18806_v20 }
 0xde1   : > { %16581 = vmatpush3.bf16.msra.mxu0 %v18807_v51 }
 0xde2   : > { %16582 = vmatprep.subr.bf16.mxu0 %v18808_v14 }
 0xde5   : > { %16583 = vmatpush3.bf16.msra.mxu0 %v18809_v45 }
 0xde6   : > { %16584 = vmatprep.subr.bf16.mxu0 %v18810_v41 }
 0xde9   : > { %16585 = vmatpush3.bf16.msra.mxu0 %v18811_v32 }
 0xdea   : > { %16592 = vmatprep.subr.bf16.mxu0 %v18812_v9 }
 0xdec   : > { %13307 = vmatmul.mubr.bf16.vlgmr.msra.gmra.mrb[76].mxu0 %v13174_v63 }
 0xded   : > { %16593 = vmatpush3.bf16.msra.mxu0 %v18813_v54  ;;  %13510 = vmatprep.mubr.bf16.mxu0 %v13379_v50 }
 0xdee   : > { %16594 = vmatprep.subr.bf16.mxu0 %v18814_v42 }
 0xdf1   : > { %16595 = vmatpush3.bf16.msra.mxu0 %v18815_v19 }
 0xdf2   : > { %16596 = vmatprep.subr.bf16.mxu0 %v18816_v53 }
 0xdf5   : > { %16597 = vmatpush3.bf16.msra.mxu0 %v18817_v34 }
 0xdf6   : > { %16598 = vmatprep.subr.bf16.mxu0 %v18818_v4 }
 0xdf9   : > { %16599 = vmatpush3.bf16.msra.mxu0 %v18819_v62 }
 0xdfa   : > { %16600 = vmatprep.subr.bf16.mxu0 %v18820_v10 }
 0xdfd   : > { %16601 = vmatpush3.bf16.msra.mxu0 %v18821_v48 }
 0xdfe   : > { %16602 = vmatprep.subr.bf16.mxu0 %v18822_v33 }
 0xe01   : > { %16603 = vmatpush3.bf16.msra.mxu0 %v18823_v38 }
 0xe02   : > { %16604 = vmatprep.subr.bf16.mxu0 %v18824_v0 }
 0xe05   : > { %16605 = vmatpush3.bf16.msra.mxu0 %v18825_v35 }
 0xe06   : > { %16606 = vmatprep.subr.bf16.mxu0 %v18826_v6 }
 0xe09   : > { %16607 = vmatpush3.bf16.msra.mxu0 %v18827_v59 }
 0xe0a   : > { %16614 = vmatprep.subr.bf16.mxu0 %v18828_v3 }
 0xe0c   : > { %13511 = vmatmul.mubr.bf16.vlgmr.msra.gmra.mrb[80].mxu0 %v13378_v18 }
 0xe0d   : > { %16615 = vmatpush3.bf16.msra.mxu0 %v18829_v13  ;;  %13714 = vmatprep.mubr.bf16.mxu0 %v13583_v8 }
 0xe0e   : > { %16616 = vmatprep.subr.bf16.mxu0 %v18830_v17 }
 0xe11   : > { %16617 = vmatpush3.bf16.msra.mxu0 %v18831_v28 }
 0xe12   : > { %16618 = vmatprep.subr.bf16.mxu0 %v18832_v60 }
 0xe15   : > { %16619 = vmatpush3.bf16.msra.mxu0 %v18833_v58 }
 0xe16   : > { %16620 = vmatprep.subr.bf16.mxu0 %v18834_v30 }
 0xe19   : > { %16621 = vmatpush3.bf16.msra.mxu0 %v18835_v11 }
 0xe1a   : > { %16622 = vmatprep.subr.bf16.mxu0 %v18836_v55 }
 0xe1d   : > { %16623 = vmatpush3.bf16.msra.mxu0 %v18837_v44 }
 0xe1e   : > { %16624 = vmatprep.subr.bf16.mxu0 %v18838_v5 }
 0xe21   : > { %16625 = vmatpush3.bf16.msra.mxu0 %v18839_v26 }
 0xe22   : > { %16626 = vmatprep.subr.bf16.mxu0 %v18840_v12 }
 0xe25   : > { %16627 = vmatpush3.bf16.msra.mxu0 %v18841_v49 }
 0xe26   : > { %16628 = vmatprep.subr.bf16.mxu0 %v18842_v24 }
 0xe29   : > { %16629 = vmatpush3.bf16.msra.mxu0 %v18843_v1 }
 0xe2a   : > { %16636 = vmatprep.subr.bf16.mxu0 %v18844_v56 }
 0xe2c   : > { %13715 = vmatmul.mubr.bf16.vlgmr.msra.gmra.mrb[84].mxu0 %v13582_v43 }
 0xe2d   : > { %16637 = vmatpush3.bf16.msra.mxu0 %v18845_v7  ;;  %13918 = vmatprep.mubr.bf16.mxu0 %v13787_v25  ;;  %v15568_v7 = vld [vmem:[%s21868_s23] ss:$0 sm:$0xff] }
 0xe2e   : > { %16638 = vmatprep.subr.bf16.mxu0 %v18846_v2 }
 0xe31   : > { %16639 = vmatpush3.bf16.msra.mxu0 %v18847_v15 }
 0xe32   : > { %16640 = vmatprep.subr.bf16.mxu0 %v18848_v16 }
 0xe35   : > { %16641 = vmatpush3.bf16.msra.mxu0 %v18849_v31 }
 0xe36   : > { %16642 = vmatprep.subr.bf16.mxu0 %v18850_v52 }
 0xe39   : > { %16643 = vmatpush3.bf16.msra.mxu0 %v18851_v36 }
 0xe3a   : > { %16644 = vmatprep.subr.bf16.mxu0 %v18852_v46 }
 0xe3d   : > { %16645 = vmatpush3.bf16.msra.mxu0 %v18853_v27 }
 0xe3e   : > { %16646 = vmatprep.subr.bf16.mxu0 %v18854_v40 }
 0xe41   : > { %16647 = vmatpush3.bf16.msra.mxu0 %v18855_v61 }
 0xe42   : > { %16648 = vmatprep.subr.bf16.mxu0 %v18856_v57 }
 0xe45   : > { %16649 = vmatpush3.bf16.msra.mxu0 %v18857_v21 }
 0xe46   : > { %16650 = vmatprep.subr.bf16.mxu0 %v18858_v22 }
 0xe49   : > { %16651 = vmatpush3.bf16.msra.mxu0 %v18859_v37 }
 0xe4c   : > { %13919 = vmatmul.mubr.bf16.vlgmr.msra.gmra.mrb[88].mxu0 %v13786_v23 }
 0xe5f   : > { %v16520_v39 = vpop.f32.mrb[64].mxu0 }
 0xe60   : > { %v16521_v47 = vpop.f32.mrb[65].mxu0 }
 0xe61   : > { %v16522_v20 = vadd.f32 %v16521_v47, %v16520_v39  ;;  %v16523_v51 = vpop.f32.mrb[66].mxu0 }
 0xe62   : > { %v16524_v14 = vpop.f32.mrb[67].mxu0 }
 0xe6c   : > { %v16674_v45 = vpop.f32.mrb[160].mxu1 }
 0xe6d   : > { %v16675_v41 = vpop.f32.mrb[161].mxu1 }
 0xe6e   : > { %v16676_v32 = vadd.f32 %v16675_v41, %v16674_v45  ;;  %v16677_v9 = vpop.f32.mrb[162].mxu1 }
 0xe6f   : > { %v16678_v54 = vpop.f32.mrb[163].mxu1 }
 0xe7f   : > { %v16542_v63 = vpop.f32.mrb[68].mxu0 }
 0xe80   : > { %v16543_v42 = vpop.f32.mrb[69].mxu0 }
 0xe81   : > { %v16544_v50 = vadd.f32 %v16543_v42, %v16542_v63  ;;  %v16545_v19 = vpop.f32.mrb[70].mxu0 }
 0xe82   : > { %v16546_v53 = vpop.f32.mrb[71].mxu0 }
 0xe83   : > { %v12906_v34 = vadd.f32 %v16544_v50, %v16522_v20 }
 0xe9f   : > { %v16564_v4 = vpop.f32.mrb[72].mxu0 }
 0xea0   : > { %v16565_v62 = vpop.f32.mrb[73].mxu0 }
 0xea1   : > { %v16566_v29 = vadd.f32 %v16565_v62, %v16564_v4  ;;  %v16567_v10 = vpop.f32.mrb[74].mxu0 }
 0xea2   : > { %v16568_v48 = vpop.f32.mrb[75].mxu0 }
 0xea3   : > { %v13110_v33 = vadd.f32 %v16566_v29, %v12906_v34 }
 0xebf   : > { %v16586_v38 = vpop.f32.mrb[76].mxu0 }
 0xec0   : > { %v16587_v0 = vpop.f32.mrb[77].mxu0 }
 0xec1   : > { %v16588_v35 = vadd.f32 %v16587_v0, %v16586_v38  ;;  %v16589_v6 = vpop.f32.mrb[78].mxu0 }
 0xec2   : > { %v16590_v59 = vpop.f32.mrb[79].mxu0 }
 0xec3   : > { %v13314_v3 = vadd.f32 %v16588_v35, %v13110_v33 }
 0xedf   : > { %v16608_v13 = vpop.f32.mrb[80].mxu0 }
 0xee0   : > { %v16609_v18 = vpop.f32.mrb[81].mxu0 }
 0xee1   : > { %v16610_v17 = vadd.f32 %v16609_v18, %v16608_v13  ;;  %v16611_v8 = vpop.f32.mrb[82].mxu0 }
 0xee2   : > { %v16612_v28 = vpop.f32.mrb[83].mxu0 }
 0xee3   : > { %v13518_v60 = vadd.f32 %v16610_v17, %v13314_v3 }
 0xeff   : > { %v16630_v58 = vpop.f32.mrb[84].mxu0 }
 0xf00   : > { %v16631_v30 = vpop.f32.mrb[85].mxu0 }
 0xf01   : > { %v16632_v11 = vadd.f32 %v16631_v30, %v16630_v58  ;;  %v16633_v55 = vpop.f32.mrb[86].mxu0 }
 0xf02   : > { %v16634_v44 = vpop.f32.mrb[87].mxu0 }
 0xf03   : > { %v13722_v5 = vadd.f32 %v16632_v11, %v13518_v60 }
 0xf1f   : > { %v16652_v26 = vpop.f32.mrb[88].mxu0 }
 0xf20   : > { %v16653_v12 = vpop.f32.mrb[89].mxu0 }
 0xf21   : > { %v16654_v49 = vadd.f32 %v16653_v12, %v16652_v26  ;;  %v16655_v24 = vpop.f32.mrb[90].mxu0 }
 0xf22   : > { %v16656_v1 = vpop.f32.mrb[91].mxu0 }
 0xf23   : > { %v13926_v56 = vadd.f32 %v16654_v49, %v13722_v5 }
 0xf25   : > { %v14130_v43 = vadd.f32 %v16676_v32, %v13926_v56 }
 0xf27   : > { %v14143_v2 = vadd.f32 %v15568_v7, %v14130_v43 }
 0xf29   : > { %14144 = vst [vmem:[%s498_s26] sm:$0xff] %v14143_v2 }
 0xf2a   : > { %18985 = shalt.err (!%p18982_p6)
}
 0xf2b   : > { %s18986_s20 = scalar_lea.hbm %s21771_s30, 128  ;;  %s18990_s17 = scalar_lea.hbm %s21869_s16, 512 }
 0xf2c   : > { %p18987_p7 = scmp.ne.s32.totalorder %s21771_s30, %s18986_s20  ;;  %p18991_p4 = scmp.lt.u32.totalorder %s21771_s30, %s21869_s16 }
 0xf2d   : > { %p18992_p8 = scmp.lt.u32.totalorder %s18990_s17, %s18986_s20  ;;  %p18994_p1 = scmp.lt.u32.totalorder %s18986_s20, %s21771_s30 }
 0xf2e   : > { %p18988_p9 = pnand %p18987_p7, %p21870_p10 }
 0xf2f   : > { %p18993_p13 = por %p18992_p8, %p18991_p4 }
 0xf30   : > { %p18989_p12 = pneg %p18988_p9 }
 0xf31   : > { %p18995_p11 = por %p18994_p1, %p18993_p13 }
 0xf33   : > { %p18996_p0 = pnand %p18995_p11, %p18989_p12 }
 0xf35   : > { %18999 = shalt.err (!%p18996_p0)
}
 0xf36   : > { %18108 = dma.vmem_to_hbm [thread:$0]  (%p21870_p10), %s21773_s11, 128, %s21771_s30, %s14146_s27  }
 0xf37 PF: > { %s21871_s23 = sld [smem:[#allocation24_spill]]  ;;  %s21872_s29 = sld [smem:[#allocation21_spill]] }
 0xf38   : > { %s21873_s26 = sld [smem:[#allocation26_spill]] }
 0xf3d   : > { %p18135_p2 = scmp.ge.s32.totalorder %s21871_s23, 2  ;;  %s14171_s18 = sand.u32 1, %s21872_s29  }
 0xf3e   : > { %p21874_p3 = scmp.ne.s32.totalorder %s21873_s26, 0  ;;  %s14172_s15 = scalar_lea.sflag [#allocation10], %s14171_s18 }
 0xf40   : > { %p18124_p5 = pnand %p18135_p2, %p21874_p3 }
 0xf42   : > { %19037 = dma.done.wait (!%p18124_p5), %s14172_s15, 128  }
 0xf43   : > { %19039 = vsyncadd (!%p18124_p5), %s14172_s15, 4294967168  ;;  %s28_s26 = sadd.s32 1, %s21871_s23   ;;  %s21875_s25 = sld [smem:[#allocation22_spill]] }
 0xf44   : > { %p25_p6 = scmp.ge.s32.totalorder %s28_s26, 6   ;;  %s21876_s23 = sld [smem:[#allocation27_spill]] }
 0xf45   : > { %s21877_s24 = sld [smem:[#allocation23_spill]]  ;;  %s21878_s13 = sld [smem:[#allocation25_spill]] }
 0xf46   : > { %s21879_s21 = smov %s19046_s22  ;;  %27 = sbr.rel (!%p25_p6) target bundleno = 11 (0xb), region = 161 }
 0xf49   : > { %s21880_s22 = smov %s21875_s25 }
 0xf4b   : > { %s21881_s25 = smov %s21878_s13 }
 0xf4d   :  { %14177 = vsyncpa [#allocation9], 1 }
 0xf4e   :  { %14179 = vsyncpa [#allocation9 + $0x1], 1 }
 0xf4f   :  { %14180 = vsyncpa [#allocation12], 1 }
 0xf50   :  { %14181 = vsyncpa [#allocation15], 1 }
 0xf51   :  { %14182 = vsyncpa [#allocation10], 1 }
 0xf52   :  { %14184 = vsyncpa [#allocation10 + $0x1], 1 }

</bundles_post_ra>
